<compile_context>
chip_gen: v6e
topology: v6e:2x2x1
jax: 0.10.0
libtpu: 0.0.40
codegen_flags: <defaults>
</compile_context>

<pallas_src>
import functools

import jax
import jax.numpy as jnp
from jax import lax
from jax.experimental import pallas as pl
from jax.experimental.pallas import tpu as pltpu

LANE = 128                       # TPU lane width; conv out-channels padded to this
_KH = _KW = 5                    # conv kernel (5x5, stride 2, pad 2)
_VMEM_LIMIT = 32 * 1024 * 1024   # explicit scoped-VMEM cap (safe on v5e/v6e/v7x)


def _round_up(x, m):
    return (x + m - 1) // m * m


# ---------------------------------------------------------------------------
# Kernel 1: fused 5x5 / stride-2 conv + bias + ReLU via 25-tap accumulation.
# ---------------------------------------------------------------------------
def _conv5x5_kernel(ph_ref, w_ref, b_ref, o_ref, *, ph_len, ow):
    """One grid step = one (batch sample, output row).

    ph_ref : (1, 4*PH, PW, Ci)  phase-decomposed padded input (f32);
             phase p = (ky%2)*2 + (kx%2); row r of phase (py,px) holds padded
             input row 2*r+py at padded columns 2*c+px.  PH=OH+2, PW=OW+2.
    w_ref  : (25, Ci, 128)      per-tap weights, out-channels zero-padded to 128
    b_ref  : (1, 128)           bias (f32), zero-padded
    o_ref  : (1, 1, OW, 128)    one output row, NHWC, lane-dense (128 lanes)
    """
    oy = pl.program_id(1)
    mm_dtype = w_ref.dtype
    acc = jnp.zeros((ow, LANE), jnp.float32)
    for ky in range(_KH):
        for kx in range(_KW):
            p = (ky % 2) * 2 + (kx % 2)
            dy, dx = ky // 2, kx // 2
            row = ph_ref[0, p * ph_len + oy + dy]            # (PW, Ci)
            a = row[dx:dx + ow, :].astype(mm_dtype)          # (OW, Ci)
            acc = acc + jnp.dot(a, w_ref[ky * _KW + kx],
                                preferred_element_type=jnp.float32)
    out = jnp.maximum(acc + b_ref[...], 0.0)                 # f32 epilogue
    o_ref[0, 0, :, :] = out.astype(o_ref.dtype)


def conv5x5_s2_relu(x_nhwc, w_taps, b_pad):
    """(N,H,W,Ci) f32 -> (N, H//2, W//2, 128) f32 (out-channels zero-padded)."""
    n, h, w, ci = x_nhwc.shape
    oh, ow = h // 2, w // 2
    ph, pw = oh + 2, ow + 2
    # pad-2 + stride-2 phase split (space-to-depth): a ~1x-bytes XLA reorg.
    xp = jnp.pad(x_nhwc, ((0, 0), (2, 2), (2, 2), (0, 0)))
    phases = jnp.stack(
        [xp[:, py::2, px::2, :] for py in (0, 1) for px in (0, 1)],
        axis=1).reshape(n, 4 * ph, pw, ci)

    flops = 2 * n * oh * ow * _KH * _KW * ci * LANE
    bytes_accessed = (phases.size * 4 + w_taps.size * w_taps.dtype.itemsize
                      + b_pad.size * 4 + n * oh * ow * LANE * 4)
    # TODO(synk): for very large images, tile output rows in blocks and stream
    # phase rows so the per-sample phase block never approaches the VMEM limit.
    return pl.pallas_call(
        functools.partial(_conv5x5_kernel, ph_len=ph, ow=ow),
        out_shape=jax.ShapeDtypeStruct((n, oh, ow, LANE), jnp.float32),
        grid=(n, oh),
        in_specs=[
            pl.BlockSpec((1, 4 * ph, pw, ci), lambda i, r: (i, 0, 0, 0)),
            pl.BlockSpec((_KH * _KW, w_taps.shape[1], LANE),
                         lambda i, r: (0, 0, 0)),
            pl.BlockSpec((1, LANE), lambda i, r: (0, 0)),
        ],
        out_specs=pl.BlockSpec((1, 1, ow, LANE), lambda i, r: (i, r, 0, 0)),
        compiler_params=pltpu.CompilerParams(
            dimension_semantics=("parallel", "parallel"),
            vmem_limit_bytes=_VMEM_LIMIT),
        cost_estimate=pl.CostEstimate(flops=flops, transcendentals=0,
                                      bytes_accessed=bytes_accessed),
    )(phases, w_taps, b_pad)


# ---------------------------------------------------------------------------
# Kernel 2: tiled  out = act(A @ W + b)  with K-axis accumulation.
# ---------------------------------------------------------------------------
def _matmul_bias_act_kernel(a_ref, w_ref, b_ref, o_ref, acc_ref, *, activation):
    @pl.when(pl.program_id(2) == 0)
    def _init():
        acc_ref[...] = jnp.zeros_like(acc_ref)

    a = a_ref[...].astype(w_ref.dtype)          # cast MXU operand at boundary
    acc_ref[...] += jnp.dot(a, w_ref[...], preferred_element_type=jnp.float32)

    @pl.when(pl.program_id(2) == pl.num_programs(2) - 1)
    def _finalize():
        out = acc_ref[...] + b_ref[...]         # f32 epilogue
        if activation == "relu":
            out = jnp.maximum(out, 0.0)
        elif activation == "tanh":
            out = jnp.tanh(out)
        o_ref[...] = out.astype(o_ref.dtype)


def matmul_bias_act(a, w_pad, b_pad, n_valid, activation="none"):
    """act(a @ w + b).  a:(M,K) f32; w_pad:(K_pad,N_pad) pre-transposed, padded,
    in compute dtype; b_pad:(1,N_pad) f32.  Returns (M, n_valid) f32."""
    m, k = a.shape
    k_pad, n_pad = w_pad.shape
    assert k <= k_pad and n_valid <= n_pad
    tm = min(256, _round_up(m, 8))
    tn = 256 if n_pad % 256 == 0 else 128
    tk = 512 if k_pad % 512 == 0 else (256 if k_pad % 256 == 0 else 128)
    m_pad = _round_up(m, tm)
    if (m_pad, k_pad) != (m, k):
        a = jnp.pad(a, ((0, m_pad - m), (0, k_pad - k)))
    grid = (m_pad // tm, n_pad // tn, k_pad // tk)
    out = pl.pallas_call(
        functools.partial(_matmul_bias_act_kernel, activation=activation),
        out_shape=jax.ShapeDtypeStruct((m_pad, n_pad), jnp.float32),
        grid=grid,
        in_specs=[
            pl.BlockSpec((tm, tk), lambda i, j, kk: (i, kk)),
            pl.BlockSpec((tk, tn), lambda i, j, kk: (kk, j)),
            pl.BlockSpec((1, tn), lambda i, j, kk: (0, j)),
        ],
        out_specs=pl.BlockSpec((tm, tn), lambda i, j, kk: (i, j)),
        scratch_shapes=[pltpu.VMEM((tm, tn), jnp.float32)],
        compiler_params=pltpu.CompilerParams(
            dimension_semantics=("parallel", "parallel", "arbitrary"),
            vmem_limit_bytes=_VMEM_LIMIT),
        cost_estimate=pl.CostEstimate(
            flops=2 * m_pad * n_pad * k_pad,
            transcendentals=(m_pad * n_pad if activation == "tanh" else 0),
            bytes_accessed=(m_pad * k_pad * 4
                            + k_pad * n_pad * w_pad.dtype.itemsize
                            + n_pad * 4 + m_pad * n_pad * 4)),
    )(a, w_pad, b_pad)
    return out[:m, :n_valid]


# ---------------------------------------------------------------------------
# Weight preparation (done ONCE, outside the forward pass) + forward.
# ---------------------------------------------------------------------------
def _prep_conv_weights(w_oihw, b, ci_fed, compute_dtype):
    co, ci, kh, kw = w_oihw.shape
    wt = jnp.transpose(w_oihw, (2, 3, 1, 0)).reshape(kh * kw, ci, co)
    wt = jnp.pad(wt, ((0, 0), (0, ci_fed - ci), (0, LANE - co)))
    bt = jnp.pad(b, (0, LANE - co)).reshape(1, LANE)
    return wt.astype(compute_dtype), bt.astype(jnp.float32)


def make_image_encoder(params, if_tanh=False, compute_dtype=jnp.bfloat16):
    """Prepares (transposes / pads / casts) weights once; returns a jitted forward."""
    couts = [params[f"w{i}"].shape[0] for i in range(1, 5)]
    ci_fed = [params["w1"].shape[1], LANE, LANE, LANE]  # layers 2-4 see padded acts
    weights = {}
    for i in range(1, 5):
        wt, bt = _prep_conv_weights(params[f"w{i}"], params[f"b{i}"],
                                    ci_fed[i - 1], compute_dtype)
        weights[f"w{i}"], weights[f"b{i}"] = wt, bt
    n_out, fc_in = params["fc_w"].shape
    k_pad, n_pad = _round_up(fc_in, LANE), _round_up(n_out, LANE)
    weights["fc_w"] = jnp.pad(
        params["fc_w"].T, ((0, k_pad - fc_in), (0, n_pad - n_out))
    ).astype(compute_dtype)
    weights["fc_b"] = jnp.pad(
        params["fc_b"], (0, n_pad - n_out)).reshape(1, n_pad).astype(jnp.float32)

    def forward(x_nchw, wts):
        n = x_nchw.shape[0]
        h = jnp.transpose(x_nchw, (0, 2, 3, 1))   # NHWC internal layout
        hs = []
        for i in range(1, 5):
            h = conv5x5_s2_relu(h, wts[f"w{i}"], wts[f"b{i}"])  # (N,OH,OW,128)
            hs.append(h)
        # NCHW tensors with the true channel counts (module return contract).
        hs_nchw = [jnp.transpose(a[..., :c], (0, 3, 1, 2))
                   for a, c in zip(hs, couts)]
        flat = hs_nchw[-1].reshape(n, -1)         # == .contiguous().view(N, -1)
        fc = matmul_bias_act(flat, wts["fc_w"], wts["fc_b"], n_valid=n_out,
                             activation="tanh" if if_tanh else "none")
        return (fc, *hs_nchw)

    jit_fwd = jax.jit(forward)
    return lambda x: jit_fwd(x, weights)


# ---------------------------------------------------------------------------
# Pure-JAX reference + test-parameter construction
# ---------------------------------------------------------------------------
def image_encoder_reference(x, params, if_tanh=False):
    def conv(h, w, b):
        y = lax.conv_general_dilated(
            h, w, window_strides=(2, 2), padding=[(2, 2), (2, 2)],
            dimension_numbers=("NCHW", "OIHW", "NCHW"))
        return jnp.maximum(y + b[None, :, None, None], 0.0)

    h1 = conv(x, params["w1"], params["b1"])
    h2 = conv(h1, params["w2"], params["b2"])
    h3 = conv(h2, params["w3"], params["b3"])
    h4 = conv(h3, params["w4"], params["b4"])
    flat = h4.reshape(h4.shape[0], -1)
    fc = flat @ params["fc_w"].T + params["fc_b"]
    if if_tanh:
        fc = jnp.tanh(fc)
    return fc, h1, h2, h3, h4


def make_params(key, size_image, num_output_length):
    size_mini_map = int(size_image / 2 ** 4)
    fc_in = size_mini_map * size_mini_map * 128
    ks = jax.random.split(key, 10)

    def w(k, shape, fan_in):
        return jax.random.normal(k, shape, jnp.float32) * (1.0 / jnp.sqrt(fan_in))

    return {
        "w1": w(ks[0], (16, 3, 5, 5), 3 * 25),    "b1": w(ks[1], (16,), 3 * 25),
        "w2": w(ks[2], (32, 16, 5, 5), 16 * 25),  "b2": w(ks[3], (32,), 16 * 25),
        "w3": w(ks[4], (64, 32, 5, 5), 32 * 25),  "b3": w(ks[5], (64,), 32 * 25),
        "w4": w(ks[6], (128, 64, 5, 5), 64 * 25), "b4": w(ks[7], (128,), 64 * 25),
        "fc_w": w(ks[8], (num_output_length, fc_in), fc_in),
        "fc_b": w(ks[9], (num_output_length,), fc_in),
    }


if __name__ == "__main__":
    key = jax.random.PRNGKey(0)
    k_x, k_p = jax.random.split(key)

    batch, size_image, num_output_length = 2, 16, 32
    x = jax.random.normal(k_x, (batch, 3, size_image, size_image), jnp.float32)
    params = make_params(k_p, size_image, num_output_length)

    # 1) f32 compute path: tight validation of the kernel algorithm.
    enc_f32 = make_image_encoder(params, if_tanh=False, compute_dtype=jnp.float32)
    outs = jax.block_until_ready(enc_f32(x))
    refs = image_encoder_reference(x, params, if_tanh=False)
    for o, r in zip(outs, refs):
        assert o.shape == r.shape, (o.shape, r.shape)
        assert jnp.allclose(o, r, atol=1e-4, rtol=1e-4), float(jnp.max(jnp.abs(o - r)))

    # 2) bf16-operand path (perf path; also exercises the tanh epilogue).
    enc_bf16 = make_image_encoder(params, if_tanh=True, compute_dtype=jnp.bfloat16)
    outs16 = jax.block_until_ready(enc_bf16(x))
    refs16 = image_encoder_reference(x, params, if_tanh=True)
    for o, r in zip(outs16, refs16):
        assert o.shape == r.shape, (o.shape, r.shape)
        assert jnp.allclose(o, r, atol=1e-1, rtol=5e-2), float(jnp.max(jnp.abs(o - r)))

    print("KERNEL_OK")
</pallas_src>

<mosaic_0001>
module attributes {stable_mosaic.version = 11 : i64} {
  func.func @_conv5x5_kernel(%arg0: i32, %arg1: i32, %arg2: memref<1x40x10x3xf32, #tpu.memory_space<vmem>>, %arg3: memref<25x3x128xf32, #tpu.memory_space<vmem>>, %arg4: memref<1x128xf32, #tpu.memory_space<vmem>>, %arg5: memref<1x1x8x128xf32, #tpu.memory_space<vmem>>) attributes {dimension_semantics = [#tpu.dimension_semantics<parallel>, #tpu.dimension_semantics<parallel>], iteration_bounds = array<i64: 2, 8>, scalar_prefetch = 0 : i64, scratch_operands = 0 : i64, tpu.core_type = #tpu.core_type<tc>, window_params = [{transform_indices = @transform_0, window_bounds = array<i64: 1, 40, 10, 3>}, {pipeline_mode = #tpu.pipeline_mode<synchronous>, transform_indices = @transform_1, window_bounds = array<i64: 25, 3, 128>}, {pipeline_mode = #tpu.pipeline_mode<synchronous>, transform_indices = @transform_2, window_bounds = array<i64: 1, 128>}, {transform_indices = @transform_3, window_bounds = array<i64: 1, 1, 8, 128>}]} {
    %cst = arith.constant 0.000000e+00 : f32
    %0 = vector.broadcast %cst : f32 to vector<8x128xf32>
    %c0_i32 = arith.constant 0 : i32
    %1 = arith.addi %c0_i32, %arg1 : i32
    %c0_i32_0 = arith.constant 0 : i32
    %2 = arith.addi %1, %c0_i32_0 : i32
    %c0 = arith.constant 0 : index
    %3 = arith.index_cast %2 : i32 to index
    %c0_1 = arith.constant 0 : index
    %c0_2 = arith.constant 0 : index
    %4 = vector.load %arg2[%c0, %3, %c0_1, %c0_2] : memref<1x40x10x3xf32, #tpu.memory_space<vmem>>, vector<1x1x10x3xf32>
    %5 = vector.shape_cast %4 : vector<1x1x10x3xf32> to vector<10x3xf32>
    %6 = vector.extract_strided_slice %5 {offsets = [0, 0], sizes = [8, 3], strides = [1, 1]} : vector<10x3xf32> to vector<8x3xf32>
    %c0_3 = arith.constant 0 : index
    %c0_4 = arith.constant 0 : index
    %c0_5 = arith.constant 0 : index
    %7 = vector.load %arg3[%c0_3, %c0_4, %c0_5] : memref<25x3x128xf32, #tpu.memory_space<vmem>>, vector<1x3x128xf32>
    %8 = vector.shape_cast %7 : vector<1x3x128xf32> to vector<3x128xf32>
    %cst_6 = arith.constant dense<0.000000e+00> : vector<8x128xf32>
    %9 = tpu.matmul %6, %8, %cst_6 {dimension_numbers = #tpu.dot_dimension_numbers<[1], [0], [0], [1], [0, 0, 1, 1], [], []>} : vector<8x3xf32>, vector<3x128xf32>, vector<8x128xf32> -> vector<8x128xf32>
    %10 = arith.addf %0, %9 : vector<8x128xf32>
    %c10_i32 = arith.constant 10 : i32
    %11 = arith.addi %c10_i32, %arg1 : i32
    %c0_i32_7 = arith.constant 0 : i32
    %12 = arith.addi %11, %c0_i32_7 : i32
    %c0_8 = arith.constant 0 : index
    %13 = arith.index_cast %12 : i32 to index
    %c0_9 = arith.constant 0 : index
    %c0_10 = arith.constant 0 : index
    %14 = vector.load %arg2[%c0_8, %13, %c0_9, %c0_10] : memref<1x40x10x3xf32, #tpu.memory_space<vmem>>, vector<1x1x10x3xf32>
    %15 = vector.shape_cast %14 : vector<1x1x10x3xf32> to vector<10x3xf32>
    %16 = vector.extract_strided_slice %15 {offsets = [0, 0], sizes = [8, 3], strides = [1, 1]} : vector<10x3xf32> to vector<8x3xf32>
    %c1 = arith.constant 1 : index
    %c0_11 = arith.constant 0 : index
    %c0_12 = arith.constant 0 : index
    %17 = vector.load %arg3[%c1, %c0_11, %c0_12] : memref<25x3x128xf32, #tpu.memory_space<vmem>>, vector<1x3x128xf32>
    %18 = vector.shape_cast %17 : vector<1x3x128xf32> to vector<3x128xf32>
    %cst_13 = arith.constant dense<0.000000e+00> : vector<8x128xf32>
    %19 = tpu.matmul %16, %18, %cst_13 {dimension_numbers = #tpu.dot_dimension_numbers<[1], [0], [0], [1], [0, 0, 1, 1], [], []>} : vector<8x3xf32>, vector<3x128xf32>, vector<8x128xf32> -> vector<8x128xf32>
    %20 = arith.addf %10, %19 : vector<8x128xf32>
    %c0_i32_14 = arith.constant 0 : i32
    %21 = arith.addi %c0_i32_14, %arg1 : i32
    %c0_i32_15 = arith.constant 0 : i32
    %22 = arith.addi %21, %c0_i32_15 : i32
    %c0_16 = arith.constant 0 : index
    %23 = arith.index_cast %22 : i32 to index
    %c0_17 = arith.constant 0 : index
    %c0_18 = arith.constant 0 : index
    %24 = vector.load %arg2[%c0_16, %23, %c0_17, %c0_18] : memref<1x40x10x3xf32, #tpu.memory_space<vmem>>, vector<1x1x10x3xf32>
    %25 = vector.shape_cast %24 : vector<1x1x10x3xf32> to vector<10x3xf32>
    %26 = vector.extract_strided_slice %25 {offsets = [1, 0], sizes = [8, 3], strides = [1, 1]} : vector<10x3xf32> to vector<8x3xf32>
    %c2 = arith.constant 2 : index
    %c0_19 = arith.constant 0 : index
    %c0_20 = arith.constant 0 : index
    %27 = vector.load %arg3[%c2, %c0_19, %c0_20] : memref<25x3x128xf32, #tpu.memory_space<vmem>>, vector<1x3x128xf32>
    %28 = vector.shape_cast %27 : vector<1x3x128xf32> to vector<3x128xf32>
    %cst_21 = arith.constant dense<0.000000e+00> : vector<8x128xf32>
    %29 = tpu.matmul %26, %28, %cst_21 {dimension_numbers = #tpu.dot_dimension_numbers<[1], [0], [0], [1], [0, 0, 1, 1], [], []>} : vector<8x3xf32>, vector<3x128xf32>, vector<8x128xf32> -> vector<8x128xf32>
    %30 = arith.addf %20, %29 : vector<8x128xf32>
    %c10_i32_22 = arith.constant 10 : i32
    %31 = arith.addi %c10_i32_22, %arg1 : i32
    %c0_i32_23 = arith.constant 0 : i32
    %32 = arith.addi %31, %c0_i32_23 : i32
    %c0_24 = arith.constant 0 : index
    %33 = arith.index_cast %32 : i32 to index
    %c0_25 = arith.constant 0 : index
    %c0_26 = arith.constant 0 : index
    %34 = vector.load %arg2[%c0_24, %33, %c0_25, %c0_26] : memref<1x40x10x3xf32, #tpu.memory_space<vmem>>, vector<1x1x10x3xf32>
    %35 = vector.shape_cast %34 : vector<1x1x10x3xf32> to vector<10x3xf32>
    %36 = vector.extract_strided_slice %35 {offsets = [1, 0], sizes = [8, 3], strides = [1, 1]} : vector<10x3xf32> to vector<8x3xf32>
    %c3 = arith.constant 3 : index
    %c0_27 = arith.constant 0 : index
    %c0_28 = arith.constant 0 : index
    %37 = vector.load %arg3[%c3, %c0_27, %c0_28] : memref<25x3x128xf32, #tpu.memory_space<vmem>>, vector<1x3x128xf32>
    %38 = vector.shape_cast %37 : vector<1x3x128xf32> to vector<3x128xf32>
    %cst_29 = arith.constant dense<0.000000e+00> : vector<8x128xf32>
    %39 = tpu.matmul %36, %38, %cst_29 {dimension_numbers = #tpu.dot_dimension_numbers<[1], [0], [0], [1], [0, 0, 1, 1], [], []>} : vector<8x3xf32>, vector<3x128xf32>, vector<8x128xf32> -> vector<8x128xf32>
    %40 = arith.addf %30, %39 : vector<8x128xf32>
    %c0_i32_30 = arith.constant 0 : i32
    %41 = arith.addi %c0_i32_30, %arg1 : i32
    %c0_i32_31 = arith.constant 0 : i32
    %42 = arith.addi %41, %c0_i32_31 : i32
    %c0_32 = arith.constant 0 : index
    %43 = arith.index_cast %42 : i32 to index
    %c0_33 = arith.constant 0 : index
    %c0_34 = arith.constant 0 : index
    %44 = vector.load %arg2[%c0_32, %43, %c0_33, %c0_34] : memref<1x40x10x3xf32, #tpu.memory_space<vmem>>, vector<1x1x10x3xf32>
    %45 = vector.shape_cast %44 : vector<1x1x10x3xf32> to vector<10x3xf32>
    %46 = vector.extract_strided_slice %45 {offsets = [2, 0], sizes = [8, 3], strides = [1, 1]} : vector<10x3xf32> to vector<8x3xf32>
    %c4 = arith.constant 4 : index
    %c0_35 = arith.constant 0 : index
    %c0_36 = arith.constant 0 : index
    %47 = vector.load %arg3[%c4, %c0_35, %c0_36] : memref<25x3x128xf32, #tpu.memory_space<vmem>>, vector<1x3x128xf32>
    %48 = vector.shape_cast %47 : vector<1x3x128xf32> to vector<3x128xf32>
    %cst_37 = arith.constant dense<0.000000e+00> : vector<8x128xf32>
    %49 = tpu.matmul %46, %48, %cst_37 {dimension_numbers = #tpu.dot_dimension_numbers<[1], [0], [0], [1], [0, 0, 1, 1], [], []>} : vector<8x3xf32>, vector<3x128xf32>, vector<8x128xf32> -> vector<8x128xf32>
    %50 = arith.addf %40, %49 : vector<8x128xf32>
    %c20_i32 = arith.constant 20 : i32
    %51 = arith.addi %c20_i32, %arg1 : i32
    %c0_i32_38 = arith.constant 0 : i32
    %52 = arith.addi %51, %c0_i32_38 : i32
    %c0_39 = arith.constant 0 : index
    %53 = arith.index_cast %52 : i32 to index
    %c0_40 = arith.constant 0 : index
    %c0_41 = arith.constant 0 : index
    %54 = vector.load %arg2[%c0_39, %53, %c0_40, %c0_41] : memref<1x40x10x3xf32, #tpu.memory_space<vmem>>, vector<1x1x10x3xf32>
    %55 = vector.shape_cast %54 : vector<1x1x10x3xf32> to vector<10x3xf32>
    %56 = vector.extract_strided_slice %55 {offsets = [0, 0], sizes = [8, 3], strides = [1, 1]} : vector<10x3xf32> to vector<8x3xf32>
    %c5 = arith.constant 5 : index
    %c0_42 = arith.constant 0 : index
    %c0_43 = arith.constant 0 : index
    %57 = vector.load %arg3[%c5, %c0_42, %c0_43] : memref<25x3x128xf32, #tpu.memory_space<vmem>>, vector<1x3x128xf32>
    %58 = vector.shape_cast %57 : vector<1x3x128xf32> to vector<3x128xf32>
    %cst_44 = arith.constant dense<0.000000e+00> : vector<8x128xf32>
    %59 = tpu.matmul %56, %58, %cst_44 {dimension_numbers = #tpu.dot_dimension_numbers<[1], [0], [0], [1], [0, 0, 1, 1], [], []>} : vector<8x3xf32>, vector<3x128xf32>, vector<8x128xf32> -> vector<8x128xf32>
    %60 = arith.addf %50, %59 : vector<8x128xf32>
    %c30_i32 = arith.constant 30 : i32
    %61 = arith.addi %c30_i32, %arg1 : i32
    %c0_i32_45 = arith.constant 0 : i32
    %62 = arith.addi %61, %c0_i32_45 : i32
    %c0_46 = arith.constant 0 : index
    %63 = arith.index_cast %62 : i32 to index
    %c0_47 = arith.constant 0 : index
    %c0_48 = arith.constant 0 : index
    %64 = vector.load %arg2[%c0_46, %63, %c0_47, %c0_48] : memref<1x40x10x3xf32, #tpu.memory_space<vmem>>, vector<1x1x10x3xf32>
    %65 = vector.shape_cast %64 : vector<1x1x10x3xf32> to vector<10x3xf32>
    %66 = vector.extract_strided_slice %65 {offsets = [0, 0], sizes = [8, 3], strides = [1, 1]} : vector<10x3xf32> to vector<8x3xf32>
    %c6 = arith.constant 6 : index
    %c0_49 = arith.constant 0 : index
    %c0_50 = arith.constant 0 : index
    %67 = vector.load %arg3[%c6, %c0_49, %c0_50] : memref<25x3x128xf32, #tpu.memory_space<vmem>>, vector<1x3x128xf32>
    %68 = vector.shape_cast %67 : vector<1x3x128xf32> to vector<3x128xf32>
    %cst_51 = arith.constant dense<0.000000e+00> : vector<8x128xf32>
    %69 = tpu.matmul %66, %68, %cst_51 {dimension_numbers = #tpu.dot_dimension_numbers<[1], [0], [0], [1], [0, 0, 1, 1], [], []>} : vector<8x3xf32>, vector<3x128xf32>, vector<8x128xf32> -> vector<8x128xf32>
    %70 = arith.addf %60, %69 : vector<8x128xf32>
    %c20_i32_52 = arith.constant 20 : i32
    %71 = arith.addi %c20_i32_52, %arg1 : i32
    %c0_i32_53 = arith.constant 0 : i32
    %72 = arith.addi %71, %c0_i32_53 : i32
    %c0_54 = arith.constant 0 : index
    %73 = arith.index_cast %72 : i32 to index
    %c0_55 = arith.constant 0 : index
    %c0_56 = arith.constant 0 : index
    %74 = vector.load %arg2[%c0_54, %73, %c0_55, %c0_56] : memref<1x40x10x3xf32, #tpu.memory_space<vmem>>, vector<1x1x10x3xf32>
    %75 = vector.shape_cast %74 : vector<1x1x10x3xf32> to vector<10x3xf32>
    %76 = vector.extract_strided_slice %75 {offsets = [1, 0], sizes = [8, 3], strides = [1, 1]} : vector<10x3xf32> to vector<8x3xf32>
    %c7 = arith.constant 7 : index
    %c0_57 = arith.constant 0 : index
    %c0_58 = arith.constant 0 : index
    %77 = vector.load %arg3[%c7, %c0_57, %c0_58] : memref<25x3x128xf32, #tpu.memory_space<vmem>>, vector<1x3x128xf32>
    %78 = vector.shape_cast %77 : vector<1x3x128xf32> to vector<3x128xf32>
    %cst_59 = arith.constant dense<0.000000e+00> : vector<8x128xf32>
    %79 = tpu.matmul %76, %78, %cst_59 {dimension_numbers = #tpu.dot_dimension_numbers<[1], [0], [0], [1], [0, 0, 1, 1], [], []>} : vector<8x3xf32>, vector<3x128xf32>, vector<8x128xf32> -> vector<8x128xf32>
    %80 = arith.addf %70, %79 : vector<8x128xf32>
    %c30_i32_60 = arith.constant 30 : i32
    %81 = arith.addi %c30_i32_60, %arg1 : i32
    %c0_i32_61 = arith.constant 0 : i32
    %82 = arith.addi %81, %c0_i32_61 : i32
    %c0_62 = arith.constant 0 : index
    %83 = arith.index_cast %82 : i32 to index
    %c0_63 = arith.constant 0 : index
    %c0_64 = arith.constant 0 : index
    %84 = vector.load %arg2[%c0_62, %83, %c0_63, %c0_64] : memref<1x40x10x3xf32, #tpu.memory_space<vmem>>, vector<1x1x10x3xf32>
    %85 = vector.shape_cast %84 : vector<1x1x10x3xf32> to vector<10x3xf32>
    %86 = vector.extract_strided_slice %85 {offsets = [1, 0], sizes = [8, 3], strides = [1, 1]} : vector<10x3xf32> to vector<8x3xf32>
    %c8 = arith.constant 8 : index
    %c0_65 = arith.constant 0 : index
    %c0_66 = arith.constant 0 : index
    %87 = vector.load %arg3[%c8, %c0_65, %c0_66] : memref<25x3x128xf32, #tpu.memory_space<vmem>>, vector<1x3x128xf32>
    %88 = vector.shape_cast %87 : vector<1x3x128xf32> to vector<3x128xf32>
    %cst_67 = arith.constant dense<0.000000e+00> : vector<8x128xf32>
    %89 = tpu.matmul %86, %88, %cst_67 {dimension_numbers = #tpu.dot_dimension_numbers<[1], [0], [0], [1], [0, 0, 1, 1], [], []>} : vector<8x3xf32>, vector<3x128xf32>, vector<8x128xf32> -> vector<8x128xf32>
    %90 = arith.addf %80, %89 : vector<8x128xf32>
    %c20_i32_68 = arith.constant 20 : i32
    %91 = arith.addi %c20_i32_68, %arg1 : i32
    %c0_i32_69 = arith.constant 0 : i32
    %92 = arith.addi %91, %c0_i32_69 : i32
    %c0_70 = arith.constant 0 : index
    %93 = arith.index_cast %92 : i32 to index
    %c0_71 = arith.constant 0 : index
    %c0_72 = arith.constant 0 : index
    %94 = vector.load %arg2[%c0_70, %93, %c0_71, %c0_72] : memref<1x40x10x3xf32, #tpu.memory_space<vmem>>, vector<1x1x10x3xf32>
    %95 = vector.shape_cast %94 : vector<1x1x10x3xf32> to vector<10x3xf32>
    %96 = vector.extract_strided_slice %95 {offsets = [2, 0], sizes = [8, 3], strides = [1, 1]} : vector<10x3xf32> to vector<8x3xf32>
    %c9 = arith.constant 9 : index
    %c0_73 = arith.constant 0 : index
    %c0_74 = arith.constant 0 : index
    %97 = vector.load %arg3[%c9, %c0_73, %c0_74] : memref<25x3x128xf32, #tpu.memory_space<vmem>>, vector<1x3x128xf32>
    %98 = vector.shape_cast %97 : vector<1x3x128xf32> to vector<3x128xf32>
    %cst_75 = arith.constant dense<0.000000e+00> : vector<8x128xf32>
    %99 = tpu.matmul %96, %98, %cst_75 {dimension_numbers = #tpu.dot_dimension_numbers<[1], [0], [0], [1], [0, 0, 1, 1], [], []>} : vector<8x3xf32>, vector<3x128xf32>, vector<8x128xf32> -> vector<8x128xf32>
    %100 = arith.addf %90, %99 : vector<8x128xf32>
    %c0_i32_76 = arith.constant 0 : i32
    %101 = arith.addi %c0_i32_76, %arg1 : i32
    %c1_i32 = arith.constant 1 : i32
    %102 = arith.addi %101, %c1_i32 : i32
    %c0_77 = arith.constant 0 : index
    %103 = arith.index_cast %102 : i32 to index
    %c0_78 = arith.constant 0 : index
    %c0_79 = arith.constant 0 : index
    %104 = vector.load %arg2[%c0_77, %103, %c0_78, %c0_79] : memref<1x40x10x3xf32, #tpu.memory_space<vmem>>, vector<1x1x10x3xf32>
    %105 = vector.shape_cast %104 : vector<1x1x10x3xf32> to vector<10x3xf32>
    %106 = vector.extract_strided_slice %105 {offsets = [0, 0], sizes = [8, 3], strides = [1, 1]} : vector<10x3xf32> to vector<8x3xf32>
    %c10 = arith.constant 10 : index
    %c0_80 = arith.constant 0 : index
    %c0_81 = arith.constant 0 : index
    %107 = vector.load %arg3[%c10, %c0_80, %c0_81] : memref<25x3x128xf32, #tpu.memory_space<vmem>>, vector<1x3x128xf32>
    %108 = vector.shape_cast %107 : vector<1x3x128xf32> to vector<3x128xf32>
    %cst_82 = arith.constant dense<0.000000e+00> : vector<8x128xf32>
    %109 = tpu.matmul %106, %108, %cst_82 {dimension_numbers = #tpu.dot_dimension_numbers<[1], [0], [0], [1], [0, 0, 1, 1], [], []>} : vector<8x3xf32>, vector<3x128xf32>, vector<8x128xf32> -> vector<8x128xf32>
    %110 = arith.addf %100, %109 : vector<8x128xf32>
    %c10_i32_83 = arith.constant 10 : i32
    %111 = arith.addi %c10_i32_83, %arg1 : i32
    %c1_i32_84 = arith.constant 1 : i32
    %112 = arith.addi %111, %c1_i32_84 : i32
    %c0_85 = arith.constant 0 : index
    %113 = arith.index_cast %112 : i32 to index
    %c0_86 = arith.constant 0 : index
    %c0_87 = arith.constant 0 : index
    %114 = vector.load %arg2[%c0_85, %113, %c0_86, %c0_87] : memref<1x40x10x3xf32, #tpu.memory_space<vmem>>, vector<1x1x10x3xf32>
    %115 = vector.shape_cast %114 : vector<1x1x10x3xf32> to vector<10x3xf32>
    %116 = vector.extract_strided_slice %115 {offsets = [0, 0], sizes = [8, 3], strides = [1, 1]} : vector<10x3xf32> to vector<8x3xf32>
    %c11 = arith.constant 11 : index
    %c0_88 = arith.constant 0 : index
    %c0_89 = arith.constant 0 : index
    %117 = vector.load %arg3[%c11, %c0_88, %c0_89] : memref<25x3x128xf32, #tpu.memory_space<vmem>>, vector<1x3x128xf32>
    %118 = vector.shape_cast %117 : vector<1x3x128xf32> to vector<3x128xf32>
    %cst_90 = arith.constant dense<0.000000e+00> : vector<8x128xf32>
    %119 = tpu.matmul %116, %118, %cst_90 {dimension_numbers = #tpu.dot_dimension_numbers<[1], [0], [0], [1], [0, 0, 1, 1], [], []>} : vector<8x3xf32>, vector<3x128xf32>, vector<8x128xf32> -> vector<8x128xf32>
    %120 = arith.addf %110, %119 : vector<8x128xf32>
    %c0_i32_91 = arith.constant 0 : i32
    %121 = arith.addi %c0_i32_91, %arg1 : i32
    %c1_i32_92 = arith.constant 1 : i32
    %122 = arith.addi %121, %c1_i32_92 : i32
    %c0_93 = arith.constant 0 : index
    %123 = arith.index_cast %122 : i32 to index
    %c0_94 = arith.constant 0 : index
    %c0_95 = arith.constant 0 : index
    %124 = vector.load %arg2[%c0_93, %123, %c0_94, %c0_95] : memref<1x40x10x3xf32, #tpu.memory_space<vmem>>, vector<1x1x10x3xf32>
    %125 = vector.shape_cast %124 : vector<1x1x10x3xf32> to vector<10x3xf32>
    %126 = vector.extract_strided_slice %125 {offsets = [1, 0], sizes = [8, 3], strides = [1, 1]} : vector<10x3xf32> to vector<8x3xf32>
    %c12 = arith.constant 12 : index
    %c0_96 = arith.constant 0 : index
    %c0_97 = arith.constant 0 : index
    %127 = vector.load %arg3[%c12, %c0_96, %c0_97] : memref<25x3x128xf32, #tpu.memory_space<vmem>>, vector<1x3x128xf32>
    %128 = vector.shape_cast %127 : vector<1x3x128xf32> to vector<3x128xf32>
    %cst_98 = arith.constant dense<0.000000e+00> : vector<8x128xf32>
    %129 = tpu.matmul %126, %128, %cst_98 {dimension_numbers = #tpu.dot_dimension_numbers<[1], [0], [0], [1], [0, 0, 1, 1], [], []>} : vector<8x3xf32>, vector<3x128xf32>, vector<8x128xf32> -> vector<8x128xf32>
    %130 = arith.addf %120, %129 : vector<8x128xf32>
    %c10_i32_99 = arith.constant 10 : i32
    %131 = arith.addi %c10_i32_99, %arg1 : i32
    %c1_i32_100 = arith.constant 1 : i32
    %132 = arith.addi %131, %c1_i32_100 : i32
    %c0_101 = arith.constant 0 : index
    %133 = arith.index_cast %132 : i32 to index
    %c0_102 = arith.constant 0 : index
    %c0_103 = arith.constant 0 : index
    %134 = vector.load %arg2[%c0_101, %133, %c0_102, %c0_103] : memref<1x40x10x3xf32, #tpu.memory_space<vmem>>, vector<1x1x10x3xf32>
    %135 = vector.shape_cast %134 : vector<1x1x10x3xf32> to vector<10x3xf32>
    %136 = vector.extract_strided_slice %135 {offsets = [1, 0], sizes = [8, 3], strides = [1, 1]} : vector<10x3xf32> to vector<8x3xf32>
    %c13 = arith.constant 13 : index
    %c0_104 = arith.constant 0 : index
    %c0_105 = arith.constant 0 : index
    %137 = vector.load %arg3[%c13, %c0_104, %c0_105] : memref<25x3x128xf32, #tpu.memory_space<vmem>>, vector<1x3x128xf32>
    %138 = vector.shape_cast %137 : vector<1x3x128xf32> to vector<3x128xf32>
    %cst_106 = arith.constant dense<0.000000e+00> : vector<8x128xf32>
    %139 = tpu.matmul %136, %138, %cst_106 {dimension_numbers = #tpu.dot_dimension_numbers<[1], [0], [0], [1], [0, 0, 1, 1], [], []>} : vector<8x3xf32>, vector<3x128xf32>, vector<8x128xf32> -> vector<8x128xf32>
    %140 = arith.addf %130, %139 : vector<8x128xf32>
    %c0_i32_107 = arith.constant 0 : i32
    %141 = arith.addi %c0_i32_107, %arg1 : i32
    %c1_i32_108 = arith.constant 1 : i32
    %142 = arith.addi %141, %c1_i32_108 : i32
    %c0_109 = arith.constant 0 : index
    %143 = arith.index_cast %142 : i32 to index
    %c0_110 = arith.constant 0 : index
    %c0_111 = arith.constant 0 : index
    %144 = vector.load %arg2[%c0_109, %143, %c0_110, %c0_111] : memref<1x40x10x3xf32, #tpu.memory_space<vmem>>, vector<1x1x10x3xf32>
    %145 = vector.shape_cast %144 : vector<1x1x10x3xf32> to vector<10x3xf32>
    %146 = vector.extract_strided_slice %145 {offsets = [2, 0], sizes = [8, 3], strides = [1, 1]} : vector<10x3xf32> to vector<8x3xf32>
    %c14 = arith.constant 14 : index
    %c0_112 = arith.constant 0 : index
    %c0_113 = arith.constant 0 : index
    %147 = vector.load %arg3[%c14, %c0_112, %c0_113] : memref<25x3x128xf32, #tpu.memory_space<vmem>>, vector<1x3x128xf32>
    %148 = vector.shape_cast %147 : vector<1x3x128xf32> to vector<3x128xf32>
    %cst_114 = arith.constant dense<0.000000e+00> : vector<8x128xf32>
    %149 = tpu.matmul %146, %148, %cst_114 {dimension_numbers = #tpu.dot_dimension_numbers<[1], [0], [0], [1], [0, 0, 1, 1], [], []>} : vector<8x3xf32>, vector<3x128xf32>, vector<8x128xf32> -> vector<8x128xf32>
    %150 = arith.addf %140, %149 : vector<8x128xf32>
    %c20_i32_115 = arith.constant 20 : i32
    %151 = arith.addi %c20_i32_115, %arg1 : i32
    %c1_i32_116 = arith.constant 1 : i32
    %152 = arith.addi %151, %c1_i32_116 : i32
    %c0_117 = arith.constant 0 : index
    %153 = arith.index_cast %152 : i32 to index
    %c0_118 = arith.constant 0 : index
    %c0_119 = arith.constant 0 : index
    %154 = vector.load %arg2[%c0_117, %153, %c0_118, %c0_119] : memref<1x40x10x3xf32, #tpu.memory_space<vmem>>, vector<1x1x10x3xf32>
    %155 = vector.shape_cast %154 : vector<1x1x10x3xf32> to vector<10x3xf32>
    %156 = vector.extract_strided_slice %155 {offsets = [0, 0], sizes = [8, 3], strides = [1, 1]} : vector<10x3xf32> to vector<8x3xf32>
    %c15 = arith.constant 15 : index
    %c0_120 = arith.constant 0 : index
    %c0_121 = arith.constant 0 : index
    %157 = vector.load %arg3[%c15, %c0_120, %c0_121] : memref<25x3x128xf32, #tpu.memory_space<vmem>>, vector<1x3x128xf32>
    %158 = vector.shape_cast %157 : vector<1x3x128xf32> to vector<3x128xf32>
    %cst_122 = arith.constant dense<0.000000e+00> : vector<8x128xf32>
    %159 = tpu.matmul %156, %158, %cst_122 {dimension_numbers = #tpu.dot_dimension_numbers<[1], [0], [0], [1], [0, 0, 1, 1], [], []>} : vector<8x3xf32>, vector<3x128xf32>, vector<8x128xf32> -> vector<8x128xf32>
    %160 = arith.addf %150, %159 : vector<8x128xf32>
    %c30_i32_123 = arith.constant 30 : i32
    %161 = arith.addi %c30_i32_123, %arg1 : i32
    %c1_i32_124 = arith.constant 1 : i32
    %162 = arith.addi %161, %c1_i32_124 : i32
    %c0_125 = arith.constant 0 : index
    %163 = arith.index_cast %162 : i32 to index
    %c0_126 = arith.constant 0 : index
    %c0_127 = arith.constant 0 : index
    %164 = vector.load %arg2[%c0_125, %163, %c0_126, %c0_127] : memref<1x40x10x3xf32, #tpu.memory_space<vmem>>, vector<1x1x10x3xf32>
    %165 = vector.shape_cast %164 : vector<1x1x10x3xf32> to vector<10x3xf32>
    %166 = vector.extract_strided_slice %165 {offsets = [0, 0], sizes = [8, 3], strides = [1, 1]} : vector<10x3xf32> to vector<8x3xf32>
    %c16 = arith.constant 16 : index
    %c0_128 = arith.constant 0 : index
    %c0_129 = arith.constant 0 : index
    %167 = vector.load %arg3[%c16, %c0_128, %c0_129] : memref<25x3x128xf32, #tpu.memory_space<vmem>>, vector<1x3x128xf32>
    %168 = vector.shape_cast %167 : vector<1x3x128xf32> to vector<3x128xf32>
    %cst_130 = arith.constant dense<0.000000e+00> : vector<8x128xf32>
    %169 = tpu.matmul %166, %168, %cst_130 {dimension_numbers = #tpu.dot_dimension_numbers<[1], [0], [0], [1], [0, 0, 1, 1], [], []>} : vector<8x3xf32>, vector<3x128xf32>, vector<8x128xf32> -> vector<8x128xf32>
    %170 = arith.addf %160, %169 : vector<8x128xf32>
    %c20_i32_131 = arith.constant 20 : i32
    %171 = arith.addi %c20_i32_131, %arg1 : i32
    %c1_i32_132 = arith.constant 1 : i32
    %172 = arith.addi %171, %c1_i32_132 : i32
    %c0_133 = arith.constant 0 : index
    %173 = arith.index_cast %172 : i32 to index
    %c0_134 = arith.constant 0 : index
    %c0_135 = arith.constant 0 : index
    %174 = vector.load %arg2[%c0_133, %173, %c0_134, %c0_135] : memref<1x40x10x3xf32, #tpu.memory_space<vmem>>, vector<1x1x10x3xf32>
    %175 = vector.shape_cast %174 : vector<1x1x10x3xf32> to vector<10x3xf32>
    %176 = vector.extract_strided_slice %175 {offsets = [1, 0], sizes = [8, 3], strides = [1, 1]} : vector<10x3xf32> to vector<8x3xf32>
    %c17 = arith.constant 17 : index
    %c0_136 = arith.constant 0 : index
    %c0_137 = arith.constant 0 : index
    %177 = vector.load %arg3[%c17, %c0_136, %c0_137] : memref<25x3x128xf32, #tpu.memory_space<vmem>>, vector<1x3x128xf32>
    %178 = vector.shape_cast %177 : vector<1x3x128xf32> to vector<3x128xf32>
    %cst_138 = arith.constant dense<0.000000e+00> : vector<8x128xf32>
    %179 = tpu.matmul %176, %178, %cst_138 {dimension_numbers = #tpu.dot_dimension_numbers<[1], [0], [0], [1], [0, 0, 1, 1], [], []>} : vector<8x3xf32>, vector<3x128xf32>, vector<8x128xf32> -> vector<8x128xf32>
    %180 = arith.addf %170, %179 : vector<8x128xf32>
    %c30_i32_139 = arith.constant 30 : i32
    %181 = arith.addi %c30_i32_139, %arg1 : i32
    %c1_i32_140 = arith.constant 1 : i32
    %182 = arith.addi %181, %c1_i32_140 : i32
    %c0_141 = arith.constant 0 : index
    %183 = arith.index_cast %182 : i32 to index
    %c0_142 = arith.constant 0 : index
    %c0_143 = arith.constant 0 : index
    %184 = vector.load %arg2[%c0_141, %183, %c0_142, %c0_143] : memref<1x40x10x3xf32, #tpu.memory_space<vmem>>, vector<1x1x10x3xf32>
    %185 = vector.shape_cast %184 : vector<1x1x10x3xf32> to vector<10x3xf32>
    %186 = vector.extract_strided_slice %185 {offsets = [1, 0], sizes = [8, 3], strides = [1, 1]} : vector<10x3xf32> to vector<8x3xf32>
    %c18 = arith.constant 18 : index
    %c0_144 = arith.constant 0 : index
    %c0_145 = arith.constant 0 : index
    %187 = vector.load %arg3[%c18, %c0_144, %c0_145] : memref<25x3x128xf32, #tpu.memory_space<vmem>>, vector<1x3x128xf32>
    %188 = vector.shape_cast %187 : vector<1x3x128xf32> to vector<3x128xf32>
    %cst_146 = arith.constant dense<0.000000e+00> : vector<8x128xf32>
    %189 = tpu.matmul %186, %188, %cst_146 {dimension_numbers = #tpu.dot_dimension_numbers<[1], [0], [0], [1], [0, 0, 1, 1], [], []>} : vector<8x3xf32>, vector<3x128xf32>, vector<8x128xf32> -> vector<8x128xf32>
    %190 = arith.addf %180, %189 : vector<8x128xf32>
    %c20_i32_147 = arith.constant 20 : i32
    %191 = arith.addi %c20_i32_147, %arg1 : i32
    %c1_i32_148 = arith.constant 1 : i32
    %192 = arith.addi %191, %c1_i32_148 : i32
    %c0_149 = arith.constant 0 : index
    %193 = arith.index_cast %192 : i32 to index
    %c0_150 = arith.constant 0 : index
    %c0_151 = arith.constant 0 : index
    %194 = vector.load %arg2[%c0_149, %193, %c0_150, %c0_151] : memref<1x40x10x3xf32, #tpu.memory_space<vmem>>, vector<1x1x10x3xf32>
    %195 = vector.shape_cast %194 : vector<1x1x10x3xf32> to vector<10x3xf32>
    %196 = vector.extract_strided_slice %195 {offsets = [2, 0], sizes = [8, 3], strides = [1, 1]} : vector<10x3xf32> to vector<8x3xf32>
    %c19 = arith.constant 19 : index
    %c0_152 = arith.constant 0 : index
    %c0_153 = arith.constant 0 : index
    %197 = vector.load %arg3[%c19, %c0_152, %c0_153] : memref<25x3x128xf32, #tpu.memory_space<vmem>>, vector<1x3x128xf32>
    %198 = vector.shape_cast %197 : vector<1x3x128xf32> to vector<3x128xf32>
    %cst_154 = arith.constant dense<0.000000e+00> : vector<8x128xf32>
    %199 = tpu.matmul %196, %198, %cst_154 {dimension_numbers = #tpu.dot_dimension_numbers<[1], [0], [0], [1], [0, 0, 1, 1], [], []>} : vector<8x3xf32>, vector<3x128xf32>, vector<8x128xf32> -> vector<8x128xf32>
    %200 = arith.addf %190, %199 : vector<8x128xf32>
    %c0_i32_155 = arith.constant 0 : i32
    %201 = arith.addi %c0_i32_155, %arg1 : i32
    %c2_i32 = arith.constant 2 : i32
    %202 = arith.addi %201, %c2_i32 : i32
    %c0_156 = arith.constant 0 : index
    %203 = arith.index_cast %202 : i32 to index
    %c0_157 = arith.constant 0 : index
    %c0_158 = arith.constant 0 : index
    %204 = vector.load %arg2[%c0_156, %203, %c0_157, %c0_158] : memref<1x40x10x3xf32, #tpu.memory_space<vmem>>, vector<1x1x10x3xf32>
    %205 = vector.shape_cast %204 : vector<1x1x10x3xf32> to vector<10x3xf32>
    %206 = vector.extract_strided_slice %205 {offsets = [0, 0], sizes = [8, 3], strides = [1, 1]} : vector<10x3xf32> to vector<8x3xf32>
    %c20 = arith.constant 20 : index
    %c0_159 = arith.constant 0 : index
    %c0_160 = arith.constant 0 : index
    %207 = vector.load %arg3[%c20, %c0_159, %c0_160] : memref<25x3x128xf32, #tpu.memory_space<vmem>>, vector<1x3x128xf32>
    %208 = vector.shape_cast %207 : vector<1x3x128xf32> to vector<3x128xf32>
    %cst_161 = arith.constant dense<0.000000e+00> : vector<8x128xf32>
    %209 = tpu.matmul %206, %208, %cst_161 {dimension_numbers = #tpu.dot_dimension_numbers<[1], [0], [0], [1], [0, 0, 1, 1], [], []>} : vector<8x3xf32>, vector<3x128xf32>, vector<8x128xf32> -> vector<8x128xf32>
    %210 = arith.addf %200, %209 : vector<8x128xf32>
    %c10_i32_162 = arith.constant 10 : i32
    %211 = arith.addi %c10_i32_162, %arg1 : i32
    %c2_i32_163 = arith.constant 2 : i32
    %212 = arith.addi %211, %c2_i32_163 : i32
    %c0_164 = arith.constant 0 : index
    %213 = arith.index_cast %212 : i32 to index
    %c0_165 = arith.constant 0 : index
    %c0_166 = arith.constant 0 : index
    %214 = vector.load %arg2[%c0_164, %213, %c0_165, %c0_166] : memref<1x40x10x3xf32, #tpu.memory_space<vmem>>, vector<1x1x10x3xf32>
    %215 = vector.shape_cast %214 : vector<1x1x10x3xf32> to vector<10x3xf32>
    %216 = vector.extract_strided_slice %215 {offsets = [0, 0], sizes = [8, 3], strides = [1, 1]} : vector<10x3xf32> to vector<8x3xf32>
    %c21 = arith.constant 21 : index
    %c0_167 = arith.constant 0 : index
    %c0_168 = arith.constant 0 : index
    %217 = vector.load %arg3[%c21, %c0_167, %c0_168] : memref<25x3x128xf32, #tpu.memory_space<vmem>>, vector<1x3x128xf32>
    %218 = vector.shape_cast %217 : vector<1x3x128xf32> to vector<3x128xf32>
    %cst_169 = arith.constant dense<0.000000e+00> : vector<8x128xf32>
    %219 = tpu.matmul %216, %218, %cst_169 {dimension_numbers = #tpu.dot_dimension_numbers<[1], [0], [0], [1], [0, 0, 1, 1], [], []>} : vector<8x3xf32>, vector<3x128xf32>, vector<8x128xf32> -> vector<8x128xf32>
    %220 = arith.addf %210, %219 : vector<8x128xf32>
    %c0_i32_170 = arith.constant 0 : i32
    %221 = arith.addi %c0_i32_170, %arg1 : i32
    %c2_i32_171 = arith.constant 2 : i32
    %222 = arith.addi %221, %c2_i32_171 : i32
    %c0_172 = arith.constant 0 : index
    %223 = arith.index_cast %222 : i32 to index
    %c0_173 = arith.constant 0 : index
    %c0_174 = arith.constant 0 : index
    %224 = vector.load %arg2[%c0_172, %223, %c0_173, %c0_174] : memref<1x40x10x3xf32, #tpu.memory_space<vmem>>, vector<1x1x10x3xf32>
    %225 = vector.shape_cast %224 : vector<1x1x10x3xf32> to vector<10x3xf32>
    %226 = vector.extract_strided_slice %225 {offsets = [1, 0], sizes = [8, 3], strides = [1, 1]} : vector<10x3xf32> to vector<8x3xf32>
    %c22 = arith.constant 22 : index
    %c0_175 = arith.constant 0 : index
    %c0_176 = arith.constant 0 : index
    %227 = vector.load %arg3[%c22, %c0_175, %c0_176] : memref<25x3x128xf32, #tpu.memory_space<vmem>>, vector<1x3x128xf32>
    %228 = vector.shape_cast %227 : vector<1x3x128xf32> to vector<3x128xf32>
    %cst_177 = arith.constant dense<0.000000e+00> : vector<8x128xf32>
    %229 = tpu.matmul %226, %228, %cst_177 {dimension_numbers = #tpu.dot_dimension_numbers<[1], [0], [0], [1], [0, 0, 1, 1], [], []>} : vector<8x3xf32>, vector<3x128xf32>, vector<8x128xf32> -> vector<8x128xf32>
    %230 = arith.addf %220, %229 : vector<8x128xf32>
    %c10_i32_178 = arith.constant 10 : i32
    %231 = arith.addi %c10_i32_178, %arg1 : i32
    %c2_i32_179 = arith.constant 2 : i32
    %232 = arith.addi %231, %c2_i32_179 : i32
    %c0_180 = arith.constant 0 : index
    %233 = arith.index_cast %232 : i32 to index
    %c0_181 = arith.constant 0 : index
    %c0_182 = arith.constant 0 : index
    %234 = vector.load %arg2[%c0_180, %233, %c0_181, %c0_182] : memref<1x40x10x3xf32, #tpu.memory_space<vmem>>, vector<1x1x10x3xf32>
    %235 = vector.shape_cast %234 : vector<1x1x10x3xf32> to vector<10x3xf32>
    %236 = vector.extract_strided_slice %235 {offsets = [1, 0], sizes = [8, 3], strides = [1, 1]} : vector<10x3xf32> to vector<8x3xf32>
    %c23 = arith.constant 23 : index
    %c0_183 = arith.constant 0 : index
    %c0_184 = arith.constant 0 : index
    %237 = vector.load %arg3[%c23, %c0_183, %c0_184] : memref<25x3x128xf32, #tpu.memory_space<vmem>>, vector<1x3x128xf32>
    %238 = vector.shape_cast %237 : vector<1x3x128xf32> to vector<3x128xf32>
    %cst_185 = arith.constant dense<0.000000e+00> : vector<8x128xf32>
    %239 = tpu.matmul %236, %238, %cst_185 {dimension_numbers = #tpu.dot_dimension_numbers<[1], [0], [0], [1], [0, 0, 1, 1], [], []>} : vector<8x3xf32>, vector<3x128xf32>, vector<8x128xf32> -> vector<8x128xf32>
    %240 = arith.addf %230, %239 : vector<8x128xf32>
    %c0_i32_186 = arith.constant 0 : i32
    %241 = arith.addi %c0_i32_186, %arg1 : i32
    %c2_i32_187 = arith.constant 2 : i32
    %242 = arith.addi %241, %c2_i32_187 : i32
    %c0_188 = arith.constant 0 : index
    %243 = arith.index_cast %242 : i32 to index
    %c0_189 = arith.constant 0 : index
    %c0_190 = arith.constant 0 : index
    %244 = vector.load %arg2[%c0_188, %243, %c0_189, %c0_190] : memref<1x40x10x3xf32, #tpu.memory_space<vmem>>, vector<1x1x10x3xf32>
    %245 = vector.shape_cast %244 : vector<1x1x10x3xf32> to vector<10x3xf32>
    %246 = vector.extract_strided_slice %245 {offsets = [2, 0], sizes = [8, 3], strides = [1, 1]} : vector<10x3xf32> to vector<8x3xf32>
    %c24 = arith.constant 24 : index
    %c0_191 = arith.constant 0 : index
    %c0_192 = arith.constant 0 : index
    %247 = vector.load %arg3[%c24, %c0_191, %c0_192] : memref<25x3x128xf32, #tpu.memory_space<vmem>>, vector<1x3x128xf32>
    %248 = vector.shape_cast %247 : vector<1x3x128xf32> to vector<3x128xf32>
    %cst_193 = arith.constant dense<0.000000e+00> : vector<8x128xf32>
    %249 = tpu.matmul %246, %248, %cst_193 {dimension_numbers = #tpu.dot_dimension_numbers<[1], [0], [0], [1], [0, 0, 1, 1], [], []>} : vector<8x3xf32>, vector<3x128xf32>, vector<8x128xf32> -> vector<8x128xf32>
    %250 = arith.addf %240, %249 : vector<8x128xf32>
    %c0_194 = arith.constant 0 : index
    %c0_195 = arith.constant 0 : index
    %251 = vector.load %arg4[%c0_194, %c0_195] : memref<1x128xf32, #tpu.memory_space<vmem>>, vector<1x128xf32>
    %252 = vector.broadcast %251 : vector<1x128xf32> to vector<8x128xf32>
    %253 = arith.addf %250, %252 : vector<8x128xf32>
    %cst_196 = arith.constant 0.000000e+00 : f32
    %254 = vector.broadcast %cst_196 : f32 to vector<8x128xf32>
    %255 = arith.maximumf %253, %254 : vector<8x128xf32>
    %c0_197 = arith.constant 0 : index
    %c0_198 = arith.constant 0 : index
    %c0_199 = arith.constant 0 : index
    %c0_200 = arith.constant 0 : index
    %256 = vector.load %arg5[%c0_197, %c0_198, %c0_199, %c0_200] : memref<1x1x8x128xf32, #tpu.memory_space<vmem>>, vector<1x1x8x128xf32>
    %257 = vector.shape_cast %256 : vector<1x1x8x128xf32> to vector<8x128xf32>
    %258 = vector.shape_cast %255 : vector<8x128xf32> to vector<1x1x8x128xf32>
    tpu.vector_store %arg5[%c0_197, %c0_198, %c0_199, %c0_200], %258 {strides = array<i32>} : memref<1x1x8x128xf32, #tpu.memory_space<vmem>>, vector<1x1x8x128xf32>,
    return
  }
  func.func @transform_0(%arg0: i32, %arg1: i32) -> (i32, i32, i32, i32) {
    %c0_i32 = arith.constant 0 : i32
    %c0_i32_0 = arith.constant 0 : i32
    %c0_i32_1 = arith.constant 0 : i32
    %c0_i32_2 = arith.constant 0 : i32
    return %arg0, %c0_i32, %c0_i32_0, %c0_i32_1 : i32, i32, i32, i32
  }
  func.func @transform_1(%arg0: i32, %arg1: i32) -> (i32, i32, i32) {
    %c0_i32 = arith.constant 0 : i32
    %c0_i32_0 = arith.constant 0 : i32
    %c0_i32_1 = arith.constant 0 : i32
    %c0_i32_2 = arith.constant 0 : i32
    return %c0_i32, %c0_i32_0, %c0_i32_1 : i32, i32, i32
  }
  func.func @transform_2(%arg0: i32, %arg1: i32) -> (i32, i32) {
    %c0_i32 = arith.constant 0 : i32
    %c0_i32_0 = arith.constant 0 : i32
    %c0_i32_1 = arith.constant 0 : i32
    return %c0_i32, %c0_i32_0 : i32, i32
  }
  func.func @transform_3(%arg0: i32, %arg1: i32) -> (i32, i32, i32, i32) {
    %c0_i32 = arith.constant 0 : i32
    %c0_i32_0 = arith.constant 0 : i32
    %c0_i32_1 = arith.constant 0 : i32
    return %arg0, %arg1, %c0_i32, %c0_i32_0 : i32, i32, i32, i32
  }
}

module attributes {stable_mosaic.version = 11 : i64} {
  func.func @_conv5x5_kernel(%arg0: i32, %arg1: i32, %arg2: memref<1x24x6x128xf32, #tpu.memory_space<vmem>>, %arg3: memref<25x128x128xf32, #tpu.memory_space<vmem>>, %arg4: memref<1x128xf32, #tpu.memory_space<vmem>>, %arg5: memref<1x1x4x128xf32, #tpu.memory_space<vmem>>) attributes {dimension_semantics = [#tpu.dimension_semantics<parallel>, #tpu.dimension_semantics<parallel>], iteration_bounds = array<i64: 2, 4>, scalar_prefetch = 0 : i64, scratch_operands = 0 : i64, tpu.core_type = #tpu.core_type<tc>, window_params = [{transform_indices = @transform_0, window_bounds = array<i64: 1, 24, 6, 128>}, {pipeline_mode = #tpu.pipeline_mode<synchronous>, transform_indices = @transform_1, window_bounds = array<i64: 25, 128, 128>}, {pipeline_mode = #tpu.pipeline_mode<synchronous>, transform_indices = @transform_2, window_bounds = array<i64: 1, 128>}, {transform_indices = @transform_3, window_bounds = array<i64: 1, 1, 4, 128>}]} {
    %cst = arith.constant 0.000000e+00 : f32
    %0 = vector.broadcast %cst : f32 to vector<4x128xf32>
    %c0_i32 = arith.constant 0 : i32
    %1 = arith.addi %c0_i32, %arg1 : i32
    %c0_i32_0 = arith.constant 0 : i32
    %2 = arith.addi %1, %c0_i32_0 : i32
    %c0 = arith.constant 0 : index
    %3 = arith.index_cast %2 : i32 to index
    %c0_1 = arith.constant 0 : index
    %c0_2 = arith.constant 0 : index
    %4 = vector.load %arg2[%c0, %3, %c0_1, %c0_2] : memref<1x24x6x128xf32, #tpu.memory_space<vmem>>, vector<1x1x6x128xf32>
    %5 = vector.shape_cast %4 : vector<1x1x6x128xf32> to vector<6x128xf32>
    %6 = vector.extract_strided_slice %5 {offsets = [0, 0], sizes = [4, 128], strides = [1, 1]} : vector<6x128xf32> to vector<4x128xf32>
    %c0_3 = arith.constant 0 : index
    %c0_4 = arith.constant 0 : index
    %c0_5 = arith.constant 0 : index
    %7 = vector.load %arg3[%c0_3, %c0_4, %c0_5] : memref<25x128x128xf32, #tpu.memory_space<vmem>>, vector<1x128x128xf32>
    %8 = vector.shape_cast %7 : vector<1x128x128xf32> to vector<128x128xf32>
    %cst_6 = arith.constant dense<0.000000e+00> : vector<4x128xf32>
    %9 = tpu.matmul %6, %8, %cst_6 {dimension_numbers = #tpu.dot_dimension_numbers<[1], [0], [0], [1], [0, 0, 1, 1], [], []>} : vector<4x128xf32>, vector<128x128xf32>, vector<4x128xf32> -> vector<4x128xf32>
    %10 = arith.addf %0, %9 : vector<4x128xf32>
    %c6_i32 = arith.constant 6 : i32
    %11 = arith.addi %c6_i32, %arg1 : i32
    %c0_i32_7 = arith.constant 0 : i32
    %12 = arith.addi %11, %c0_i32_7 : i32
    %c0_8 = arith.constant 0 : index
    %13 = arith.index_cast %12 : i32 to index
    %c0_9 = arith.constant 0 : index
    %c0_10 = arith.constant 0 : index
    %14 = vector.load %arg2[%c0_8, %13, %c0_9, %c0_10] : memref<1x24x6x128xf32, #tpu.memory_space<vmem>>, vector<1x1x6x128xf32>
    %15 = vector.shape_cast %14 : vector<1x1x6x128xf32> to vector<6x128xf32>
    %16 = vector.extract_strided_slice %15 {offsets = [0, 0], sizes = [4, 128], strides = [1, 1]} : vector<6x128xf32> to vector<4x128xf32>
    %c1 = arith.constant 1 : index
    %c0_11 = arith.constant 0 : index
    %c0_12 = arith.constant 0 : index
    %17 = vector.load %arg3[%c1, %c0_11, %c0_12] : memref<25x128x128xf32, #tpu.memory_space<vmem>>, vector<1x128x128xf32>
    %18 = vector.shape_cast %17 : vector<1x128x128xf32> to vector<128x128xf32>
    %cst_13 = arith.constant dense<0.000000e+00> : vector<4x128xf32>
    %19 = tpu.matmul %16, %18, %cst_13 {dimension_numbers = #tpu.dot_dimension_numbers<[1], [0], [0], [1], [0, 0, 1, 1], [], []>} : vector<4x128xf32>, vector<128x128xf32>, vector<4x128xf32> -> vector<4x128xf32>
    %20 = arith.addf %10, %19 : vector<4x128xf32>
    %c0_i32_14 = arith.constant 0 : i32
    %21 = arith.addi %c0_i32_14, %arg1 : i32
    %c0_i32_15 = arith.constant 0 : i32
    %22 = arith.addi %21, %c0_i32_15 : i32
    %c0_16 = arith.constant 0 : index
    %23 = arith.index_cast %22 : i32 to index
    %c0_17 = arith.constant 0 : index
    %c0_18 = arith.constant 0 : index
    %24 = vector.load %arg2[%c0_16, %23, %c0_17, %c0_18] : memref<1x24x6x128xf32, #tpu.memory_space<vmem>>, vector<1x1x6x128xf32>
    %25 = vector.shape_cast %24 : vector<1x1x6x128xf32> to vector<6x128xf32>
    %26 = vector.extract_strided_slice %25 {offsets = [1, 0], sizes = [4, 128], strides = [1, 1]} : vector<6x128xf32> to vector<4x128xf32>
    %c2 = arith.constant 2 : index
    %c0_19 = arith.constant 0 : index
    %c0_20 = arith.constant 0 : index
    %27 = vector.load %arg3[%c2, %c0_19, %c0_20] : memref<25x128x128xf32, #tpu.memory_space<vmem>>, vector<1x128x128xf32>
    %28 = vector.shape_cast %27 : vector<1x128x128xf32> to vector<128x128xf32>
    %cst_21 = arith.constant dense<0.000000e+00> : vector<4x128xf32>
    %29 = tpu.matmul %26, %28, %cst_21 {dimension_numbers = #tpu.dot_dimension_numbers<[1], [0], [0], [1], [0, 0, 1, 1], [], []>} : vector<4x128xf32>, vector<128x128xf32>, vector<4x128xf32> -> vector<4x128xf32>
    %30 = arith.addf %20, %29 : vector<4x128xf32>
    %c6_i32_22 = arith.constant 6 : i32
    %31 = arith.addi %c6_i32_22, %arg1 : i32
    %c0_i32_23 = arith.constant 0 : i32
    %32 = arith.addi %31, %c0_i32_23 : i32
    %c0_24 = arith.constant 0 : index
    %33 = arith.index_cast %32 : i32 to index
    %c0_25 = arith.constant 0 : index
    %c0_26 = arith.constant 0 : index
    %34 = vector.load %arg2[%c0_24, %33, %c0_25, %c0_26] : memref<1x24x6x128xf32, #tpu.memory_space<vmem>>, vector<1x1x6x128xf32>
    %35 = vector.shape_cast %34 : vector<1x1x6x128xf32> to vector<6x128xf32>
    %36 = vector.extract_strided_slice %35 {offsets = [1, 0], sizes = [4, 128], strides = [1, 1]} : vector<6x128xf32> to vector<4x128xf32>
    %c3 = arith.constant 3 : index
    %c0_27 = arith.constant 0 : index
    %c0_28 = arith.constant 0 : index
    %37 = vector.load %arg3[%c3, %c0_27, %c0_28] : memref<25x128x128xf32, #tpu.memory_space<vmem>>, vector<1x128x128xf32>
    %38 = vector.shape_cast %37 : vector<1x128x128xf32> to vector<128x128xf32>
    %cst_29 = arith.constant dense<0.000000e+00> : vector<4x128xf32>
    %39 = tpu.matmul %36, %38, %cst_29 {dimension_numbers = #tpu.dot_dimension_numbers<[1], [0], [0], [1], [0, 0, 1, 1], [], []>} : vector<4x128xf32>, vector<128x128xf32>, vector<4x128xf32> -> vector<4x128xf32>
    %40 = arith.addf %30, %39 : vector<4x128xf32>
    %c0_i32_30 = arith.constant 0 : i32
    %41 = arith.addi %c0_i32_30, %arg1 : i32
    %c0_i32_31 = arith.constant 0 : i32
    %42 = arith.addi %41, %c0_i32_31 : i32
    %c0_32 = arith.constant 0 : index
    %43 = arith.index_cast %42 : i32 to index
    %c0_33 = arith.constant 0 : index
    %c0_34 = arith.constant 0 : index
    %44 = vector.load %arg2[%c0_32, %43, %c0_33, %c0_34] : memref<1x24x6x128xf32, #tpu.memory_space<vmem>>, vector<1x1x6x128xf32>
    %45 = vector.shape_cast %44 : vector<1x1x6x128xf32> to vector<6x128xf32>
    %46 = vector.extract_strided_slice %45 {offsets = [2, 0], sizes = [4, 128], strides = [1, 1]} : vector<6x128xf32> to vector<4x128xf32>
    %c4 = arith.constant 4 : index
    %c0_35 = arith.constant 0 : index
    %c0_36 = arith.constant 0 : index
    %47 = vector.load %arg3[%c4, %c0_35, %c0_36] : memref<25x128x128xf32, #tpu.memory_space<vmem>>, vector<1x128x128xf32>
    %48 = vector.shape_cast %47 : vector<1x128x128xf32> to vector<128x128xf32>
    %cst_37 = arith.constant dense<0.000000e+00> : vector<4x128xf32>
    %49 = tpu.matmul %46, %48, %cst_37 {dimension_numbers = #tpu.dot_dimension_numbers<[1], [0], [0], [1], [0, 0, 1, 1], [], []>} : vector<4x128xf32>, vector<128x128xf32>, vector<4x128xf32> -> vector<4x128xf32>
    %50 = arith.addf %40, %49 : vector<4x128xf32>
    %c12_i32 = arith.constant 12 : i32
    %51 = arith.addi %c12_i32, %arg1 : i32
    %c0_i32_38 = arith.constant 0 : i32
    %52 = arith.addi %51, %c0_i32_38 : i32
    %c0_39 = arith.constant 0 : index
    %53 = arith.index_cast %52 : i32 to index
    %c0_40 = arith.constant 0 : index
    %c0_41 = arith.constant 0 : index
    %54 = vector.load %arg2[%c0_39, %53, %c0_40, %c0_41] : memref<1x24x6x128xf32, #tpu.memory_space<vmem>>, vector<1x1x6x128xf32>
    %55 = vector.shape_cast %54 : vector<1x1x6x128xf32> to vector<6x128xf32>
    %56 = vector.extract_strided_slice %55 {offsets = [0, 0], sizes = [4, 128], strides = [1, 1]} : vector<6x128xf32> to vector<4x128xf32>
    %c5 = arith.constant 5 : index
    %c0_42 = arith.constant 0 : index
    %c0_43 = arith.constant 0 : index
    %57 = vector.load %arg3[%c5, %c0_42, %c0_43] : memref<25x128x128xf32, #tpu.memory_space<vmem>>, vector<1x128x128xf32>
    %58 = vector.shape_cast %57 : vector<1x128x128xf32> to vector<128x128xf32>
    %cst_44 = arith.constant dense<0.000000e+00> : vector<4x128xf32>
    %59 = tpu.matmul %56, %58, %cst_44 {dimension_numbers = #tpu.dot_dimension_numbers<[1], [0], [0], [1], [0, 0, 1, 1], [], []>} : vector<4x128xf32>, vector<128x128xf32>, vector<4x128xf32> -> vector<4x128xf32>
    %60 = arith.addf %50, %59 : vector<4x128xf32>
    %c18_i32 = arith.constant 18 : i32
    %61 = arith.addi %c18_i32, %arg1 : i32
    %c0_i32_45 = arith.constant 0 : i32
    %62 = arith.addi %61, %c0_i32_45 : i32
    %c0_46 = arith.constant 0 : index
    %63 = arith.index_cast %62 : i32 to index
    %c0_47 = arith.constant 0 : index
    %c0_48 = arith.constant 0 : index
    %64 = vector.load %arg2[%c0_46, %63, %c0_47, %c0_48] : memref<1x24x6x128xf32, #tpu.memory_space<vmem>>, vector<1x1x6x128xf32>
    %65 = vector.shape_cast %64 : vector<1x1x6x128xf32> to vector<6x128xf32>
    %66 = vector.extract_strided_slice %65 {offsets = [0, 0], sizes = [4, 128], strides = [1, 1]} : vector<6x128xf32> to vector<4x128xf32>
    %c6 = arith.constant 6 : index
    %c0_49 = arith.constant 0 : index
    %c0_50 = arith.constant 0 : index
    %67 = vector.load %arg3[%c6, %c0_49, %c0_50] : memref<25x128x128xf32, #tpu.memory_space<vmem>>, vector<1x128x128xf32>
    %68 = vector.shape_cast %67 : vector<1x128x128xf32> to vector<128x128xf32>
    %cst_51 = arith.constant dense<0.000000e+00> : vector<4x128xf32>
    %69 = tpu.matmul %66, %68, %cst_51 {dimension_numbers = #tpu.dot_dimension_numbers<[1], [0], [0], [1], [0, 0, 1, 1], [], []>} : vector<4x128xf32>, vector<128x128xf32>, vector<4x128xf32> -> vector<4x128xf32>
    %70 = arith.addf %60, %69 : vector<4x128xf32>
    %c12_i32_52 = arith.constant 12 : i32
    %71 = arith.addi %c12_i32_52, %arg1 : i32
    %c0_i32_53 = arith.constant 0 : i32
    %72 = arith.addi %71, %c0_i32_53 : i32
    %c0_54 = arith.constant 0 : index
    %73 = arith.index_cast %72 : i32 to index
    %c0_55 = arith.constant 0 : index
    %c0_56 = arith.constant 0 : index
    %74 = vector.load %arg2[%c0_54, %73, %c0_55, %c0_56] : memref<1x24x6x128xf32, #tpu.memory_space<vmem>>, vector<1x1x6x128xf32>
    %75 = vector.shape_cast %74 : vector<1x1x6x128xf32> to vector<6x128xf32>
    %76 = vector.extract_strided_slice %75 {offsets = [1, 0], sizes = [4, 128], strides = [1, 1]} : vector<6x128xf32> to vector<4x128xf32>
    %c7 = arith.constant 7 : index
    %c0_57 = arith.constant 0 : index
    %c0_58 = arith.constant 0 : index
    %77 = vector.load %arg3[%c7, %c0_57, %c0_58] : memref<25x128x128xf32, #tpu.memory_space<vmem>>, vector<1x128x128xf32>
    %78 = vector.shape_cast %77 : vector<1x128x128xf32> to vector<128x128xf32>
    %cst_59 = arith.constant dense<0.000000e+00> : vector<4x128xf32>
    %79 = tpu.matmul %76, %78, %cst_59 {dimension_numbers = #tpu.dot_dimension_numbers<[1], [0], [0], [1], [0, 0, 1, 1], [], []>} : vector<4x128xf32>, vector<128x128xf32>, vector<4x128xf32> -> vector<4x128xf32>
    %80 = arith.addf %70, %79 : vector<4x128xf32>
    %c18_i32_60 = arith.constant 18 : i32
    %81 = arith.addi %c18_i32_60, %arg1 : i32
    %c0_i32_61 = arith.constant 0 : i32
    %82 = arith.addi %81, %c0_i32_61 : i32
    %c0_62 = arith.constant 0 : index
    %83 = arith.index_cast %82 : i32 to index
    %c0_63 = arith.constant 0 : index
    %c0_64 = arith.constant 0 : index
    %84 = vector.load %arg2[%c0_62, %83, %c0_63, %c0_64] : memref<1x24x6x128xf32, #tpu.memory_space<vmem>>, vector<1x1x6x128xf32>
    %85 = vector.shape_cast %84 : vector<1x1x6x128xf32> to vector<6x128xf32>
    %86 = vector.extract_strided_slice %85 {offsets = [1, 0], sizes = [4, 128], strides = [1, 1]} : vector<6x128xf32> to vector<4x128xf32>
    %c8 = arith.constant 8 : index
    %c0_65 = arith.constant 0 : index
    %c0_66 = arith.constant 0 : index
    %87 = vector.load %arg3[%c8, %c0_65, %c0_66] : memref<25x128x128xf32, #tpu.memory_space<vmem>>, vector<1x128x128xf32>
    %88 = vector.shape_cast %87 : vector<1x128x128xf32> to vector<128x128xf32>
    %cst_67 = arith.constant dense<0.000000e+00> : vector<4x128xf32>
    %89 = tpu.matmul %86, %88, %cst_67 {dimension_numbers = #tpu.dot_dimension_numbers<[1], [0], [0], [1], [0, 0, 1, 1], [], []>} : vector<4x128xf32>, vector<128x128xf32>, vector<4x128xf32> -> vector<4x128xf32>
    %90 = arith.addf %80, %89 : vector<4x128xf32>
    %c12_i32_68 = arith.constant 12 : i32
    %91 = arith.addi %c12_i32_68, %arg1 : i32
    %c0_i32_69 = arith.constant 0 : i32
    %92 = arith.addi %91, %c0_i32_69 : i32
    %c0_70 = arith.constant 0 : index
    %93 = arith.index_cast %92 : i32 to index
    %c0_71 = arith.constant 0 : index
    %c0_72 = arith.constant 0 : index
    %94 = vector.load %arg2[%c0_70, %93, %c0_71, %c0_72] : memref<1x24x6x128xf32, #tpu.memory_space<vmem>>, vector<1x1x6x128xf32>
    %95 = vector.shape_cast %94 : vector<1x1x6x128xf32> to vector<6x128xf32>
    %96 = vector.extract_strided_slice %95 {offsets = [2, 0], sizes = [4, 128], strides = [1, 1]} : vector<6x128xf32> to vector<4x128xf32>
    %c9 = arith.constant 9 : index
    %c0_73 = arith.constant 0 : index
    %c0_74 = arith.constant 0 : index
    %97 = vector.load %arg3[%c9, %c0_73, %c0_74] : memref<25x128x128xf32, #tpu.memory_space<vmem>>, vector<1x128x128xf32>
    %98 = vector.shape_cast %97 : vector<1x128x128xf32> to vector<128x128xf32>
    %cst_75 = arith.constant dense<0.000000e+00> : vector<4x128xf32>
    %99 = tpu.matmul %96, %98, %cst_75 {dimension_numbers = #tpu.dot_dimension_numbers<[1], [0], [0], [1], [0, 0, 1, 1], [], []>} : vector<4x128xf32>, vector<128x128xf32>, vector<4x128xf32> -> vector<4x128xf32>
    %100 = arith.addf %90, %99 : vector<4x128xf32>
    %c0_i32_76 = arith.constant 0 : i32
    %101 = arith.addi %c0_i32_76, %arg1 : i32
    %c1_i32 = arith.constant 1 : i32
    %102 = arith.addi %101, %c1_i32 : i32
    %c0_77 = arith.constant 0 : index
    %103 = arith.index_cast %102 : i32 to index
    %c0_78 = arith.constant 0 : index
    %c0_79 = arith.constant 0 : index
    %104 = vector.load %arg2[%c0_77, %103, %c0_78, %c0_79] : memref<1x24x6x128xf32, #tpu.memory_space<vmem>>, vector<1x1x6x128xf32>
    %105 = vector.shape_cast %104 : vector<1x1x6x128xf32> to vector<6x128xf32>
    %106 = vector.extract_strided_slice %105 {offsets = [0, 0], sizes = [4, 128], strides = [1, 1]} : vector<6x128xf32> to vector<4x128xf32>
    %c10 = arith.constant 10 : index
    %c0_80 = arith.constant 0 : index
    %c0_81 = arith.constant 0 : index
    %107 = vector.load %arg3[%c10, %c0_80, %c0_81] : memref<25x128x128xf32, #tpu.memory_space<vmem>>, vector<1x128x128xf32>
    %108 = vector.shape_cast %107 : vector<1x128x128xf32> to vector<128x128xf32>
    %cst_82 = arith.constant dense<0.000000e+00> : vector<4x128xf32>
    %109 = tpu.matmul %106, %108, %cst_82 {dimension_numbers = #tpu.dot_dimension_numbers<[1], [0], [0], [1], [0, 0, 1, 1], [], []>} : vector<4x128xf32>, vector<128x128xf32>, vector<4x128xf32> -> vector<4x128xf32>
    %110 = arith.addf %100, %109 : vector<4x128xf32>
    %c6_i32_83 = arith.constant 6 : i32
    %111 = arith.addi %c6_i32_83, %arg1 : i32
    %c1_i32_84 = arith.constant 1 : i32
    %112 = arith.addi %111, %c1_i32_84 : i32
    %c0_85 = arith.constant 0 : index
    %113 = arith.index_cast %112 : i32 to index
    %c0_86 = arith.constant 0 : index
    %c0_87 = arith.constant 0 : index
    %114 = vector.load %arg2[%c0_85, %113, %c0_86, %c0_87] : memref<1x24x6x128xf32, #tpu.memory_space<vmem>>, vector<1x1x6x128xf32>
    %115 = vector.shape_cast %114 : vector<1x1x6x128xf32> to vector<6x128xf32>
    %116 = vector.extract_strided_slice %115 {offsets = [0, 0], sizes = [4, 128], strides = [1, 1]} : vector<6x128xf32> to vector<4x128xf32>
    %c11 = arith.constant 11 : index
    %c0_88 = arith.constant 0 : index
    %c0_89 = arith.constant 0 : index
    %117 = vector.load %arg3[%c11, %c0_88, %c0_89] : memref<25x128x128xf32, #tpu.memory_space<vmem>>, vector<1x128x128xf32>
    %118 = vector.shape_cast %117 : vector<1x128x128xf32> to vector<128x128xf32>
    %cst_90 = arith.constant dense<0.000000e+00> : vector<4x128xf32>
    %119 = tpu.matmul %116, %118, %cst_90 {dimension_numbers = #tpu.dot_dimension_numbers<[1], [0], [0], [1], [0, 0, 1, 1], [], []>} : vector<4x128xf32>, vector<128x128xf32>, vector<4x128xf32> -> vector<4x128xf32>
    %120 = arith.addf %110, %119 : vector<4x128xf32>
    %c0_i32_91 = arith.constant 0 : i32
    %121 = arith.addi %c0_i32_91, %arg1 : i32
    %c1_i32_92 = arith.constant 1 : i32
    %122 = arith.addi %121, %c1_i32_92 : i32
    %c0_93 = arith.constant 0 : index
    %123 = arith.index_cast %122 : i32 to index
    %c0_94 = arith.constant 0 : index
    %c0_95 = arith.constant 0 : index
    %124 = vector.load %arg2[%c0_93, %123, %c0_94, %c0_95] : memref<1x24x6x128xf32, #tpu.memory_space<vmem>>, vector<1x1x6x128xf32>
    %125 = vector.shape_cast %124 : vector<1x1x6x128xf32> to vector<6x128xf32>
    %126 = vector.extract_strided_slice %125 {offsets = [1, 0], sizes = [4, 128], strides = [1, 1]} : vector<6x128xf32> to vector<4x128xf32>
    %c12 = arith.constant 12 : index
    %c0_96 = arith.constant 0 : index
    %c0_97 = arith.constant 0 : index
    %127 = vector.load %arg3[%c12, %c0_96, %c0_97] : memref<25x128x128xf32, #tpu.memory_space<vmem>>, vector<1x128x128xf32>
    %128 = vector.shape_cast %127 : vector<1x128x128xf32> to vector<128x128xf32>
    %cst_98 = arith.constant dense<0.000000e+00> : vector<4x128xf32>
    %129 = tpu.matmul %126, %128, %cst_98 {dimension_numbers = #tpu.dot_dimension_numbers<[1], [0], [0], [1], [0, 0, 1, 1], [], []>} : vector<4x128xf32>, vector<128x128xf32>, vector<4x128xf32> -> vector<4x128xf32>
    %130 = arith.addf %120, %129 : vector<4x128xf32>
    %c6_i32_99 = arith.constant 6 : i32
    %131 = arith.addi %c6_i32_99, %arg1 : i32
    %c1_i32_100 = arith.constant 1 : i32
    %132 = arith.addi %131, %c1_i32_100 : i32
    %c0_101 = arith.constant 0 : index
    %133 = arith.index_cast %132 : i32 to index
    %c0_102 = arith.constant 0 : index
    %c0_103 = arith.constant 0 : index
    %134 = vector.load %arg2[%c0_101, %133, %c0_102, %c0_103] : memref<1x24x6x128xf32, #tpu.memory_space<vmem>>, vector<1x1x6x128xf32>
    %135 = vector.shape_cast %134 : vector<1x1x6x128xf32> to vector<6x128xf32>
    %136 = vector.extract_strided_slice %135 {offsets = [1, 0], sizes = [4, 128], strides = [1, 1]} : vector<6x128xf32> to vector<4x128xf32>
    %c13 = arith.constant 13 : index
    %c0_104 = arith.constant 0 : index
    %c0_105 = arith.constant 0 : index
    %137 = vector.load %arg3[%c13, %c0_104, %c0_105] : memref<25x128x128xf32, #tpu.memory_space<vmem>>, vector<1x128x128xf32>
    %138 = vector.shape_cast %137 : vector<1x128x128xf32> to vector<128x128xf32>
    %cst_106 = arith.constant dense<0.000000e+00> : vector<4x128xf32>
    %139 = tpu.matmul %136, %138, %cst_106 {dimension_numbers = #tpu.dot_dimension_numbers<[1], [0], [0], [1], [0, 0, 1, 1], [], []>} : vector<4x128xf32>, vector<128x128xf32>, vector<4x128xf32> -> vector<4x128xf32>
    %140 = arith.addf %130, %139 : vector<4x128xf32>
    %c0_i32_107 = arith.constant 0 : i32
    %141 = arith.addi %c0_i32_107, %arg1 : i32
    %c1_i32_108 = arith.constant 1 : i32
    %142 = arith.addi %141, %c1_i32_108 : i32
    %c0_109 = arith.constant 0 : index
    %143 = arith.index_cast %142 : i32 to index
    %c0_110 = arith.constant 0 : index
    %c0_111 = arith.constant 0 : index
    %144 = vector.load %arg2[%c0_109, %143, %c0_110, %c0_111] : memref<1x24x6x128xf32, #tpu.memory_space<vmem>>, vector<1x1x6x128xf32>
    %145 = vector.shape_cast %144 : vector<1x1x6x128xf32> to vector<6x128xf32>
    %146 = vector.extract_strided_slice %145 {offsets = [2, 0], sizes = [4, 128], strides = [1, 1]} : vector<6x128xf32> to vector<4x128xf32>
    %c14 = arith.constant 14 : index
    %c0_112 = arith.constant 0 : index
    %c0_113 = arith.constant 0 : index
    %147 = vector.load %arg3[%c14, %c0_112, %c0_113] : memref<25x128x128xf32, #tpu.memory_space<vmem>>, vector<1x128x128xf32>
    %148 = vector.shape_cast %147 : vector<1x128x128xf32> to vector<128x128xf32>
    %cst_114 = arith.constant dense<0.000000e+00> : vector<4x128xf32>
    %149 = tpu.matmul %146, %148, %cst_114 {dimension_numbers = #tpu.dot_dimension_numbers<[1], [0], [0], [1], [0, 0, 1, 1], [], []>} : vector<4x128xf32>, vector<128x128xf32>, vector<4x128xf32> -> vector<4x128xf32>
    %150 = arith.addf %140, %149 : vector<4x128xf32>
    %c12_i32_115 = arith.constant 12 : i32
    %151 = arith.addi %c12_i32_115, %arg1 : i32
    %c1_i32_116 = arith.constant 1 : i32
    %152 = arith.addi %151, %c1_i32_116 : i32
    %c0_117 = arith.constant 0 : index
    %153 = arith.index_cast %152 : i32 to index
    %c0_118 = arith.constant 0 : index
    %c0_119 = arith.constant 0 : index
    %154 = vector.load %arg2[%c0_117, %153, %c0_118, %c0_119] : memref<1x24x6x128xf32, #tpu.memory_space<vmem>>, vector<1x1x6x128xf32>
    %155 = vector.shape_cast %154 : vector<1x1x6x128xf32> to vector<6x128xf32>
    %156 = vector.extract_strided_slice %155 {offsets = [0, 0], sizes = [4, 128], strides = [1, 1]} : vector<6x128xf32> to vector<4x128xf32>
    %c15 = arith.constant 15 : index
    %c0_120 = arith.constant 0 : index
    %c0_121 = arith.constant 0 : index
    %157 = vector.load %arg3[%c15, %c0_120, %c0_121] : memref<25x128x128xf32, #tpu.memory_space<vmem>>, vector<1x128x128xf32>
    %158 = vector.shape_cast %157 : vector<1x128x128xf32> to vector<128x128xf32>
    %cst_122 = arith.constant dense<0.000000e+00> : vector<4x128xf32>
    %159 = tpu.matmul %156, %158, %cst_122 {dimension_numbers = #tpu.dot_dimension_numbers<[1], [0], [0], [1], [0, 0, 1, 1], [], []>} : vector<4x128xf32>, vector<128x128xf32>, vector<4x128xf32> -> vector<4x128xf32>
    %160 = arith.addf %150, %159 : vector<4x128xf32>
    %c18_i32_123 = arith.constant 18 : i32
    %161 = arith.addi %c18_i32_123, %arg1 : i32
    %c1_i32_124 = arith.constant 1 : i32
    %162 = arith.addi %161, %c1_i32_124 : i32
    %c0_125 = arith.constant 0 : index
    %163 = arith.index_cast %162 : i32 to index
    %c0_126 = arith.constant 0 : index
    %c0_127 = arith.constant 0 : index
    %164 = vector.load %arg2[%c0_125, %163, %c0_126, %c0_127] : memref<1x24x6x128xf32, #tpu.memory_space<vmem>>, vector<1x1x6x128xf32>
    %165 = vector.shape_cast %164 : vector<1x1x6x128xf32> to vector<6x128xf32>
    %166 = vector.extract_strided_slice %165 {offsets = [0, 0], sizes = [4, 128], strides = [1, 1]} : vector<6x128xf32> to vector<4x128xf32>
    %c16 = arith.constant 16 : index
    %c0_128 = arith.constant 0 : index
    %c0_129 = arith.constant 0 : index
    %167 = vector.load %arg3[%c16, %c0_128, %c0_129] : memref<25x128x128xf32, #tpu.memory_space<vmem>>, vector<1x128x128xf32>
    %168 = vector.shape_cast %167 : vector<1x128x128xf32> to vector<128x128xf32>
    %cst_130 = arith.constant dense<0.000000e+00> : vector<4x128xf32>
    %169 = tpu.matmul %166, %168, %cst_130 {dimension_numbers = #tpu.dot_dimension_numbers<[1], [0], [0], [1], [0, 0, 1, 1], [], []>} : vector<4x128xf32>, vector<128x128xf32>, vector<4x128xf32> -> vector<4x128xf32>
    %170 = arith.addf %160, %169 : vector<4x128xf32>
    %c12_i32_131 = arith.constant 12 : i32
    %171 = arith.addi %c12_i32_131, %arg1 : i32
    %c1_i32_132 = arith.constant 1 : i32
    %172 = arith.addi %171, %c1_i32_132 : i32
    %c0_133 = arith.constant 0 : index
    %173 = arith.index_cast %172 : i32 to index
    %c0_134 = arith.constant 0 : index
    %c0_135 = arith.constant 0 : index
    %174 = vector.load %arg2[%c0_133, %173, %c0_134, %c0_135] : memref<1x24x6x128xf32, #tpu.memory_space<vmem>>, vector<1x1x6x128xf32>
    %175 = vector.shape_cast %174 : vector<1x1x6x128xf32> to vector<6x128xf32>
    %176 = vector.extract_strided_slice %175 {offsets = [1, 0], sizes = [4, 128], strides = [1, 1]} : vector<6x128xf32> to vector<4x128xf32>
    %c17 = arith.constant 17 : index
    %c0_136 = arith.constant 0 : index
    %c0_137 = arith.constant 0 : index
    %177 = vector.load %arg3[%c17, %c0_136, %c0_137] : memref<25x128x128xf32, #tpu.memory_space<vmem>>, vector<1x128x128xf32>
    %178 = vector.shape_cast %177 : vector<1x128x128xf32> to vector<128x128xf32>
    %cst_138 = arith.constant dense<0.000000e+00> : vector<4x128xf32>
    %179 = tpu.matmul %176, %178, %cst_138 {dimension_numbers = #tpu.dot_dimension_numbers<[1], [0], [0], [1], [0, 0, 1, 1], [], []>} : vector<4x128xf32>, vector<128x128xf32>, vector<4x128xf32> -> vector<4x128xf32>
    %180 = arith.addf %170, %179 : vector<4x128xf32>
    %c18_i32_139 = arith.constant 18 : i32
    %181 = arith.addi %c18_i32_139, %arg1 : i32
    %c1_i32_140 = arith.constant 1 : i32
    %182 = arith.addi %181, %c1_i32_140 : i32
    %c0_141 = arith.constant 0 : index
    %183 = arith.index_cast %182 : i32 to index
    %c0_142 = arith.constant 0 : index
    %c0_143 = arith.constant 0 : index
    %184 = vector.load %arg2[%c0_141, %183, %c0_142, %c0_143] : memref<1x24x6x128xf32, #tpu.memory_space<vmem>>, vector<1x1x6x128xf32>
    %185 = vector.shape_cast %184 : vector<1x1x6x128xf32> to vector<6x128xf32>
    %186 = vector.extract_strided_slice %185 {offsets = [1, 0], sizes = [4, 128], strides = [1, 1]} : vector<6x128xf32> to vector<4x128xf32>
    %c18 = arith.constant 18 : index
    %c0_144 = arith.constant 0 : index
    %c0_145 = arith.constant 0 : index
    %187 = vector.load %arg3[%c18, %c0_144, %c0_145] : memref<25x128x128xf32, #tpu.memory_space<vmem>>, vector<1x128x128xf32>
    %188 = vector.shape_cast %187 : vector<1x128x128xf32> to vector<128x128xf32>
    %cst_146 = arith.constant dense<0.000000e+00> : vector<4x128xf32>
    %189 = tpu.matmul %186, %188, %cst_146 {dimension_numbers = #tpu.dot_dimension_numbers<[1], [0], [0], [1], [0, 0, 1, 1], [], []>} : vector<4x128xf32>, vector<128x128xf32>, vector<4x128xf32> -> vector<4x128xf32>
    %190 = arith.addf %180, %189 : vector<4x128xf32>
    %c12_i32_147 = arith.constant 12 : i32
    %191 = arith.addi %c12_i32_147, %arg1 : i32
    %c1_i32_148 = arith.constant 1 : i32
    %192 = arith.addi %191, %c1_i32_148 : i32
    %c0_149 = arith.constant 0 : index
    %193 = arith.index_cast %192 : i32 to index
    %c0_150 = arith.constant 0 : index
    %c0_151 = arith.constant 0 : index
    %194 = vector.load %arg2[%c0_149, %193, %c0_150, %c0_151] : memref<1x24x6x128xf32, #tpu.memory_space<vmem>>, vector<1x1x6x128xf32>
    %195 = vector.shape_cast %194 : vector<1x1x6x128xf32> to vector<6x128xf32>
    %196 = vector.extract_strided_slice %195 {offsets = [2, 0], sizes = [4, 128], strides = [1, 1]} : vector<6x128xf32> to vector<4x128xf32>
    %c19 = arith.constant 19 : index
    %c0_152 = arith.constant 0 : index
    %c0_153 = arith.constant 0 : index
    %197 = vector.load %arg3[%c19, %c0_152, %c0_153] : memref<25x128x128xf32, #tpu.memory_space<vmem>>, vector<1x128x128xf32>
    %198 = vector.shape_cast %197 : vector<1x128x128xf32> to vector<128x128xf32>
    %cst_154 = arith.constant dense<0.000000e+00> : vector<4x128xf32>
    %199 = tpu.matmul %196, %198, %cst_154 {dimension_numbers = #tpu.dot_dimension_numbers<[1], [0], [0], [1], [0, 0, 1, 1], [], []>} : vector<4x128xf32>, vector<128x128xf32>, vector<4x128xf32> -> vector<4x128xf32>
    %200 = arith.addf %190, %199 : vector<4x128xf32>
    %c0_i32_155 = arith.constant 0 : i32
    %201 = arith.addi %c0_i32_155, %arg1 : i32
    %c2_i32 = arith.constant 2 : i32
    %202 = arith.addi %201, %c2_i32 : i32
    %c0_156 = arith.constant 0 : index
    %203 = arith.index_cast %202 : i32 to index
    %c0_157 = arith.constant 0 : index
    %c0_158 = arith.constant 0 : index
    %204 = vector.load %arg2[%c0_156, %203, %c0_157, %c0_158] : memref<1x24x6x128xf32, #tpu.memory_space<vmem>>, vector<1x1x6x128xf32>
    %205 = vector.shape_cast %204 : vector<1x1x6x128xf32> to vector<6x128xf32>
    %206 = vector.extract_strided_slice %205 {offsets = [0, 0], sizes = [4, 128], strides = [1, 1]} : vector<6x128xf32> to vector<4x128xf32>
    %c20 = arith.constant 20 : index
    %c0_159 = arith.constant 0 : index
    %c0_160 = arith.constant 0 : index
    %207 = vector.load %arg3[%c20, %c0_159, %c0_160] : memref<25x128x128xf32, #tpu.memory_space<vmem>>, vector<1x128x128xf32>
    %208 = vector.shape_cast %207 : vector<1x128x128xf32> to vector<128x128xf32>
    %cst_161 = arith.constant dense<0.000000e+00> : vector<4x128xf32>
    %209 = tpu.matmul %206, %208, %cst_161 {dimension_numbers = #tpu.dot_dimension_numbers<[1], [0], [0], [1], [0, 0, 1, 1], [], []>} : vector<4x128xf32>, vector<128x128xf32>, vector<4x128xf32> -> vector<4x128xf32>
    %210 = arith.addf %200, %209 : vector<4x128xf32>
    %c6_i32_162 = arith.constant 6 : i32
    %211 = arith.addi %c6_i32_162, %arg1 : i32
    %c2_i32_163 = arith.constant 2 : i32
    %212 = arith.addi %211, %c2_i32_163 : i32
    %c0_164 = arith.constant 0 : index
    %213 = arith.index_cast %212 : i32 to index
    %c0_165 = arith.constant 0 : index
    %c0_166 = arith.constant 0 : index
    %214 = vector.load %arg2[%c0_164, %213, %c0_165, %c0_166] : memref<1x24x6x128xf32, #tpu.memory_space<vmem>>, vector<1x1x6x128xf32>
    %215 = vector.shape_cast %214 : vector<1x1x6x128xf32> to vector<6x128xf32>
    %216 = vector.extract_strided_slice %215 {offsets = [0, 0], sizes = [4, 128], strides = [1, 1]} : vector<6x128xf32> to vector<4x128xf32>
    %c21 = arith.constant 21 : index
    %c0_167 = arith.constant 0 : index
    %c0_168 = arith.constant 0 : index
    %217 = vector.load %arg3[%c21, %c0_167, %c0_168] : memref<25x128x128xf32, #tpu.memory_space<vmem>>, vector<1x128x128xf32>
    %218 = vector.shape_cast %217 : vector<1x128x128xf32> to vector<128x128xf32>
    %cst_169 = arith.constant dense<0.000000e+00> : vector<4x128xf32>
    %219 = tpu.matmul %216, %218, %cst_169 {dimension_numbers = #tpu.dot_dimension_numbers<[1], [0], [0], [1], [0, 0, 1, 1], [], []>} : vector<4x128xf32>, vector<128x128xf32>, vector<4x128xf32> -> vector<4x128xf32>
    %220 = arith.addf %210, %219 : vector<4x128xf32>
    %c0_i32_170 = arith.constant 0 : i32
    %221 = arith.addi %c0_i32_170, %arg1 : i32
    %c2_i32_171 = arith.constant 2 : i32
    %222 = arith.addi %221, %c2_i32_171 : i32
    %c0_172 = arith.constant 0 : index
    %223 = arith.index_cast %222 : i32 to index
    %c0_173 = arith.constant 0 : index
    %c0_174 = arith.constant 0 : index
    %224 = vector.load %arg2[%c0_172, %223, %c0_173, %c0_174] : memref<1x24x6x128xf32, #tpu.memory_space<vmem>>, vector<1x1x6x128xf32>
    %225 = vector.shape_cast %224 : vector<1x1x6x128xf32> to vector<6x128xf32>
    %226 = vector.extract_strided_slice %225 {offsets = [1, 0], sizes = [4, 128], strides = [1, 1]} : vector<6x128xf32> to vector<4x128xf32>
    %c22 = arith.constant 22 : index
    %c0_175 = arith.constant 0 : index
    %c0_176 = arith.constant 0 : index
    %227 = vector.load %arg3[%c22, %c0_175, %c0_176] : memref<25x128x128xf32, #tpu.memory_space<vmem>>, vector<1x128x128xf32>
    %228 = vector.shape_cast %227 : vector<1x128x128xf32> to vector<128x128xf32>
    %cst_177 = arith.constant dense<0.000000e+00> : vector<4x128xf32>
    %229 = tpu.matmul %226, %228, %cst_177 {dimension_numbers = #tpu.dot_dimension_numbers<[1], [0], [0], [1], [0, 0, 1, 1], [], []>} : vector<4x128xf32>, vector<128x128xf32>, vector<4x128xf32> -> vector<4x128xf32>
    %230 = arith.addf %220, %229 : vector<4x128xf32>
    %c6_i32_178 = arith.constant 6 : i32
    %231 = arith.addi %c6_i32_178, %arg1 : i32
    %c2_i32_179 = arith.constant 2 : i32
    %232 = arith.addi %231, %c2_i32_179 : i32
    %c0_180 = arith.constant 0 : index
    %233 = arith.index_cast %232 : i32 to index
    %c0_181 = arith.constant 0 : index
    %c0_182 = arith.constant 0 : index
    %234 = vector.load %arg2[%c0_180, %233, %c0_181, %c0_182] : memref<1x24x6x128xf32, #tpu.memory_space<vmem>>, vector<1x1x6x128xf32>
    %235 = vector.shape_cast %234 : vector<1x1x6x128xf32> to vector<6x128xf32>
    %236 = vector.extract_strided_slice %235 {offsets = [1, 0], sizes = [4, 128], strides = [1, 1]} : vector<6x128xf32> to vector<4x128xf32>
    %c23 = arith.constant 23 : index
    %c0_183 = arith.constant 0 : index
    %c0_184 = arith.constant 0 : index
    %237 = vector.load %arg3[%c23, %c0_183, %c0_184] : memref<25x128x128xf32, #tpu.memory_space<vmem>>, vector<1x128x128xf32>
    %238 = vector.shape_cast %237 : vector<1x128x128xf32> to vector<128x128xf32>
    %cst_185 = arith.constant dense<0.000000e+00> : vector<4x128xf32>
    %239 = tpu.matmul %236, %238, %cst_185 {dimension_numbers = #tpu.dot_dimension_numbers<[1], [0], [0], [1], [0, 0, 1, 1], [], []>} : vector<4x128xf32>, vector<128x128xf32>, vector<4x128xf32> -> vector<4x128xf32>
    %240 = arith.addf %230, %239 : vector<4x128xf32>
    %c0_i32_186 = arith.constant 0 : i32
    %241 = arith.addi %c0_i32_186, %arg1 : i32
    %c2_i32_187 = arith.constant 2 : i32
    %242 = arith.addi %241, %c2_i32_187 : i32
    %c0_188 = arith.constant 0 : index
    %243 = arith.index_cast %242 : i32 to index
    %c0_189 = arith.constant 0 : index
    %c0_190 = arith.constant 0 : index
    %244 = vector.load %arg2[%c0_188, %243, %c0_189, %c0_190] : memref<1x24x6x128xf32, #tpu.memory_space<vmem>>, vector<1x1x6x128xf32>
    %245 = vector.shape_cast %244 : vector<1x1x6x128xf32> to vector<6x128xf32>
    %246 = vector.extract_strided_slice %245 {offsets = [2, 0], sizes = [4, 128], strides = [1, 1]} : vector<6x128xf32> to vector<4x128xf32>
    %c24 = arith.constant 24 : index
    %c0_191 = arith.constant 0 : index
    %c0_192 = arith.constant 0 : index
    %247 = vector.load %arg3[%c24, %c0_191, %c0_192] : memref<25x128x128xf32, #tpu.memory_space<vmem>>, vector<1x128x128xf32>
    %248 = vector.shape_cast %247 : vector<1x128x128xf32> to vector<128x128xf32>
    %cst_193 = arith.constant dense<0.000000e+00> : vector<4x128xf32>
    %249 = tpu.matmul %246, %248, %cst_193 {dimension_numbers = #tpu.dot_dimension_numbers<[1], [0], [0], [1], [0, 0, 1, 1], [], []>} : vector<4x128xf32>, vector<128x128xf32>, vector<4x128xf32> -> vector<4x128xf32>
    %250 = arith.addf %240, %249 : vector<4x128xf32>
    %c0_194 = arith.constant 0 : index
    %c0_195 = arith.constant 0 : index
    %251 = vector.load %arg4[%c0_194, %c0_195] : memref<1x128xf32, #tpu.memory_space<vmem>>, vector<1x128xf32>
    %252 = vector.broadcast %251 : vector<1x128xf32> to vector<4x128xf32>
    %253 = arith.addf %250, %252 : vector<4x128xf32>
    %cst_196 = arith.constant 0.000000e+00 : f32
    %254 = vector.broadcast %cst_196 : f32 to vector<4x128xf32>
    %255 = arith.maximumf %253, %254 : vector<4x128xf32>
    %c0_197 = arith.constant 0 : index
    %c0_198 = arith.constant 0 : index
    %c0_199 = arith.constant 0 : index
    %c0_200 = arith.constant 0 : index
    %256 = vector.load %arg5[%c0_197, %c0_198, %c0_199, %c0_200] : memref<1x1x4x128xf32, #tpu.memory_space<vmem>>, vector<1x1x4x128xf32>
    %257 = vector.shape_cast %256 : vector<1x1x4x128xf32> to vector<4x128xf32>
    %258 = vector.shape_cast %255 : vector<4x128xf32> to vector<1x1x4x128xf32>
    tpu.vector_store %arg5[%c0_197, %c0_198, %c0_199, %c0_200], %258 {strides = array<i32>} : memref<1x1x4x128xf32, #tpu.memory_space<vmem>>, vector<1x1x4x128xf32>,
    return
  }
  func.func @transform_0(%arg0: i32, %arg1: i32) -> (i32, i32, i32, i32) {
    %c0_i32 = arith.constant 0 : i32
    %c0_i32_0 = arith.constant 0 : i32
    %c0_i32_1 = arith.constant 0 : i32
    %c0_i32_2 = arith.constant 0 : i32
    return %arg0, %c0_i32, %c0_i32_0, %c0_i32_1 : i32, i32, i32, i32
  }
  func.func @transform_1(%arg0: i32, %arg1: i32) -> (i32, i32, i32) {
    %c0_i32 = arith.constant 0 : i32
    %c0_i32_0 = arith.constant 0 : i32
    %c0_i32_1 = arith.constant 0 : i32
    %c0_i32_2 = arith.constant 0 : i32
    return %c0_i32, %c0_i32_0, %c0_i32_1 : i32, i32, i32
  }
  func.func @transform_2(%arg0: i32, %arg1: i32) -> (i32, i32) {
    %c0_i32 = arith.constant 0 : i32
    %c0_i32_0 = arith.constant 0 : i32
    %c0_i32_1 = arith.constant 0 : i32
    return %c0_i32, %c0_i32_0 : i32, i32
  }
  func.func @transform_3(%arg0: i32, %arg1: i32) -> (i32, i32, i32, i32) {
    %c0_i32 = arith.constant 0 : i32
    %c0_i32_0 = arith.constant 0 : i32
    %c0_i32_1 = arith.constant 0 : i32
    return %arg0, %arg1, %c0_i32, %c0_i32_0 : i32, i32, i32, i32
  }
}

module attributes {stable_mosaic.version = 11 : i64} {
  func.func @_conv5x5_kernel(%arg0: i32, %arg1: i32, %arg2: memref<1x16x4x128xf32, #tpu.memory_space<vmem>>, %arg3: memref<25x128x128xf32, #tpu.memory_space<vmem>>, %arg4: memref<1x128xf32, #tpu.memory_space<vmem>>, %arg5: memref<1x1x2x128xf32, #tpu.memory_space<vmem>>) attributes {dimension_semantics = [#tpu.dimension_semantics<parallel>, #tpu.dimension_semantics<parallel>], iteration_bounds = array<i64: 2, 2>, scalar_prefetch = 0 : i64, scratch_operands = 0 : i64, tpu.core_type = #tpu.core_type<tc>, window_params = [{transform_indices = @transform_0, window_bounds = array<i64: 1, 16, 4, 128>}, {pipeline_mode = #tpu.pipeline_mode<synchronous>, transform_indices = @transform_1, window_bounds = array<i64: 25, 128, 128>}, {pipeline_mode = #tpu.pipeline_mode<synchronous>, transform_indices = @transform_2, window_bounds = array<i64: 1, 128>}, {transform_indices = @transform_3, window_bounds = array<i64: 1, 1, 2, 128>}]} {
    %cst = arith.constant 0.000000e+00 : f32
    %0 = vector.broadcast %cst : f32 to vector<2x128xf32>
    %c0_i32 = arith.constant 0 : i32
    %1 = arith.addi %c0_i32, %arg1 : i32
    %c0_i32_0 = arith.constant 0 : i32
    %2 = arith.addi %1, %c0_i32_0 : i32
    %c0 = arith.constant 0 : index
    %3 = arith.index_cast %2 : i32 to index
    %c0_1 = arith.constant 0 : index
    %c0_2 = arith.constant 0 : index
    %4 = vector.load %arg2[%c0, %3, %c0_1, %c0_2] : memref<1x16x4x128xf32, #tpu.memory_space<vmem>>, vector<1x1x4x128xf32>
    %5 = vector.shape_cast %4 : vector<1x1x4x128xf32> to vector<4x128xf32>
    %6 = vector.extract_strided_slice %5 {offsets = [0, 0], sizes = [2, 128], strides = [1, 1]} : vector<4x128xf32> to vector<2x128xf32>
    %c0_3 = arith.constant 0 : index
    %c0_4 = arith.constant 0 : index
    %c0_5 = arith.constant 0 : index
    %7 = vector.load %arg3[%c0_3, %c0_4, %c0_5] : memref<25x128x128xf32, #tpu.memory_space<vmem>>, vector<1x128x128xf32>
    %8 = vector.shape_cast %7 : vector<1x128x128xf32> to vector<128x128xf32>
    %cst_6 = arith.constant dense<0.000000e+00> : vector<2x128xf32>
    %9 = tpu.matmul %6, %8, %cst_6 {dimension_numbers = #tpu.dot_dimension_numbers<[1], [0], [0], [1], [0, 0, 1, 1], [], []>} : vector<2x128xf32>, vector<128x128xf32>, vector<2x128xf32> -> vector<2x128xf32>
    %10 = arith.addf %0, %9 : vector<2x128xf32>
    %c4_i32 = arith.constant 4 : i32
    %11 = arith.addi %c4_i32, %arg1 : i32
    %c0_i32_7 = arith.constant 0 : i32
    %12 = arith.addi %11, %c0_i32_7 : i32
    %c0_8 = arith.constant 0 : index
    %13 = arith.index_cast %12 : i32 to index
    %c0_9 = arith.constant 0 : index
    %c0_10 = arith.constant 0 : index
    %14 = vector.load %arg2[%c0_8, %13, %c0_9, %c0_10] : memref<1x16x4x128xf32, #tpu.memory_space<vmem>>, vector<1x1x4x128xf32>
    %15 = vector.shape_cast %14 : vector<1x1x4x128xf32> to vector<4x128xf32>
    %16 = vector.extract_strided_slice %15 {offsets = [0, 0], sizes = [2, 128], strides = [1, 1]} : vector<4x128xf32> to vector<2x128xf32>
    %c1 = arith.constant 1 : index
    %c0_11 = arith.constant 0 : index
    %c0_12 = arith.constant 0 : index
    %17 = vector.load %arg3[%c1, %c0_11, %c0_12] : memref<25x128x128xf32, #tpu.memory_space<vmem>>, vector<1x128x128xf32>
    %18 = vector.shape_cast %17 : vector<1x128x128xf32> to vector<128x128xf32>
    %cst_13 = arith.constant dense<0.000000e+00> : vector<2x128xf32>
    %19 = tpu.matmul %16, %18, %cst_13 {dimension_numbers = #tpu.dot_dimension_numbers<[1], [0], [0], [1], [0, 0, 1, 1], [], []>} : vector<2x128xf32>, vector<128x128xf32>, vector<2x128xf32> -> vector<2x128xf32>
    %20 = arith.addf %10, %19 : vector<2x128xf32>
    %c0_i32_14 = arith.constant 0 : i32
    %21 = arith.addi %c0_i32_14, %arg1 : i32
    %c0_i32_15 = arith.constant 0 : i32
    %22 = arith.addi %21, %c0_i32_15 : i32
    %c0_16 = arith.constant 0 : index
    %23 = arith.index_cast %22 : i32 to index
    %c0_17 = arith.constant 0 : index
    %c0_18 = arith.constant 0 : index
    %24 = vector.load %arg2[%c0_16, %23, %c0_17, %c0_18] : memref<1x16x4x128xf32, #tpu.memory_space<vmem>>, vector<1x1x4x128xf32>
    %25 = vector.shape_cast %24 : vector<1x1x4x128xf32> to vector<4x128xf32>
    %26 = vector.extract_strided_slice %25 {offsets = [1, 0], sizes = [2, 128], strides = [1, 1]} : vector<4x128xf32> to vector<2x128xf32>
    %c2 = arith.constant 2 : index
    %c0_19 = arith.constant 0 : index
    %c0_20 = arith.constant 0 : index
    %27 = vector.load %arg3[%c2, %c0_19, %c0_20] : memref<25x128x128xf32, #tpu.memory_space<vmem>>, vector<1x128x128xf32>
    %28 = vector.shape_cast %27 : vector<1x128x128xf32> to vector<128x128xf32>
    %cst_21 = arith.constant dense<0.000000e+00> : vector<2x128xf32>
    %29 = tpu.matmul %26, %28, %cst_21 {dimension_numbers = #tpu.dot_dimension_numbers<[1], [0], [0], [1], [0, 0, 1, 1], [], []>} : vector<2x128xf32>, vector<128x128xf32>, vector<2x128xf32> -> vector<2x128xf32>
    %30 = arith.addf %20, %29 : vector<2x128xf32>
    %c4_i32_22 = arith.constant 4 : i32
    %31 = arith.addi %c4_i32_22, %arg1 : i32
    %c0_i32_23 = arith.constant 0 : i32
    %32 = arith.addi %31, %c0_i32_23 : i32
    %c0_24 = arith.constant 0 : index
    %33 = arith.index_cast %32 : i32 to index
    %c0_25 = arith.constant 0 : index
    %c0_26 = arith.constant 0 : index
    %34 = vector.load %arg2[%c0_24, %33, %c0_25, %c0_26] : memref<1x16x4x128xf32, #tpu.memory_space<vmem>>, vector<1x1x4x128xf32>
    %35 = vector.shape_cast %34 : vector<1x1x4x128xf32> to vector<4x128xf32>
    %36 = vector.extract_strided_slice %35 {offsets = [1, 0], sizes = [2, 128], strides = [1, 1]} : vector<4x128xf32> to vector<2x128xf32>
    %c3 = arith.constant 3 : index
    %c0_27 = arith.constant 0 : index
    %c0_28 = arith.constant 0 : index
    %37 = vector.load %arg3[%c3, %c0_27, %c0_28] : memref<25x128x128xf32, #tpu.memory_space<vmem>>, vector<1x128x128xf32>
    %38 = vector.shape_cast %37 : vector<1x128x128xf32> to vector<128x128xf32>
    %cst_29 = arith.constant dense<0.000000e+00> : vector<2x128xf32>
    %39 = tpu.matmul %36, %38, %cst_29 {dimension_numbers = #tpu.dot_dimension_numbers<[1], [0], [0], [1], [0, 0, 1, 1], [], []>} : vector<2x128xf32>, vector<128x128xf32>, vector<2x128xf32> -> vector<2x128xf32>
    %40 = arith.addf %30, %39 : vector<2x128xf32>
    %c0_i32_30 = arith.constant 0 : i32
    %41 = arith.addi %c0_i32_30, %arg1 : i32
    %c0_i32_31 = arith.constant 0 : i32
    %42 = arith.addi %41, %c0_i32_31 : i32
    %c0_32 = arith.constant 0 : index
    %43 = arith.index_cast %42 : i32 to index
    %c0_33 = arith.constant 0 : index
    %c0_34 = arith.constant 0 : index
    %44 = vector.load %arg2[%c0_32, %43, %c0_33, %c0_34] : memref<1x16x4x128xf32, #tpu.memory_space<vmem>>, vector<1x1x4x128xf32>
    %45 = vector.shape_cast %44 : vector<1x1x4x128xf32> to vector<4x128xf32>
    %46 = vector.extract_strided_slice %45 {offsets = [2, 0], sizes = [2, 128], strides = [1, 1]} : vector<4x128xf32> to vector<2x128xf32>
    %c4 = arith.constant 4 : index
    %c0_35 = arith.constant 0 : index
    %c0_36 = arith.constant 0 : index
    %47 = vector.load %arg3[%c4, %c0_35, %c0_36] : memref<25x128x128xf32, #tpu.memory_space<vmem>>, vector<1x128x128xf32>
    %48 = vector.shape_cast %47 : vector<1x128x128xf32> to vector<128x128xf32>
    %cst_37 = arith.constant dense<0.000000e+00> : vector<2x128xf32>
    %49 = tpu.matmul %46, %48, %cst_37 {dimension_numbers = #tpu.dot_dimension_numbers<[1], [0], [0], [1], [0, 0, 1, 1], [], []>} : vector<2x128xf32>, vector<128x128xf32>, vector<2x128xf32> -> vector<2x128xf32>
    %50 = arith.addf %40, %49 : vector<2x128xf32>
    %c8_i32 = arith.constant 8 : i32
    %51 = arith.addi %c8_i32, %arg1 : i32
    %c0_i32_38 = arith.constant 0 : i32
    %52 = arith.addi %51, %c0_i32_38 : i32
    %c0_39 = arith.constant 0 : index
    %53 = arith.index_cast %52 : i32 to index
    %c0_40 = arith.constant 0 : index
    %c0_41 = arith.constant 0 : index
    %54 = vector.load %arg2[%c0_39, %53, %c0_40, %c0_41] : memref<1x16x4x128xf32, #tpu.memory_space<vmem>>, vector<1x1x4x128xf32>
    %55 = vector.shape_cast %54 : vector<1x1x4x128xf32> to vector<4x128xf32>
    %56 = vector.extract_strided_slice %55 {offsets = [0, 0], sizes = [2, 128], strides = [1, 1]} : vector<4x128xf32> to vector<2x128xf32>
    %c5 = arith.constant 5 : index
    %c0_42 = arith.constant 0 : index
    %c0_43 = arith.constant 0 : index
    %57 = vector.load %arg3[%c5, %c0_42, %c0_43] : memref<25x128x128xf32, #tpu.memory_space<vmem>>, vector<1x128x128xf32>
    %58 = vector.shape_cast %57 : vector<1x128x128xf32> to vector<128x128xf32>
    %cst_44 = arith.constant dense<0.000000e+00> : vector<2x128xf32>
    %59 = tpu.matmul %56, %58, %cst_44 {dimension_numbers = #tpu.dot_dimension_numbers<[1], [0], [0], [1], [0, 0, 1, 1], [], []>} : vector<2x128xf32>, vector<128x128xf32>, vector<2x128xf32> -> vector<2x128xf32>
    %60 = arith.addf %50, %59 : vector<2x128xf32>
    %c12_i32 = arith.constant 12 : i32
    %61 = arith.addi %c12_i32, %arg1 : i32
    %c0_i32_45 = arith.constant 0 : i32
    %62 = arith.addi %61, %c0_i32_45 : i32
    %c0_46 = arith.constant 0 : index
    %63 = arith.index_cast %62 : i32 to index
    %c0_47 = arith.constant 0 : index
    %c0_48 = arith.constant 0 : index
    %64 = vector.load %arg2[%c0_46, %63, %c0_47, %c0_48] : memref<1x16x4x128xf32, #tpu.memory_space<vmem>>, vector<1x1x4x128xf32>
    %65 = vector.shape_cast %64 : vector<1x1x4x128xf32> to vector<4x128xf32>
    %66 = vector.extract_strided_slice %65 {offsets = [0, 0], sizes = [2, 128], strides = [1, 1]} : vector<4x128xf32> to vector<2x128xf32>
    %c6 = arith.constant 6 : index
    %c0_49 = arith.constant 0 : index
    %c0_50 = arith.constant 0 : index
    %67 = vector.load %arg3[%c6, %c0_49, %c0_50] : memref<25x128x128xf32, #tpu.memory_space<vmem>>, vector<1x128x128xf32>
    %68 = vector.shape_cast %67 : vector<1x128x128xf32> to vector<128x128xf32>
    %cst_51 = arith.constant dense<0.000000e+00> : vector<2x128xf32>
    %69 = tpu.matmul %66, %68, %cst_51 {dimension_numbers = #tpu.dot_dimension_numbers<[1], [0], [0], [1], [0, 0, 1, 1], [], []>} : vector<2x128xf32>, vector<128x128xf32>, vector<2x128xf32> -> vector<2x128xf32>
    %70 = arith.addf %60, %69 : vector<2x128xf32>
    %c8_i32_52 = arith.constant 8 : i32
    %71 = arith.addi %c8_i32_52, %arg1 : i32
    %c0_i32_53 = arith.constant 0 : i32
    %72 = arith.addi %71, %c0_i32_53 : i32
    %c0_54 = arith.constant 0 : index
    %73 = arith.index_cast %72 : i32 to index
    %c0_55 = arith.constant 0 : index
    %c0_56 = arith.constant 0 : index
    %74 = vector.load %arg2[%c0_54, %73, %c0_55, %c0_56] : memref<1x16x4x128xf32, #tpu.memory_space<vmem>>, vector<1x1x4x128xf32>
    %75 = vector.shape_cast %74 : vector<1x1x4x128xf32> to vector<4x128xf32>
    %76 = vector.extract_strided_slice %75 {offsets = [1, 0], sizes = [2, 128], strides = [1, 1]} : vector<4x128xf32> to vector<2x128xf32>
    %c7 = arith.constant 7 : index
    %c0_57 = arith.constant 0 : index
    %c0_58 = arith.constant 0 : index
    %77 = vector.load %arg3[%c7, %c0_57, %c0_58] : memref<25x128x128xf32, #tpu.memory_space<vmem>>, vector<1x128x128xf32>
    %78 = vector.shape_cast %77 : vector<1x128x128xf32> to vector<128x128xf32>
    %cst_59 = arith.constant dense<0.000000e+00> : vector<2x128xf32>
    %79 = tpu.matmul %76, %78, %cst_59 {dimension_numbers = #tpu.dot_dimension_numbers<[1], [0], [0], [1], [0, 0, 1, 1], [], []>} : vector<2x128xf32>, vector<128x128xf32>, vector<2x128xf32> -> vector<2x128xf32>
    %80 = arith.addf %70, %79 : vector<2x128xf32>
    %c12_i32_60 = arith.constant 12 : i32
    %81 = arith.addi %c12_i32_60, %arg1 : i32
    %c0_i32_61 = arith.constant 0 : i32
    %82 = arith.addi %81, %c0_i32_61 : i32
    %c0_62 = arith.constant 0 : index
    %83 = arith.index_cast %82 : i32 to index
    %c0_63 = arith.constant 0 : index
    %c0_64 = arith.constant 0 : index
    %84 = vector.load %arg2[%c0_62, %83, %c0_63, %c0_64] : memref<1x16x4x128xf32, #tpu.memory_space<vmem>>, vector<1x1x4x128xf32>
    %85 = vector.shape_cast %84 : vector<1x1x4x128xf32> to vector<4x128xf32>
    %86 = vector.extract_strided_slice %85 {offsets = [1, 0], sizes = [2, 128], strides = [1, 1]} : vector<4x128xf32> to vector<2x128xf32>
    %c8 = arith.constant 8 : index
    %c0_65 = arith.constant 0 : index
    %c0_66 = arith.constant 0 : index
    %87 = vector.load %arg3[%c8, %c0_65, %c0_66] : memref<25x128x128xf32, #tpu.memory_space<vmem>>, vector<1x128x128xf32>
    %88 = vector.shape_cast %87 : vector<1x128x128xf32> to vector<128x128xf32>
    %cst_67 = arith.constant dense<0.000000e+00> : vector<2x128xf32>
    %89 = tpu.matmul %86, %88, %cst_67 {dimension_numbers = #tpu.dot_dimension_numbers<[1], [0], [0], [1], [0, 0, 1, 1], [], []>} : vector<2x128xf32>, vector<128x128xf32>, vector<2x128xf32> -> vector<2x128xf32>
    %90 = arith.addf %80, %89 : vector<2x128xf32>
    %c8_i32_68 = arith.constant 8 : i32
    %91 = arith.addi %c8_i32_68, %arg1 : i32
    %c0_i32_69 = arith.constant 0 : i32
    %92 = arith.addi %91, %c0_i32_69 : i32
    %c0_70 = arith.constant 0 : index
    %93 = arith.index_cast %92 : i32 to index
    %c0_71 = arith.constant 0 : index
    %c0_72 = arith.constant 0 : index
    %94 = vector.load %arg2[%c0_70, %93, %c0_71, %c0_72] : memref<1x16x4x128xf32, #tpu.memory_space<vmem>>, vector<1x1x4x128xf32>
    %95 = vector.shape_cast %94 : vector<1x1x4x128xf32> to vector<4x128xf32>
    %96 = vector.extract_strided_slice %95 {offsets = [2, 0], sizes = [2, 128], strides = [1, 1]} : vector<4x128xf32> to vector<2x128xf32>
    %c9 = arith.constant 9 : index
    %c0_73 = arith.constant 0 : index
    %c0_74 = arith.constant 0 : index
    %97 = vector.load %arg3[%c9, %c0_73, %c0_74] : memref<25x128x128xf32, #tpu.memory_space<vmem>>, vector<1x128x128xf32>
    %98 = vector.shape_cast %97 : vector<1x128x128xf32> to vector<128x128xf32>
    %cst_75 = arith.constant dense<0.000000e+00> : vector<2x128xf32>
    %99 = tpu.matmul %96, %98, %cst_75 {dimension_numbers = #tpu.dot_dimension_numbers<[1], [0], [0], [1], [0, 0, 1, 1], [], []>} : vector<2x128xf32>, vector<128x128xf32>, vector<2x128xf32> -> vector<2x128xf32>
    %100 = arith.addf %90, %99 : vector<2x128xf32>
    %c0_i32_76 = arith.constant 0 : i32
    %101 = arith.addi %c0_i32_76, %arg1 : i32
    %c1_i32 = arith.constant 1 : i32
    %102 = arith.addi %101, %c1_i32 : i32
    %c0_77 = arith.constant 0 : index
    %103 = arith.index_cast %102 : i32 to index
    %c0_78 = arith.constant 0 : index
    %c0_79 = arith.constant 0 : index
    %104 = vector.load %arg2[%c0_77, %103, %c0_78, %c0_79] : memref<1x16x4x128xf32, #tpu.memory_space<vmem>>, vector<1x1x4x128xf32>
    %105 = vector.shape_cast %104 : vector<1x1x4x128xf32> to vector<4x128xf32>
    %106 = vector.extract_strided_slice %105 {offsets = [0, 0], sizes = [2, 128], strides = [1, 1]} : vector<4x128xf32> to vector<2x128xf32>
    %c10 = arith.constant 10 : index
    %c0_80 = arith.constant 0 : index
    %c0_81 = arith.constant 0 : index
    %107 = vector.load %arg3[%c10, %c0_80, %c0_81] : memref<25x128x128xf32, #tpu.memory_space<vmem>>, vector<1x128x128xf32>
    %108 = vector.shape_cast %107 : vector<1x128x128xf32> to vector<128x128xf32>
    %cst_82 = arith.constant dense<0.000000e+00> : vector<2x128xf32>
    %109 = tpu.matmul %106, %108, %cst_82 {dimension_numbers = #tpu.dot_dimension_numbers<[1], [0], [0], [1], [0, 0, 1, 1], [], []>} : vector<2x128xf32>, vector<128x128xf32>, vector<2x128xf32> -> vector<2x128xf32>
    %110 = arith.addf %100, %109 : vector<2x128xf32>
    %c4_i32_83 = arith.constant 4 : i32
    %111 = arith.addi %c4_i32_83, %arg1 : i32
    %c1_i32_84 = arith.constant 1 : i32
    %112 = arith.addi %111, %c1_i32_84 : i32
    %c0_85 = arith.constant 0 : index
    %113 = arith.index_cast %112 : i32 to index
    %c0_86 = arith.constant 0 : index
    %c0_87 = arith.constant 0 : index
    %114 = vector.load %arg2[%c0_85, %113, %c0_86, %c0_87] : memref<1x16x4x128xf32, #tpu.memory_space<vmem>>, vector<1x1x4x128xf32>
    %115 = vector.shape_cast %114 : vector<1x1x4x128xf32> to vector<4x128xf32>
    %116 = vector.extract_strided_slice %115 {offsets = [0, 0], sizes = [2, 128], strides = [1, 1]} : vector<4x128xf32> to vector<2x128xf32>
    %c11 = arith.constant 11 : index
    %c0_88 = arith.constant 0 : index
    %c0_89 = arith.constant 0 : index
    %117 = vector.load %arg3[%c11, %c0_88, %c0_89] : memref<25x128x128xf32, #tpu.memory_space<vmem>>, vector<1x128x128xf32>
    %118 = vector.shape_cast %117 : vector<1x128x128xf32> to vector<128x128xf32>
    %cst_90 = arith.constant dense<0.000000e+00> : vector<2x128xf32>
    %119 = tpu.matmul %116, %118, %cst_90 {dimension_numbers = #tpu.dot_dimension_numbers<[1], [0], [0], [1], [0, 0, 1, 1], [], []>} : vector<2x128xf32>, vector<128x128xf32>, vector<2x128xf32> -> vector<2x128xf32>
    %120 = arith.addf %110, %119 : vector<2x128xf32>
    %c0_i32_91 = arith.constant 0 : i32
    %121 = arith.addi %c0_i32_91, %arg1 : i32
    %c1_i32_92 = arith.constant 1 : i32
    %122 = arith.addi %121, %c1_i32_92 : i32
    %c0_93 = arith.constant 0 : index
    %123 = arith.index_cast %122 : i32 to index
    %c0_94 = arith.constant 0 : index
    %c0_95 = arith.constant 0 : index
    %124 = vector.load %arg2[%c0_93, %123, %c0_94, %c0_95] : memref<1x16x4x128xf32, #tpu.memory_space<vmem>>, vector<1x1x4x128xf32>
    %125 = vector.shape_cast %124 : vector<1x1x4x128xf32> to vector<4x128xf32>
    %126 = vector.extract_strided_slice %125 {offsets = [1, 0], sizes = [2, 128], strides = [1, 1]} : vector<4x128xf32> to vector<2x128xf32>
    %c12 = arith.constant 12 : index
    %c0_96 = arith.constant 0 : index
    %c0_97 = arith.constant 0 : index
    %127 = vector.load %arg3[%c12, %c0_96, %c0_97] : memref<25x128x128xf32, #tpu.memory_space<vmem>>, vector<1x128x128xf32>
    %128 = vector.shape_cast %127 : vector<1x128x128xf32> to vector<128x128xf32>
    %cst_98 = arith.constant dense<0.000000e+00> : vector<2x128xf32>
    %129 = tpu.matmul %126, %128, %cst_98 {dimension_numbers = #tpu.dot_dimension_numbers<[1], [0], [0], [1], [0, 0, 1, 1], [], []>} : vector<2x128xf32>, vector<128x128xf32>, vector<2x128xf32> -> vector<2x128xf32>
    %130 = arith.addf %120, %129 : vector<2x128xf32>
    %c4_i32_99 = arith.constant 4 : i32
    %131 = arith.addi %c4_i32_99, %arg1 : i32
    %c1_i32_100 = arith.constant 1 : i32
    %132 = arith.addi %131, %c1_i32_100 : i32
    %c0_101 = arith.constant 0 : index
    %133 = arith.index_cast %132 : i32 to index
    %c0_102 = arith.constant 0 : index
    %c0_103 = arith.constant 0 : index
    %134 = vector.load %arg2[%c0_101, %133, %c0_102, %c0_103] : memref<1x16x4x128xf32, #tpu.memory_space<vmem>>, vector<1x1x4x128xf32>
    %135 = vector.shape_cast %134 : vector<1x1x4x128xf32> to vector<4x128xf32>
    %136 = vector.extract_strided_slice %135 {offsets = [1, 0], sizes = [2, 128], strides = [1, 1]} : vector<4x128xf32> to vector<2x128xf32>
    %c13 = arith.constant 13 : index
    %c0_104 = arith.constant 0 : index
    %c0_105 = arith.constant 0 : index
    %137 = vector.load %arg3[%c13, %c0_104, %c0_105] : memref<25x128x128xf32, #tpu.memory_space<vmem>>, vector<1x128x128xf32>
    %138 = vector.shape_cast %137 : vector<1x128x128xf32> to vector<128x128xf32>
    %cst_106 = arith.constant dense<0.000000e+00> : vector<2x128xf32>
    %139 = tpu.matmul %136, %138, %cst_106 {dimension_numbers = #tpu.dot_dimension_numbers<[1], [0], [0], [1], [0, 0, 1, 1], [], []>} : vector<2x128xf32>, vector<128x128xf32>, vector<2x128xf32> -> vector<2x128xf32>
    %140 = arith.addf %130, %139 : vector<2x128xf32>
    %c0_i32_107 = arith.constant 0 : i32
    %141 = arith.addi %c0_i32_107, %arg1 : i32
    %c1_i32_108 = arith.constant 1 : i32
    %142 = arith.addi %141, %c1_i32_108 : i32
    %c0_109 = arith.constant 0 : index
    %143 = arith.index_cast %142 : i32 to index
    %c0_110 = arith.constant 0 : index
    %c0_111 = arith.constant 0 : index
    %144 = vector.load %arg2[%c0_109, %143, %c0_110, %c0_111] : memref<1x16x4x128xf32, #tpu.memory_space<vmem>>, vector<1x1x4x128xf32>
    %145 = vector.shape_cast %144 : vector<1x1x4x128xf32> to vector<4x128xf32>
    %146 = vector.extract_strided_slice %145 {offsets = [2, 0], sizes = [2, 128], strides = [1, 1]} : vector<4x128xf32> to vector<2x128xf32>
    %c14 = arith.constant 14 : index
    %c0_112 = arith.constant 0 : index
    %c0_113 = arith.constant 0 : index
    %147 = vector.load %arg3[%c14, %c0_112, %c0_113] : memref<25x128x128xf32, #tpu.memory_space<vmem>>, vector<1x128x128xf32>
    %148 = vector.shape_cast %147 : vector<1x128x128xf32> to vector<128x128xf32>
    %cst_114 = arith.constant dense<0.000000e+00> : vector<2x128xf32>
    %149 = tpu.matmul %146, %148, %cst_114 {dimension_numbers = #tpu.dot_dimension_numbers<[1], [0], [0], [1], [0, 0, 1, 1], [], []>} : vector<2x128xf32>, vector<128x128xf32>, vector<2x128xf32> -> vector<2x128xf32>
    %150 = arith.addf %140, %149 : vector<2x128xf32>
    %c8_i32_115 = arith.constant 8 : i32
    %151 = arith.addi %c8_i32_115, %arg1 : i32
    %c1_i32_116 = arith.constant 1 : i32
    %152 = arith.addi %151, %c1_i32_116 : i32
    %c0_117 = arith.constant 0 : index
    %153 = arith.index_cast %152 : i32 to index
    %c0_118 = arith.constant 0 : index
    %c0_119 = arith.constant 0 : index
    %154 = vector.load %arg2[%c0_117, %153, %c0_118, %c0_119] : memref<1x16x4x128xf32, #tpu.memory_space<vmem>>, vector<1x1x4x128xf32>
    %155 = vector.shape_cast %154 : vector<1x1x4x128xf32> to vector<4x128xf32>
    %156 = vector.extract_strided_slice %155 {offsets = [0, 0], sizes = [2, 128], strides = [1, 1]} : vector<4x128xf32> to vector<2x128xf32>
    %c15 = arith.constant 15 : index
    %c0_120 = arith.constant 0 : index
    %c0_121 = arith.constant 0 : index
    %157 = vector.load %arg3[%c15, %c0_120, %c0_121] : memref<25x128x128xf32, #tpu.memory_space<vmem>>, vector<1x128x128xf32>
    %158 = vector.shape_cast %157 : vector<1x128x128xf32> to vector<128x128xf32>
    %cst_122 = arith.constant dense<0.000000e+00> : vector<2x128xf32>
    %159 = tpu.matmul %156, %158, %cst_122 {dimension_numbers = #tpu.dot_dimension_numbers<[1], [0], [0], [1], [0, 0, 1, 1], [], []>} : vector<2x128xf32>, vector<128x128xf32>, vector<2x128xf32> -> vector<2x128xf32>
    %160 = arith.addf %150, %159 : vector<2x128xf32>
    %c12_i32_123 = arith.constant 12 : i32
    %161 = arith.addi %c12_i32_123, %arg1 : i32
    %c1_i32_124 = arith.constant 1 : i32
    %162 = arith.addi %161, %c1_i32_124 : i32
    %c0_125 = arith.constant 0 : index
    %163 = arith.index_cast %162 : i32 to index
    %c0_126 = arith.constant 0 : index
    %c0_127 = arith.constant 0 : index
    %164 = vector.load %arg2[%c0_125, %163, %c0_126, %c0_127] : memref<1x16x4x128xf32, #tpu.memory_space<vmem>>, vector<1x1x4x128xf32>
    %165 = vector.shape_cast %164 : vector<1x1x4x128xf32> to vector<4x128xf32>
    %166 = vector.extract_strided_slice %165 {offsets = [0, 0], sizes = [2, 128], strides = [1, 1]} : vector<4x128xf32> to vector<2x128xf32>
    %c16 = arith.constant 16 : index
    %c0_128 = arith.constant 0 : index
    %c0_129 = arith.constant 0 : index
    %167 = vector.load %arg3[%c16, %c0_128, %c0_129] : memref<25x128x128xf32, #tpu.memory_space<vmem>>, vector<1x128x128xf32>
    %168 = vector.shape_cast %167 : vector<1x128x128xf32> to vector<128x128xf32>
    %cst_130 = arith.constant dense<0.000000e+00> : vector<2x128xf32>
    %169 = tpu.matmul %166, %168, %cst_130 {dimension_numbers = #tpu.dot_dimension_numbers<[1], [0], [0], [1], [0, 0, 1, 1], [], []>} : vector<2x128xf32>, vector<128x128xf32>, vector<2x128xf32> -> vector<2x128xf32>
    %170 = arith.addf %160, %169 : vector<2x128xf32>
    %c8_i32_131 = arith.constant 8 : i32
    %171 = arith.addi %c8_i32_131, %arg1 : i32
    %c1_i32_132 = arith.constant 1 : i32
    %172 = arith.addi %171, %c1_i32_132 : i32
    %c0_133 = arith.constant 0 : index
    %173 = arith.index_cast %172 : i32 to index
    %c0_134 = arith.constant 0 : index
    %c0_135 = arith.constant 0 : index
    %174 = vector.load %arg2[%c0_133, %173, %c0_134, %c0_135] : memref<1x16x4x128xf32, #tpu.memory_space<vmem>>, vector<1x1x4x128xf32>
    %175 = vector.shape_cast %174 : vector<1x1x4x128xf32> to vector<4x128xf32>
    %176 = vector.extract_strided_slice %175 {offsets = [1, 0], sizes = [2, 128], strides = [1, 1]} : vector<4x128xf32> to vector<2x128xf32>
    %c17 = arith.constant 17 : index
    %c0_136 = arith.constant 0 : index
    %c0_137 = arith.constant 0 : index
    %177 = vector.load %arg3[%c17, %c0_136, %c0_137] : memref<25x128x128xf32, #tpu.memory_space<vmem>>, vector<1x128x128xf32>
    %178 = vector.shape_cast %177 : vector<1x128x128xf32> to vector<128x128xf32>
    %cst_138 = arith.constant dense<0.000000e+00> : vector<2x128xf32>
    %179 = tpu.matmul %176, %178, %cst_138 {dimension_numbers = #tpu.dot_dimension_numbers<[1], [0], [0], [1], [0, 0, 1, 1], [], []>} : vector<2x128xf32>, vector<128x128xf32>, vector<2x128xf32> -> vector<2x128xf32>
    %180 = arith.addf %170, %179 : vector<2x128xf32>
    %c12_i32_139 = arith.constant 12 : i32
    %181 = arith.addi %c12_i32_139, %arg1 : i32
    %c1_i32_140 = arith.constant 1 : i32
    %182 = arith.addi %181, %c1_i32_140 : i32
    %c0_141 = arith.constant 0 : index
    %183 = arith.index_cast %182 : i32 to index
    %c0_142 = arith.constant 0 : index
    %c0_143 = arith.constant 0 : index
    %184 = vector.load %arg2[%c0_141, %183, %c0_142, %c0_143] : memref<1x16x4x128xf32, #tpu.memory_space<vmem>>, vector<1x1x4x128xf32>
    %185 = vector.shape_cast %184 : vector<1x1x4x128xf32> to vector<4x128xf32>
    %186 = vector.extract_strided_slice %185 {offsets = [1, 0], sizes = [2, 128], strides = [1, 1]} : vector<4x128xf32> to vector<2x128xf32>
    %c18 = arith.constant 18 : index
    %c0_144 = arith.constant 0 : index
    %c0_145 = arith.constant 0 : index
    %187 = vector.load %arg3[%c18, %c0_144, %c0_145] : memref<25x128x128xf32, #tpu.memory_space<vmem>>, vector<1x128x128xf32>
    %188 = vector.shape_cast %187 : vector<1x128x128xf32> to vector<128x128xf32>
    %cst_146 = arith.constant dense<0.000000e+00> : vector<2x128xf32>
    %189 = tpu.matmul %186, %188, %cst_146 {dimension_numbers = #tpu.dot_dimension_numbers<[1], [0], [0], [1], [0, 0, 1, 1], [], []>} : vector<2x128xf32>, vector<128x128xf32>, vector<2x128xf32> -> vector<2x128xf32>
    %190 = arith.addf %180, %189 : vector<2x128xf32>
    %c8_i32_147 = arith.constant 8 : i32
    %191 = arith.addi %c8_i32_147, %arg1 : i32
    %c1_i32_148 = arith.constant 1 : i32
    %192 = arith.addi %191, %c1_i32_148 : i32
    %c0_149 = arith.constant 0 : index
    %193 = arith.index_cast %192 : i32 to index
    %c0_150 = arith.constant 0 : index
    %c0_151 = arith.constant 0 : index
    %194 = vector.load %arg2[%c0_149, %193, %c0_150, %c0_151] : memref<1x16x4x128xf32, #tpu.memory_space<vmem>>, vector<1x1x4x128xf32>
    %195 = vector.shape_cast %194 : vector<1x1x4x128xf32> to vector<4x128xf32>
    %196 = vector.extract_strided_slice %195 {offsets = [2, 0], sizes = [2, 128], strides = [1, 1]} : vector<4x128xf32> to vector<2x128xf32>
    %c19 = arith.constant 19 : index
    %c0_152 = arith.constant 0 : index
    %c0_153 = arith.constant 0 : index
    %197 = vector.load %arg3[%c19, %c0_152, %c0_153] : memref<25x128x128xf32, #tpu.memory_space<vmem>>, vector<1x128x128xf32>
    %198 = vector.shape_cast %197 : vector<1x128x128xf32> to vector<128x128xf32>
    %cst_154 = arith.constant dense<0.000000e+00> : vector<2x128xf32>
    %199 = tpu.matmul %196, %198, %cst_154 {dimension_numbers = #tpu.dot_dimension_numbers<[1], [0], [0], [1], [0, 0, 1, 1], [], []>} : vector<2x128xf32>, vector<128x128xf32>, vector<2x128xf32> -> vector<2x128xf32>
    %200 = arith.addf %190, %199 : vector<2x128xf32>
    %c0_i32_155 = arith.constant 0 : i32
    %201 = arith.addi %c0_i32_155, %arg1 : i32
    %c2_i32 = arith.constant 2 : i32
    %202 = arith.addi %201, %c2_i32 : i32
    %c0_156 = arith.constant 0 : index
    %203 = arith.index_cast %202 : i32 to index
    %c0_157 = arith.constant 0 : index
    %c0_158 = arith.constant 0 : index
    %204 = vector.load %arg2[%c0_156, %203, %c0_157, %c0_158] : memref<1x16x4x128xf32, #tpu.memory_space<vmem>>, vector<1x1x4x128xf32>
    %205 = vector.shape_cast %204 : vector<1x1x4x128xf32> to vector<4x128xf32>
    %206 = vector.extract_strided_slice %205 {offsets = [0, 0], sizes = [2, 128], strides = [1, 1]} : vector<4x128xf32> to vector<2x128xf32>
    %c20 = arith.constant 20 : index
    %c0_159 = arith.constant 0 : index
    %c0_160 = arith.constant 0 : index
    %207 = vector.load %arg3[%c20, %c0_159, %c0_160] : memref<25x128x128xf32, #tpu.memory_space<vmem>>, vector<1x128x128xf32>
    %208 = vector.shape_cast %207 : vector<1x128x128xf32> to vector<128x128xf32>
    %cst_161 = arith.constant dense<0.000000e+00> : vector<2x128xf32>
    %209 = tpu.matmul %206, %208, %cst_161 {dimension_numbers = #tpu.dot_dimension_numbers<[1], [0], [0], [1], [0, 0, 1, 1], [], []>} : vector<2x128xf32>, vector<128x128xf32>, vector<2x128xf32> -> vector<2x128xf32>
    %210 = arith.addf %200, %209 : vector<2x128xf32>
    %c4_i32_162 = arith.constant 4 : i32
    %211 = arith.addi %c4_i32_162, %arg1 : i32
    %c2_i32_163 = arith.constant 2 : i32
    %212 = arith.addi %211, %c2_i32_163 : i32
    %c0_164 = arith.constant 0 : index
    %213 = arith.index_cast %212 : i32 to index
    %c0_165 = arith.constant 0 : index
    %c0_166 = arith.constant 0 : index
    %214 = vector.load %arg2[%c0_164, %213, %c0_165, %c0_166] : memref<1x16x4x128xf32, #tpu.memory_space<vmem>>, vector<1x1x4x128xf32>
    %215 = vector.shape_cast %214 : vector<1x1x4x128xf32> to vector<4x128xf32>
    %216 = vector.extract_strided_slice %215 {offsets = [0, 0], sizes = [2, 128], strides = [1, 1]} : vector<4x128xf32> to vector<2x128xf32>
    %c21 = arith.constant 21 : index
    %c0_167 = arith.constant 0 : index
    %c0_168 = arith.constant 0 : index
    %217 = vector.load %arg3[%c21, %c0_167, %c0_168] : memref<25x128x128xf32, #tpu.memory_space<vmem>>, vector<1x128x128xf32>
    %218 = vector.shape_cast %217 : vector<1x128x128xf32> to vector<128x128xf32>
    %cst_169 = arith.constant dense<0.000000e+00> : vector<2x128xf32>
    %219 = tpu.matmul %216, %218, %cst_169 {dimension_numbers = #tpu.dot_dimension_numbers<[1], [0], [0], [1], [0, 0, 1, 1], [], []>} : vector<2x128xf32>, vector<128x128xf32>, vector<2x128xf32> -> vector<2x128xf32>
    %220 = arith.addf %210, %219 : vector<2x128xf32>
    %c0_i32_170 = arith.constant 0 : i32
    %221 = arith.addi %c0_i32_170, %arg1 : i32
    %c2_i32_171 = arith.constant 2 : i32
    %222 = arith.addi %221, %c2_i32_171 : i32
    %c0_172 = arith.constant 0 : index
    %223 = arith.index_cast %222 : i32 to index
    %c0_173 = arith.constant 0 : index
    %c0_174 = arith.constant 0 : index
    %224 = vector.load %arg2[%c0_172, %223, %c0_173, %c0_174] : memref<1x16x4x128xf32, #tpu.memory_space<vmem>>, vector<1x1x4x128xf32>
    %225 = vector.shape_cast %224 : vector<1x1x4x128xf32> to vector<4x128xf32>
    %226 = vector.extract_strided_slice %225 {offsets = [1, 0], sizes = [2, 128], strides = [1, 1]} : vector<4x128xf32> to vector<2x128xf32>
    %c22 = arith.constant 22 : index
    %c0_175 = arith.constant 0 : index
    %c0_176 = arith.constant 0 : index
    %227 = vector.load %arg3[%c22, %c0_175, %c0_176] : memref<25x128x128xf32, #tpu.memory_space<vmem>>, vector<1x128x128xf32>
    %228 = vector.shape_cast %227 : vector<1x128x128xf32> to vector<128x128xf32>
    %cst_177 = arith.constant dense<0.000000e+00> : vector<2x128xf32>
    %229 = tpu.matmul %226, %228, %cst_177 {dimension_numbers = #tpu.dot_dimension_numbers<[1], [0], [0], [1], [0, 0, 1, 1], [], []>} : vector<2x128xf32>, vector<128x128xf32>, vector<2x128xf32> -> vector<2x128xf32>
    %230 = arith.addf %220, %229 : vector<2x128xf32>
    %c4_i32_178 = arith.constant 4 : i32
    %231 = arith.addi %c4_i32_178, %arg1 : i32
    %c2_i32_179 = arith.constant 2 : i32
    %232 = arith.addi %231, %c2_i32_179 : i32
    %c0_180 = arith.constant 0 : index
    %233 = arith.index_cast %232 : i32 to index
    %c0_181 = arith.constant 0 : index
    %c0_182 = arith.constant 0 : index
    %234 = vector.load %arg2[%c0_180, %233, %c0_181, %c0_182] : memref<1x16x4x128xf32, #tpu.memory_space<vmem>>, vector<1x1x4x128xf32>
    %235 = vector.shape_cast %234 : vector<1x1x4x128xf32> to vector<4x128xf32>
    %236 = vector.extract_strided_slice %235 {offsets = [1, 0], sizes = [2, 128], strides = [1, 1]} : vector<4x128xf32> to vector<2x128xf32>
    %c23 = arith.constant 23 : index
    %c0_183 = arith.constant 0 : index
    %c0_184 = arith.constant 0 : index
    %237 = vector.load %arg3[%c23, %c0_183, %c0_184] : memref<25x128x128xf32, #tpu.memory_space<vmem>>, vector<1x128x128xf32>
    %238 = vector.shape_cast %237 : vector<1x128x128xf32> to vector<128x128xf32>
    %cst_185 = arith.constant dense<0.000000e+00> : vector<2x128xf32>
    %239 = tpu.matmul %236, %238, %cst_185 {dimension_numbers = #tpu.dot_dimension_numbers<[1], [0], [0], [1], [0, 0, 1, 1], [], []>} : vector<2x128xf32>, vector<128x128xf32>, vector<2x128xf32> -> vector<2x128xf32>
    %240 = arith.addf %230, %239 : vector<2x128xf32>
    %c0_i32_186 = arith.constant 0 : i32
    %241 = arith.addi %c0_i32_186, %arg1 : i32
    %c2_i32_187 = arith.constant 2 : i32
    %242 = arith.addi %241, %c2_i32_187 : i32
    %c0_188 = arith.constant 0 : index
    %243 = arith.index_cast %242 : i32 to index
    %c0_189 = arith.constant 0 : index
    %c0_190 = arith.constant 0 : index
    %244 = vector.load %arg2[%c0_188, %243, %c0_189, %c0_190] : memref<1x16x4x128xf32, #tpu.memory_space<vmem>>, vector<1x1x4x128xf32>
    %245 = vector.shape_cast %244 : vector<1x1x4x128xf32> to vector<4x128xf32>
    %246 = vector.extract_strided_slice %245 {offsets = [2, 0], sizes = [2, 128], strides = [1, 1]} : vector<4x128xf32> to vector<2x128xf32>
    %c24 = arith.constant 24 : index
    %c0_191 = arith.constant 0 : index
    %c0_192 = arith.constant 0 : index
    %247 = vector.load %arg3[%c24, %c0_191, %c0_192] : memref<25x128x128xf32, #tpu.memory_space<vmem>>, vector<1x128x128xf32>
    %248 = vector.shape_cast %247 : vector<1x128x128xf32> to vector<128x128xf32>
    %cst_193 = arith.constant dense<0.000000e+00> : vector<2x128xf32>
    %249 = tpu.matmul %246, %248, %cst_193 {dimension_numbers = #tpu.dot_dimension_numbers<[1], [0], [0], [1], [0, 0, 1, 1], [], []>} : vector<2x128xf32>, vector<128x128xf32>, vector<2x128xf32> -> vector<2x128xf32>
    %250 = arith.addf %240, %249 : vector<2x128xf32>
    %c0_194 = arith.constant 0 : index
    %c0_195 = arith.constant 0 : index
    %251 = vector.load %arg4[%c0_194, %c0_195] : memref<1x128xf32, #tpu.memory_space<vmem>>, vector<1x128xf32>
    %252 = vector.broadcast %251 : vector<1x128xf32> to vector<2x128xf32>
    %253 = arith.addf %250, %252 : vector<2x128xf32>
    %cst_196 = arith.constant 0.000000e+00 : f32
    %254 = vector.broadcast %cst_196 : f32 to vector<2x128xf32>
    %255 = arith.maximumf %253, %254 : vector<2x128xf32>
    %c0_197 = arith.constant 0 : index
    %c0_198 = arith.constant 0 : index
    %c0_199 = arith.constant 0 : index
    %c0_200 = arith.constant 0 : index
    %256 = vector.load %arg5[%c0_197, %c0_198, %c0_199, %c0_200] : memref<1x1x2x128xf32, #tpu.memory_space<vmem>>, vector<1x1x2x128xf32>
    %257 = vector.shape_cast %256 : vector<1x1x2x128xf32> to vector<2x128xf32>
    %258 = vector.shape_cast %255 : vector<2x128xf32> to vector<1x1x2x128xf32>
    tpu.vector_store %arg5[%c0_197, %c0_198, %c0_199, %c0_200], %258 {strides = array<i32>} : memref<1x1x2x128xf32, #tpu.memory_space<vmem>>, vector<1x1x2x128xf32>,
    return
  }
  func.func @transform_0(%arg0: i32, %arg1: i32) -> (i32, i32, i32, i32) {
    %c0_i32 = arith.constant 0 : i32
    %c0_i32_0 = arith.constant 0 : i32
    %c0_i32_1 = arith.constant 0 : i32
    %c0_i32_2 = arith.constant 0 : i32
    return %arg0, %c0_i32, %c0_i32_0, %c0_i32_1 : i32, i32, i32, i32
  }
  func.func @transform_1(%arg0: i32, %arg1: i32) -> (i32, i32, i32) {
    %c0_i32 = arith.constant 0 : i32
    %c0_i32_0 = arith.constant 0 : i32
    %c0_i32_1 = arith.constant 0 : i32
    %c0_i32_2 = arith.constant 0 : i32
    return %c0_i32, %c0_i32_0, %c0_i32_1 : i32, i32, i32
  }
  func.func @transform_2(%arg0: i32, %arg1: i32) -> (i32, i32) {
    %c0_i32 = arith.constant 0 : i32
    %c0_i32_0 = arith.constant 0 : i32
    %c0_i32_1 = arith.constant 0 : i32
    return %c0_i32, %c0_i32_0 : i32, i32
  }
  func.func @transform_3(%arg0: i32, %arg1: i32) -> (i32, i32, i32, i32) {
    %c0_i32 = arith.constant 0 : i32
    %c0_i32_0 = arith.constant 0 : i32
    %c0_i32_1 = arith.constant 0 : i32
    return %arg0, %arg1, %c0_i32, %c0_i32_0 : i32, i32, i32, i32
  }
}

module attributes {stable_mosaic.version = 11 : i64} {
  func.func @_conv5x5_kernel(%arg0: i32, %arg1: i32, %arg2: memref<1x12x3x128xf32, #tpu.memory_space<vmem>>, %arg3: memref<25x128x128xf32, #tpu.memory_space<vmem>>, %arg4: memref<1x128xf32, #tpu.memory_space<vmem>>, %arg5: memref<1x1x1x128xf32, #tpu.memory_space<vmem>>) attributes {dimension_semantics = [#tpu.dimension_semantics<parallel>, #tpu.dimension_semantics<parallel>], iteration_bounds = array<i64: 2, 1>, scalar_prefetch = 0 : i64, scratch_operands = 0 : i64, tpu.core_type = #tpu.core_type<tc>, window_params = [{transform_indices = @transform_0, window_bounds = array<i64: 1, 12, 3, 128>}, {pipeline_mode = #tpu.pipeline_mode<synchronous>, transform_indices = @transform_1, window_bounds = array<i64: 25, 128, 128>}, {pipeline_mode = #tpu.pipeline_mode<synchronous>, transform_indices = @transform_2, window_bounds = array<i64: 1, 128>}, {transform_indices = @transform_3, window_bounds = array<i64: 1, 1, 1, 128>}]} {
    %cst = arith.constant 0.000000e+00 : f32
    %0 = vector.broadcast %cst : f32 to vector<1x128xf32>
    %c0_i32 = arith.constant 0 : i32
    %1 = arith.addi %c0_i32, %arg1 : i32
    %c0_i32_0 = arith.constant 0 : i32
    %2 = arith.addi %1, %c0_i32_0 : i32
    %c0 = arith.constant 0 : index
    %3 = arith.index_cast %2 : i32 to index
    %c0_1 = arith.constant 0 : index
    %c0_2 = arith.constant 0 : index
    %4 = vector.load %arg2[%c0, %3, %c0_1, %c0_2] : memref<1x12x3x128xf32, #tpu.memory_space<vmem>>, vector<1x1x3x128xf32>
    %5 = vector.shape_cast %4 : vector<1x1x3x128xf32> to vector<3x128xf32>
    %6 = vector.extract_strided_slice %5 {offsets = [0, 0], sizes = [1, 128], strides = [1, 1]} : vector<3x128xf32> to vector<1x128xf32>
    %c0_3 = arith.constant 0 : index
    %c0_4 = arith.constant 0 : index
    %c0_5 = arith.constant 0 : index
    %7 = vector.load %arg3[%c0_3, %c0_4, %c0_5] : memref<25x128x128xf32, #tpu.memory_space<vmem>>, vector<1x128x128xf32>
    %8 = vector.shape_cast %7 : vector<1x128x128xf32> to vector<128x128xf32>
    %cst_6 = arith.constant dense<0.000000e+00> : vector<1x128xf32>
    %9 = tpu.matmul %6, %8, %cst_6 {dimension_numbers = #tpu.dot_dimension_numbers<[1], [0], [0], [1], [0, 0, 1, 1], [], []>} : vector<1x128xf32>, vector<128x128xf32>, vector<1x128xf32> -> vector<1x128xf32>
    %10 = arith.addf %0, %9 : vector<1x128xf32>
    %c3_i32 = arith.constant 3 : i32
    %11 = arith.addi %c3_i32, %arg1 : i32
    %c0_i32_7 = arith.constant 0 : i32
    %12 = arith.addi %11, %c0_i32_7 : i32
    %c0_8 = arith.constant 0 : index
    %13 = arith.index_cast %12 : i32 to index
    %c0_9 = arith.constant 0 : index
    %c0_10 = arith.constant 0 : index
    %14 = vector.load %arg2[%c0_8, %13, %c0_9, %c0_10] : memref<1x12x3x128xf32, #tpu.memory_space<vmem>>, vector<1x1x3x128xf32>
    %15 = vector.shape_cast %14 : vector<1x1x3x128xf32> to vector<3x128xf32>
    %16 = vector.extract_strided_slice %15 {offsets = [0, 0], sizes = [1, 128], strides = [1, 1]} : vector<3x128xf32> to vector<1x128xf32>
    %c1 = arith.constant 1 : index
    %c0_11 = arith.constant 0 : index
    %c0_12 = arith.constant 0 : index
    %17 = vector.load %arg3[%c1, %c0_11, %c0_12] : memref<25x128x128xf32, #tpu.memory_space<vmem>>, vector<1x128x128xf32>
    %18 = vector.shape_cast %17 : vector<1x128x128xf32> to vector<128x128xf32>
    %cst_13 = arith.constant dense<0.000000e+00> : vector<1x128xf32>
    %19 = tpu.matmul %16, %18, %cst_13 {dimension_numbers = #tpu.dot_dimension_numbers<[1], [0], [0], [1], [0, 0, 1, 1], [], []>} : vector<1x128xf32>, vector<128x128xf32>, vector<1x128xf32> -> vector<1x128xf32>
    %20 = arith.addf %10, %19 : vector<1x128xf32>
    %c0_i32_14 = arith.constant 0 : i32
    %21 = arith.addi %c0_i32_14, %arg1 : i32
    %c0_i32_15 = arith.constant 0 : i32
    %22 = arith.addi %21, %c0_i32_15 : i32
    %c0_16 = arith.constant 0 : index
    %23 = arith.index_cast %22 : i32 to index
    %c0_17 = arith.constant 0 : index
    %c0_18 = arith.constant 0 : index
    %24 = vector.load %arg2[%c0_16, %23, %c0_17, %c0_18] : memref<1x12x3x128xf32, #tpu.memory_space<vmem>>, vector<1x1x3x128xf32>
    %25 = vector.shape_cast %24 : vector<1x1x3x128xf32> to vector<3x128xf32>
    %26 = vector.extract_strided_slice %25 {offsets = [1, 0], sizes = [1, 128], strides = [1, 1]} : vector<3x128xf32> to vector<1x128xf32>
    %c2 = arith.constant 2 : index
    %c0_19 = arith.constant 0 : index
    %c0_20 = arith.constant 0 : index
    %27 = vector.load %arg3[%c2, %c0_19, %c0_20] : memref<25x128x128xf32, #tpu.memory_space<vmem>>, vector<1x128x128xf32>
    %28 = vector.shape_cast %27 : vector<1x128x128xf32> to vector<128x128xf32>
    %cst_21 = arith.constant dense<0.000000e+00> : vector<1x128xf32>
    %29 = tpu.matmul %26, %28, %cst_21 {dimension_numbers = #tpu.dot_dimension_numbers<[1], [0], [0], [1], [0, 0, 1, 1], [], []>} : vector<1x128xf32>, vector<128x128xf32>, vector<1x128xf32> -> vector<1x128xf32>
    %30 = arith.addf %20, %29 : vector<1x128xf32>
    %c3_i32_22 = arith.constant 3 : i32
    %31 = arith.addi %c3_i32_22, %arg1 : i32
    %c0_i32_23 = arith.constant 0 : i32
    %32 = arith.addi %31, %c0_i32_23 : i32
    %c0_24 = arith.constant 0 : index
    %33 = arith.index_cast %32 : i32 to index
    %c0_25 = arith.constant 0 : index
    %c0_26 = arith.constant 0 : index
    %34 = vector.load %arg2[%c0_24, %33, %c0_25, %c0_26] : memref<1x12x3x128xf32, #tpu.memory_space<vmem>>, vector<1x1x3x128xf32>
    %35 = vector.shape_cast %34 : vector<1x1x3x128xf32> to vector<3x128xf32>
    %36 = vector.extract_strided_slice %35 {offsets = [1, 0], sizes = [1, 128], strides = [1, 1]} : vector<3x128xf32> to vector<1x128xf32>
    %c3 = arith.constant 3 : index
    %c0_27 = arith.constant 0 : index
    %c0_28 = arith.constant 0 : index
    %37 = vector.load %arg3[%c3, %c0_27, %c0_28] : memref<25x128x128xf32, #tpu.memory_space<vmem>>, vector<1x128x128xf32>
    %38 = vector.shape_cast %37 : vector<1x128x128xf32> to vector<128x128xf32>
    %cst_29 = arith.constant dense<0.000000e+00> : vector<1x128xf32>
    %39 = tpu.matmul %36, %38, %cst_29 {dimension_numbers = #tpu.dot_dimension_numbers<[1], [0], [0], [1], [0, 0, 1, 1], [], []>} : vector<1x128xf32>, vector<128x128xf32>, vector<1x128xf32> -> vector<1x128xf32>
    %40 = arith.addf %30, %39 : vector<1x128xf32>
    %c0_i32_30 = arith.constant 0 : i32
    %41 = arith.addi %c0_i32_30, %arg1 : i32
    %c0_i32_31 = arith.constant 0 : i32
    %42 = arith.addi %41, %c0_i32_31 : i32
    %c0_32 = arith.constant 0 : index
    %43 = arith.index_cast %42 : i32 to index
    %c0_33 = arith.constant 0 : index
    %c0_34 = arith.constant 0 : index
    %44 = vector.load %arg2[%c0_32, %43, %c0_33, %c0_34] : memref<1x12x3x128xf32, #tpu.memory_space<vmem>>, vector<1x1x3x128xf32>
    %45 = vector.shape_cast %44 : vector<1x1x3x128xf32> to vector<3x128xf32>
    %46 = vector.extract_strided_slice %45 {offsets = [2, 0], sizes = [1, 128], strides = [1, 1]} : vector<3x128xf32> to vector<1x128xf32>
    %c4 = arith.constant 4 : index
    %c0_35 = arith.constant 0 : index
    %c0_36 = arith.constant 0 : index
    %47 = vector.load %arg3[%c4, %c0_35, %c0_36] : memref<25x128x128xf32, #tpu.memory_space<vmem>>, vector<1x128x128xf32>
    %48 = vector.shape_cast %47 : vector<1x128x128xf32> to vector<128x128xf32>
    %cst_37 = arith.constant dense<0.000000e+00> : vector<1x128xf32>
    %49 = tpu.matmul %46, %48, %cst_37 {dimension_numbers = #tpu.dot_dimension_numbers<[1], [0], [0], [1], [0, 0, 1, 1], [], []>} : vector<1x128xf32>, vector<128x128xf32>, vector<1x128xf32> -> vector<1x128xf32>
    %50 = arith.addf %40, %49 : vector<1x128xf32>
    %c6_i32 = arith.constant 6 : i32
    %51 = arith.addi %c6_i32, %arg1 : i32
    %c0_i32_38 = arith.constant 0 : i32
    %52 = arith.addi %51, %c0_i32_38 : i32
    %c0_39 = arith.constant 0 : index
    %53 = arith.index_cast %52 : i32 to index
    %c0_40 = arith.constant 0 : index
    %c0_41 = arith.constant 0 : index
    %54 = vector.load %arg2[%c0_39, %53, %c0_40, %c0_41] : memref<1x12x3x128xf32, #tpu.memory_space<vmem>>, vector<1x1x3x128xf32>
    %55 = vector.shape_cast %54 : vector<1x1x3x128xf32> to vector<3x128xf32>
    %56 = vector.extract_strided_slice %55 {offsets = [0, 0], sizes = [1, 128], strides = [1, 1]} : vector<3x128xf32> to vector<1x128xf32>
    %c5 = arith.constant 5 : index
    %c0_42 = arith.constant 0 : index
    %c0_43 = arith.constant 0 : index
    %57 = vector.load %arg3[%c5, %c0_42, %c0_43] : memref<25x128x128xf32, #tpu.memory_space<vmem>>, vector<1x128x128xf32>
    %58 = vector.shape_cast %57 : vector<1x128x128xf32> to vector<128x128xf32>
    %cst_44 = arith.constant dense<0.000000e+00> : vector<1x128xf32>
    %59 = tpu.matmul %56, %58, %cst_44 {dimension_numbers = #tpu.dot_dimension_numbers<[1], [0], [0], [1], [0, 0, 1, 1], [], []>} : vector<1x128xf32>, vector<128x128xf32>, vector<1x128xf32> -> vector<1x128xf32>
    %60 = arith.addf %50, %59 : vector<1x128xf32>
    %c9_i32 = arith.constant 9 : i32
    %61 = arith.addi %c9_i32, %arg1 : i32
    %c0_i32_45 = arith.constant 0 : i32
    %62 = arith.addi %61, %c0_i32_45 : i32
    %c0_46 = arith.constant 0 : index
    %63 = arith.index_cast %62 : i32 to index
    %c0_47 = arith.constant 0 : index
    %c0_48 = arith.constant 0 : index
    %64 = vector.load %arg2[%c0_46, %63, %c0_47, %c0_48] : memref<1x12x3x128xf32, #tpu.memory_space<vmem>>, vector<1x1x3x128xf32>
    %65 = vector.shape_cast %64 : vector<1x1x3x128xf32> to vector<3x128xf32>
    %66 = vector.extract_strided_slice %65 {offsets = [0, 0], sizes = [1, 128], strides = [1, 1]} : vector<3x128xf32> to vector<1x128xf32>
    %c6 = arith.constant 6 : index
    %c0_49 = arith.constant 0 : index
    %c0_50 = arith.constant 0 : index
    %67 = vector.load %arg3[%c6, %c0_49, %c0_50] : memref<25x128x128xf32, #tpu.memory_space<vmem>>, vector<1x128x128xf32>
    %68 = vector.shape_cast %67 : vector<1x128x128xf32> to vector<128x128xf32>
    %cst_51 = arith.constant dense<0.000000e+00> : vector<1x128xf32>
    %69 = tpu.matmul %66, %68, %cst_51 {dimension_numbers = #tpu.dot_dimension_numbers<[1], [0], [0], [1], [0, 0, 1, 1], [], []>} : vector<1x128xf32>, vector<128x128xf32>, vector<1x128xf32> -> vector<1x128xf32>
    %70 = arith.addf %60, %69 : vector<1x128xf32>
    %c6_i32_52 = arith.constant 6 : i32
    %71 = arith.addi %c6_i32_52, %arg1 : i32
    %c0_i32_53 = arith.constant 0 : i32
    %72 = arith.addi %71, %c0_i32_53 : i32
    %c0_54 = arith.constant 0 : index
    %73 = arith.index_cast %72 : i32 to index
    %c0_55 = arith.constant 0 : index
    %c0_56 = arith.constant 0 : index
    %74 = vector.load %arg2[%c0_54, %73, %c0_55, %c0_56] : memref<1x12x3x128xf32, #tpu.memory_space<vmem>>, vector<1x1x3x128xf32>
    %75 = vector.shape_cast %74 : vector<1x1x3x128xf32> to vector<3x128xf32>
    %76 = vector.extract_strided_slice %75 {offsets = [1, 0], sizes = [1, 128], strides = [1, 1]} : vector<3x128xf32> to vector<1x128xf32>
    %c7 = arith.constant 7 : index
    %c0_57 = arith.constant 0 : index
    %c0_58 = arith.constant 0 : index
    %77 = vector.load %arg3[%c7, %c0_57, %c0_58] : memref<25x128x128xf32, #tpu.memory_space<vmem>>, vector<1x128x128xf32>
    %78 = vector.shape_cast %77 : vector<1x128x128xf32> to vector<128x128xf32>
    %cst_59 = arith.constant dense<0.000000e+00> : vector<1x128xf32>
    %79 = tpu.matmul %76, %78, %cst_59 {dimension_numbers = #tpu.dot_dimension_numbers<[1], [0], [0], [1], [0, 0, 1, 1], [], []>} : vector<1x128xf32>, vector<128x128xf32>, vector<1x128xf32> -> vector<1x128xf32>
    %80 = arith.addf %70, %79 : vector<1x128xf32>
    %c9_i32_60 = arith.constant 9 : i32
    %81 = arith.addi %c9_i32_60, %arg1 : i32
    %c0_i32_61 = arith.constant 0 : i32
    %82 = arith.addi %81, %c0_i32_61 : i32
    %c0_62 = arith.constant 0 : index
    %83 = arith.index_cast %82 : i32 to index
    %c0_63 = arith.constant 0 : index
    %c0_64 = arith.constant 0 : index
    %84 = vector.load %arg2[%c0_62, %83, %c0_63, %c0_64] : memref<1x12x3x128xf32, #tpu.memory_space<vmem>>, vector<1x1x3x128xf32>
    %85 = vector.shape_cast %84 : vector<1x1x3x128xf32> to vector<3x128xf32>
    %86 = vector.extract_strided_slice %85 {offsets = [1, 0], sizes = [1, 128], strides = [1, 1]} : vector<3x128xf32> to vector<1x128xf32>
    %c8 = arith.constant 8 : index
    %c0_65 = arith.constant 0 : index
    %c0_66 = arith.constant 0 : index
    %87 = vector.load %arg3[%c8, %c0_65, %c0_66] : memref<25x128x128xf32, #tpu.memory_space<vmem>>, vector<1x128x128xf32>
    %88 = vector.shape_cast %87 : vector<1x128x128xf32> to vector<128x128xf32>
    %cst_67 = arith.constant dense<0.000000e+00> : vector<1x128xf32>
    %89 = tpu.matmul %86, %88, %cst_67 {dimension_numbers = #tpu.dot_dimension_numbers<[1], [0], [0], [1], [0, 0, 1, 1], [], []>} : vector<1x128xf32>, vector<128x128xf32>, vector<1x128xf32> -> vector<1x128xf32>
    %90 = arith.addf %80, %89 : vector<1x128xf32>
    %c6_i32_68 = arith.constant 6 : i32
    %91 = arith.addi %c6_i32_68, %arg1 : i32
    %c0_i32_69 = arith.constant 0 : i32
    %92 = arith.addi %91, %c0_i32_69 : i32
    %c0_70 = arith.constant 0 : index
    %93 = arith.index_cast %92 : i32 to index
    %c0_71 = arith.constant 0 : index
    %c0_72 = arith.constant 0 : index
    %94 = vector.load %arg2[%c0_70, %93, %c0_71, %c0_72] : memref<1x12x3x128xf32, #tpu.memory_space<vmem>>, vector<1x1x3x128xf32>
    %95 = vector.shape_cast %94 : vector<1x1x3x128xf32> to vector<3x128xf32>
    %96 = vector.extract_strided_slice %95 {offsets = [2, 0], sizes = [1, 128], strides = [1, 1]} : vector<3x128xf32> to vector<1x128xf32>
    %c9 = arith.constant 9 : index
    %c0_73 = arith.constant 0 : index
    %c0_74 = arith.constant 0 : index
    %97 = vector.load %arg3[%c9, %c0_73, %c0_74] : memref<25x128x128xf32, #tpu.memory_space<vmem>>, vector<1x128x128xf32>
    %98 = vector.shape_cast %97 : vector<1x128x128xf32> to vector<128x128xf32>
    %cst_75 = arith.constant dense<0.000000e+00> : vector<1x128xf32>
    %99 = tpu.matmul %96, %98, %cst_75 {dimension_numbers = #tpu.dot_dimension_numbers<[1], [0], [0], [1], [0, 0, 1, 1], [], []>} : vector<1x128xf32>, vector<128x128xf32>, vector<1x128xf32> -> vector<1x128xf32>
    %100 = arith.addf %90, %99 : vector<1x128xf32>
    %c0_i32_76 = arith.constant 0 : i32
    %101 = arith.addi %c0_i32_76, %arg1 : i32
    %c1_i32 = arith.constant 1 : i32
    %102 = arith.addi %101, %c1_i32 : i32
    %c0_77 = arith.constant 0 : index
    %103 = arith.index_cast %102 : i32 to index
    %c0_78 = arith.constant 0 : index
    %c0_79 = arith.constant 0 : index
    %104 = vector.load %arg2[%c0_77, %103, %c0_78, %c0_79] : memref<1x12x3x128xf32, #tpu.memory_space<vmem>>, vector<1x1x3x128xf32>
    %105 = vector.shape_cast %104 : vector<1x1x3x128xf32> to vector<3x128xf32>
    %106 = vector.extract_strided_slice %105 {offsets = [0, 0], sizes = [1, 128], strides = [1, 1]} : vector<3x128xf32> to vector<1x128xf32>
    %c10 = arith.constant 10 : index
    %c0_80 = arith.constant 0 : index
    %c0_81 = arith.constant 0 : index
    %107 = vector.load %arg3[%c10, %c0_80, %c0_81] : memref<25x128x128xf32, #tpu.memory_space<vmem>>, vector<1x128x128xf32>
    %108 = vector.shape_cast %107 : vector<1x128x128xf32> to vector<128x128xf32>
    %cst_82 = arith.constant dense<0.000000e+00> : vector<1x128xf32>
    %109 = tpu.matmul %106, %108, %cst_82 {dimension_numbers = #tpu.dot_dimension_numbers<[1], [0], [0], [1], [0, 0, 1, 1], [], []>} : vector<1x128xf32>, vector<128x128xf32>, vector<1x128xf32> -> vector<1x128xf32>
    %110 = arith.addf %100, %109 : vector<1x128xf32>
    %c3_i32_83 = arith.constant 3 : i32
    %111 = arith.addi %c3_i32_83, %arg1 : i32
    %c1_i32_84 = arith.constant 1 : i32
    %112 = arith.addi %111, %c1_i32_84 : i32
    %c0_85 = arith.constant 0 : index
    %113 = arith.index_cast %112 : i32 to index
    %c0_86 = arith.constant 0 : index
    %c0_87 = arith.constant 0 : index
    %114 = vector.load %arg2[%c0_85, %113, %c0_86, %c0_87] : memref<1x12x3x128xf32, #tpu.memory_space<vmem>>, vector<1x1x3x128xf32>
    %115 = vector.shape_cast %114 : vector<1x1x3x128xf32> to vector<3x128xf32>
    %116 = vector.extract_strided_slice %115 {offsets = [0, 0], sizes = [1, 128], strides = [1, 1]} : vector<3x128xf32> to vector<1x128xf32>
    %c11 = arith.constant 11 : index
    %c0_88 = arith.constant 0 : index
    %c0_89 = arith.constant 0 : index
    %117 = vector.load %arg3[%c11, %c0_88, %c0_89] : memref<25x128x128xf32, #tpu.memory_space<vmem>>, vector<1x128x128xf32>
    %118 = vector.shape_cast %117 : vector<1x128x128xf32> to vector<128x128xf32>
    %cst_90 = arith.constant dense<0.000000e+00> : vector<1x128xf32>
    %119 = tpu.matmul %116, %118, %cst_90 {dimension_numbers = #tpu.dot_dimension_numbers<[1], [0], [0], [1], [0, 0, 1, 1], [], []>} : vector<1x128xf32>, vector<128x128xf32>, vector<1x128xf32> -> vector<1x128xf32>
    %120 = arith.addf %110, %119 : vector<1x128xf32>
    %c0_i32_91 = arith.constant 0 : i32
    %121 = arith.addi %c0_i32_91, %arg1 : i32
    %c1_i32_92 = arith.constant 1 : i32
    %122 = arith.addi %121, %c1_i32_92 : i32
    %c0_93 = arith.constant 0 : index
    %123 = arith.index_cast %122 : i32 to index
    %c0_94 = arith.constant 0 : index
    %c0_95 = arith.constant 0 : index
    %124 = vector.load %arg2[%c0_93, %123, %c0_94, %c0_95] : memref<1x12x3x128xf32, #tpu.memory_space<vmem>>, vector<1x1x3x128xf32>
    %125 = vector.shape_cast %124 : vector<1x1x3x128xf32> to vector<3x128xf32>
    %126 = vector.extract_strided_slice %125 {offsets = [1, 0], sizes = [1, 128], strides = [1, 1]} : vector<3x128xf32> to vector<1x128xf32>
    %c12 = arith.constant 12 : index
    %c0_96 = arith.constant 0 : index
    %c0_97 = arith.constant 0 : index
    %127 = vector.load %arg3[%c12, %c0_96, %c0_97] : memref<25x128x128xf32, #tpu.memory_space<vmem>>, vector<1x128x128xf32>
    %128 = vector.shape_cast %127 : vector<1x128x128xf32> to vector<128x128xf32>
    %cst_98 = arith.constant dense<0.000000e+00> : vector<1x128xf32>
    %129 = tpu.matmul %126, %128, %cst_98 {dimension_numbers = #tpu.dot_dimension_numbers<[1], [0], [0], [1], [0, 0, 1, 1], [], []>} : vector<1x128xf32>, vector<128x128xf32>, vector<1x128xf32> -> vector<1x128xf32>
    %130 = arith.addf %120, %129 : vector<1x128xf32>
    %c3_i32_99 = arith.constant 3 : i32
    %131 = arith.addi %c3_i32_99, %arg1 : i32
    %c1_i32_100 = arith.constant 1 : i32
    %132 = arith.addi %131, %c1_i32_100 : i32
    %c0_101 = arith.constant 0 : index
    %133 = arith.index_cast %132 : i32 to index
    %c0_102 = arith.constant 0 : index
    %c0_103 = arith.constant 0 : index
    %134 = vector.load %arg2[%c0_101, %133, %c0_102, %c0_103] : memref<1x12x3x128xf32, #tpu.memory_space<vmem>>, vector<1x1x3x128xf32>
    %135 = vector.shape_cast %134 : vector<1x1x3x128xf32> to vector<3x128xf32>
    %136 = vector.extract_strided_slice %135 {offsets = [1, 0], sizes = [1, 128], strides = [1, 1]} : vector<3x128xf32> to vector<1x128xf32>
    %c13 = arith.constant 13 : index
    %c0_104 = arith.constant 0 : index
    %c0_105 = arith.constant 0 : index
    %137 = vector.load %arg3[%c13, %c0_104, %c0_105] : memref<25x128x128xf32, #tpu.memory_space<vmem>>, vector<1x128x128xf32>
    %138 = vector.shape_cast %137 : vector<1x128x128xf32> to vector<128x128xf32>
    %cst_106 = arith.constant dense<0.000000e+00> : vector<1x128xf32>
    %139 = tpu.matmul %136, %138, %cst_106 {dimension_numbers = #tpu.dot_dimension_numbers<[1], [0], [0], [1], [0, 0, 1, 1], [], []>} : vector<1x128xf32>, vector<128x128xf32>, vector<1x128xf32> -> vector<1x128xf32>
    %140 = arith.addf %130, %139 : vector<1x128xf32>
    %c0_i32_107 = arith.constant 0 : i32
    %141 = arith.addi %c0_i32_107, %arg1 : i32
    %c1_i32_108 = arith.constant 1 : i32
    %142 = arith.addi %141, %c1_i32_108 : i32
    %c0_109 = arith.constant 0 : index
    %143 = arith.index_cast %142 : i32 to index
    %c0_110 = arith.constant 0 : index
    %c0_111 = arith.constant 0 : index
    %144 = vector.load %arg2[%c0_109, %143, %c0_110, %c0_111] : memref<1x12x3x128xf32, #tpu.memory_space<vmem>>, vector<1x1x3x128xf32>
    %145 = vector.shape_cast %144 : vector<1x1x3x128xf32> to vector<3x128xf32>
    %146 = vector.extract_strided_slice %145 {offsets = [2, 0], sizes = [1, 128], strides = [1, 1]} : vector<3x128xf32> to vector<1x128xf32>
    %c14 = arith.constant 14 : index
    %c0_112 = arith.constant 0 : index
    %c0_113 = arith.constant 0 : index
    %147 = vector.load %arg3[%c14, %c0_112, %c0_113] : memref<25x128x128xf32, #tpu.memory_space<vmem>>, vector<1x128x128xf32>
    %148 = vector.shape_cast %147 : vector<1x128x128xf32> to vector<128x128xf32>
    %cst_114 = arith.constant dense<0.000000e+00> : vector<1x128xf32>
    %149 = tpu.matmul %146, %148, %cst_114 {dimension_numbers = #tpu.dot_dimension_numbers<[1], [0], [0], [1], [0, 0, 1, 1], [], []>} : vector<1x128xf32>, vector<128x128xf32>, vector<1x128xf32> -> vector<1x128xf32>
    %150 = arith.addf %140, %149 : vector<1x128xf32>
    %c6_i32_115 = arith.constant 6 : i32
    %151 = arith.addi %c6_i32_115, %arg1 : i32
    %c1_i32_116 = arith.constant 1 : i32
    %152 = arith.addi %151, %c1_i32_116 : i32
    %c0_117 = arith.constant 0 : index
    %153 = arith.index_cast %152 : i32 to index
    %c0_118 = arith.constant 0 : index
    %c0_119 = arith.constant 0 : index
    %154 = vector.load %arg2[%c0_117, %153, %c0_118, %c0_119] : memref<1x12x3x128xf32, #tpu.memory_space<vmem>>, vector<1x1x3x128xf32>
    %155 = vector.shape_cast %154 : vector<1x1x3x128xf32> to vector<3x128xf32>
    %156 = vector.extract_strided_slice %155 {offsets = [0, 0], sizes = [1, 128], strides = [1, 1]} : vector<3x128xf32> to vector<1x128xf32>
    %c15 = arith.constant 15 : index
    %c0_120 = arith.constant 0 : index
    %c0_121 = arith.constant 0 : index
    %157 = vector.load %arg3[%c15, %c0_120, %c0_121] : memref<25x128x128xf32, #tpu.memory_space<vmem>>, vector<1x128x128xf32>
    %158 = vector.shape_cast %157 : vector<1x128x128xf32> to vector<128x128xf32>
    %cst_122 = arith.constant dense<0.000000e+00> : vector<1x128xf32>
    %159 = tpu.matmul %156, %158, %cst_122 {dimension_numbers = #tpu.dot_dimension_numbers<[1], [0], [0], [1], [0, 0, 1, 1], [], []>} : vector<1x128xf32>, vector<128x128xf32>, vector<1x128xf32> -> vector<1x128xf32>
    %160 = arith.addf %150, %159 : vector<1x128xf32>
    %c9_i32_123 = arith.constant 9 : i32
    %161 = arith.addi %c9_i32_123, %arg1 : i32
    %c1_i32_124 = arith.constant 1 : i32
    %162 = arith.addi %161, %c1_i32_124 : i32
    %c0_125 = arith.constant 0 : index
    %163 = arith.index_cast %162 : i32 to index
    %c0_126 = arith.constant 0 : index
    %c0_127 = arith.constant 0 : index
    %164 = vector.load %arg2[%c0_125, %163, %c0_126, %c0_127] : memref<1x12x3x128xf32, #tpu.memory_space<vmem>>, vector<1x1x3x128xf32>
    %165 = vector.shape_cast %164 : vector<1x1x3x128xf32> to vector<3x128xf32>
    %166 = vector.extract_strided_slice %165 {offsets = [0, 0], sizes = [1, 128], strides = [1, 1]} : vector<3x128xf32> to vector<1x128xf32>
    %c16 = arith.constant 16 : index
    %c0_128 = arith.constant 0 : index
    %c0_129 = arith.constant 0 : index
    %167 = vector.load %arg3[%c16, %c0_128, %c0_129] : memref<25x128x128xf32, #tpu.memory_space<vmem>>, vector<1x128x128xf32>
    %168 = vector.shape_cast %167 : vector<1x128x128xf32> to vector<128x128xf32>
    %cst_130 = arith.constant dense<0.000000e+00> : vector<1x128xf32>
    %169 = tpu.matmul %166, %168, %cst_130 {dimension_numbers = #tpu.dot_dimension_numbers<[1], [0], [0], [1], [0, 0, 1, 1], [], []>} : vector<1x128xf32>, vector<128x128xf32>, vector<1x128xf32> -> vector<1x128xf32>
    %170 = arith.addf %160, %169 : vector<1x128xf32>
    %c6_i32_131 = arith.constant 6 : i32
    %171 = arith.addi %c6_i32_131, %arg1 : i32
    %c1_i32_132 = arith.constant 1 : i32
    %172 = arith.addi %171, %c1_i32_132 : i32
    %c0_133 = arith.constant 0 : index
    %173 = arith.index_cast %172 : i32 to index
    %c0_134 = arith.constant 0 : index
    %c0_135 = arith.constant 0 : index
    %174 = vector.load %arg2[%c0_133, %173, %c0_134, %c0_135] : memref<1x12x3x128xf32, #tpu.memory_space<vmem>>, vector<1x1x3x128xf32>
    %175 = vector.shape_cast %174 : vector<1x1x3x128xf32> to vector<3x128xf32>
    %176 = vector.extract_strided_slice %175 {offsets = [1, 0], sizes = [1, 128], strides = [1, 1]} : vector<3x128xf32> to vector<1x128xf32>
    %c17 = arith.constant 17 : index
    %c0_136 = arith.constant 0 : index
    %c0_137 = arith.constant 0 : index
    %177 = vector.load %arg3[%c17, %c0_136, %c0_137] : memref<25x128x128xf32, #tpu.memory_space<vmem>>, vector<1x128x128xf32>
    %178 = vector.shape_cast %177 : vector<1x128x128xf32> to vector<128x128xf32>
    %cst_138 = arith.constant dense<0.000000e+00> : vector<1x128xf32>
    %179 = tpu.matmul %176, %178, %cst_138 {dimension_numbers = #tpu.dot_dimension_numbers<[1], [0], [0], [1], [0, 0, 1, 1], [], []>} : vector<1x128xf32>, vector<128x128xf32>, vector<1x128xf32> -> vector<1x128xf32>
    %180 = arith.addf %170, %179 : vector<1x128xf32>
    %c9_i32_139 = arith.constant 9 : i32
    %181 = arith.addi %c9_i32_139, %arg1 : i32
    %c1_i32_140 = arith.constant 1 : i32
    %182 = arith.addi %181, %c1_i32_140 : i32
    %c0_141 = arith.constant 0 : index
    %183 = arith.index_cast %182 : i32 to index
    %c0_142 = arith.constant 0 : index
    %c0_143 = arith.constant 0 : index
    %184 = vector.load %arg2[%c0_141, %183, %c0_142, %c0_143] : memref<1x12x3x128xf32, #tpu.memory_space<vmem>>, vector<1x1x3x128xf32>
    %185 = vector.shape_cast %184 : vector<1x1x3x128xf32> to vector<3x128xf32>
    %186 = vector.extract_strided_slice %185 {offsets = [1, 0], sizes = [1, 128], strides = [1, 1]} : vector<3x128xf32> to vector<1x128xf32>
    %c18 = arith.constant 18 : index
    %c0_144 = arith.constant 0 : index
    %c0_145 = arith.constant 0 : index
    %187 = vector.load %arg3[%c18, %c0_144, %c0_145] : memref<25x128x128xf32, #tpu.memory_space<vmem>>, vector<1x128x128xf32>
    %188 = vector.shape_cast %187 : vector<1x128x128xf32> to vector<128x128xf32>
    %cst_146 = arith.constant dense<0.000000e+00> : vector<1x128xf32>
    %189 = tpu.matmul %186, %188, %cst_146 {dimension_numbers = #tpu.dot_dimension_numbers<[1], [0], [0], [1], [0, 0, 1, 1], [], []>} : vector<1x128xf32>, vector<128x128xf32>, vector<1x128xf32> -> vector<1x128xf32>
    %190 = arith.addf %180, %189 : vector<1x128xf32>
    %c6_i32_147 = arith.constant 6 : i32
    %191 = arith.addi %c6_i32_147, %arg1 : i32
    %c1_i32_148 = arith.constant 1 : i32
    %192 = arith.addi %191, %c1_i32_148 : i32
    %c0_149 = arith.constant 0 : index
    %193 = arith.index_cast %192 : i32 to index
    %c0_150 = arith.constant 0 : index
    %c0_151 = arith.constant 0 : index
    %194 = vector.load %arg2[%c0_149, %193, %c0_150, %c0_151] : memref<1x12x3x128xf32, #tpu.memory_space<vmem>>, vector<1x1x3x128xf32>
    %195 = vector.shape_cast %194 : vector<1x1x3x128xf32> to vector<3x128xf32>
    %196 = vector.extract_strided_slice %195 {offsets = [2, 0], sizes = [1, 128], strides = [1, 1]} : vector<3x128xf32> to vector<1x128xf32>
    %c19 = arith.constant 19 : index
    %c0_152 = arith.constant 0 : index
    %c0_153 = arith.constant 0 : index
    %197 = vector.load %arg3[%c19, %c0_152, %c0_153] : memref<25x128x128xf32, #tpu.memory_space<vmem>>, vector<1x128x128xf32>
    %198 = vector.shape_cast %197 : vector<1x128x128xf32> to vector<128x128xf32>
    %cst_154 = arith.constant dense<0.000000e+00> : vector<1x128xf32>
    %199 = tpu.matmul %196, %198, %cst_154 {dimension_numbers = #tpu.dot_dimension_numbers<[1], [0], [0], [1], [0, 0, 1, 1], [], []>} : vector<1x128xf32>, vector<128x128xf32>, vector<1x128xf32> -> vector<1x128xf32>
    %200 = arith.addf %190, %199 : vector<1x128xf32>
    %c0_i32_155 = arith.constant 0 : i32
    %201 = arith.addi %c0_i32_155, %arg1 : i32
    %c2_i32 = arith.constant 2 : i32
    %202 = arith.addi %201, %c2_i32 : i32
    %c0_156 = arith.constant 0 : index
    %203 = arith.index_cast %202 : i32 to index
    %c0_157 = arith.constant 0 : index
    %c0_158 = arith.constant 0 : index
    %204 = vector.load %arg2[%c0_156, %203, %c0_157, %c0_158] : memref<1x12x3x128xf32, #tpu.memory_space<vmem>>, vector<1x1x3x128xf32>
    %205 = vector.shape_cast %204 : vector<1x1x3x128xf32> to vector<3x128xf32>
    %206 = vector.extract_strided_slice %205 {offsets = [0, 0], sizes = [1, 128], strides = [1, 1]} : vector<3x128xf32> to vector<1x128xf32>
    %c20 = arith.constant 20 : index
    %c0_159 = arith.constant 0 : index
    %c0_160 = arith.constant 0 : index
    %207 = vector.load %arg3[%c20, %c0_159, %c0_160] : memref<25x128x128xf32, #tpu.memory_space<vmem>>, vector<1x128x128xf32>
    %208 = vector.shape_cast %207 : vector<1x128x128xf32> to vector<128x128xf32>
    %cst_161 = arith.constant dense<0.000000e+00> : vector<1x128xf32>
    %209 = tpu.matmul %206, %208, %cst_161 {dimension_numbers = #tpu.dot_dimension_numbers<[1], [0], [0], [1], [0, 0, 1, 1], [], []>} : vector<1x128xf32>, vector<128x128xf32>, vector<1x128xf32> -> vector<1x128xf32>
    %210 = arith.addf %200, %209 : vector<1x128xf32>
    %c3_i32_162 = arith.constant 3 : i32
    %211 = arith.addi %c3_i32_162, %arg1 : i32
    %c2_i32_163 = arith.constant 2 : i32
    %212 = arith.addi %211, %c2_i32_163 : i32
    %c0_164 = arith.constant 0 : index
    %213 = arith.index_cast %212 : i32 to index
    %c0_165 = arith.constant 0 : index
    %c0_166 = arith.constant 0 : index
    %214 = vector.load %arg2[%c0_164, %213, %c0_165, %c0_166] : memref<1x12x3x128xf32, #tpu.memory_space<vmem>>, vector<1x1x3x128xf32>
    %215 = vector.shape_cast %214 : vector<1x1x3x128xf32> to vector<3x128xf32>
    %216 = vector.extract_strided_slice %215 {offsets = [0, 0], sizes = [1, 128], strides = [1, 1]} : vector<3x128xf32> to vector<1x128xf32>
    %c21 = arith.constant 21 : index
    %c0_167 = arith.constant 0 : index
    %c0_168 = arith.constant 0 : index
    %217 = vector.load %arg3[%c21, %c0_167, %c0_168] : memref<25x128x128xf32, #tpu.memory_space<vmem>>, vector<1x128x128xf32>
    %218 = vector.shape_cast %217 : vector<1x128x128xf32> to vector<128x128xf32>
    %cst_169 = arith.constant dense<0.000000e+00> : vector<1x128xf32>
    %219 = tpu.matmul %216, %218, %cst_169 {dimension_numbers = #tpu.dot_dimension_numbers<[1], [0], [0], [1], [0, 0, 1, 1], [], []>} : vector<1x128xf32>, vector<128x128xf32>, vector<1x128xf32> -> vector<1x128xf32>
    %220 = arith.addf %210, %219 : vector<1x128xf32>
    %c0_i32_170 = arith.constant 0 : i32
    %221 = arith.addi %c0_i32_170, %arg1 : i32
    %c2_i32_171 = arith.constant 2 : i32
    %222 = arith.addi %221, %c2_i32_171 : i32
    %c0_172 = arith.constant 0 : index
    %223 = arith.index_cast %222 : i32 to index
    %c0_173 = arith.constant 0 : index
    %c0_174 = arith.constant 0 : index
    %224 = vector.load %arg2[%c0_172, %223, %c0_173, %c0_174] : memref<1x12x3x128xf32, #tpu.memory_space<vmem>>, vector<1x1x3x128xf32>
    %225 = vector.shape_cast %224 : vector<1x1x3x128xf32> to vector<3x128xf32>
    %226 = vector.extract_strided_slice %225 {offsets = [1, 0], sizes = [1, 128], strides = [1, 1]} : vector<3x128xf32> to vector<1x128xf32>
    %c22 = arith.constant 22 : index
    %c0_175 = arith.constant 0 : index
    %c0_176 = arith.constant 0 : index
    %227 = vector.load %arg3[%c22, %c0_175, %c0_176] : memref<25x128x128xf32, #tpu.memory_space<vmem>>, vector<1x128x128xf32>
    %228 = vector.shape_cast %227 : vector<1x128x128xf32> to vector<128x128xf32>
    %cst_177 = arith.constant dense<0.000000e+00> : vector<1x128xf32>
    %229 = tpu.matmul %226, %228, %cst_177 {dimension_numbers = #tpu.dot_dimension_numbers<[1], [0], [0], [1], [0, 0, 1, 1], [], []>} : vector<1x128xf32>, vector<128x128xf32>, vector<1x128xf32> -> vector<1x128xf32>
    %230 = arith.addf %220, %229 : vector<1x128xf32>
    %c3_i32_178 = arith.constant 3 : i32
    %231 = arith.addi %c3_i32_178, %arg1 : i32
    %c2_i32_179 = arith.constant 2 : i32
    %232 = arith.addi %231, %c2_i32_179 : i32
    %c0_180 = arith.constant 0 : index
    %233 = arith.index_cast %232 : i32 to index
    %c0_181 = arith.constant 0 : index
    %c0_182 = arith.constant 0 : index
    %234 = vector.load %arg2[%c0_180, %233, %c0_181, %c0_182] : memref<1x12x3x128xf32, #tpu.memory_space<vmem>>, vector<1x1x3x128xf32>
    %235 = vector.shape_cast %234 : vector<1x1x3x128xf32> to vector<3x128xf32>
    %236 = vector.extract_strided_slice %235 {offsets = [1, 0], sizes = [1, 128], strides = [1, 1]} : vector<3x128xf32> to vector<1x128xf32>
    %c23 = arith.constant 23 : index
    %c0_183 = arith.constant 0 : index
    %c0_184 = arith.constant 0 : index
    %237 = vector.load %arg3[%c23, %c0_183, %c0_184] : memref<25x128x128xf32, #tpu.memory_space<vmem>>, vector<1x128x128xf32>
    %238 = vector.shape_cast %237 : vector<1x128x128xf32> to vector<128x128xf32>
    %cst_185 = arith.constant dense<0.000000e+00> : vector<1x128xf32>
    %239 = tpu.matmul %236, %238, %cst_185 {dimension_numbers = #tpu.dot_dimension_numbers<[1], [0], [0], [1], [0, 0, 1, 1], [], []>} : vector<1x128xf32>, vector<128x128xf32>, vector<1x128xf32> -> vector<1x128xf32>
    %240 = arith.addf %230, %239 : vector<1x128xf32>
    %c0_i32_186 = arith.constant 0 : i32
    %241 = arith.addi %c0_i32_186, %arg1 : i32
    %c2_i32_187 = arith.constant 2 : i32
    %242 = arith.addi %241, %c2_i32_187 : i32
    %c0_188 = arith.constant 0 : index
    %243 = arith.index_cast %242 : i32 to index
    %c0_189 = arith.constant 0 : index
    %c0_190 = arith.constant 0 : index
    %244 = vector.load %arg2[%c0_188, %243, %c0_189, %c0_190] : memref<1x12x3x128xf32, #tpu.memory_space<vmem>>, vector<1x1x3x128xf32>
    %245 = vector.shape_cast %244 : vector<1x1x3x128xf32> to vector<3x128xf32>
    %246 = vector.extract_strided_slice %245 {offsets = [2, 0], sizes = [1, 128], strides = [1, 1]} : vector<3x128xf32> to vector<1x128xf32>
    %c24 = arith.constant 24 : index
    %c0_191 = arith.constant 0 : index
    %c0_192 = arith.constant 0 : index
    %247 = vector.load %arg3[%c24, %c0_191, %c0_192] : memref<25x128x128xf32, #tpu.memory_space<vmem>>, vector<1x128x128xf32>
    %248 = vector.shape_cast %247 : vector<1x128x128xf32> to vector<128x128xf32>
    %cst_193 = arith.constant dense<0.000000e+00> : vector<1x128xf32>
    %249 = tpu.matmul %246, %248, %cst_193 {dimension_numbers = #tpu.dot_dimension_numbers<[1], [0], [0], [1], [0, 0, 1, 1], [], []>} : vector<1x128xf32>, vector<128x128xf32>, vector<1x128xf32> -> vector<1x128xf32>
    %250 = arith.addf %240, %249 : vector<1x128xf32>
    %c0_194 = arith.constant 0 : index
    %c0_195 = arith.constant 0 : index
    %251 = vector.load %arg4[%c0_194, %c0_195] : memref<1x128xf32, #tpu.memory_space<vmem>>, vector<1x128xf32>
    %252 = arith.addf %250, %251 : vector<1x128xf32>
    %cst_196 = arith.constant 0.000000e+00 : f32
    %253 = vector.broadcast %cst_196 : f32 to vector<1x128xf32>
    %254 = arith.maximumf %252, %253 : vector<1x128xf32>
    %c0_197 = arith.constant 0 : index
    %c0_198 = arith.constant 0 : index
    %c0_199 = arith.constant 0 : index
    %c0_200 = arith.constant 0 : index
    %255 = vector.load %arg5[%c0_197, %c0_198, %c0_199, %c0_200] : memref<1x1x1x128xf32, #tpu.memory_space<vmem>>, vector<1x1x1x128xf32>
    %256 = vector.shape_cast %255 : vector<1x1x1x128xf32> to vector<1x128xf32>
    %257 = vector.shape_cast %254 : vector<1x128xf32> to vector<1x1x1x128xf32>
    tpu.vector_store %arg5[%c0_197, %c0_198, %c0_199, %c0_200], %257 {strides = array<i32>} : memref<1x1x1x128xf32, #tpu.memory_space<vmem>>, vector<1x1x1x128xf32>,
    return
  }
  func.func @transform_0(%arg0: i32, %arg1: i32) -> (i32, i32, i32, i32) {
    %c0_i32 = arith.constant 0 : i32
    %c0_i32_0 = arith.constant 0 : i32
    %c0_i32_1 = arith.constant 0 : i32
    %c0_i32_2 = arith.constant 0 : i32
    return %arg0, %c0_i32, %c0_i32_0, %c0_i32_1 : i32, i32, i32, i32
  }
  func.func @transform_1(%arg0: i32, %arg1: i32) -> (i32, i32, i32) {
    %c0_i32 = arith.constant 0 : i32
    %c0_i32_0 = arith.constant 0 : i32
    %c0_i32_1 = arith.constant 0 : i32
    %c0_i32_2 = arith.constant 0 : i32
    return %c0_i32, %c0_i32_0, %c0_i32_1 : i32, i32, i32
  }
  func.func @transform_2(%arg0: i32, %arg1: i32) -> (i32, i32) {
    %c0_i32 = arith.constant 0 : i32
    %c0_i32_0 = arith.constant 0 : i32
    %c0_i32_1 = arith.constant 0 : i32
    return %c0_i32, %c0_i32_0 : i32, i32
  }
  func.func @transform_3(%arg0: i32, %arg1: i32) -> (i32, i32, i32, i32) {
    %c0_i32 = arith.constant 0 : i32
    %c0_i32_0 = arith.constant 0 : i32
    %c0_i32_1 = arith.constant 0 : i32
    return %arg0, %arg1, %c0_i32, %c0_i32_0 : i32, i32, i32, i32
  }
}

module attributes {stable_mosaic.version = 11 : i64} {
  func.func @_matmul_bias_act_kernel(%arg0: i32, %arg1: i32, %arg2: i32, %arg3: memref<8x128xf32, #tpu.memory_space<vmem>>, %arg4: memref<128x128xf32, #tpu.memory_space<vmem>>, %arg5: memref<1x128xf32, #tpu.memory_space<vmem>>, %arg6: memref<8x128xf32, #tpu.memory_space<vmem>>, %arg7: memref<8x128xf32, #tpu.memory_space<vmem>>) attributes {dimension_semantics = [#tpu.dimension_semantics<parallel>, #tpu.dimension_semantics<parallel>, #tpu.dimension_semantics<arbitrary>], iteration_bounds = array<i64: 1, 1, 1>, scalar_prefetch = 0 : i64, scratch_operands = 1 : i64, tpu.core_type = #tpu.core_type<tc>, window_params = [{transform_indices = @transform_0, window_bounds = array<i64: 8, 128>}, {transform_indices = @transform_1, window_bounds = array<i64: 128, 128>}, {transform_indices = @transform_2, window_bounds = array<i64: 1, 128>}, {transform_indices = @transform_3, window_bounds = array<i64: 8, 128>}]} {
    %c0_i32 = arith.constant 0 : i32
    %0 = arith.cmpi eq, %arg2, %c0_i32 : i32
    %1 = arith.extui %0 : i1 to i32
    %c0_i32_0 = arith.constant 0 : i32
    %2 = arith.cmpi ne, %1, %c0_i32_0 : i32
    scf.if %2 {
      %cst_10 = arith.constant 0.000000e+00 : f32
      %12 = vector.broadcast %cst_10 : f32 to vector<8x128xf32>
      %c0_11 = arith.constant 0 : index
      %c0_12 = arith.constant 0 : index
      %13 = vector.load %arg7[%c0_11, %c0_12] : memref<8x128xf32, #tpu.memory_space<vmem>>, vector<8x128xf32>
      tpu.vector_store %arg7[%c0_11, %c0_12], %12 {strides = array<i32>} : memref<8x128xf32, #tpu.memory_space<vmem>>, vector<8x128xf32>,
    } else {
    }
    %c0 = arith.constant 0 : index
    %c0_1 = arith.constant 0 : index
    %3 = vector.load %arg3[%c0, %c0_1] : memref<8x128xf32, #tpu.memory_space<vmem>>, vector<8x128xf32>
    %c0_2 = arith.constant 0 : index
    %c0_3 = arith.constant 0 : index
    %4 = vector.load %arg7[%c0_2, %c0_3] : memref<8x128xf32, #tpu.memory_space<vmem>>, vector<8x128xf32>
    %c0_4 = arith.constant 0 : index
    %c0_5 = arith.constant 0 : index
    %5 = vector.load %arg4[%c0_4, %c0_5] : memref<128x128xf32, #tpu.memory_space<vmem>>, vector<128x128xf32>
    %cst = arith.constant dense<0.000000e+00> : vector<8x128xf32>
    %6 = tpu.matmul %3, %5, %cst {dimension_numbers = #tpu.dot_dimension_numbers<[1], [0], [0], [1], [0, 0, 1, 1], [], []>} : vector<8x128xf32>, vector<128x128xf32>, vector<8x128xf32> -> vector<8x128xf32>
    %7 = arith.addf %4, %6 : vector<8x128xf32>
    %c0_6 = arith.constant 0 : index
    %c0_7 = arith.constant 0 : index
    %8 = vector.load %arg7[%c0_6, %c0_7] : memref<8x128xf32, #tpu.memory_space<vmem>>, vector<8x128xf32>
    tpu.vector_store %arg7[%c0_6, %c0_7], %7 {strides = array<i32>} : memref<8x128xf32, #tpu.memory_space<vmem>>, vector<8x128xf32>,
    %c0_i32_8 = arith.constant 0 : i32
    %9 = arith.cmpi eq, %arg2, %c0_i32_8 : i32
    %10 = arith.extui %9 : i1 to i32
    %c0_i32_9 = arith.constant 0 : i32
    %11 = arith.cmpi ne, %10, %c0_i32_9 : i32
    scf.if %11 {
      %c0_10 = arith.constant 0 : index
      %c0_11 = arith.constant 0 : index
      %12 = vector.load %arg7[%c0_10, %c0_11] : memref<8x128xf32, #tpu.memory_space<vmem>>, vector<8x128xf32>
      %c0_12 = arith.constant 0 : index
      %c0_13 = arith.constant 0 : index
      %13 = vector.load %arg5[%c0_12, %c0_13] : memref<1x128xf32, #tpu.memory_space<vmem>>, vector<1x128xf32>
      %14 = vector.broadcast %13 : vector<1x128xf32> to vector<8x128xf32>
      %15 = arith.addf %12, %14 : vector<8x128xf32>
      %c0_14 = arith.constant 0 : index
      %c0_15 = arith.constant 0 : index
      %16 = vector.load %arg6[%c0_14, %c0_15] : memref<8x128xf32, #tpu.memory_space<vmem>>, vector<8x128xf32>
      tpu.vector_store %arg6[%c0_14, %c0_15], %15 {strides = array<i32>} : memref<8x128xf32, #tpu.memory_space<vmem>>, vector<8x128xf32>,
    } else {
    }
    return
  }
  func.func @transform_0(%arg0: i32, %arg1: i32, %arg2: i32) -> (i32, i32) {
    %c0_i32 = arith.constant 0 : i32
    return %arg0, %arg2 : i32, i32
  }
  func.func @transform_1(%arg0: i32, %arg1: i32, %arg2: i32) -> (i32, i32) {
    %c0_i32 = arith.constant 0 : i32
    return %arg2, %arg1 : i32, i32
  }
  func.func @transform_2(%arg0: i32, %arg1: i32, %arg2: i32) -> (i32, i32) {
    %c0_i32 = arith.constant 0 : i32
    %c0_i32_0 = arith.constant 0 : i32
    return %c0_i32, %arg1 : i32, i32
  }
  func.func @transform_3(%arg0: i32, %arg1: i32, %arg2: i32) -> (i32, i32) {
    %c0_i32 = arith.constant 0 : i32
    return %arg0, %arg1 : i32, i32
  }
}

</mosaic_0001>

<bundles_post_ra>
// kernel: forward.5
= control target key start
LH: loop header
LB: loop body
LE: loop exit
PB: predicated region body
PF: predicated region fallthrough
CT: control target
= control target key end

     0   :  { %s2768_s12 = smov 0   ;;  %s2770_s13 = smov 0   ;;  %s3068_s0 = inlined_call_operand.vmem [shape: f32[2,40,10,3], index: 0, kind: input, shape index: {}]   ;;  %s3069_s1 = inlined_call_operand.vmem [shape: f32[25,3,128], index: 1, kind: input, shape index: {}]   ;;  %s3070_s2 = inlined_call_operand.vmem [shape: f32[1,128], index: 2, kind: input, shape index: {}]   ;;  %s3071_s3 = inlined_call_operand.vmem [shape: f32[2,8,8,128], index: 3, kind: output, shape index: {}]  }
   0x1   :  { %s2772_s14 = smov 0   ;;  %s2774_s15 = smov 0  }
   0x2   :  { %s2776_s16 = smov 0  }
   0x3 LB: > { %s22_s17 = sadd.s32 1, %s2736_s14  ;;  %s25_s18 = sadd.s32 1, %s2740_s15  ;;  %s2744_s16 = sphi %s2776_s16, %s13_s16   ;;  %s2740_s15 = sphi %s2774_s15, %s3075_s15   ;;  %s2736_s14 = sphi %s2772_s14, %s3074_s14   ;;  %s2732_s13 = sphi %s2770_s13, %s3073_s13   ;;  %s2728_s12 = sphi %s2768_s12, %s3072_s12  }
   0x4   : > { %p23_p0 = scmp.ge.s32.totalorder %s22_s17, 8  ;;  %p2379_p1 = scmp.ge.s32.totalorder %s2744_s16, 1 }
   0x5   : > { %p151_p2 = scmp.lt.s32.totalorder %s2744_s16, 17 }
   0x6   : > { %s3077_s17 = smov (%p23_p0, %s22_s17), 0  ;;  %s3079_s18 = smov (!%p23_p0, %s25_s18), %s2740_s15 }
   0x7   : > { %p152_p3 = pnand %p2379_p1, %p151_p2  ;;  %p27_p4 = scmp.ge.s32.totalorder %s3079_s18, 2 }
   0x8   : > { %p178_p5 = scmp.lt.s32.totalorder (!%p152_p3), %s2732_s13, 1  ;;  %s2383_s24 = sshll.u32 (!%p152_p3), %s2728_s12, 4 }
   0x9   : > { %s3081_s18 = smov (%p27_p4, %s3079_s18), 0  ;;  %155 = sbr.rel (%p152_p3) target bundleno = 269 (0x10d), region = 32 }
   0xa   : > { %p185_p6 = scmp.lt.s32.totalorder (!%p152_p3), %s2728_s12, 7 }
   0xe   : > { %v2387_v0 = vld [vmem:[%s3069_s1 + $0x4] sm:$0x7]  ;;  %vm207_vm0 = vcmask 1042432   ;;  %v2746_v1 = vmov 0.0   ;;  %v195_v2 = vld [vmem:[%s3069_s1] sm:$0x7] }
   0xf   : > { %2538 = vmatprep.subr.mxu0 %v2746_v1  ;;  %2543 = vmatprep.subr.mxu1 %v2746_v1  ;;  %vm2747_vm1 = vmmov 0   ;;  %s3083_s13 = smov (!%p178_p5, %s2732_s13), 1  ;;  %vm203_vm2 = vcmask 23552   ;;  %v2392_v3 = vld [vmem:[%s3069_s1 + $0x8] sm:$0x7]  ;;  %vm360_vm3 = vcmask 1046528  }
  0x10   : > { %2539 = vmatpush3.msk.msra.mxu0 %vm207_vm0, %v2387_v0  ;;  %2540 = vmatprep.mubr.msk.f32.mxu0 %vm2747_vm1, %v2746_v1  ;;  %s2663_s23 = smul.u32 640, %s3083_s13  ;;  %v2395_v4 = vld [vmem:[%s3069_s1 + $0xc] sm:$0x7]  ;;  %v2398_v14 = vld [vmem:[%s3069_s1 + $0x10] sm:$0x7]  ;;  %vm524_vm4 = vcmask 1045504  }
  0x11   : > { %2544 = vmatpush3.msk.msra.mxu1 %vm207_vm0, %v195_v2  ;;  %2545 = vmatprep.mubr.msk.f32.mxu1 %vm2747_vm1, %v2746_v1  ;;  %v2404_v17 = vld [vmem:[%s3069_s1 + $0x14] sm:$0x7]  ;;  %v2410_v23 = vld [vmem:[%s3069_s1 + $0x18] sm:$0x7]  ;;  %v2413_v25 = vld [vmem:[%s3069_s1 + $0x1c] sm:$0x7] }
  0x12   : > { %2548 = vmatprep.subr.mxu0 %v2746_v1  ;;  %2553 = vmatprep.subr.mxu1 %v2746_v1  ;;  %s182_s27 = scalar_lea.vmem %s3068_s0, %s2663_s23  ;;  %v2416_v33 = vld [vmem:[%s3069_s1 + $0x20] sm:$0x7]  ;;  %v2419_v34 = vld [vmem:[%s3069_s1 + $0x24] sm:$0x7]  ;;  %v2425_v37 = vld [vmem:[%s3069_s1 + $0x28] sm:$0x7] }
  0x13   : > { %s2823_s28 = scalar_lea.vmem %s182_s27, %s2383_s24  ;;  %v2431_v38 = vld [vmem:[%s3069_s1 + $0x2c] sm:$0x7]  ;;  %v2434_v47 = vld [vmem:[%s3069_s1 + $0x30] sm:$0x7]  ;;  %v2437_v48 = vld [vmem:[%s3069_s1 + $0x34] sm:$0x7] }
  0x14   : > { %v2385_v5 = vld [vmem:[%s2823_s28 + $0xa0] sm:$0xff]  ;;  %v194_v7 = vld [vmem:[%s2823_s28 + $0x8] sm:$0x3]  ;;  %v2423_v39 = vld [vmem:[%s2823_s28 + $0x10] sm:$0xff]  ;;  %s3085_s12 = smov (!%p185_p6, %s2728_s12), 7  ;;  %s2381_s9 = sshll.u32 %s3083_s13, 3 }
  0x15   : > { %v193_v6 = vld [vmem:[%s2823_s28] sm:$0xff]  ;;  %2541 = vmatmul.mubr.msk.f32.vlgmr.msra.gmra.mxu0 %vm203_vm2, %v2385_v5  ;;  %v443_v8 = vrot.slane %v2385_v5, 1  ;;  %v362_v10 = vrot.slane %v194_v7, 1  ;;  %v2386_v11 = vld [vmem:[%s2823_s28 + $0xa8] sm:$0x3]  ;;  %v526_v15 = vrot.slane %v194_v7, 2  ;;  %s188_s10 = sadd.s32 %s2381_s9, %s3085_s12 }
  0x16   : > { %2546 = vmatmul.mubr.msk.f32.vlgmr.msra.gmra.mxu1 %vm203_vm2, %v193_v6  ;;  %v361_v9 = vrot.slane %v193_v6, 1  ;;  %v525_v12 = vrot.slane %v193_v6, 2  ;;  %2549 = vmatpush3.msk.msra.mxu0 %vm207_vm0, %v2392_v3  ;;  %v444_v13 = vrot.slane %v2386_v11, 1  ;;  %v2402_v18 = vld [vmem:[%s2823_s28 + $0x140] sm:$0xff]  ;;  %v2403_v19 = vld [vmem:[%s2823_s28 + $0x148] sm:$0x3] }
  0x17   : > { %2554 = vmatpush3.msk.msra.mxu1 %vm207_vm0, %v2395_v4  ;;  %2550 = vmatprep.mubr.msk.f32.mxu0 %vm2747_vm1, %v2746_v1  ;;  %v775_v22 = vrot.slane %v2402_v18, 1  ;;  %v776_v24 = vrot.slane %v2403_v19, 1  ;;  %v2408_v26 = vld [vmem:[%s2823_s28 + $0x1e0] sm:$0xff]  ;;  %v2409_v27 = vld [vmem:[%s2823_s28 + $0x1e8] sm:$0x3]  ;;  %v938_v28 = vrot.slane %v2402_v18, 2 }
  0x18   : > { %2555 = vmatprep.mubr.msk.f32.mxu1 %vm2747_vm1, %v2746_v1  ;;  %v363_v16 = vsel %vm360_vm3, %v361_v9, %v362_v10  ;;  %2558 = vmatprep.subr.mxu0 %v2746_v1  ;;  %v445_v20 = vsel %vm360_vm3, %v443_v8, %v444_v13  ;;  %v527_v21 = vsel %vm524_vm4, %v525_v12, %v526_v15  ;;  %v857_v29 = vrot.slane %v2408_v26, 1  ;;  %v2429_v40 = vld [vmem:[%s2823_s28 + $0xb0] sm:$0xff]  ;;  %v2424_v41 = vld [vmem:[%s2823_s28 + $0x18] sm:$0x3]  ;;  %v2446_v54 = vld [vmem:[%s3069_s1 + $0x3c] sm:$0x7] }
  0x19   : > { %2563 = vmatprep.subr.mxu1 %v2746_v1  ;;  %2551 = vmatmul.mubr.msk.f32.vlgmr.msra.gmra.mxu0 %vm203_vm2, %v363_v16  ;;  %v777_v30 = vsel %vm360_vm3, %v775_v22, %v776_v24  ;;  %v858_v31 = vrot.slane %v2409_v27, 1  ;;  %v939_v32 = vrot.slane %v2403_v19, 2  ;;  %v2430_v42 = vld [vmem:[%s2823_s28 + $0xb8] sm:$0x3]  ;;  %v1188_v43 = vrot.slane %v2423_v39, 1  ;;  %v2444_v55 = vld [vmem:[%s2823_s28 + $0x150] sm:$0xff] }
  0x1a   : > { %2556 = vmatmul.mubr.msk.f32.vlgmr.msra.gmra.mxu1 %vm203_vm2, %v445_v20  ;;  %2559 = vmatpush3.msk.msra.mxu0 %vm207_vm0, %v2398_v14  ;;  %v1270_v44 = vrot.slane %v2429_v40, 1  ;;  %v1189_v45 = vrot.slane %v2424_v41, 1  ;;  %v1271_v46 = vrot.slane %v2430_v42, 1  ;;  %v1351_v49 = vrot.slane %v2423_v39, 2  ;;  %v2440_v52 = vld [vmem:[%s3069_s1 + $0x38] sm:$0x7] }
  0x1b   : > { %2564 = vmatpush3.msk.msra.mxu1 %vm207_vm0, %v2404_v17  ;;  %2560 = vmatprep.mubr.msk.f32.mxu0 %vm2747_vm1, %v2746_v1  ;;  %v859_v35 = vsel %vm360_vm3, %v857_v29, %v858_v31  ;;  %v940_v36 = vsel %vm524_vm4, %v938_v28, %v939_v32  ;;  %v1352_v53 = vrot.slane %v2424_v41, 2  ;;  %v2445_v56 = vld [vmem:[%s2823_s28 + $0x158] sm:$0x3]  ;;  %v1601_v58 = vrot.slane %v2444_v55, 1  ;;  %v2452_v59 = vld [vmem:[%s3069_s1 + $0x40] sm:$0x7] }
  0x1c   : > { %2565 = vmatprep.mubr.msk.f32.mxu1 %vm2747_vm1, %v2746_v1  ;;  %2568 = vmatprep.subr.mxu0 %v2746_v1  ;;  %v1190_v50 = vsel %vm360_vm3, %v1188_v43, %v1189_v45  ;;  %v1272_v51 = vsel %vm360_vm3, %v1270_v44, %v1271_v46  ;;  %v1602_v60 = vrot.slane %v2445_v56, 1  ;;  %v2455_v61 = vld [vmem:[%s3069_s1 + $0x44] sm:$0x7]  ;;  %v2450_v62 = vld [vmem:[%s2823_s28 + $0x1f0] sm:$0xff]  ;;  %v2451_v63 = vld [vmem:[%s2823_s28 + $0x1f8] sm:$0x3] }
  0x1d   : > { %2573 = vmatprep.subr.mxu1 %v2746_v1  ;;  %2561 = vmatmul.mubr.msk.f32.vlgmr.msra.gmra.mxu0 %vm203_vm2, %v527_v21  ;;  %v1353_v57 = vsel %vm524_vm4, %v1351_v49, %v1352_v53  ;;  %v1764_v0 = vrot.slane %v2444_v55, 2  ;;  %v1683_v2 = vrot.slane %v2450_v62, 1  ;;  %v1684_v4 = vrot.slane %v2451_v63, 1  ;;  %v2458_v6 = vld [vmem:[%s3069_s1 + $0x48] sm:$0x7]  ;;  %v2465_v11 = vld [vmem:[%s2823_s28 + $0x20] sm:$0xff] }
  0x1e   : > { %2566 = vmatmul.mubr.msk.f32.vlgmr.msra.gmra.mxu1 %vm203_vm2, %v2402_v18  ;;  %2569 = vmatpush3.msk.msra.mxu0 %vm207_vm0, %v2410_v23  ;;  %v1603_v3 = vsel %vm360_vm3, %v1601_v58, %v1602_v60  ;;  %v1765_v5 = vrot.slane %v2445_v56, 2  ;;  %v2461_v7 = vld [vmem:[%s3069_s1 + $0x4c] sm:$0x7]  ;;  %v2467_v10 = vld [vmem:[%s3069_s1 + $0x50] sm:$0x7]  ;;  %v2471_v12 = vld [vmem:[%s2823_s28 + $0xc0] sm:$0xff] }
  0x1f   : > { %2574 = vmatpush3.msk.msra.mxu1 %vm207_vm0, %v2413_v25  ;;  %2570 = vmatprep.mubr.msk.f32.mxu0 %vm2747_vm1, %v2746_v1  ;;  %v1685_v8 = vsel %vm360_vm3, %v1683_v2, %v1684_v4  ;;  %v2473_v13 = vld [vmem:[%s3069_s1 + $0x54] sm:$0x7]  ;;  %v2466_v14 = vld [vmem:[%s2823_s28 + $0x28] sm:$0x3]  ;;  %v2014_v16 = vrot.slane %v2465_v11, 1  ;;  %v2096_v17 = vrot.slane %v2471_v12, 1 }
  0x20   : > { %2575 = vmatprep.mubr.msk.f32.mxu1 %vm2747_vm1, %v2746_v1  ;;  %2578 = vmatprep.subr.mxu0 %v2746_v1  ;;  %v1766_v9 = vsel %vm524_vm4, %v1764_v0, %v1765_v5  ;;  %v2472_v15 = vld [vmem:[%s2823_s28 + $0xc8] sm:$0x3]  ;;  %v2015_v18 = vrot.slane %v2466_v14, 1  ;;  %v2476_v20 = vld [vmem:[%s3069_s1 + $0x58] sm:$0x7]  ;;  %v2177_v22 = vrot.slane %v2465_v11, 2 }
  0x21   : > { %2583 = vmatprep.subr.mxu1 %v2746_v1  ;;  %2571 = vmatmul.mubr.msk.f32.vlgmr.msra.gmra.mxu0 %vm203_vm2, %v2408_v26  ;;  %v2097_v19 = vrot.slane %v2472_v15, 1  ;;  %v2479_v21 = vld [vmem:[%s3069_s1 + $0x5c] sm:$0x7]  ;;  %v2178_v25 = vrot.slane %v2466_v14, 2  ;;  %v2482_v26 = vld [vmem:[%s3069_s1 + $0x60] sm:$0x7] }
  0x22   : > { %2576 = vmatmul.mubr.msk.f32.vlgmr.msra.gmra.mxu1 %vm203_vm2, %v777_v30  ;;  %2579 = vmatpush3.msk.msra.mxu0 %vm207_vm0, %v2416_v33  ;;  %v2016_v23 = vsel %vm360_vm3, %v2014_v16, %v2015_v18  ;;  %s2382_s20 = sshll.u32 %s188_s10, 3 }
  0x23   : > { %2584 = vmatpush3.msk.msra.mxu1 %vm207_vm0, %v2419_v34  ;;  %2580 = vmatprep.mubr.msk.f32.mxu0 %vm2747_vm1, %v2746_v1  ;;  %v2098_v24 = vsel %vm360_vm3, %v2096_v17, %v2097_v19  ;;  %v2179_v27 = vsel %vm524_vm4, %v2177_v22, %v2178_v25  ;;  %s190_s13 = scalar_lea.vmem %s3071_s3, %s2382_s20 }
  0x24   : > { %2585 = vmatprep.mubr.msk.f32.mxu1 %vm2747_vm1, %v2746_v1  ;;  %2588 = vmatprep.subr.mxu0 %v2746_v1 }
  0x25   : > { %2593 = vmatprep.subr.mxu1 %v2746_v1  ;;  %2581 = vmatmul.mubr.msk.f32.vlgmr.msra.gmra.mxu0 %vm203_vm2, %v859_v35 }
  0x26   : > { %2586 = vmatmul.mubr.msk.f32.vlgmr.msra.gmra.mxu1 %vm203_vm2, %v940_v36  ;;  %2589 = vmatpush3.msk.msra.mxu0 %vm207_vm0, %v2425_v37 }
  0x27   : > { %2594 = vmatpush3.msk.msra.mxu1 %vm207_vm0, %v2431_v38  ;;  %2590 = vmatprep.mubr.msk.f32.mxu0 %vm2747_vm1, %v2746_v1 }
  0x28   : > { %2595 = vmatprep.mubr.msk.f32.mxu1 %vm2747_vm1, %v2746_v1  ;;  %2598 = vmatprep.subr.mxu0 %v2746_v1 }
  0x29   : > { %2603 = vmatprep.subr.mxu1 %v2746_v1  ;;  %2591 = vmatmul.mubr.msk.f32.vlgmr.msra.gmra.mxu0 %vm203_vm2, %v2423_v39 }
  0x2a   : > { %2596 = vmatmul.mubr.msk.f32.vlgmr.msra.gmra.mxu1 %vm203_vm2, %v2429_v40  ;;  %2599 = vmatpush3.msk.msra.mxu0 %vm207_vm0, %v2434_v47 }
  0x2b   : > { %2604 = vmatpush3.msk.msra.mxu1 %vm207_vm0, %v2437_v48  ;;  %2600 = vmatprep.mubr.msk.f32.mxu0 %vm2747_vm1, %v2746_v1 }
  0x2c   : > { %2605 = vmatprep.mubr.msk.f32.mxu1 %vm2747_vm1, %v2746_v1  ;;  %2608 = vmatprep.subr.mxu0 %v2746_v1 }
  0x2d   : > { %2613 = vmatprep.subr.mxu1 %v2746_v1  ;;  %2601 = vmatmul.mubr.msk.f32.vlgmr.msra.gmra.mxu0 %vm203_vm2, %v1190_v50 }
  0x2e   : > { %2606 = vmatmul.mubr.msk.f32.vlgmr.msra.gmra.mxu1 %vm203_vm2, %v1272_v51  ;;  %2609 = vmatpush3.msk.msra.mxu0 %vm207_vm0, %v2440_v52 }
  0x2f   : > { %2614 = vmatpush3.msk.msra.mxu1 %vm207_vm0, %v2446_v54  ;;  %2610 = vmatprep.mubr.msk.f32.mxu0 %vm2747_vm1, %v2746_v1 }
  0x30   : > { %2615 = vmatprep.mubr.msk.f32.mxu1 %vm2747_vm1, %v2746_v1  ;;  %2618 = vmatprep.subr.mxu0 %v2746_v1 }
  0x31   : > { %2623 = vmatprep.subr.mxu1 %v2746_v1  ;;  %2611 = vmatmul.mubr.msk.f32.vlgmr.msra.gmra.mxu0 %vm203_vm2, %v1353_v57 }
  0x32   : > { %2616 = vmatmul.mubr.msk.f32.vlgmr.msra.gmra.mxu1 %vm203_vm2, %v2444_v55  ;;  %2619 = vmatpush3.msk.msra.mxu0 %vm207_vm0, %v2452_v59 }
  0x33   : > { %2624 = vmatpush3.msk.msra.mxu1 %vm207_vm0, %v2455_v61  ;;  %2620 = vmatprep.mubr.msk.f32.mxu0 %vm2747_vm1, %v2746_v1 }
  0x34   : > { %2625 = vmatprep.mubr.msk.f32.mxu1 %vm2747_vm1, %v2746_v1  ;;  %2628 = vmatprep.subr.mxu0 %v2746_v1 }
  0x35   : > { %2633 = vmatprep.subr.mxu1 %v2746_v1  ;;  %2621 = vmatmul.mubr.msk.f32.vlgmr.msra.gmra.mxu0 %vm203_vm2, %v2450_v62 }
  0x36   : > { %2626 = vmatmul.mubr.msk.f32.vlgmr.msra.gmra.mxu1 %vm203_vm2, %v1603_v3  ;;  %2629 = vmatpush3.msk.msra.mxu0 %vm207_vm0, %v2458_v6 }
  0x37   : > { %2634 = vmatpush3.msk.msra.mxu1 %vm207_vm0, %v2461_v7  ;;  %2630 = vmatprep.mubr.msk.f32.mxu0 %vm2747_vm1, %v2746_v1 }
  0x38   : > { %2635 = vmatprep.mubr.msk.f32.mxu1 %vm2747_vm1, %v2746_v1  ;;  %2638 = vmatprep.subr.mxu0 %v2746_v1 }
  0x39   : > { %2643 = vmatprep.subr.mxu1 %v2746_v1  ;;  %2631 = vmatmul.mubr.msk.f32.vlgmr.msra.gmra.mxu0 %vm203_vm2, %v1685_v8 }
  0x3a   : > { %2636 = vmatmul.mubr.msk.f32.vlgmr.msra.gmra.mxu1 %vm203_vm2, %v1766_v9  ;;  %2639 = vmatpush3.msk.msra.mxu0 %vm207_vm0, %v2467_v10 }
  0x3b   : > { %2644 = vmatpush3.msk.msra.mxu1 %vm207_vm0, %v2473_v13  ;;  %2640 = vmatprep.mubr.msk.f32.mxu0 %vm2747_vm1, %v2746_v1 }
  0x3c   : > { %2645 = vmatprep.mubr.msk.f32.mxu1 %vm2747_vm1, %v2746_v1  ;;  %2648 = vmatprep.subr.mxu0 %v2746_v1 }
  0x3d   : > { %2653 = vmatprep.subr.mxu1 %v2746_v1  ;;  %2641 = vmatmul.mubr.msk.f32.vlgmr.msra.gmra.mxu0 %vm203_vm2, %v2465_v11 }
  0x3e   : > { %2646 = vmatmul.mubr.msk.f32.vlgmr.msra.gmra.mxu1 %vm203_vm2, %v2471_v12  ;;  %2649 = vmatpush3.msk.msra.mxu0 %vm207_vm0, %v2476_v20 }
  0x3f   : > { %2654 = vmatpush3.msk.msra.mxu1 %vm207_vm0, %v2479_v21  ;;  %2650 = vmatprep.mubr.msk.f32.mxu0 %vm2747_vm1, %v2746_v1 }
  0x40   : > { %2655 = vmatprep.mubr.msk.f32.mxu1 %vm2747_vm1, %v2746_v1  ;;  %2658 = vmatprep.subr.mxu0 %v2746_v1 }
  0x41   : > { %2651 = vmatmul.mubr.msk.f32.vlgmr.msra.gmra.mxu0 %vm203_vm2, %v2016_v23 }
  0x42   : > { %2656 = vmatmul.mubr.msk.f32.vlgmr.msra.gmra.mxu1 %vm203_vm2, %v2098_v24  ;;  %2659 = vmatpush3.msk.msra.mxu0 %vm207_vm0, %v2482_v26 }
  0x43   : > { %2660 = vmatprep.mubr.msk.f32.mxu0 %vm2747_vm1, %v2746_v1 }
  0x45   : > { %2661 = vmatmul.mubr.msk.f32.vlgmr.msra.gmra.mxu0 %vm203_vm2, %v2179_v27 }
  0xd5   : > { %v277_v28 = vpop.f32.mrf.mxu0 }
  0xd6   : > { %v353_v29 = vpop.f32.mrf.mxu1 }
  0xd7   : > { %v2542_v30 = vpop.f32.mrf.mxu0  ;;  %v354_v32 = vadd.f32 %v353_v29, %v277_v28 }
  0xd8   : > { %v2547_v31 = vpop.f32.mrf.mxu1 }
  0xd9   : > { %v435_v33 = vpop.f32.mrf.mxu0 }
  0xda   : > { %v517_v34 = vpop.f32.mrf.mxu1  ;;  %v439_v35 = vadd.f32 %v435_v33, %v354_v32 }
  0xdb   : > { %v2552_v36 = vpop.f32.mrf.mxu0 }
  0xdc   : > { %v2557_v37 = vpop.f32.mrf.mxu1  ;;  %v521_v38 = vadd.f32 %v517_v34, %v439_v35  ;;  %v2485_v36 = vld [vmem:[%s3070_s2] ss:$0 sm:$0xff] }
  0xdd   : > { %v599_v39 = vpop.f32.mrf.mxu0 }
  0xde   : > { %v683_v40 = vpop.f32.mrf.mxu1  ;;  %v603_v41 = vadd.f32 %v599_v39, %v521_v38 }
  0xdf   : > { %v2562_v42 = vpop.f32.mrf.mxu0 }
  0xe0   : > { %v2567_v1 = vpop.f32.mrf.mxu1  ;;  %v687_v43 = vadd.f32 %v683_v40, %v603_v41 }
  0xe1   : > { %v767_v44 = vpop.f32.mrf.mxu0 }
  0xe2   : > { %v849_v45 = vpop.f32.mrf.mxu1  ;;  %v771_v46 = vadd.f32 %v767_v44, %v687_v43 }
  0xe3   : > { %v2572_v47 = vpop.f32.mrf.mxu0 }
  0xe4   : > { %v2577_v48 = vpop.f32.mrf.mxu1  ;;  %v853_v49 = vadd.f32 %v849_v45, %v771_v46 }
  0xe5   : > { %v931_v50 = vpop.f32.mrf.mxu0 }
  0xe6   : > { %v1012_v51 = vpop.f32.mrf.mxu1  ;;  %v935_v52 = vadd.f32 %v931_v50, %v853_v49 }
  0xe7   : > { %v2582_v53 = vpop.f32.mrf.mxu0 }
  0xe8   : > { %v2587_v54 = vpop.f32.mrf.mxu1  ;;  %v1016_v55 = vadd.f32 %v1012_v51, %v935_v52 }
  0xe9   : > { %v1096_v56 = vpop.f32.mrf.mxu0 }
  0xea   : > { %v1180_v57 = vpop.f32.mrf.mxu1  ;;  %v1100_v58 = vadd.f32 %v1096_v56, %v1016_v55 }
  0xeb   : > { %v2592_v59 = vpop.f32.mrf.mxu0 }
  0xec   : > { %v2597_v60 = vpop.f32.mrf.mxu1  ;;  %v1184_v61 = vadd.f32 %v1180_v57, %v1100_v58 }
  0xed   : > { %v1262_v62 = vpop.f32.mrf.mxu0 }
  0xee   : > { %v1344_v63 = vpop.f32.mrf.mxu1  ;;  %v1266_v0 = vadd.f32 %v1262_v62, %v1184_v61 }
  0xef   : > { %v2602_v2 = vpop.f32.mrf.mxu0 }
  0xf0   : > { %v2607_v3 = vpop.f32.mrf.mxu1  ;;  %v1348_v4 = vadd.f32 %v1344_v63, %v1266_v0 }
  0xf1   : > { %v1425_v5 = vpop.f32.mrf.mxu0 }
  0xf2   : > { %v1509_v6 = vpop.f32.mrf.mxu1  ;;  %v1429_v7 = vadd.f32 %v1425_v5, %v1348_v4 }
  0xf3   : > { %v2612_v8 = vpop.f32.mrf.mxu0 }
  0xf4   : > { %v2617_v9 = vpop.f32.mrf.mxu1  ;;  %v1513_v10 = vadd.f32 %v1509_v6, %v1429_v7 }
  0xf5   : > { %v1593_v11 = vpop.f32.mrf.mxu0 }
  0xf6   : > { %v1675_v12 = vpop.f32.mrf.mxu1  ;;  %v1597_v13 = vadd.f32 %v1593_v11, %v1513_v10 }
  0xf7   : > { %v2622_v14 = vpop.f32.mrf.mxu0 }
  0xf8   : > { %v2627_v15 = vpop.f32.mrf.mxu1  ;;  %v1679_v16 = vadd.f32 %v1675_v12, %v1597_v13 }
  0xf9   : > { %v1757_v17 = vpop.f32.mrf.mxu0 }
  0xfa   : > { %v1838_v18 = vpop.f32.mrf.mxu1  ;;  %v1761_v19 = vadd.f32 %v1757_v17, %v1679_v16 }
  0xfb   : > { %v2632_v20 = vpop.f32.mrf.mxu0 }
  0xfc   : > { %v2637_v21 = vpop.f32.mrf.mxu1  ;;  %v1842_v22 = vadd.f32 %v1838_v18, %v1761_v19 }
  0xfd   : > { %v1922_v23 = vpop.f32.mrf.mxu0 }
  0xfe   : > { %v2006_v24 = vpop.f32.mrf.mxu1  ;;  %v1926_v25 = vadd.f32 %v1922_v23, %v1842_v22 }
  0xff   : > { %v2642_v26 = vpop.f32.mrf.mxu0 }
 0x100   : > { %v2647_v27 = vpop.f32.mrf.mxu1  ;;  %v2010_v28 = vadd.f32 %v2006_v24, %v1926_v25 }
 0x101   : > { %v2088_v29 = vpop.f32.mrf.mxu0 }
 0x102   : > { %v2170_v30 = vpop.f32.mrf.mxu1  ;;  %v2092_v31 = vadd.f32 %v2088_v29, %v2010_v28 }
 0x103   : > { %v2652_v32 = vpop.f32.mrf.mxu0 }
 0x104   : > { %v2657_v33 = vpop.f32.mrf.mxu1  ;;  %v2174_v34 = vadd.f32 %v2170_v30, %v2092_v31 }
 0x105   : > { %v2251_v35 = vpop.f32.mrf.mxu0 }
 0x106   : > { %v2255_v37 = vadd.f32 %v2251_v35, %v2174_v34 }
 0x107   : > { %v2662_v38 = vpop.f32.mrf.mxu0 }
 0x108   : > { %v2263_v39 = vadd.f32 %v2485_v36, %v2255_v37 }
 0x10a   : > { %v2264_v40 = vmax.f32 %v2263_v39, 0.0 }
 0x10c   : > { %2265 = vst [vmem:[%s190_s13] sm:$0xff] %v2264_v40 }
 0x10d PF: > { %s13_s16 = sadd.s32 1, %s2744_s16   ;;  %s3072_s12 = smov %s2736_s14 }
 0x10e   : > { %p10_p7 = scmp.ge.s32.totalorder %s13_s16, 18   ;;  %s3073_s13 = smov %s2740_s15 }
 0x10f   : > { %s3074_s14 = smov %s3077_s17  ;;  %s3075_s15 = smov %s3081_s18 }
 0x110   :  { %12 = sbr.rel (!%p10_p7) target bundleno = 3 (0x3), region = 96 }

// kernel: forward.6
= control target key start
LH: loop header
LB: loop body
LE: loop exit
PB: predicated region body
PF: predicated region fallthrough
CT: control target
= control target key end

     0   :  { %s4405_s12 = smov 0   ;;  %s4407_s13 = smov 0   ;;  %s6197_s0 = inlined_call_operand.vmem [shape: f32[2,24,6,128], index: 0, kind: input, shape index: {}]   ;;  %s6198_s1 = inlined_call_operand.vmem [shape: f32[25,128,128], index: 1, kind: input, shape index: {}]   ;;  %s6199_s2 = inlined_call_operand.vmem [shape: f32[1,128], index: 2, kind: input, shape index: {}]   ;;  %s6200_s3 = inlined_call_operand.vmem [shape: f32[2,4,4,128], index: 3, kind: output, shape index: {}]  }
   0x1   :  { %s4409_s14 = smov 0   ;;  %s4411_s15 = smov 0  }
   0x2   :  { %s4413_s16 = smov 0  }
   0x3 LB: > { %s22_s17 = sadd.s32 1, %s4373_s14  ;;  %s25_s18 = sadd.s32 1, %s4377_s15  ;;  %s4381_s16 = sphi %s4413_s16, %s13_s16   ;;  %s4377_s15 = sphi %s4411_s15, %s6204_s15   ;;  %s4373_s14 = sphi %s4409_s14, %s6203_s14   ;;  %s4369_s13 = sphi %s4407_s13, %s6202_s13   ;;  %s4365_s12 = sphi %s4405_s12, %s6201_s12  }
   0x4   : > { %p23_p0 = scmp.ge.s32.totalorder %s22_s17, 4  ;;  %p2590_p1 = scmp.ge.s32.totalorder %s4381_s16, 1 }
   0x5   : > { %p151_p2 = scmp.lt.s32.totalorder %s4381_s16, 9 }
   0x6   : > { %s6206_s17 = smov (%p23_p0, %s22_s17), 0  ;;  %s6208_s18 = smov (!%p23_p0, %s25_s18), %s4377_s15 }
   0x7   : > { %p152_p3 = pnand %p2590_p1, %p151_p2  ;;  %p27_p4 = scmp.ge.s32.totalorder %s6208_s18, 2 }
   0x8   : > { %p178_p5 = scmp.lt.s32.totalorder (!%p152_p3), %s4369_s13, 1  ;;  %s2594_s8 = sshll.u32 (!%p152_p3), %s4365_s12, 3 }
   0x9   : > { %s6210_s18 = smov (%p27_p4, %s6208_s18), 0  ;;  %155 = sbr.rel (%p152_p3) target bundleno = 654 (0x28e), region = 32 }
   0xa   : > { %p185_p6 = scmp.lt.s32.totalorder (!%p152_p3), %s4365_s12, 3 }
   0xe   : > { %v2612_v0 = vld [vmem:[%s6198_s1 + $0xf8] sm:$0xff]  ;;  %v4383_v2 = vmov 0.0   ;;  %v2611_v3 = vld [vmem:[%s6198_s1 + $0xf0] sm:$0xff]  ;;  %v2610_v5 = vld [vmem:[%s6198_s1 + $0xe8] sm:$0xff]  ;;  %s6212_s13 = smov (!%p178_p5, %s4369_s13), 1  ;;  %vm4384_vm0 = vmmov 0  }
   0xf   : > { %v209_v1 = vld [vmem:[%s6198_s1 + $0x78] sm:$0xff]  ;;  %3425 = vmatprep.subr.mxu0 %v4383_v2  ;;  %3460 = vmatprep.subr.mxu1 %v4383_v2  ;;  %v208_v4 = vld [vmem:[%s6198_s1 + $0x70] sm:$0xff]  ;;  %v207_v6 = vld [vmem:[%s6198_s1 + $0x68] sm:$0xff]  ;;  %s4300_s23 = smul.u32 192, %s6212_s13  ;;  %s6214_s12 = smov (!%p185_p6, %s4365_s12), 3 }
  0x10   : > { %3426 = vmatpush3.msra.mxu0 %v2612_v0  ;;  %3461 = vmatpush3.msra.mxu1 %v209_v1  ;;  %v2609_v7 = vld [vmem:[%s6198_s1 + $0xe0] sm:$0xff]  ;;  %v2608_v9 = vld [vmem:[%s6198_s1 + $0xd8] sm:$0xff]  ;;  %v2607_v11 = vld [vmem:[%s6198_s1 + $0xd0] sm:$0xff]  ;;  %s2592_s11 = sshll.u32 %s6212_s13, 2 }
  0x11   : > { %3427 = vmatprep.subr.mxu0 %v4383_v2  ;;  %3462 = vmatprep.subr.mxu1 %v4383_v2  ;;  %v206_v8 = vld [vmem:[%s6198_s1 + $0x60] sm:$0xff]  ;;  %v205_v10 = vld [vmem:[%s6198_s1 + $0x58] sm:$0xff]  ;;  %v204_v12 = vld [vmem:[%s6198_s1 + $0x50] sm:$0xff]  ;;  %s182_s7 = scalar_lea.vmem %s6197_s0, %s4300_s23  ;;  %s188_s19 = sadd.s32 %s2592_s11, %s6214_s12 }
  0x12   : > { %3428 = vmatpush3.msra.mxu0 %v2611_v3  ;;  %3463 = vmatpush3.msra.mxu1 %v208_v4  ;;  %v2606_v13 = vld [vmem:[%s6198_s1 + $0xc8] sm:$0xff]  ;;  %v2605_v15 = vld [vmem:[%s6198_s1 + $0xc0] sm:$0xff]  ;;  %v2604_v17 = vld [vmem:[%s6198_s1 + $0xb8] sm:$0xff]  ;;  %s4566_s24 = scalar_lea.vmem %s182_s7, %s2594_s8  ;;  %s2593_s22 = sshll.u32 %s188_s19, 2 }
  0x13   : > { %3429 = vmatprep.subr.mxu0 %v4383_v2  ;;  %3464 = vmatprep.subr.mxu1 %v4383_v2  ;;  %v203_v14 = vld [vmem:[%s6198_s1 + $0x48] sm:$0xff]  ;;  %v202_v16 = vld [vmem:[%s6198_s1 + $0x40] sm:$0xff]  ;;  %v201_v18 = vld [vmem:[%s6198_s1 + $0x38] sm:$0xff]  ;;  %s190_s26 = scalar_lea.vmem %s6200_s3, %s2593_s22 }
  0x14   : > { %3430 = vmatpush3.msra.mxu0 %v2610_v5  ;;  %3465 = vmatpush3.msra.mxu1 %v207_v6  ;;  %v2603_v19 = vld [vmem:[%s6198_s1 + $0xb0] sm:$0xff]  ;;  %v2602_v21 = vld [vmem:[%s6198_s1 + $0xa8] sm:$0xff]  ;;  %v2601_v23 = vld [vmem:[%s6198_s1 + $0xa0] sm:$0xff] }
  0x15   : > { %3431 = vmatprep.subr.mxu0 %v4383_v2  ;;  %3466 = vmatprep.subr.mxu1 %v4383_v2  ;;  %v200_v20 = vld [vmem:[%s6198_s1 + $0x30] sm:$0xff]  ;;  %v199_v22 = vld [vmem:[%s6198_s1 + $0x28] sm:$0xff]  ;;  %v198_v24 = vld [vmem:[%s6198_s1 + $0x20] sm:$0xff] }
  0x16   : > { %3432 = vmatpush3.msra.mxu0 %v2609_v7  ;;  %3467 = vmatpush3.msra.mxu1 %v206_v8  ;;  %v2600_v25 = vld [vmem:[%s6198_s1 + $0x98] sm:$0xff]  ;;  %v2599_v27 = vld [vmem:[%s6198_s1 + $0x90] sm:$0xff]  ;;  %v2598_v29 = vld [vmem:[%s6198_s1 + $0x88] sm:$0xff] }
  0x17   : > { %3433 = vmatprep.subr.mxu0 %v4383_v2  ;;  %3468 = vmatprep.subr.mxu1 %v4383_v2  ;;  %v197_v26 = vld [vmem:[%s6198_s1 + $0x18] sm:$0xff]  ;;  %v196_v28 = vld [vmem:[%s6198_s1 + $0x10] sm:$0xff]  ;;  %v195_v30 = vld [vmem:[%s6198_s1 + $0x8] sm:$0xff] }
  0x18   : > { %3434 = vmatpush3.msra.mxu0 %v2608_v9  ;;  %3469 = vmatpush3.msra.mxu1 %v205_v10  ;;  %v2597_v31 = vld [vmem:[%s6198_s1 + $0x80] sm:$0xff]  ;;  %v4574_v32 = vld [vmem:[%s4566_s24 + $0x30] sm:$0x3f]  ;;  %v2628_v35 = vld [vmem:[%s6198_s1 + $0x178] sm:$0xff] }
  0x19   : > { %3435 = vmatprep.subr.mxu0 %v4383_v2  ;;  %3470 = vmatprep.subr.mxu1 %v4383_v2  ;;  %v194_v33 = vld [vmem:[%s6198_s1] sm:$0xff]  ;;  %v2627_v36 = vld [vmem:[%s6198_s1 + $0x170] sm:$0xff]  ;;  %v2644_v37 = vld [vmem:[%s6198_s1 + $0x1f8] sm:$0xff]  ;;  %v480_v4 = vrot.slane %v4574_v32, 1 }
  0x1a   : > { %3436 = vmatpush3.msra.mxu0 %v2607_v11  ;;  %3471 = vmatpush3.msra.mxu1 %v204_v12  ;;  %v4584_v34 = vld [vmem:[%s4566_s24] sm:$0x3f]  ;;  %v2626_v38 = vld [vmem:[%s6198_s1 + $0x168] sm:$0xff]  ;;  %v2643_v39 = vld [vmem:[%s6198_s1 + $0x1f0] sm:$0xff] }
  0x1b   : > { %3437 = vmatprep.subr.mxu0 %v4383_v2  ;;  %3472 = vmatprep.subr.mxu1 %v4383_v2  ;;  %v2625_v40 = vld [vmem:[%s6198_s1 + $0x160] sm:$0xff]  ;;  %v2642_v41 = vld [vmem:[%s6198_s1 + $0x1e8] sm:$0xff]  ;;  %v2624_v42 = vld [vmem:[%s6198_s1 + $0x158] sm:$0xff]  ;;  %v389_v0 = vrot.slane %v4584_v34, 1 }
  0x1c   : > { %3438 = vmatpush3.msra.mxu0 %v2606_v13  ;;  %3473 = vmatpush3.msra.mxu1 %v203_v14  ;;  %v2641_v43 = vld [vmem:[%s6198_s1 + $0x1e0] sm:$0xff]  ;;  %v2623_v44 = vld [vmem:[%s6198_s1 + $0x150] sm:$0xff]  ;;  %v2640_v45 = vld [vmem:[%s6198_s1 + $0x1d8] sm:$0xff] }
  0x1d   : > { %3439 = vmatprep.subr.mxu0 %v4383_v2  ;;  %3474 = vmatprep.subr.mxu1 %v4383_v2  ;;  %v2622_v46 = vld [vmem:[%s6198_s1 + $0x148] sm:$0xff]  ;;  %v2639_v47 = vld [vmem:[%s6198_s1 + $0x1d0] sm:$0xff]  ;;  %v2621_v48 = vld [vmem:[%s6198_s1 + $0x140] sm:$0xff] }
  0x1e   : > { %3440 = vmatpush3.msra.mxu0 %v2605_v15  ;;  %3475 = vmatpush3.msra.mxu1 %v202_v16  ;;  %v2638_v49 = vld [vmem:[%s6198_s1 + $0x1c8] sm:$0xff]  ;;  %v2620_v50 = vld [vmem:[%s6198_s1 + $0x138] sm:$0xff]  ;;  %v2637_v51 = vld [vmem:[%s6198_s1 + $0x1c0] sm:$0xff] }
  0x1f   : > { %3441 = vmatprep.subr.mxu0 %v4383_v2  ;;  %3476 = vmatprep.subr.mxu1 %v4383_v2  ;;  %v2619_v52 = vld [vmem:[%s6198_s1 + $0x130] sm:$0xff]  ;;  %v2636_v53 = vld [vmem:[%s6198_s1 + $0x1b8] sm:$0xff]  ;;  %v2618_v54 = vld [vmem:[%s6198_s1 + $0x128] sm:$0xff] }
  0x20   : > { %3442 = vmatpush3.msra.mxu0 %v2604_v17  ;;  %3477 = vmatpush3.msra.mxu1 %v201_v18  ;;  %v2635_v55 = vld [vmem:[%s6198_s1 + $0x1b0] sm:$0xff]  ;;  %v2617_v56 = vld [vmem:[%s6198_s1 + $0x120] sm:$0xff]  ;;  %v2634_v57 = vld [vmem:[%s6198_s1 + $0x1a8] sm:$0xff] }
  0x21   : > { %3443 = vmatprep.subr.mxu0 %v4383_v2  ;;  %3478 = vmatprep.subr.mxu1 %v4383_v2  ;;  %v2616_v58 = vld [vmem:[%s6198_s1 + $0x118] sm:$0xff]  ;;  %v2633_v59 = vld [vmem:[%s6198_s1 + $0x1a0] sm:$0xff]  ;;  %v2615_v60 = vld [vmem:[%s6198_s1 + $0x110] sm:$0xff] }
  0x22   : > { %3444 = vmatpush3.msra.mxu0 %v2603_v19  ;;  %3479 = vmatpush3.msra.mxu1 %v200_v20  ;;  %v2632_v61 = vld [vmem:[%s6198_s1 + $0x198] sm:$0xff]  ;;  %v2614_v62 = vld [vmem:[%s6198_s1 + $0x108] sm:$0xff]  ;;  %v2631_v63 = vld [vmem:[%s6198_s1 + $0x190] sm:$0xff] }
  0x23   : > { %3445 = vmatprep.subr.mxu0 %v4383_v2  ;;  %3480 = vmatprep.subr.mxu1 %v4383_v2  ;;  %v2613_v1 = vld [vmem:[%s6198_s1 + $0x100] sm:$0xff]  ;;  %v2630_v3 = vld [vmem:[%s6198_s1 + $0x188] sm:$0xff]  ;;  %v2660_v6 = vld [vmem:[%s6198_s1 + $0x278] sm:$0xff] }
  0x24   : > { %3446 = vmatpush3.msra.mxu0 %v2602_v21  ;;  %3481 = vmatpush3.msra.mxu1 %v199_v22  ;;  %v2629_v5 = vld [vmem:[%s6198_s1 + $0x180] sm:$0xff]  ;;  %v2659_v7 = vld [vmem:[%s6198_s1 + $0x270] sm:$0xff]  ;;  %v2678_v8 = vld [vmem:[%s6198_s1 + $0x2f8] sm:$0xff] }
  0x25   : > { %3447 = vmatprep.subr.mxu0 %v4383_v2  ;;  %3482 = vmatprep.subr.mxu1 %v4383_v2  ;;  %v2658_v9 = vld [vmem:[%s6198_s1 + $0x268] sm:$0xff]  ;;  %v2677_v10 = vld [vmem:[%s6198_s1 + $0x2f0] sm:$0xff]  ;;  %v2657_v11 = vld [vmem:[%s6198_s1 + $0x260] sm:$0xff] }
  0x26   : > { %3448 = vmatpush3.msra.mxu0 %v2601_v23  ;;  %3483 = vmatpush3.msra.mxu1 %v198_v24  ;;  %v2676_v12 = vld [vmem:[%s6198_s1 + $0x2e8] sm:$0xff]  ;;  %v2656_v13 = vld [vmem:[%s6198_s1 + $0x258] sm:$0xff]  ;;  %v2675_v14 = vld [vmem:[%s6198_s1 + $0x2e0] sm:$0xff] }
  0x27   : > { %3449 = vmatprep.subr.mxu0 %v4383_v2  ;;  %3484 = vmatprep.subr.mxu1 %v4383_v2  ;;  %v2655_v15 = vld [vmem:[%s6198_s1 + $0x250] sm:$0xff]  ;;  %v2674_v16 = vld [vmem:[%s6198_s1 + $0x2d8] sm:$0xff]  ;;  %v2654_v17 = vld [vmem:[%s6198_s1 + $0x248] sm:$0xff] }
  0x28   : > { %3450 = vmatpush3.msra.mxu0 %v2600_v25  ;;  %3485 = vmatpush3.msra.mxu1 %v197_v26  ;;  %v2673_v18 = vld [vmem:[%s6198_s1 + $0x2d0] sm:$0xff]  ;;  %v2653_v19 = vld [vmem:[%s6198_s1 + $0x240] sm:$0xff]  ;;  %v2672_v20 = vld [vmem:[%s6198_s1 + $0x2c8] sm:$0xff] }
  0x29   : > { %3451 = vmatprep.subr.mxu0 %v4383_v2  ;;  %3486 = vmatprep.subr.mxu1 %v4383_v2  ;;  %v2652_v21 = vld [vmem:[%s6198_s1 + $0x238] sm:$0xff]  ;;  %v2671_v22 = vld [vmem:[%s6198_s1 + $0x2c0] sm:$0xff]  ;;  %v2651_v23 = vld [vmem:[%s6198_s1 + $0x230] sm:$0xff] }
  0x2a   : > { %3452 = vmatpush3.msra.mxu0 %v2599_v27  ;;  %3487 = vmatpush3.msra.mxu1 %v196_v28  ;;  %v2670_v24 = vld [vmem:[%s6198_s1 + $0x2b8] sm:$0xff]  ;;  %v2650_v25 = vld [vmem:[%s6198_s1 + $0x228] sm:$0xff]  ;;  %v2669_v26 = vld [vmem:[%s6198_s1 + $0x2b0] sm:$0xff] }
  0x2b   : > { %3453 = vmatprep.subr.mxu0 %v4383_v2  ;;  %3488 = vmatprep.subr.mxu1 %v4383_v2  ;;  %v2649_v27 = vld [vmem:[%s6198_s1 + $0x220] sm:$0xff]  ;;  %v2668_v28 = vld [vmem:[%s6198_s1 + $0x2a8] sm:$0xff] }
  0x2c   : > { %3454 = vmatpush3.msra.mxu0 %v2598_v29  ;;  %3489 = vmatpush3.msra.mxu1 %v195_v30  ;;  %v2648_v29 = vld [vmem:[%s6198_s1 + $0x218] sm:$0xff]  ;;  %v2667_v30 = vld [vmem:[%s6198_s1 + $0x2a0] sm:$0xff] }
  0x2d   : > { %3455 = vmatprep.subr.mxu0 %v4383_v2  ;;  %3457 = vmatprep.mubr.msk.f32.mxu0 %vm4384_vm0, %v4383_v2 }
  0x2e   : > { %3456 = vmatpush3.msra.mxu0 %v2597_v31  ;;  %3490 = vmatprep.subr.mxu1 %v4383_v2  ;;  %v2647_v31 = vld [vmem:[%s6198_s1 + $0x210] sm:$0xff] }
  0x2f   : > { %3458 = vmatmul.mubr.f32.vlgmr.msra.gmra.mxu0 %v4574_v32  ;;  %3491 = vmatpush3.msra.mxu1 %v194_v33  ;;  %v2666_v32 = vld [vmem:[%s6198_s1 + $0x298] sm:$0xff]  ;;  %v2646_v33 = vld [vmem:[%s6198_s1 + $0x208] sm:$0xff] }
  0x30   : > { %3492 = vmatprep.mubr.msk.f32.mxu1 %vm4384_vm0, %v4383_v2  ;;  %3495 = vmatprep.subr.mxu0 %v4383_v2 }
  0x31   : > { %3493 = vmatmul.mubr.f32.vlgmr.msra.gmra.mxu1 %v4584_v34  ;;  %3496 = vmatpush3.msra.mxu0 %v2628_v35  ;;  %v2665_v35 = vld [vmem:[%s6198_s1 + $0x290] sm:$0xff] }
  0x32   : > { %3497 = vmatprep.subr.mxu0 %v4383_v2  ;;  %3530 = vmatprep.subr.mxu1 %v4383_v2 }
  0x33   : > { %3498 = vmatpush3.msra.mxu0 %v2627_v36  ;;  %3531 = vmatpush3.msra.mxu1 %v2644_v37  ;;  %v570_v36 = vrot.slane %v4584_v34, 2  ;;  %v2645_v37 = vld [vmem:[%s6198_s1 + $0x200] sm:$0xff] }
  0x34   : > { %3499 = vmatprep.subr.mxu0 %v4383_v2  ;;  %3532 = vmatprep.subr.mxu1 %v4383_v2  ;;  %v2663_v34 = vld [vmem:[%s6198_s1 + $0x280] sm:$0xff] }
  0x35   : > { %3500 = vmatpush3.msra.mxu0 %v2626_v38  ;;  %3533 = vmatpush3.msra.mxu1 %v2643_v39  ;;  %v2664_v38 = vld [vmem:[%s6198_s1 + $0x288] sm:$0xff]  ;;  %v2696_v39 = vld [vmem:[%s6198_s1 + $0x378] sm:$0xff] }
  0x36   : > { %3501 = vmatprep.subr.mxu0 %v4383_v2  ;;  %3534 = vmatprep.subr.mxu1 %v4383_v2 }
  0x37   : > { %3502 = vmatpush3.msra.mxu0 %v2625_v40  ;;  %3535 = vmatpush3.msra.mxu1 %v2642_v41  ;;  %v4858_v40 = vld [vmem:[%s4566_s24 + $0x60] sm:$0x3f]  ;;  %v2695_v41 = vld [vmem:[%s6198_s1 + $0x370] sm:$0xff] }
  0x38   : > { %3503 = vmatprep.subr.mxu0 %v4383_v2  ;;  %3536 = vmatprep.subr.mxu1 %v4383_v2 }
  0x39   : > { %3504 = vmatpush3.msra.mxu0 %v2624_v42  ;;  %3537 = vmatpush3.msra.mxu1 %v2641_v43  ;;  %v2712_v42 = vld [vmem:[%s6198_s1 + $0x3f8] sm:$0xff]  ;;  %v2694_v43 = vld [vmem:[%s6198_s1 + $0x368] sm:$0xff] }
  0x3a   : > { %3505 = vmatprep.subr.mxu0 %v4383_v2  ;;  %3538 = vmatprep.subr.mxu1 %v4383_v2 }
  0x3b   : > { %3506 = vmatpush3.msra.mxu0 %v2623_v44  ;;  %3539 = vmatpush3.msra.mxu1 %v2640_v45  ;;  %v2711_v44 = vld [vmem:[%s6198_s1 + $0x3f0] sm:$0xff]  ;;  %v2693_v45 = vld [vmem:[%s6198_s1 + $0x360] sm:$0xff] }
  0x3c   : > { %3507 = vmatprep.subr.mxu0 %v4383_v2  ;;  %3540 = vmatprep.subr.mxu1 %v4383_v2 }
  0x3d   : > { %3508 = vmatpush3.msra.mxu0 %v2622_v46  ;;  %3541 = vmatpush3.msra.mxu1 %v2639_v47  ;;  %v2710_v46 = vld [vmem:[%s6198_s1 + $0x3e8] sm:$0xff]  ;;  %v2692_v47 = vld [vmem:[%s6198_s1 + $0x358] sm:$0xff] }
  0x3e   : > { %3509 = vmatprep.subr.mxu0 %v4383_v2  ;;  %3542 = vmatprep.subr.mxu1 %v4383_v2 }
  0x3f   : > { %3510 = vmatpush3.msra.mxu0 %v2621_v48  ;;  %3543 = vmatpush3.msra.mxu1 %v2638_v49  ;;  %v2709_v48 = vld [vmem:[%s6198_s1 + $0x3e0] sm:$0xff]  ;;  %v2691_v49 = vld [vmem:[%s6198_s1 + $0x350] sm:$0xff] }
  0x40   : > { %3511 = vmatprep.subr.mxu0 %v4383_v2  ;;  %3544 = vmatprep.subr.mxu1 %v4383_v2 }
  0x41   : > { %3512 = vmatpush3.msra.mxu0 %v2620_v50  ;;  %3545 = vmatpush3.msra.mxu1 %v2637_v51  ;;  %v2708_v50 = vld [vmem:[%s6198_s1 + $0x3d8] sm:$0xff]  ;;  %v2690_v51 = vld [vmem:[%s6198_s1 + $0x348] sm:$0xff] }
  0x42   : > { %3513 = vmatprep.subr.mxu0 %v4383_v2  ;;  %3546 = vmatprep.subr.mxu1 %v4383_v2 }
  0x43   : > { %3514 = vmatpush3.msra.mxu0 %v2619_v52  ;;  %3547 = vmatpush3.msra.mxu1 %v2636_v53  ;;  %v2707_v52 = vld [vmem:[%s6198_s1 + $0x3d0] sm:$0xff]  ;;  %v2689_v53 = vld [vmem:[%s6198_s1 + $0x340] sm:$0xff] }
  0x44   : > { %3515 = vmatprep.subr.mxu0 %v4383_v2  ;;  %3548 = vmatprep.subr.mxu1 %v4383_v2 }
  0x45   : > { %3516 = vmatpush3.msra.mxu0 %v2618_v54  ;;  %3549 = vmatpush3.msra.mxu1 %v2635_v55  ;;  %v2706_v54 = vld [vmem:[%s6198_s1 + $0x3c8] sm:$0xff]  ;;  %v2688_v55 = vld [vmem:[%s6198_s1 + $0x338] sm:$0xff] }
  0x46   : > { %3517 = vmatprep.subr.mxu0 %v4383_v2  ;;  %3550 = vmatprep.subr.mxu1 %v4383_v2 }
  0x47   : > { %3518 = vmatpush3.msra.mxu0 %v2617_v56  ;;  %3551 = vmatpush3.msra.mxu1 %v2634_v57  ;;  %v2705_v56 = vld [vmem:[%s6198_s1 + $0x3c0] sm:$0xff]  ;;  %v2687_v57 = vld [vmem:[%s6198_s1 + $0x330] sm:$0xff] }
  0x48   : > { %3519 = vmatprep.subr.mxu0 %v4383_v2  ;;  %3552 = vmatprep.subr.mxu1 %v4383_v2 }
  0x49   : > { %3520 = vmatpush3.msra.mxu0 %v2616_v58  ;;  %3553 = vmatpush3.msra.mxu1 %v2633_v59  ;;  %v2704_v58 = vld [vmem:[%s6198_s1 + $0x3b8] sm:$0xff]  ;;  %v2686_v59 = vld [vmem:[%s6198_s1 + $0x328] sm:$0xff] }
  0x4a   : > { %3521 = vmatprep.subr.mxu0 %v4383_v2  ;;  %3554 = vmatprep.subr.mxu1 %v4383_v2 }
  0x4b   : > { %3522 = vmatpush3.msra.mxu0 %v2615_v60  ;;  %3555 = vmatpush3.msra.mxu1 %v2632_v61  ;;  %v2703_v60 = vld [vmem:[%s6198_s1 + $0x3b0] sm:$0xff]  ;;  %v2685_v61 = vld [vmem:[%s6198_s1 + $0x320] sm:$0xff] }
  0x4c   : > { %3523 = vmatprep.subr.mxu0 %v4383_v2  ;;  %3556 = vmatprep.subr.mxu1 %v4383_v2 }
  0x4d   : > { %3524 = vmatpush3.msra.mxu0 %v2614_v62  ;;  %3557 = vmatpush3.msra.mxu1 %v2631_v63  ;;  %v2702_v62 = vld [vmem:[%s6198_s1 + $0x3a8] sm:$0xff]  ;;  %v2684_v63 = vld [vmem:[%s6198_s1 + $0x318] sm:$0xff] }
  0x4e   : > { %3525 = vmatprep.subr.mxu0 %v4383_v2  ;;  %3558 = vmatprep.subr.mxu1 %v4383_v2 }
  0x4f   : > { %3526 = vmatpush3.msra.mxu0 %v2613_v1  ;;  %3527 = vmatprep.mubr.msk.f32.mxu0 %vm4384_vm0, %v4383_v2  ;;  %v2683_v1 = vld [vmem:[%s6198_s1 + $0x310] sm:$0xff] }
  0x50   : > { %3559 = vmatpush3.msra.mxu1 %v2630_v3  ;;  %3528 = vmatmul.mubr.f32.vlgmr.msra.gmra.mxu0 %v389_v0  ;;  %v2701_v0 = vld [vmem:[%s6198_s1 + $0x3a0] sm:$0xff]  ;;  %v2700_v3 = vld [vmem:[%s6198_s1 + $0x398] sm:$0xff] }
  0x51   : > { %3560 = vmatprep.subr.mxu1 %v4383_v2  ;;  %3565 = vmatprep.subr.mxu0 %v4383_v2 }
  0x52   : > { %3561 = vmatpush3.msra.mxu1 %v2629_v5  ;;  %3562 = vmatprep.mubr.msk.f32.mxu1 %vm4384_vm0, %v4383_v2  ;;  %v2699_v5 = vld [vmem:[%s6198_s1 + $0x390] sm:$0xff] }
  0x53   : > { %3566 = vmatpush3.msra.mxu0 %v2660_v6  ;;  %3563 = vmatmul.mubr.f32.vlgmr.msra.gmra.mxu1 %v480_v4  ;;  %v2682_v4 = vld [vmem:[%s6198_s1 + $0x308] sm:$0xff]  ;;  %v2681_v6 = vld [vmem:[%s6198_s1 + $0x300] sm:$0xff] }
  0x54   : > { %3567 = vmatprep.subr.mxu0 %v4383_v2  ;;  %3600 = vmatprep.subr.mxu1 %v4383_v2 }
  0x55   : > { %3568 = vmatpush3.msra.mxu0 %v2659_v7  ;;  %3601 = vmatpush3.msra.mxu1 %v2678_v8  ;;  %v2698_v7 = vld [vmem:[%s6198_s1 + $0x388] sm:$0xff]  ;;  %v4984_v8 = vld [vmem:[%s4566_s24 + $0x90] sm:$0x3f] }
  0x56   : > { %3569 = vmatprep.subr.mxu0 %v4383_v2  ;;  %3602 = vmatprep.subr.mxu1 %v4383_v2 }
  0x57   : > { %3570 = vmatpush3.msra.mxu0 %v2658_v9  ;;  %3603 = vmatpush3.msra.mxu1 %v2677_v10  ;;  %v845_v9 = vrot.slane %v4858_v40, 1  ;;  %v2697_v10 = vld [vmem:[%s6198_s1 + $0x380] sm:$0xff] }
  0x58   : > { %3571 = vmatprep.subr.mxu0 %v4383_v2  ;;  %3604 = vmatprep.subr.mxu1 %v4383_v2 }
  0x59   : > { %3572 = vmatpush3.msra.mxu0 %v2657_v11  ;;  %3605 = vmatpush3.msra.mxu1 %v2676_v12  ;;  %v2728_v11 = vld [vmem:[%s6198_s1 + $0x478] sm:$0xff]  ;;  %v2727_v12 = vld [vmem:[%s6198_s1 + $0x470] sm:$0xff] }
  0x5a   : > { %3573 = vmatprep.subr.mxu0 %v4383_v2  ;;  %3606 = vmatprep.subr.mxu1 %v4383_v2 }
  0x5b   : > { %3574 = vmatpush3.msra.mxu0 %v2656_v13  ;;  %3607 = vmatpush3.msra.mxu1 %v2675_v14  ;;  %v2744_v13 = vld [vmem:[%s6198_s1 + $0x4f8] sm:$0xff]  ;;  %v2726_v14 = vld [vmem:[%s6198_s1 + $0x468] sm:$0xff] }
  0x5c   : > { %3575 = vmatprep.subr.mxu0 %v4383_v2  ;;  %3608 = vmatprep.subr.mxu1 %v4383_v2 }
  0x5d   : > { %3576 = vmatpush3.msra.mxu0 %v2655_v15  ;;  %3609 = vmatpush3.msra.mxu1 %v2674_v16  ;;  %v2743_v15 = vld [vmem:[%s6198_s1 + $0x4f0] sm:$0xff]  ;;  %v2725_v16 = vld [vmem:[%s6198_s1 + $0x460] sm:$0xff] }
  0x5e   : > { %3577 = vmatprep.subr.mxu0 %v4383_v2  ;;  %3610 = vmatprep.subr.mxu1 %v4383_v2 }
  0x5f   : > { %3578 = vmatpush3.msra.mxu0 %v2654_v17  ;;  %3611 = vmatpush3.msra.mxu1 %v2673_v18  ;;  %v2742_v17 = vld [vmem:[%s6198_s1 + $0x4e8] sm:$0xff]  ;;  %v2724_v18 = vld [vmem:[%s6198_s1 + $0x458] sm:$0xff] }
  0x60   : > { %3579 = vmatprep.subr.mxu0 %v4383_v2  ;;  %3612 = vmatprep.subr.mxu1 %v4383_v2 }
  0x61   : > { %3580 = vmatpush3.msra.mxu0 %v2653_v19  ;;  %3613 = vmatpush3.msra.mxu1 %v2672_v20  ;;  %v2741_v19 = vld [vmem:[%s6198_s1 + $0x4e0] sm:$0xff]  ;;  %v2723_v20 = vld [vmem:[%s6198_s1 + $0x450] sm:$0xff] }
  0x62   : > { %3581 = vmatprep.subr.mxu0 %v4383_v2  ;;  %3614 = vmatprep.subr.mxu1 %v4383_v2 }
  0x63   : > { %3582 = vmatpush3.msra.mxu0 %v2652_v21  ;;  %3615 = vmatpush3.msra.mxu1 %v2671_v22  ;;  %v2740_v21 = vld [vmem:[%s6198_s1 + $0x4d8] sm:$0xff]  ;;  %v2722_v22 = vld [vmem:[%s6198_s1 + $0x448] sm:$0xff] }
  0x64   : > { %3583 = vmatprep.subr.mxu0 %v4383_v2  ;;  %3616 = vmatprep.subr.mxu1 %v4383_v2 }
  0x65   : > { %3584 = vmatpush3.msra.mxu0 %v2651_v23  ;;  %3617 = vmatpush3.msra.mxu1 %v2670_v24  ;;  %v2739_v23 = vld [vmem:[%s6198_s1 + $0x4d0] sm:$0xff]  ;;  %v2721_v24 = vld [vmem:[%s6198_s1 + $0x440] sm:$0xff] }
  0x66   : > { %3585 = vmatprep.subr.mxu0 %v4383_v2  ;;  %3618 = vmatprep.subr.mxu1 %v4383_v2 }
  0x67   : > { %3586 = vmatpush3.msra.mxu0 %v2650_v25  ;;  %3619 = vmatpush3.msra.mxu1 %v2669_v26  ;;  %v2738_v25 = vld [vmem:[%s6198_s1 + $0x4c8] sm:$0xff]  ;;  %v2720_v26 = vld [vmem:[%s6198_s1 + $0x438] sm:$0xff] }
  0x68   : > { %3587 = vmatprep.subr.mxu0 %v4383_v2  ;;  %3620 = vmatprep.subr.mxu1 %v4383_v2 }
  0x69   : > { %3588 = vmatpush3.msra.mxu0 %v2649_v27  ;;  %3621 = vmatpush3.msra.mxu1 %v2668_v28  ;;  %v2737_v27 = vld [vmem:[%s6198_s1 + $0x4c0] sm:$0xff]  ;;  %v2719_v28 = vld [vmem:[%s6198_s1 + $0x430] sm:$0xff] }
  0x6a   : > { %3589 = vmatprep.subr.mxu0 %v4383_v2  ;;  %3622 = vmatprep.subr.mxu1 %v4383_v2 }
  0x6b   : > { %3590 = vmatpush3.msra.mxu0 %v2648_v29  ;;  %3623 = vmatpush3.msra.mxu1 %v2667_v30  ;;  %v2736_v29 = vld [vmem:[%s6198_s1 + $0x4b8] sm:$0xff]  ;;  %v2718_v30 = vld [vmem:[%s6198_s1 + $0x428] sm:$0xff] }
  0x6c   : > { %3591 = vmatprep.subr.mxu0 %v4383_v2  ;;  %3624 = vmatprep.subr.mxu1 %v4383_v2 }
  0x6d   : > { %3592 = vmatpush3.msra.mxu0 %v2647_v31  ;;  %3625 = vmatpush3.msra.mxu1 %v2666_v32  ;;  %v2735_v31 = vld [vmem:[%s6198_s1 + $0x4b0] sm:$0xff]  ;;  %v2717_v32 = vld [vmem:[%s6198_s1 + $0x420] sm:$0xff] }
  0x6e   : > { %3593 = vmatprep.subr.mxu0 %v4383_v2  ;;  %3626 = vmatprep.subr.mxu1 %v4383_v2 }
  0x6f   : > { %3594 = vmatpush3.msra.mxu0 %v2646_v33  ;;  %3627 = vmatpush3.msra.mxu1 %v2665_v35  ;;  %v2734_v33 = vld [vmem:[%s6198_s1 + $0x4a8] sm:$0xff]  ;;  %v2716_v35 = vld [vmem:[%s6198_s1 + $0x418] sm:$0xff] }
  0x70   : > { %3595 = vmatprep.subr.mxu0 %v4383_v2  ;;  %3628 = vmatprep.subr.mxu1 %v4383_v2 }
  0x71   : > { %3596 = vmatpush3.msra.mxu0 %v2645_v37  ;;  %3597 = vmatprep.mubr.msk.f32.mxu0 %vm4384_vm0, %v4383_v2  ;;  %v2715_v37 = vld [vmem:[%s6198_s1 + $0x410] sm:$0xff] }
  0x72   : > { %3629 = vmatpush3.msra.mxu1 %v2664_v38  ;;  %3598 = vmatmul.mubr.f32.vlgmr.msra.gmra.mxu0 %v570_v36  ;;  %v2733_v36 = vld [vmem:[%s6198_s1 + $0x4a0] sm:$0xff]  ;;  %v2732_v38 = vld [vmem:[%s6198_s1 + $0x498] sm:$0xff] }
  0x73   : > { %3630 = vmatprep.subr.mxu1 %v4383_v2  ;;  %3635 = vmatprep.subr.mxu0 %v4383_v2 }
  0x74   : > { %3631 = vmatpush3.msra.mxu1 %v2663_v34  ;;  %3632 = vmatprep.mubr.msk.f32.mxu1 %vm4384_vm0, %v4383_v2  ;;  %v2714_v34 = vld [vmem:[%s6198_s1 + $0x408] sm:$0xff] }
  0x75   : > { %3636 = vmatpush3.msra.mxu0 %v2696_v39  ;;  %3633 = vmatmul.mubr.f32.vlgmr.msra.gmra.mxu1 %v4858_v40  ;;  %v2731_v39 = vld [vmem:[%s6198_s1 + $0x490] sm:$0xff] }
  0x76   : > { %3637 = vmatprep.subr.mxu0 %v4383_v2  ;;  %3670 = vmatprep.subr.mxu1 %v4383_v2 }
  0x77   : > { %3638 = vmatpush3.msra.mxu0 %v2695_v41  ;;  %3671 = vmatpush3.msra.mxu1 %v2712_v42  ;;  %v936_v41 = vrot.slane %v4984_v8, 1  ;;  %v2713_v42 = vld [vmem:[%s6198_s1 + $0x400] sm:$0xff] }
  0x78   : > { %3639 = vmatprep.subr.mxu0 %v4383_v2  ;;  %3672 = vmatprep.subr.mxu1 %v4383_v2 }
  0x79   : > { %3640 = vmatpush3.msra.mxu0 %v2694_v43  ;;  %3673 = vmatpush3.msra.mxu1 %v2711_v44  ;;  %v2730_v43 = vld [vmem:[%s6198_s1 + $0x488] sm:$0xff]  ;;  %v1026_v44 = vrot.slane %v4858_v40, 2  ;;  %v2761_v40 = vld [vmem:[%s6198_s1 + $0x570] sm:$0xff] }
  0x7a   : > { %3641 = vmatprep.subr.mxu0 %v4383_v2  ;;  %3674 = vmatprep.subr.mxu1 %v4383_v2 }
  0x7b   : > { %3642 = vmatpush3.msra.mxu0 %v2693_v45  ;;  %3675 = vmatpush3.msra.mxu1 %v2710_v46  ;;  %v2729_v45 = vld [vmem:[%s6198_s1 + $0x480] sm:$0xff]  ;;  %v2762_v46 = vld [vmem:[%s6198_s1 + $0x578] sm:$0xff] }
  0x7c   : > { %3643 = vmatprep.subr.mxu0 %v4383_v2  ;;  %3676 = vmatprep.subr.mxu1 %v4383_v2 }
  0x7d   : > { %3644 = vmatpush3.msra.mxu0 %v2692_v47  ;;  %3677 = vmatpush3.msra.mxu1 %v2709_v48  ;;  %v2780_v47 = vld [vmem:[%s6198_s1 + $0x5f8] sm:$0xff]  ;;  %v2760_v48 = vld [vmem:[%s6198_s1 + $0x568] sm:$0xff] }
  0x7e   : > { %3645 = vmatprep.subr.mxu0 %v4383_v2  ;;  %3678 = vmatprep.subr.mxu1 %v4383_v2 }
  0x7f   : > { %3646 = vmatpush3.msra.mxu0 %v2691_v49  ;;  %3679 = vmatpush3.msra.mxu1 %v2708_v50  ;;  %v2779_v49 = vld [vmem:[%s6198_s1 + $0x5f0] sm:$0xff]  ;;  %v2759_v50 = vld [vmem:[%s6198_s1 + $0x560] sm:$0xff] }
  0x80   : > { %3647 = vmatprep.subr.mxu0 %v4383_v2  ;;  %3680 = vmatprep.subr.mxu1 %v4383_v2 }
  0x81   : > { %3648 = vmatpush3.msra.mxu0 %v2690_v51  ;;  %3681 = vmatpush3.msra.mxu1 %v2707_v52  ;;  %v2778_v51 = vld [vmem:[%s6198_s1 + $0x5e8] sm:$0xff]  ;;  %v2758_v52 = vld [vmem:[%s6198_s1 + $0x558] sm:$0xff] }
  0x82   : > { %3649 = vmatprep.subr.mxu0 %v4383_v2  ;;  %3682 = vmatprep.subr.mxu1 %v4383_v2 }
  0x83   : > { %3650 = vmatpush3.msra.mxu0 %v2689_v53  ;;  %3683 = vmatpush3.msra.mxu1 %v2706_v54  ;;  %v2777_v53 = vld [vmem:[%s6198_s1 + $0x5e0] sm:$0xff]  ;;  %v2757_v54 = vld [vmem:[%s6198_s1 + $0x550] sm:$0xff] }
  0x84   : > { %3651 = vmatprep.subr.mxu0 %v4383_v2  ;;  %3684 = vmatprep.subr.mxu1 %v4383_v2 }
  0x85   : > { %3652 = vmatpush3.msra.mxu0 %v2688_v55  ;;  %3685 = vmatpush3.msra.mxu1 %v2705_v56  ;;  %v2776_v55 = vld [vmem:[%s6198_s1 + $0x5d8] sm:$0xff]  ;;  %v2756_v56 = vld [vmem:[%s6198_s1 + $0x548] sm:$0xff] }
  0x86   : > { %3653 = vmatprep.subr.mxu0 %v4383_v2  ;;  %3686 = vmatprep.subr.mxu1 %v4383_v2 }
  0x87   : > { %3654 = vmatpush3.msra.mxu0 %v2687_v57  ;;  %3687 = vmatpush3.msra.mxu1 %v2704_v58  ;;  %v2775_v57 = vld [vmem:[%s6198_s1 + $0x5d0] sm:$0xff]  ;;  %v2755_v58 = vld [vmem:[%s6198_s1 + $0x540] sm:$0xff] }
  0x88   : > { %3655 = vmatprep.subr.mxu0 %v4383_v2  ;;  %3688 = vmatprep.subr.mxu1 %v4383_v2 }
  0x89   : > { %3656 = vmatpush3.msra.mxu0 %v2686_v59  ;;  %3689 = vmatpush3.msra.mxu1 %v2703_v60  ;;  %v2774_v59 = vld [vmem:[%s6198_s1 + $0x5c8] sm:$0xff]  ;;  %v2754_v60 = vld [vmem:[%s6198_s1 + $0x538] sm:$0xff] }
  0x8a   : > { %3657 = vmatprep.subr.mxu0 %v4383_v2  ;;  %3690 = vmatprep.subr.mxu1 %v4383_v2 }
  0x8b   : > { %3658 = vmatpush3.msra.mxu0 %v2685_v61  ;;  %3691 = vmatpush3.msra.mxu1 %v2702_v62  ;;  %v2773_v61 = vld [vmem:[%s6198_s1 + $0x5c0] sm:$0xff]  ;;  %v2753_v62 = vld [vmem:[%s6198_s1 + $0x530] sm:$0xff] }
  0x8c   : > { %3659 = vmatprep.subr.mxu0 %v4383_v2  ;;  %3692 = vmatprep.subr.mxu1 %v4383_v2 }
  0x8d   : > { %3660 = vmatpush3.msra.mxu0 %v2684_v63  ;;  %3693 = vmatpush3.msra.mxu1 %v2701_v0  ;;  %v2772_v63 = vld [vmem:[%s6198_s1 + $0x5b8] sm:$0xff]  ;;  %v2752_v0 = vld [vmem:[%s6198_s1 + $0x528] sm:$0xff] }
  0x8e   : > { %3661 = vmatprep.subr.mxu0 %v4383_v2  ;;  %3694 = vmatprep.subr.mxu1 %v4383_v2 }
  0x8f   : > { %3662 = vmatpush3.msra.mxu0 %v2683_v1  ;;  %3695 = vmatpush3.msra.mxu1 %v2700_v3  ;;  %v2771_v1 = vld [vmem:[%s6198_s1 + $0x5b0] sm:$0xff]  ;;  %v2751_v3 = vld [vmem:[%s6198_s1 + $0x520] sm:$0xff] }
  0x90   : > { %3663 = vmatprep.subr.mxu0 %v4383_v2  ;;  %3696 = vmatprep.subr.mxu1 %v4383_v2 }
  0x91   : > { %3664 = vmatpush3.msra.mxu0 %v2682_v4  ;;  %3697 = vmatpush3.msra.mxu1 %v2699_v5  ;;  %v2770_v4 = vld [vmem:[%s6198_s1 + $0x5a8] sm:$0xff]  ;;  %v2750_v5 = vld [vmem:[%s6198_s1 + $0x518] sm:$0xff] }
  0x92   : > { %3665 = vmatprep.subr.mxu0 %v4383_v2  ;;  %3698 = vmatprep.subr.mxu1 %v4383_v2 }
  0x93   : > { %3666 = vmatpush3.msra.mxu0 %v2681_v6  ;;  %3667 = vmatprep.mubr.msk.f32.mxu0 %vm4384_vm0, %v4383_v2  ;;  %v2769_v6 = vld [vmem:[%s6198_s1 + $0x5a0] sm:$0xff] }
  0x94   : > { %3699 = vmatpush3.msra.mxu1 %v2698_v7  ;;  %3668 = vmatmul.mubr.f32.vlgmr.msra.gmra.mxu0 %v4984_v8  ;;  %v2749_v7 = vld [vmem:[%s6198_s1 + $0x510] sm:$0xff]  ;;  %v2768_v8 = vld [vmem:[%s6198_s1 + $0x598] sm:$0xff] }
  0x95   : > { %3700 = vmatprep.subr.mxu1 %v4383_v2  ;;  %3705 = vmatprep.subr.mxu0 %v4383_v2 }
  0x96   : > { %3701 = vmatpush3.msra.mxu1 %v2697_v10  ;;  %3702 = vmatprep.mubr.msk.f32.mxu1 %vm4384_vm0, %v4383_v2  ;;  %v2767_v10 = vld [vmem:[%s6198_s1 + $0x590] sm:$0xff] }
  0x97   : > { %3706 = vmatpush3.msra.mxu0 %v2728_v11  ;;  %3703 = vmatmul.mubr.f32.vlgmr.msra.gmra.mxu1 %v845_v9  ;;  %v2748_v9 = vld [vmem:[%s6198_s1 + $0x508] sm:$0xff]  ;;  %v2747_v11 = vld [vmem:[%s6198_s1 + $0x500] sm:$0xff] }
  0x98   : > { %3707 = vmatprep.subr.mxu0 %v4383_v2  ;;  %3740 = vmatprep.subr.mxu1 %v4383_v2 }
  0x99   : > { %3708 = vmatpush3.msra.mxu0 %v2727_v12  ;;  %3741 = vmatpush3.msra.mxu1 %v2744_v13  ;;  %v2766_v12 = vld [vmem:[%s6198_s1 + $0x588] sm:$0xff] }
  0x9a   : > { %3709 = vmatprep.subr.mxu0 %v4383_v2  ;;  %3742 = vmatprep.subr.mxu1 %v4383_v2  ;;  %v5255_v13 = vld [vmem:[%s4566_s24 + $0x8] sm:$0x3f] }
  0x9b   : > { %3710 = vmatpush3.msra.mxu0 %v2726_v14  ;;  %3743 = vmatpush3.msra.mxu1 %v2743_v15  ;;  %v2765_v14 = vld [vmem:[%s6198_s1 + $0x580] sm:$0xff]  ;;  %v2796_v15 = vld [vmem:[%s6198_s1 + $0x678] sm:$0xff] }
  0x9c   : > { %3711 = vmatprep.subr.mxu0 %v4383_v2  ;;  %3744 = vmatprep.subr.mxu1 %v4383_v2 }
  0x9d   : > { %3712 = vmatpush3.msra.mxu0 %v2725_v16  ;;  %3745 = vmatpush3.msra.mxu1 %v2742_v17  ;;  %v5269_v16 = vld [vmem:[%s4566_s24 + $0x38] sm:$0x3f]  ;;  %v2795_v17 = vld [vmem:[%s6198_s1 + $0x670] sm:$0xff] }
  0x9e   : > { %3713 = vmatprep.subr.mxu0 %v4383_v2  ;;  %3746 = vmatprep.subr.mxu1 %v4383_v2 }
  0x9f   : > { %3714 = vmatpush3.msra.mxu0 %v2724_v18  ;;  %3747 = vmatpush3.msra.mxu1 %v2741_v19  ;;  %v2812_v18 = vld [vmem:[%s6198_s1 + $0x6f8] sm:$0xff]  ;;  %v2794_v19 = vld [vmem:[%s6198_s1 + $0x668] sm:$0xff] }
  0xa0   : > { %3715 = vmatprep.subr.mxu0 %v4383_v2  ;;  %3748 = vmatprep.subr.mxu1 %v4383_v2 }
  0xa1   : > { %3716 = vmatpush3.msra.mxu0 %v2723_v20  ;;  %3749 = vmatpush3.msra.mxu1 %v2740_v21  ;;  %v2811_v20 = vld [vmem:[%s6198_s1 + $0x6f0] sm:$0xff]  ;;  %v2793_v21 = vld [vmem:[%s6198_s1 + $0x660] sm:$0xff] }
  0xa2   : > { %3717 = vmatprep.subr.mxu0 %v4383_v2  ;;  %3750 = vmatprep.subr.mxu1 %v4383_v2 }
  0xa3   : > { %3718 = vmatpush3.msra.mxu0 %v2722_v22  ;;  %3751 = vmatpush3.msra.mxu1 %v2739_v23  ;;  %v2810_v22 = vld [vmem:[%s6198_s1 + $0x6e8] sm:$0xff]  ;;  %v2792_v23 = vld [vmem:[%s6198_s1 + $0x658] sm:$0xff] }
  0xa4   : > { %3719 = vmatprep.subr.mxu0 %v4383_v2  ;;  %3752 = vmatprep.subr.mxu1 %v4383_v2 }
  0xa5   : > { %3720 = vmatpush3.msra.mxu0 %v2721_v24  ;;  %3753 = vmatpush3.msra.mxu1 %v2738_v25  ;;  %v2809_v24 = vld [vmem:[%s6198_s1 + $0x6e0] sm:$0xff]  ;;  %v2791_v25 = vld [vmem:[%s6198_s1 + $0x650] sm:$0xff] }
  0xa6   : > { %3721 = vmatprep.subr.mxu0 %v4383_v2  ;;  %3754 = vmatprep.subr.mxu1 %v4383_v2 }
  0xa7   : > { %3722 = vmatpush3.msra.mxu0 %v2720_v26  ;;  %3755 = vmatpush3.msra.mxu1 %v2737_v27  ;;  %v2808_v26 = vld [vmem:[%s6198_s1 + $0x6d8] sm:$0xff]  ;;  %v2790_v27 = vld [vmem:[%s6198_s1 + $0x648] sm:$0xff] }
  0xa8   : > { %3723 = vmatprep.subr.mxu0 %v4383_v2  ;;  %3756 = vmatprep.subr.mxu1 %v4383_v2 }
  0xa9   : > { %3724 = vmatpush3.msra.mxu0 %v2719_v28  ;;  %3757 = vmatpush3.msra.mxu1 %v2736_v29  ;;  %v2807_v28 = vld [vmem:[%s6198_s1 + $0x6d0] sm:$0xff]  ;;  %v2789_v29 = vld [vmem:[%s6198_s1 + $0x640] sm:$0xff] }
  0xaa   : > { %3725 = vmatprep.subr.mxu0 %v4383_v2  ;;  %3758 = vmatprep.subr.mxu1 %v4383_v2 }
  0xab   : > { %3726 = vmatpush3.msra.mxu0 %v2718_v30  ;;  %3759 = vmatpush3.msra.mxu1 %v2735_v31  ;;  %v2806_v30 = vld [vmem:[%s6198_s1 + $0x6c8] sm:$0xff]  ;;  %v2788_v31 = vld [vmem:[%s6198_s1 + $0x638] sm:$0xff] }
  0xac   : > { %3727 = vmatprep.subr.mxu0 %v4383_v2  ;;  %3760 = vmatprep.subr.mxu1 %v4383_v2 }
  0xad   : > { %3728 = vmatpush3.msra.mxu0 %v2717_v32  ;;  %3761 = vmatpush3.msra.mxu1 %v2734_v33  ;;  %v2805_v32 = vld [vmem:[%s6198_s1 + $0x6c0] sm:$0xff]  ;;  %v2787_v33 = vld [vmem:[%s6198_s1 + $0x630] sm:$0xff] }
  0xae   : > { %3729 = vmatprep.subr.mxu0 %v4383_v2  ;;  %3762 = vmatprep.subr.mxu1 %v4383_v2 }
  0xaf   : > { %3730 = vmatpush3.msra.mxu0 %v2716_v35  ;;  %3763 = vmatpush3.msra.mxu1 %v2733_v36  ;;  %v2804_v35 = vld [vmem:[%s6198_s1 + $0x6b8] sm:$0xff]  ;;  %v2786_v36 = vld [vmem:[%s6198_s1 + $0x628] sm:$0xff] }
  0xb0   : > { %3731 = vmatprep.subr.mxu0 %v4383_v2  ;;  %3764 = vmatprep.subr.mxu1 %v4383_v2 }
  0xb1   : > { %3732 = vmatpush3.msra.mxu0 %v2715_v37  ;;  %3765 = vmatpush3.msra.mxu1 %v2732_v38  ;;  %v2803_v37 = vld [vmem:[%s6198_s1 + $0x6b0] sm:$0xff]  ;;  %v2785_v38 = vld [vmem:[%s6198_s1 + $0x620] sm:$0xff] }
  0xb2   : > { %3733 = vmatprep.subr.mxu0 %v4383_v2  ;;  %3766 = vmatprep.subr.mxu1 %v4383_v2 }
  0xb3   : > { %3734 = vmatpush3.msra.mxu0 %v2714_v34  ;;  %3767 = vmatpush3.msra.mxu1 %v2731_v39  ;;  %v2802_v34 = vld [vmem:[%s6198_s1 + $0x6a8] sm:$0xff] }
  0xb4   : > { %3735 = vmatprep.subr.mxu0 %v4383_v2  ;;  %3768 = vmatprep.subr.mxu1 %v4383_v2 }
  0xb5   : > { %3736 = vmatpush3.msra.mxu0 %v2713_v42  ;;  %3737 = vmatprep.mubr.msk.f32.mxu0 %vm4384_vm0, %v4383_v2  ;;  %v2801_v42 = vld [vmem:[%s6198_s1 + $0x6a0] sm:$0xff] }
  0xb6   : > { %3769 = vmatpush3.msra.mxu1 %v2730_v43  ;;  %3738 = vmatmul.mubr.f32.vlgmr.msra.gmra.mxu0 %v936_v41  ;;  %v2784_v41 = vld [vmem:[%s6198_s1 + $0x618] sm:$0xff] }
  0xb7   : > { %3770 = vmatprep.subr.mxu1 %v4383_v2  ;;  %3775 = vmatprep.subr.mxu0 %v4383_v2 }
  0xb8   : > { %3771 = vmatpush3.msra.mxu1 %v2729_v45  ;;  %3772 = vmatprep.mubr.msk.f32.mxu1 %vm4384_vm0, %v4383_v2  ;;  %v2783_v45 = vld [vmem:[%s6198_s1 + $0x610] sm:$0xff] }
  0xb9   : > { %3776 = vmatpush3.msra.mxu0 %v2762_v46  ;;  %3773 = vmatmul.mubr.f32.vlgmr.msra.gmra.mxu1 %v1026_v44  ;;  %v2800_v46 = vld [vmem:[%s6198_s1 + $0x698] sm:$0xff] }
  0xba   : > { %3777 = vmatprep.subr.mxu0 %v4383_v2  ;;  %3810 = vmatprep.subr.mxu1 %v4383_v2 }
  0xbb   : > { %3778 = vmatpush3.msra.mxu0 %v2761_v40  ;;  %3811 = vmatpush3.msra.mxu1 %v2780_v47 }
  0xbc   : > { %3779 = vmatprep.subr.mxu0 %v4383_v2  ;;  %3812 = vmatprep.subr.mxu1 %v4383_v2 }
  0xbd   : > { %3780 = vmatpush3.msra.mxu0 %v2760_v48  ;;  %3813 = vmatpush3.msra.mxu1 %v2779_v49  ;;  %v2782_v48 = vld [vmem:[%s6198_s1 + $0x608] sm:$0xff]  ;;  %v2799_v49 = vld [vmem:[%s6198_s1 + $0x690] sm:$0xff] }
  0xbe   : > { %3781 = vmatprep.subr.mxu0 %v4383_v2  ;;  %3814 = vmatprep.subr.mxu1 %v4383_v2 }
  0xbf   : > { %3782 = vmatpush3.msra.mxu0 %v2759_v50  ;;  %3815 = vmatpush3.msra.mxu1 %v2778_v51  ;;  %v1301_v50 = vrot.slane %v5255_v13, 1  ;;  %v2781_v51 = vld [vmem:[%s6198_s1 + $0x600] sm:$0xff] }
  0xc0   : > { %3783 = vmatprep.subr.mxu0 %v4383_v2  ;;  %3816 = vmatprep.subr.mxu1 %v4383_v2 }
  0xc1   : > { %3784 = vmatpush3.msra.mxu0 %v2758_v52  ;;  %3817 = vmatpush3.msra.mxu1 %v2777_v53  ;;  %v2798_v52 = vld [vmem:[%s6198_s1 + $0x688] sm:$0xff]  ;;  %v1392_v53 = vrot.slane %v5269_v16, 1 }
  0xc2   : > { %3785 = vmatprep.subr.mxu0 %v4383_v2  ;;  %3818 = vmatprep.subr.mxu1 %v4383_v2 }
  0xc3   : > { %3786 = vmatpush3.msra.mxu0 %v2757_v54  ;;  %3819 = vmatpush3.msra.mxu1 %v2776_v55  ;;  %v2797_v54 = vld [vmem:[%s6198_s1 + $0x680] sm:$0xff]  ;;  %v2828_v55 = vld [vmem:[%s6198_s1 + $0x778] sm:$0xff] }
  0xc4   : > { %3787 = vmatprep.subr.mxu0 %v4383_v2  ;;  %3820 = vmatprep.subr.mxu1 %v4383_v2 }
  0xc5   : > { %3788 = vmatpush3.msra.mxu0 %v2756_v56  ;;  %3821 = vmatpush3.msra.mxu1 %v2775_v57  ;;  %v2827_v56 = vld [vmem:[%s6198_s1 + $0x770] sm:$0xff]  ;;  %v2846_v57 = vld [vmem:[%s6198_s1 + $0x7f8] sm:$0xff] }
  0xc6   : > { %3789 = vmatprep.subr.mxu0 %v4383_v2  ;;  %3822 = vmatprep.subr.mxu1 %v4383_v2 }
  0xc7   : > { %3790 = vmatpush3.msra.mxu0 %v2755_v58  ;;  %3823 = vmatpush3.msra.mxu1 %v2774_v59  ;;  %v2826_v58 = vld [vmem:[%s6198_s1 + $0x768] sm:$0xff]  ;;  %v2845_v59 = vld [vmem:[%s6198_s1 + $0x7f0] sm:$0xff] }
  0xc8   : > { %3791 = vmatprep.subr.mxu0 %v4383_v2  ;;  %3824 = vmatprep.subr.mxu1 %v4383_v2 }
  0xc9   : > { %3792 = vmatpush3.msra.mxu0 %v2754_v60  ;;  %3825 = vmatpush3.msra.mxu1 %v2773_v61  ;;  %v2825_v60 = vld [vmem:[%s6198_s1 + $0x760] sm:$0xff]  ;;  %v2844_v61 = vld [vmem:[%s6198_s1 + $0x7e8] sm:$0xff] }
  0xca   : > { %3793 = vmatprep.subr.mxu0 %v4383_v2  ;;  %3826 = vmatprep.subr.mxu1 %v4383_v2 }
  0xcb   : > { %3794 = vmatpush3.msra.mxu0 %v2753_v62  ;;  %3827 = vmatpush3.msra.mxu1 %v2772_v63  ;;  %v2824_v62 = vld [vmem:[%s6198_s1 + $0x758] sm:$0xff]  ;;  %v2843_v63 = vld [vmem:[%s6198_s1 + $0x7e0] sm:$0xff] }
  0xcc   : > { %3795 = vmatprep.subr.mxu0 %v4383_v2  ;;  %3828 = vmatprep.subr.mxu1 %v4383_v2 }
  0xcd   : > { %3796 = vmatpush3.msra.mxu0 %v2752_v0  ;;  %3829 = vmatpush3.msra.mxu1 %v2771_v1  ;;  %v2823_v0 = vld [vmem:[%s6198_s1 + $0x750] sm:$0xff]  ;;  %v2842_v1 = vld [vmem:[%s6198_s1 + $0x7d8] sm:$0xff] }
  0xce   : > { %3797 = vmatprep.subr.mxu0 %v4383_v2  ;;  %3830 = vmatprep.subr.mxu1 %v4383_v2 }
  0xcf   : > { %3798 = vmatpush3.msra.mxu0 %v2751_v3  ;;  %3831 = vmatpush3.msra.mxu1 %v2770_v4  ;;  %v2822_v3 = vld [vmem:[%s6198_s1 + $0x748] sm:$0xff]  ;;  %v2841_v4 = vld [vmem:[%s6198_s1 + $0x7d0] sm:$0xff] }
  0xd0   : > { %3799 = vmatprep.subr.mxu0 %v4383_v2  ;;  %3832 = vmatprep.subr.mxu1 %v4383_v2 }
  0xd1   : > { %3800 = vmatpush3.msra.mxu0 %v2750_v5  ;;  %3833 = vmatpush3.msra.mxu1 %v2769_v6  ;;  %v2821_v5 = vld [vmem:[%s6198_s1 + $0x740] sm:$0xff]  ;;  %v2840_v6 = vld [vmem:[%s6198_s1 + $0x7c8] sm:$0xff] }
  0xd2   : > { %3801 = vmatprep.subr.mxu0 %v4383_v2  ;;  %3834 = vmatprep.subr.mxu1 %v4383_v2 }
  0xd3   : > { %3802 = vmatpush3.msra.mxu0 %v2749_v7  ;;  %3835 = vmatpush3.msra.mxu1 %v2768_v8  ;;  %v2820_v7 = vld [vmem:[%s6198_s1 + $0x738] sm:$0xff]  ;;  %v2839_v8 = vld [vmem:[%s6198_s1 + $0x7c0] sm:$0xff] }
  0xd4   : > { %3803 = vmatprep.subr.mxu0 %v4383_v2  ;;  %3836 = vmatprep.subr.mxu1 %v4383_v2 }
  0xd5   : > { %3804 = vmatpush3.msra.mxu0 %v2748_v9  ;;  %3837 = vmatpush3.msra.mxu1 %v2767_v10  ;;  %v2819_v9 = vld [vmem:[%s6198_s1 + $0x730] sm:$0xff]  ;;  %v2838_v10 = vld [vmem:[%s6198_s1 + $0x7b8] sm:$0xff] }
  0xd6   : > { %3805 = vmatprep.subr.mxu0 %v4383_v2  ;;  %3838 = vmatprep.subr.mxu1 %v4383_v2 }
  0xd7   : > { %3806 = vmatpush3.msra.mxu0 %v2747_v11  ;;  %3807 = vmatprep.mubr.msk.f32.mxu0 %vm4384_vm0, %v4383_v2  ;;  %v2818_v11 = vld [vmem:[%s6198_s1 + $0x728] sm:$0xff] }
  0xd8   : > { %3839 = vmatpush3.msra.mxu1 %v2766_v12  ;;  %3808 = vmatmul.mubr.f32.vlgmr.msra.gmra.mxu0 %v5255_v13  ;;  %v2837_v12 = vld [vmem:[%s6198_s1 + $0x7b0] sm:$0xff] }
  0xd9   : > { %3840 = vmatprep.subr.mxu1 %v4383_v2  ;;  %3845 = vmatprep.subr.mxu0 %v4383_v2 }
  0xda   : > { %3841 = vmatpush3.msra.mxu1 %v2765_v14  ;;  %3842 = vmatprep.mubr.msk.f32.mxu1 %vm4384_vm0, %v4383_v2  ;;  %v2817_v14 = vld [vmem:[%s6198_s1 + $0x720] sm:$0xff] }
  0xdb   : > { %3846 = vmatpush3.msra.mxu0 %v2796_v15  ;;  %3843 = vmatmul.mubr.f32.vlgmr.msra.gmra.mxu1 %v5269_v16  ;;  %v2836_v15 = vld [vmem:[%s6198_s1 + $0x7a8] sm:$0xff] }
  0xdc   : > { %3847 = vmatprep.subr.mxu0 %v4383_v2  ;;  %3880 = vmatprep.subr.mxu1 %v4383_v2 }
  0xdd   : > { %3848 = vmatpush3.msra.mxu0 %v2795_v17  ;;  %3881 = vmatpush3.msra.mxu1 %v2812_v18  ;;  %v2816_v18 = vld [vmem:[%s6198_s1 + $0x718] sm:$0xff] }
  0xde   : > { %3849 = vmatprep.subr.mxu0 %v4383_v2  ;;  %3882 = vmatprep.subr.mxu1 %v4383_v2 }
  0xdf   : > { %3850 = vmatpush3.msra.mxu0 %v2794_v19  ;;  %3883 = vmatpush3.msra.mxu1 %v2811_v20  ;;  %v2835_v19 = vld [vmem:[%s6198_s1 + $0x7a0] sm:$0xff] }
  0xe0   : > { %3851 = vmatprep.subr.mxu0 %v4383_v2  ;;  %3884 = vmatprep.subr.mxu1 %v4383_v2 }
  0xe1   : > { %3852 = vmatpush3.msra.mxu0 %v2793_v21  ;;  %3885 = vmatpush3.msra.mxu1 %v2810_v22  ;;  %v2815_v22 = vld [vmem:[%s6198_s1 + $0x710] sm:$0xff] }
  0xe2   : > { %3853 = vmatprep.subr.mxu0 %v4383_v2  ;;  %3886 = vmatprep.subr.mxu1 %v4383_v2 }
  0xe3   : > { %3854 = vmatpush3.msra.mxu0 %v2792_v23  ;;  %3887 = vmatpush3.msra.mxu1 %v2809_v24  ;;  %v2834_v23 = vld [vmem:[%s6198_s1 + $0x798] sm:$0xff] }
  0xe4   : > { %3855 = vmatprep.subr.mxu0 %v4383_v2  ;;  %3888 = vmatprep.subr.mxu1 %v4383_v2 }
  0xe5   : > { %3856 = vmatpush3.msra.mxu0 %v2791_v25  ;;  %3889 = vmatpush3.msra.mxu1 %v2808_v26  ;;  %v2814_v26 = vld [vmem:[%s6198_s1 + $0x708] sm:$0xff] }
  0xe6   : > { %3857 = vmatprep.subr.mxu0 %v4383_v2  ;;  %3890 = vmatprep.subr.mxu1 %v4383_v2 }
  0xe7   : > { %3858 = vmatpush3.msra.mxu0 %v2790_v27  ;;  %3891 = vmatpush3.msra.mxu1 %v2807_v28  ;;  %v2833_v27 = vld [vmem:[%s6198_s1 + $0x790] sm:$0xff]  ;;  %v1482_v28 = vrot.slane %v5255_v13, 2  ;;  %v2831_v13 = vld [vmem:[%s6198_s1 + $0x780] sm:$0xff] }
  0xe8   : > { %3859 = vmatprep.subr.mxu0 %v4383_v2  ;;  %3892 = vmatprep.subr.mxu1 %v4383_v2 }
  0xe9   : > { %3860 = vmatpush3.msra.mxu0 %v2789_v29  ;;  %3893 = vmatpush3.msra.mxu1 %v2806_v30  ;;  %v2813_v29 = vld [vmem:[%s6198_s1 + $0x700] sm:$0xff]  ;;  %v2832_v30 = vld [vmem:[%s6198_s1 + $0x788] sm:$0xff] }
  0xea   : > { %3861 = vmatprep.subr.mxu0 %v4383_v2  ;;  %3894 = vmatprep.subr.mxu1 %v4383_v2 }
  0xeb   : > { %3862 = vmatpush3.msra.mxu0 %v2788_v31  ;;  %3895 = vmatpush3.msra.mxu1 %v2805_v32  ;;  %v2864_v31 = vld [vmem:[%s6198_s1 + $0x878] sm:$0xff]  ;;  %v5545_v32 = vld [vmem:[%s4566_s24 + $0x68] sm:$0x3f] }
  0xec   : > { %3863 = vmatprep.subr.mxu0 %v4383_v2  ;;  %3896 = vmatprep.subr.mxu1 %v4383_v2 }
  0xed   : > { %3864 = vmatpush3.msra.mxu0 %v2787_v33  ;;  %3897 = vmatpush3.msra.mxu1 %v2804_v35  ;;  %v2863_v33 = vld [vmem:[%s6198_s1 + $0x870] sm:$0xff]  ;;  %v2880_v35 = vld [vmem:[%s6198_s1 + $0x8f8] sm:$0xff] }
  0xee   : > { %3865 = vmatprep.subr.mxu0 %v4383_v2  ;;  %3898 = vmatprep.subr.mxu1 %v4383_v2 }
  0xef   : > { %3866 = vmatpush3.msra.mxu0 %v2786_v36  ;;  %3899 = vmatpush3.msra.mxu1 %v2803_v37  ;;  %v297_v39 = vpop.f32.mrf.mxu0  ;;  %v2862_v36 = vld [vmem:[%s6198_s1 + $0x868] sm:$0xff]  ;;  %v2879_v37 = vld [vmem:[%s6198_s1 + $0x8f0] sm:$0xff] }
  0xf0   : > { %3867 = vmatprep.subr.mxu0 %v4383_v2  ;;  %3900 = vmatprep.subr.mxu1 %v4383_v2 }
  0xf1   : > { %3868 = vmatpush3.msra.mxu0 %v2785_v38  ;;  %3901 = vmatpush3.msra.mxu1 %v2802_v34  ;;  %v367_v43 = vpop.f32.mrf.mxu1  ;;  %v3459_v44 = vpop.f32.mrf.mxu0  ;;  %v2861_v38 = vld [vmem:[%s6198_s1 + $0x860] sm:$0xff]  ;;  %v2878_v34 = vld [vmem:[%s6198_s1 + $0x8e8] sm:$0xff] }
  0xf2   : > { %3869 = vmatprep.subr.mxu0 %v4383_v2  ;;  %3902 = vmatprep.subr.mxu1 %v4383_v2  ;;  %v5378_v40 = vadd.f32 %v367_v43, %v297_v39  ;;  %v2860_v39 = vld [vmem:[%s6198_s1 + $0x858] sm:$0xff]  ;;  %v2858_v44 = vld [vmem:[%s6198_s1 + $0x848] sm:$0xff] }
  0xf3   : > { %3870 = vmatpush3.msra.mxu0 %v2784_v41  ;;  %3903 = vmatpush3.msra.mxu1 %v2801_v42  ;;  %v3494_v47 = vpop.f32.mrf.mxu1  ;;  %v2877_v41 = vld [vmem:[%s6198_s1 + $0x8e0] sm:$0xff]  ;;  %v2859_v42 = vld [vmem:[%s6198_s1 + $0x850] sm:$0xff]  ;;  %v2876_v43 = vld [vmem:[%s6198_s1 + $0x8d8] sm:$0xff] }
  0xf4   : > { %3871 = vmatprep.subr.mxu0 %v4383_v2  ;;  %3904 = vmatprep.subr.mxu1 %v4383_v2  ;;  %v2856_v47 = vld [vmem:[%s6198_s1 + $0x838] sm:$0xff] }
  0xf5   : > { %3872 = vmatpush3.msra.mxu0 %v2783_v45  ;;  %3905 = vmatpush3.msra.mxu1 %v2800_v46  ;;  %v2875_v45 = vld [vmem:[%s6198_s1 + $0x8d0] sm:$0xff]  ;;  %v2857_v46 = vld [vmem:[%s6198_s1 + $0x840] sm:$0xff] }
  0xf6   : > { %3873 = vmatprep.subr.mxu0 %v4383_v2  ;;  %3906 = vmatprep.subr.mxu1 %v4383_v2 }
  0xf7   : > { %3874 = vmatpush3.msra.mxu0 %v2782_v48  ;;  %3907 = vmatpush3.msra.mxu1 %v2799_v49  ;;  %v2873_v48 = vld [vmem:[%s6198_s1 + $0x8c0] sm:$0xff]  ;;  %v2855_v49 = vld [vmem:[%s6198_s1 + $0x830] sm:$0xff] }
  0xf8   : > { %3875 = vmatprep.subr.mxu0 %v4383_v2  ;;  %3908 = vmatprep.subr.mxu1 %v4383_v2 }
  0xf9   : > { %3876 = vmatpush3.msra.mxu0 %v2781_v51  ;;  %3877 = vmatprep.mubr.msk.f32.mxu0 %vm4384_vm0, %v4383_v2  ;;  %v2854_v51 = vld [vmem:[%s6198_s1 + $0x828] sm:$0xff] }
  0xfa   : > { %3909 = vmatpush3.msra.mxu1 %v2798_v52  ;;  %3878 = vmatmul.mubr.f32.vlgmr.msra.gmra.mxu0 %v1301_v50  ;;  %v2872_v50 = vld [vmem:[%s6198_s1 + $0x8b8] sm:$0xff]  ;;  %v2871_v52 = vld [vmem:[%s6198_s1 + $0x8b0] sm:$0xff] }
  0xfb   : > { %3910 = vmatprep.subr.mxu1 %v4383_v2  ;;  %3915 = vmatprep.subr.mxu0 %v4383_v2 }
  0xfc   : > { %3911 = vmatpush3.msra.mxu1 %v2797_v54  ;;  %3912 = vmatprep.mubr.msk.f32.mxu1 %vm4384_vm0, %v4383_v2  ;;  %v2870_v54 = vld [vmem:[%s6198_s1 + $0x8a8] sm:$0xff] }
  0xfd   : > { %3916 = vmatpush3.msra.mxu0 %v2828_v55  ;;  %3913 = vmatmul.mubr.f32.vlgmr.msra.gmra.mxu1 %v1392_v53  ;;  %v2853_v53 = vld [vmem:[%s6198_s1 + $0x820] sm:$0xff] }
  0xfe   : > { %3917 = vmatprep.subr.mxu0 %v4383_v2  ;;  %3950 = vmatprep.subr.mxu1 %v4383_v2 }
  0xff   : > { %3918 = vmatpush3.msra.mxu0 %v2827_v56  ;;  %3951 = vmatpush3.msra.mxu1 %v2846_v57  ;;  %v2852_v57 = vld [vmem:[%s6198_s1 + $0x818] sm:$0xff] }
 0x100   : > { %3919 = vmatprep.subr.mxu0 %v4383_v2  ;;  %3952 = vmatprep.subr.mxu1 %v4383_v2 }
 0x101   : > { %3920 = vmatpush3.msra.mxu0 %v2826_v58  ;;  %3953 = vmatpush3.msra.mxu1 %v2845_v59  ;;  %v2869_v58 = vld [vmem:[%s6198_s1 + $0x8a0] sm:$0xff] }
 0x102   : > { %3921 = vmatprep.subr.mxu0 %v4383_v2  ;;  %3954 = vmatprep.subr.mxu1 %v4383_v2 }
 0x103   : > { %3922 = vmatpush3.msra.mxu0 %v2825_v60  ;;  %3955 = vmatpush3.msra.mxu1 %v2844_v61  ;;  %v2851_v61 = vld [vmem:[%s6198_s1 + $0x810] sm:$0xff] }
 0x104   : > { %3923 = vmatprep.subr.mxu0 %v4383_v2  ;;  %3956 = vmatprep.subr.mxu1 %v4383_v2 }
 0x105   : > { %3924 = vmatpush3.msra.mxu0 %v2824_v62  ;;  %3957 = vmatpush3.msra.mxu1 %v2843_v63  ;;  %v2868_v62 = vld [vmem:[%s6198_s1 + $0x898] sm:$0xff] }
 0x106   : > { %3925 = vmatprep.subr.mxu0 %v4383_v2  ;;  %3958 = vmatprep.subr.mxu1 %v4383_v2 }
 0x107   : > { %3926 = vmatpush3.msra.mxu0 %v2823_v0  ;;  %3959 = vmatpush3.msra.mxu1 %v2842_v1  ;;  %v2850_v1 = vld [vmem:[%s6198_s1 + $0x808] sm:$0xff] }
 0x108   : > { %3927 = vmatprep.subr.mxu0 %v4383_v2  ;;  %3960 = vmatprep.subr.mxu1 %v4383_v2 }
 0x109   : > { %3928 = vmatpush3.msra.mxu0 %v2822_v3  ;;  %3961 = vmatpush3.msra.mxu1 %v2841_v4  ;;  %v2867_v3 = vld [vmem:[%s6198_s1 + $0x890] sm:$0xff]  ;;  %v2849_v4 = vld [vmem:[%s6198_s1 + $0x800] sm:$0xff] }
 0x10a   : > { %3929 = vmatprep.subr.mxu0 %v4383_v2  ;;  %3962 = vmatprep.subr.mxu1 %v4383_v2 }
 0x10b   : > { %3930 = vmatpush3.msra.mxu0 %v2821_v5  ;;  %3963 = vmatpush3.msra.mxu1 %v2840_v6  ;;  %v2866_v5 = vld [vmem:[%s6198_s1 + $0x888] sm:$0xff]  ;;  %v5674_v6 = vld [vmem:[%s4566_s24 + $0x98] sm:$0x3f] }
 0x10c   : > { %3931 = vmatprep.subr.mxu0 %v4383_v2  ;;  %3964 = vmatprep.subr.mxu1 %v4383_v2 }
 0x10d   : > { %3932 = vmatpush3.msra.mxu0 %v2820_v7  ;;  %3965 = vmatpush3.msra.mxu1 %v2839_v8  ;;  %v1757_v7 = vrot.slane %v5545_v32, 1  ;;  %v2865_v8 = vld [vmem:[%s6198_s1 + $0x880] sm:$0xff] }
 0x10e   : > { %3933 = vmatprep.subr.mxu0 %v4383_v2  ;;  %3966 = vmatprep.subr.mxu1 %v4383_v2 }
 0x10f   : > { %3934 = vmatpush3.msra.mxu0 %v2819_v9  ;;  %3967 = vmatpush3.msra.mxu1 %v2838_v10  ;;  %v2896_v9 = vld [vmem:[%s6198_s1 + $0x978] sm:$0xff]  ;;  %v2895_v10 = vld [vmem:[%s6198_s1 + $0x970] sm:$0xff] }
 0x110   : > { %3935 = vmatprep.subr.mxu0 %v4383_v2  ;;  %3968 = vmatprep.subr.mxu1 %v4383_v2  ;;  %v457_v16 = vpop.f32.mrf.mxu0 }
 0x111   : > { %3936 = vmatpush3.msra.mxu0 %v2818_v11  ;;  %3969 = vmatpush3.msra.mxu1 %v2837_v12  ;;  %v461_v17 = vadd.f32 %v457_v16, %v5378_v40  ;;  %v2874_v40 = vld [vmem:[%s6198_s1 + $0x8c8] sm:$0xff]  ;;  %v2912_v11 = vld [vmem:[%s6198_s1 + $0x9f8] sm:$0xff] }
 0x112   : > { %3937 = vmatprep.subr.mxu0 %v4383_v2  ;;  %3970 = vmatprep.subr.mxu1 %v4383_v2  ;;  %v3529_v20 = vpop.f32.mrf.mxu0  ;;  %v2894_v12 = vld [vmem:[%s6198_s1 + $0x968] sm:$0xff] }
 0x113   : > { %3938 = vmatpush3.msra.mxu0 %v2817_v14  ;;  %3971 = vmatpush3.msra.mxu1 %v2836_v15  ;;  %v548_v21 = vpop.f32.mrf.mxu1  ;;  %v2911_v14 = vld [vmem:[%s6198_s1 + $0x9f0] sm:$0xff]  ;;  %v2893_v15 = vld [vmem:[%s6198_s1 + $0x960] sm:$0xff]  ;;  %v2910_v16 = vld [vmem:[%s6198_s1 + $0x9e8] sm:$0xff] }
 0x114   : > { %3939 = vmatprep.subr.mxu0 %v4383_v2  ;;  %3972 = vmatprep.subr.mxu1 %v4383_v2  ;;  %v5515_v24 = vadd.f32 %v548_v21, %v461_v17  ;;  %v2892_v17 = vld [vmem:[%s6198_s1 + $0x958] sm:$0xff]  ;;  %v2890_v21 = vld [vmem:[%s6198_s1 + $0x948] sm:$0xff] }
 0x115   : > { %3940 = vmatpush3.msra.mxu0 %v2816_v18  ;;  %3973 = vmatpush3.msra.mxu1 %v2835_v19  ;;  %v3564_v25 = vpop.f32.mrf.mxu1  ;;  %v2909_v18 = vld [vmem:[%s6198_s1 + $0x9e0] sm:$0xff]  ;;  %v2891_v19 = vld [vmem:[%s6198_s1 + $0x950] sm:$0xff]  ;;  %v2908_v20 = vld [vmem:[%s6198_s1 + $0x9d8] sm:$0xff] }
 0x116   : > { %3941 = vmatprep.subr.mxu0 %v4383_v2  ;;  %3974 = vmatprep.subr.mxu1 %v4383_v2  ;;  %v2888_v25 = vld [vmem:[%s6198_s1 + $0x938] sm:$0xff] }
 0x117   : > { %3942 = vmatpush3.msra.mxu0 %v2815_v22  ;;  %3975 = vmatpush3.msra.mxu1 %v2834_v23  ;;  %v2907_v22 = vld [vmem:[%s6198_s1 + $0x9d0] sm:$0xff]  ;;  %v2889_v23 = vld [vmem:[%s6198_s1 + $0x940] sm:$0xff] }
 0x118   : > { %3943 = vmatprep.subr.mxu0 %v4383_v2  ;;  %3976 = vmatprep.subr.mxu1 %v4383_v2 }
 0x119   : > { %3944 = vmatpush3.msra.mxu0 %v2814_v26  ;;  %3977 = vmatpush3.msra.mxu1 %v2833_v27  ;;  %v2905_v26 = vld [vmem:[%s6198_s1 + $0x9c0] sm:$0xff]  ;;  %v2887_v27 = vld [vmem:[%s6198_s1 + $0x930] sm:$0xff] }
 0x11a   : > { %3945 = vmatprep.subr.mxu0 %v4383_v2  ;;  %3978 = vmatprep.subr.mxu1 %v4383_v2 }
 0x11b   : > { %3946 = vmatpush3.msra.mxu0 %v2813_v29  ;;  %3947 = vmatprep.mubr.msk.f32.mxu0 %vm4384_vm0, %v4383_v2  ;;  %v2886_v29 = vld [vmem:[%s6198_s1 + $0x928] sm:$0xff] }
 0x11c   : > { %3979 = vmatpush3.msra.mxu1 %v2832_v30  ;;  %3948 = vmatmul.mubr.f32.vlgmr.msra.gmra.mxu0 %v1482_v28  ;;  %v2904_v28 = vld [vmem:[%s6198_s1 + $0x9b8] sm:$0xff]  ;;  %v2903_v30 = vld [vmem:[%s6198_s1 + $0x9b0] sm:$0xff] }
 0x11d   : > { %3980 = vmatprep.subr.mxu1 %v4383_v2  ;;  %3985 = vmatprep.subr.mxu0 %v4383_v2 }
 0x11e   : > { %3981 = vmatpush3.msra.mxu1 %v2831_v13  ;;  %3982 = vmatprep.mubr.msk.f32.mxu1 %vm4384_vm0, %v4383_v2  ;;  %v2885_v13 = vld [vmem:[%s6198_s1 + $0x920] sm:$0xff] }
 0x11f   : > { %3986 = vmatpush3.msra.mxu0 %v2864_v31  ;;  %3983 = vmatmul.mubr.f32.vlgmr.msra.gmra.mxu1 %v5545_v32  ;;  %v2902_v31 = vld [vmem:[%s6198_s1 + $0x9a8] sm:$0xff] }
 0x120   : > { %3987 = vmatprep.subr.mxu0 %v4383_v2  ;;  %4020 = vmatprep.subr.mxu1 %v4383_v2 }
 0x121   : > { %3988 = vmatpush3.msra.mxu0 %v2863_v33  ;;  %4021 = vmatpush3.msra.mxu1 %v2880_v35 }
 0x122   : > { %3989 = vmatprep.subr.mxu0 %v4383_v2  ;;  %4022 = vmatprep.subr.mxu1 %v4383_v2 }
 0x123   : > { %3990 = vmatpush3.msra.mxu0 %v2862_v36  ;;  %4023 = vmatpush3.msra.mxu1 %v2879_v37  ;;  %v2884_v36 = vld [vmem:[%s6198_s1 + $0x918] sm:$0xff]  ;;  %v2901_v37 = vld [vmem:[%s6198_s1 + $0x9a0] sm:$0xff] }
 0x124   : > { %3991 = vmatprep.subr.mxu0 %v4383_v2  ;;  %4024 = vmatprep.subr.mxu1 %v4383_v2 }
 0x125   : > { %3992 = vmatpush3.msra.mxu0 %v2861_v38  ;;  %4025 = vmatpush3.msra.mxu1 %v2878_v34 }
 0x126   : > { %3993 = vmatprep.subr.mxu0 %v4383_v2  ;;  %4026 = vmatprep.subr.mxu1 %v4383_v2 }
 0x127   : > { %3994 = vmatpush3.msra.mxu0 %v2860_v39  ;;  %4027 = vmatpush3.msra.mxu1 %v2877_v41  ;;  %v2883_v39 = vld [vmem:[%s6198_s1 + $0x910] sm:$0xff]  ;;  %v2900_v41 = vld [vmem:[%s6198_s1 + $0x998] sm:$0xff] }
 0x128   : > { %3995 = vmatprep.subr.mxu0 %v4383_v2  ;;  %4028 = vmatprep.subr.mxu1 %v4383_v2 }
 0x129   : > { %3996 = vmatpush3.msra.mxu0 %v2859_v42  ;;  %4029 = vmatpush3.msra.mxu1 %v2876_v43 }
 0x12a   : > { %3997 = vmatprep.subr.mxu0 %v4383_v2  ;;  %4030 = vmatprep.subr.mxu1 %v4383_v2 }
 0x12b   : > { %3998 = vmatpush3.msra.mxu0 %v2858_v44  ;;  %4031 = vmatpush3.msra.mxu1 %v2875_v45  ;;  %v2882_v44 = vld [vmem:[%s6198_s1 + $0x908] sm:$0xff]  ;;  %v2899_v45 = vld [vmem:[%s6198_s1 + $0x990] sm:$0xff] }
 0x12c   : > { %3999 = vmatprep.subr.mxu0 %v4383_v2  ;;  %4032 = vmatprep.subr.mxu1 %v4383_v2 }
 0x12d   : > { %4000 = vmatpush3.msra.mxu0 %v2857_v46  ;;  %4033 = vmatpush3.msra.mxu1 %v2874_v40  ;;  %v1848_v46 = vrot.slane %v5674_v6, 1  ;;  %v2881_v40 = vld [vmem:[%s6198_s1 + $0x900] sm:$0xff] }
 0x12e   : > { %4001 = vmatprep.subr.mxu0 %v4383_v2  ;;  %4034 = vmatprep.subr.mxu1 %v4383_v2 }
 0x12f   : > { %4002 = vmatpush3.msra.mxu0 %v2856_v47  ;;  %4035 = vmatpush3.msra.mxu1 %v2873_v48  ;;  %v2898_v47 = vld [vmem:[%s6198_s1 + $0x988] sm:$0xff]  ;;  %v1938_v48 = vrot.slane %v5545_v32, 2  ;;  %v2929_v32 = vld [vmem:[%s6198_s1 + $0xa70] sm:$0xff] }
 0x130   : > { %4003 = vmatprep.subr.mxu0 %v4383_v2  ;;  %4036 = vmatprep.subr.mxu1 %v4383_v2 }
 0x131   : > { %4004 = vmatpush3.msra.mxu0 %v2855_v49  ;;  %4037 = vmatpush3.msra.mxu1 %v2872_v50  ;;  %v2897_v49 = vld [vmem:[%s6198_s1 + $0x980] sm:$0xff]  ;;  %v2930_v50 = vld [vmem:[%s6198_s1 + $0xa78] sm:$0xff] }
 0x132   : > { %4005 = vmatprep.subr.mxu0 %v4383_v2  ;;  %4038 = vmatprep.subr.mxu1 %v4383_v2  ;;  %v638_v55 = vpop.f32.mrf.mxu0 }
 0x133   : > { %4006 = vmatpush3.msra.mxu0 %v2854_v51  ;;  %4039 = vmatpush3.msra.mxu1 %v2871_v52  ;;  %v642_v56 = vadd.f32 %v638_v55, %v5515_v24  ;;  %v2906_v24 = vld [vmem:[%s6198_s1 + $0x9c8] sm:$0xff]  ;;  %v2948_v51 = vld [vmem:[%s6198_s1 + $0xaf8] sm:$0xff] }
 0x134   : > { %4007 = vmatprep.subr.mxu0 %v4383_v2  ;;  %4040 = vmatprep.subr.mxu1 %v4383_v2  ;;  %v3599_v59 = vpop.f32.mrf.mxu0  ;;  %v2928_v52 = vld [vmem:[%s6198_s1 + $0xa68] sm:$0xff] }
 0x135   : > { %4008 = vmatpush3.msra.mxu0 %v2853_v53  ;;  %4041 = vmatpush3.msra.mxu1 %v2870_v54  ;;  %v730_v60 = vpop.f32.mrf.mxu1  ;;  %v2947_v53 = vld [vmem:[%s6198_s1 + $0xaf0] sm:$0xff]  ;;  %v2927_v54 = vld [vmem:[%s6198_s1 + $0xa60] sm:$0xff]  ;;  %v2946_v55 = vld [vmem:[%s6198_s1 + $0xae8] sm:$0xff] }
 0x136   : > { %4009 = vmatprep.subr.mxu0 %v4383_v2  ;;  %4042 = vmatprep.subr.mxu1 %v4383_v2  ;;  %v5655_v63 = vadd.f32 %v730_v60, %v642_v56  ;;  %v2926_v56 = vld [vmem:[%s6198_s1 + $0xa58] sm:$0xff]  ;;  %v2924_v60 = vld [vmem:[%s6198_s1 + $0xa48] sm:$0xff] }
 0x137   : > { %4010 = vmatpush3.msra.mxu0 %v2852_v57  ;;  %4043 = vmatpush3.msra.mxu1 %v2869_v58  ;;  %v3634_v0 = vpop.f32.mrf.mxu1  ;;  %v2945_v57 = vld [vmem:[%s6198_s1 + $0xae0] sm:$0xff]  ;;  %v2925_v58 = vld [vmem:[%s6198_s1 + $0xa50] sm:$0xff]  ;;  %v2944_v59 = vld [vmem:[%s6198_s1 + $0xad8] sm:$0xff] }
 0x138   : > { %4011 = vmatprep.subr.mxu0 %v4383_v2  ;;  %4044 = vmatprep.subr.mxu1 %v4383_v2  ;;  %v2922_v0 = vld [vmem:[%s6198_s1 + $0xa38] sm:$0xff] }
 0x139   : > { %4012 = vmatpush3.msra.mxu0 %v2851_v61  ;;  %4045 = vmatpush3.msra.mxu1 %v2868_v62  ;;  %v2943_v61 = vld [vmem:[%s6198_s1 + $0xad0] sm:$0xff]  ;;  %v2923_v62 = vld [vmem:[%s6198_s1 + $0xa40] sm:$0xff] }
 0x13a   : > { %4013 = vmatprep.subr.mxu0 %v4383_v2  ;;  %4046 = vmatprep.subr.mxu1 %v4383_v2 }
 0x13b   : > { %4014 = vmatpush3.msra.mxu0 %v2850_v1  ;;  %4047 = vmatpush3.msra.mxu1 %v2867_v3  ;;  %v2941_v1 = vld [vmem:[%s6198_s1 + $0xac0] sm:$0xff]  ;;  %v2921_v3 = vld [vmem:[%s6198_s1 + $0xa30] sm:$0xff] }
 0x13c   : > { %4015 = vmatprep.subr.mxu0 %v4383_v2  ;;  %4048 = vmatprep.subr.mxu1 %v4383_v2 }
 0x13d   : > { %4016 = vmatpush3.msra.mxu0 %v2849_v4  ;;  %4017 = vmatprep.mubr.msk.f32.mxu0 %vm4384_vm0, %v4383_v2  ;;  %v2940_v4 = vld [vmem:[%s6198_s1 + $0xab8] sm:$0xff] }
 0x13e   : > { %4049 = vmatpush3.msra.mxu1 %v2866_v5  ;;  %4018 = vmatmul.mubr.f32.vlgmr.msra.gmra.mxu0 %v5674_v6  ;;  %v2920_v5 = vld [vmem:[%s6198_s1 + $0xa28] sm:$0xff]  ;;  %v2939_v6 = vld [vmem:[%s6198_s1 + $0xab0] sm:$0xff] }
 0x13f   : > { %4050 = vmatprep.subr.mxu1 %v4383_v2  ;;  %4055 = vmatprep.subr.mxu0 %v4383_v2 }
 0x140   : > { %4051 = vmatpush3.msra.mxu1 %v2865_v8  ;;  %4052 = vmatprep.mubr.msk.f32.mxu1 %vm4384_vm0, %v4383_v2  ;;  %v2938_v8 = vld [vmem:[%s6198_s1 + $0xaa8] sm:$0xff] }
 0x141   : > { %4056 = vmatpush3.msra.mxu0 %v2896_v9  ;;  %4053 = vmatmul.mubr.f32.vlgmr.msra.gmra.mxu1 %v1757_v7  ;;  %v2919_v7 = vld [vmem:[%s6198_s1 + $0xa20] sm:$0xff] }
 0x142   : > { %4057 = vmatprep.subr.mxu0 %v4383_v2  ;;  %4090 = vmatprep.subr.mxu1 %v4383_v2 }
 0x143   : > { %4058 = vmatpush3.msra.mxu0 %v2895_v10  ;;  %4091 = vmatpush3.msra.mxu1 %v2912_v11  ;;  %v2918_v11 = vld [vmem:[%s6198_s1 + $0xa18] sm:$0xff] }
 0x144   : > { %4059 = vmatprep.subr.mxu0 %v4383_v2  ;;  %4092 = vmatprep.subr.mxu1 %v4383_v2 }
 0x145   : > { %4060 = vmatpush3.msra.mxu0 %v2894_v12  ;;  %4093 = vmatpush3.msra.mxu1 %v2911_v14  ;;  %v2937_v12 = vld [vmem:[%s6198_s1 + $0xaa0] sm:$0xff] }
 0x146   : > { %4061 = vmatprep.subr.mxu0 %v4383_v2  ;;  %4094 = vmatprep.subr.mxu1 %v4383_v2 }
 0x147   : > { %4062 = vmatpush3.msra.mxu0 %v2893_v15  ;;  %4095 = vmatpush3.msra.mxu1 %v2910_v16  ;;  %v2917_v16 = vld [vmem:[%s6198_s1 + $0xa10] sm:$0xff] }
 0x148   : > { %4063 = vmatprep.subr.mxu0 %v4383_v2  ;;  %4096 = vmatprep.subr.mxu1 %v4383_v2 }
 0x149   : > { %4064 = vmatpush3.msra.mxu0 %v2892_v17  ;;  %4097 = vmatpush3.msra.mxu1 %v2909_v18  ;;  %v2936_v17 = vld [vmem:[%s6198_s1 + $0xa98] sm:$0xff] }
 0x14a   : > { %4065 = vmatprep.subr.mxu0 %v4383_v2  ;;  %4098 = vmatprep.subr.mxu1 %v4383_v2 }
 0x14b   : > { %4066 = vmatpush3.msra.mxu0 %v2891_v19  ;;  %4099 = vmatpush3.msra.mxu1 %v2908_v20  ;;  %v2916_v20 = vld [vmem:[%s6198_s1 + $0xa08] sm:$0xff] }
 0x14c   : > { %4067 = vmatprep.subr.mxu0 %v4383_v2  ;;  %4100 = vmatprep.subr.mxu1 %v4383_v2 }
 0x14d   : > { %4068 = vmatpush3.msra.mxu0 %v2890_v21  ;;  %4101 = vmatpush3.msra.mxu1 %v2907_v22  ;;  %v2935_v21 = vld [vmem:[%s6198_s1 + $0xa90] sm:$0xff]  ;;  %v2915_v22 = vld [vmem:[%s6198_s1 + $0xa00] sm:$0xff] }
 0x14e   : > { %4069 = vmatprep.subr.mxu0 %v4383_v2  ;;  %4102 = vmatprep.subr.mxu1 %v4383_v2 }
 0x14f   : > { %4070 = vmatpush3.msra.mxu0 %v2889_v23  ;;  %4103 = vmatpush3.msra.mxu1 %v2906_v24  ;;  %v2934_v23 = vld [vmem:[%s6198_s1 + $0xa88] sm:$0xff]  ;;  %v5951_v24 = vld [vmem:[%s4566_s24 + $0x10] sm:$0x3f] }
 0x150   : > { %4071 = vmatprep.subr.mxu0 %v4383_v2  ;;  %4104 = vmatprep.subr.mxu1 %v4383_v2 }
 0x151   : > { %4072 = vmatpush3.msra.mxu0 %v2888_v25  ;;  %4105 = vmatpush3.msra.mxu1 %v2905_v26  ;;  %v2933_v25 = vld [vmem:[%s6198_s1 + $0xa80] sm:$0xff]  ;;  %v2964_v26 = vld [vmem:[%s6198_s1 + $0xb78] sm:$0xff] }
 0x152   : > { %4073 = vmatprep.subr.mxu0 %v4383_v2  ;;  %4106 = vmatprep.subr.mxu1 %v4383_v2 }
 0x153   : > { %4074 = vmatpush3.msra.mxu0 %v2887_v27  ;;  %4107 = vmatpush3.msra.mxu1 %v2904_v28  ;;  %v5965_v27 = vld [vmem:[%s4566_s24 + $0x40] sm:$0x3f]  ;;  %v2963_v28 = vld [vmem:[%s6198_s1 + $0xb70] sm:$0xff] }
 0x154   : > { %4075 = vmatprep.subr.mxu0 %v4383_v2  ;;  %4108 = vmatprep.subr.mxu1 %v4383_v2  ;;  %v822_v33 = vpop.f32.mrf.mxu0 }
 0x155   : > { %4076 = vmatpush3.msra.mxu0 %v2886_v29  ;;  %4109 = vmatpush3.msra.mxu1 %v2903_v30  ;;  %v826_v35 = vadd.f32 %v822_v33, %v5655_v63  ;;  %v2942_v63 = vld [vmem:[%s6198_s1 + $0xac8] sm:$0xff]  ;;  %v2980_v29 = vld [vmem:[%s6198_s1 + $0xbf8] sm:$0xff] }
 0x156   : > { %4077 = vmatprep.subr.mxu0 %v4383_v2  ;;  %4110 = vmatprep.subr.mxu1 %v4383_v2  ;;  %v3669_v38 = vpop.f32.mrf.mxu0  ;;  %v2962_v30 = vld [vmem:[%s6198_s1 + $0xb68] sm:$0xff] }
 0x157   : > { %4078 = vmatpush3.msra.mxu0 %v2885_v13  ;;  %4111 = vmatpush3.msra.mxu1 %v2902_v31  ;;  %v913_v34 = vpop.f32.mrf.mxu1  ;;  %v2979_v13 = vld [vmem:[%s6198_s1 + $0xbf0] sm:$0xff]  ;;  %v2961_v31 = vld [vmem:[%s6198_s1 + $0xb60] sm:$0xff]  ;;  %v2978_v33 = vld [vmem:[%s6198_s1 + $0xbe8] sm:$0xff] }
 0x158   : > { %4079 = vmatprep.subr.mxu0 %v4383_v2  ;;  %4112 = vmatprep.subr.mxu1 %v4383_v2  ;;  %v5795_v42 = vadd.f32 %v913_v34, %v826_v35  ;;  %v2960_v35 = vld [vmem:[%s6198_s1 + $0xb58] sm:$0xff]  ;;  %v2958_v34 = vld [vmem:[%s6198_s1 + $0xb48] sm:$0xff] }
 0x159   : > { %4080 = vmatpush3.msra.mxu0 %v2884_v36  ;;  %4113 = vmatpush3.msra.mxu1 %v2901_v37  ;;  %v3704_v43 = vpop.f32.mrf.mxu1  ;;  %v2977_v36 = vld [vmem:[%s6198_s1 + $0xbe0] sm:$0xff]  ;;  %v2959_v37 = vld [vmem:[%s6198_s1 + $0xb50] sm:$0xff]  ;;  %v2976_v38 = vld [vmem:[%s6198_s1 + $0xbd8] sm:$0xff] }
 0x15a   : > { %4081 = vmatprep.subr.mxu0 %v4383_v2  ;;  %4114 = vmatprep.subr.mxu1 %v4383_v2  ;;  %v2956_v43 = vld [vmem:[%s6198_s1 + $0xb38] sm:$0xff] }
 0x15b   : > { %4082 = vmatpush3.msra.mxu0 %v2883_v39  ;;  %4115 = vmatpush3.msra.mxu1 %v2900_v41  ;;  %v2975_v39 = vld [vmem:[%s6198_s1 + $0xbd0] sm:$0xff]  ;;  %v2957_v41 = vld [vmem:[%s6198_s1 + $0xb40] sm:$0xff] }
 0x15c   : > { %4083 = vmatprep.subr.mxu0 %v4383_v2  ;;  %4116 = vmatprep.subr.mxu1 %v4383_v2 }
 0x15d   : > { %4084 = vmatpush3.msra.mxu0 %v2882_v44  ;;  %4117 = vmatpush3.msra.mxu1 %v2899_v45  ;;  %v2973_v44 = vld [vmem:[%s6198_s1 + $0xbc0] sm:$0xff]  ;;  %v2955_v45 = vld [vmem:[%s6198_s1 + $0xb30] sm:$0xff] }
 0x15e   : > { %4085 = vmatprep.subr.mxu0 %v4383_v2  ;;  %4118 = vmatprep.subr.mxu1 %v4383_v2 }
 0x15f   : > { %4086 = vmatpush3.msra.mxu0 %v2881_v40  ;;  %4087 = vmatprep.mubr.msk.f32.mxu0 %vm4384_vm0, %v4383_v2  ;;  %v2954_v40 = vld [vmem:[%s6198_s1 + $0xb28] sm:$0xff] }
 0x160   : > { %4119 = vmatpush3.msra.mxu1 %v2898_v47  ;;  %4088 = vmatmul.mubr.f32.vlgmr.msra.gmra.mxu0 %v1848_v46  ;;  %v2972_v46 = vld [vmem:[%s6198_s1 + $0xbb8] sm:$0xff]  ;;  %v2971_v47 = vld [vmem:[%s6198_s1 + $0xbb0] sm:$0xff] }
 0x161   : > { %4120 = vmatprep.subr.mxu1 %v4383_v2  ;;  %4125 = vmatprep.subr.mxu0 %v4383_v2 }
 0x162   : > { %4121 = vmatpush3.msra.mxu1 %v2897_v49  ;;  %4122 = vmatprep.mubr.msk.f32.mxu1 %vm4384_vm0, %v4383_v2  ;;  %v2970_v49 = vld [vmem:[%s6198_s1 + $0xba8] sm:$0xff] }
 0x163   : > { %4126 = vmatpush3.msra.mxu0 %v2930_v50  ;;  %4123 = vmatmul.mubr.f32.vlgmr.msra.gmra.mxu1 %v1938_v48  ;;  %v2953_v48 = vld [vmem:[%s6198_s1 + $0xb20] sm:$0xff] }
 0x164   : > { %4127 = vmatprep.subr.mxu0 %v4383_v2  ;;  %4160 = vmatprep.subr.mxu1 %v4383_v2 }
 0x165   : > { %4128 = vmatpush3.msra.mxu0 %v2929_v32  ;;  %4161 = vmatpush3.msra.mxu1 %v2948_v51  ;;  %v2952_v51 = vld [vmem:[%s6198_s1 + $0xb18] sm:$0xff] }
 0x166   : > { %4129 = vmatprep.subr.mxu0 %v4383_v2  ;;  %4162 = vmatprep.subr.mxu1 %v4383_v2 }
 0x167   : > { %4130 = vmatpush3.msra.mxu0 %v2928_v52  ;;  %4163 = vmatpush3.msra.mxu1 %v2947_v53  ;;  %v2969_v52 = vld [vmem:[%s6198_s1 + $0xba0] sm:$0xff] }
 0x168   : > { %4131 = vmatprep.subr.mxu0 %v4383_v2  ;;  %4164 = vmatprep.subr.mxu1 %v4383_v2 }
 0x169   : > { %4132 = vmatpush3.msra.mxu0 %v2927_v54  ;;  %4165 = vmatpush3.msra.mxu1 %v2946_v55  ;;  %v2951_v55 = vld [vmem:[%s6198_s1 + $0xb10] sm:$0xff] }
 0x16a   : > { %4133 = vmatprep.subr.mxu0 %v4383_v2  ;;  %4166 = vmatprep.subr.mxu1 %v4383_v2 }
 0x16b   : > { %4134 = vmatpush3.msra.mxu0 %v2926_v56  ;;  %4167 = vmatpush3.msra.mxu1 %v2945_v57  ;;  %v2968_v56 = vld [vmem:[%s6198_s1 + $0xb98] sm:$0xff] }
 0x16c   : > { %4135 = vmatprep.subr.mxu0 %v4383_v2  ;;  %4168 = vmatprep.subr.mxu1 %v4383_v2 }
 0x16d   : > { %4136 = vmatpush3.msra.mxu0 %v2925_v58  ;;  %4169 = vmatpush3.msra.mxu1 %v2944_v59  ;;  %v2950_v59 = vld [vmem:[%s6198_s1 + $0xb08] sm:$0xff] }
 0x16e   : > { %4137 = vmatprep.subr.mxu0 %v4383_v2  ;;  %4170 = vmatprep.subr.mxu1 %v4383_v2 }
 0x16f   : > { %4138 = vmatpush3.msra.mxu0 %v2924_v60  ;;  %4171 = vmatpush3.msra.mxu1 %v2943_v61  ;;  %v2967_v60 = vld [vmem:[%s6198_s1 + $0xb90] sm:$0xff]  ;;  %v2213_v61 = vrot.slane %v5951_v24, 1 }
 0x170   : > { %4139 = vmatprep.subr.mxu0 %v4383_v2  ;;  %4172 = vmatprep.subr.mxu1 %v4383_v2 }
 0x171   : > { %4140 = vmatpush3.msra.mxu0 %v2923_v62  ;;  %4173 = vmatpush3.msra.mxu1 %v2942_v63  ;;  %v2949_v62 = vld [vmem:[%s6198_s1 + $0xb00] sm:$0xff]  ;;  %v2966_v63 = vld [vmem:[%s6198_s1 + $0xb88] sm:$0xff] }
 0x172   : > { %4141 = vmatprep.subr.mxu0 %v4383_v2  ;;  %4174 = vmatprep.subr.mxu1 %v4383_v2 }
 0x173   : > { %4142 = vmatpush3.msra.mxu0 %v2922_v0  ;;  %4175 = vmatpush3.msra.mxu1 %v2941_v1  ;;  %v2304_v0 = vrot.slane %v5965_v27, 1  ;;  %v2965_v1 = vld [vmem:[%s6198_s1 + $0xb80] sm:$0xff] }
 0x174   : > { %4143 = vmatprep.subr.mxu0 %v4383_v2  ;;  %4176 = vmatprep.subr.mxu1 %v4383_v2 }
 0x175   : > { %4144 = vmatpush3.msra.mxu0 %v2921_v3  ;;  %4177 = vmatpush3.msra.mxu1 %v2940_v4  ;;  %v2996_v3 = vld [vmem:[%s6198_s1 + $0xc78] sm:$0xff]  ;;  %v2995_v4 = vld [vmem:[%s6198_s1 + $0xc70] sm:$0xff] }
 0x176   : > { %4145 = vmatprep.subr.mxu0 %v4383_v2  ;;  %4178 = vmatprep.subr.mxu1 %v4383_v2  ;;  %v1004_v9 = vpop.f32.mrf.mxu0 }
 0x177   : > { %4146 = vmatpush3.msra.mxu0 %v2920_v5  ;;  %4179 = vmatpush3.msra.mxu1 %v2939_v6  ;;  %v1008_v10 = vadd.f32 %v1004_v9, %v5795_v42  ;;  %v2974_v42 = vld [vmem:[%s6198_s1 + $0xbc8] sm:$0xff]  ;;  %v2993_v6 = vld [vmem:[%s6198_s1 + $0xc60] sm:$0xff] }
 0x178   : > { %4147 = vmatprep.subr.mxu0 %v4383_v2  ;;  %4180 = vmatprep.subr.mxu1 %v4383_v2  ;;  %v3739_v14 = vpop.f32.mrf.mxu0  ;;  %v2994_v5 = vld [vmem:[%s6198_s1 + $0xc68] sm:$0xff] }
 0x179   : > { %4148 = vmatpush3.msra.mxu0 %v2919_v7  ;;  %4181 = vmatpush3.msra.mxu1 %v2938_v8  ;;  %v1094_v15 = vpop.f32.mrf.mxu1  ;;  %v2992_v7 = vld [vmem:[%s6198_s1 + $0xc58] sm:$0xff]  ;;  %v2991_v8 = vld [vmem:[%s6198_s1 + $0xc50] sm:$0xff]  ;;  %v2990_v9 = vld [vmem:[%s6198_s1 + $0xc48] sm:$0xff] }
 0x17a   : > { %4149 = vmatprep.subr.mxu0 %v4383_v2  ;;  %4182 = vmatprep.subr.mxu1 %v4383_v2  ;;  %v5932_v18 = vadd.f32 %v1094_v15, %v1008_v10  ;;  %v2989_v10 = vld [vmem:[%s6198_s1 + $0xc40] sm:$0xff]  ;;  %v2986_v14 = vld [vmem:[%s6198_s1 + $0xc28] sm:$0xff] }
 0x17b   : > { %4150 = vmatpush3.msra.mxu0 %v2918_v11  ;;  %4183 = vmatpush3.msra.mxu1 %v2937_v12  ;;  %v3774_v19 = vpop.f32.mrf.mxu1  ;;  %v2988_v11 = vld [vmem:[%s6198_s1 + $0xc38] sm:$0xff]  ;;  %v2987_v12 = vld [vmem:[%s6198_s1 + $0xc30] sm:$0xff]  ;;  %v2985_v15 = vld [vmem:[%s6198_s1 + $0xc20] sm:$0xff] }
 0x17c   : > { %4151 = vmatprep.subr.mxu0 %v4383_v2  ;;  %4184 = vmatprep.subr.mxu1 %v4383_v2 }
 0x17d   : > { %4152 = vmatpush3.msra.mxu0 %v2917_v16  ;;  %4185 = vmatpush3.msra.mxu1 %v2936_v17 }
 0x17e   : > { %4153 = vmatprep.subr.mxu0 %v4383_v2  ;;  %4186 = vmatprep.subr.mxu1 %v4383_v2 }
 0x17f   : > { %4154 = vmatpush3.msra.mxu0 %v2916_v20  ;;  %4187 = vmatpush3.msra.mxu1 %v2935_v21  ;;  %v2983_v21 = vld [vmem:[%s6198_s1 + $0xc10] sm:$0xff] }
 0x180   : > { %4155 = vmatprep.subr.mxu0 %v4383_v2  ;;  %4188 = vmatprep.subr.mxu1 %v4383_v2 }
 0x181   : > { %4156 = vmatpush3.msra.mxu0 %v2915_v22  ;;  %4157 = vmatprep.mubr.msk.f32.mxu0 %vm4384_vm0, %v4383_v2 }
 0x182   : > { %4189 = vmatpush3.msra.mxu1 %v2934_v23  ;;  %4158 = vmatmul.mubr.f32.vlgmr.msra.gmra.mxu0 %v5951_v24 }
 0x183   : > { %4190 = vmatprep.subr.mxu1 %v4383_v2  ;;  %4195 = vmatprep.subr.mxu0 %v4383_v2 }
 0x184   : > { %4191 = vmatpush3.msra.mxu1 %v2933_v25  ;;  %4192 = vmatprep.mubr.msk.f32.mxu1 %vm4384_vm0, %v4383_v2  ;;  %v2982_v25 = vld [vmem:[%s6198_s1 + $0xc08] sm:$0xff] }
 0x185   : > { %4196 = vmatpush3.msra.mxu0 %v2964_v26  ;;  %4193 = vmatmul.mubr.f32.vlgmr.msra.gmra.mxu1 %v5965_v27  ;;  %v2394_v26 = vrot.slane %v5951_v24, 2  ;;  %v2981_v27 = vld [vmem:[%s6198_s1 + $0xc00] sm:$0xff] }
 0x186   : > { %4197 = vmatprep.subr.mxu0 %v4383_v2  ;;  %4230 = vmatprep.subr.mxu1 %v4383_v2 }
 0x187   : > { %4198 = vmatpush3.msra.mxu0 %v2963_v28  ;;  %4231 = vmatpush3.msra.mxu1 %v2980_v29 }
 0x188   : > { %4199 = vmatprep.subr.mxu0 %v4383_v2  ;;  %4232 = vmatprep.subr.mxu1 %v4383_v2 }
 0x189   : > { %4200 = vmatpush3.msra.mxu0 %v2962_v30  ;;  %4233 = vmatpush3.msra.mxu1 %v2979_v13 }
 0x18a   : > { %4201 = vmatprep.subr.mxu0 %v4383_v2  ;;  %4234 = vmatprep.subr.mxu1 %v4383_v2 }
 0x18b   : > { %4202 = vmatpush3.msra.mxu0 %v2961_v31  ;;  %4235 = vmatpush3.msra.mxu1 %v2978_v33 }
 0x18c   : > { %4203 = vmatprep.subr.mxu0 %v4383_v2  ;;  %4236 = vmatprep.subr.mxu1 %v4383_v2 }
 0x18d   : > { %4204 = vmatpush3.msra.mxu0 %v2960_v35  ;;  %4237 = vmatpush3.msra.mxu1 %v2977_v36 }
 0x18e   : > { %4205 = vmatprep.subr.mxu0 %v4383_v2  ;;  %4238 = vmatprep.subr.mxu1 %v4383_v2 }
 0x18f   : > { %4206 = vmatpush3.msra.mxu0 %v2959_v37  ;;  %4239 = vmatpush3.msra.mxu1 %v2976_v38 }
 0x190   : > { %4207 = vmatprep.subr.mxu0 %v4383_v2  ;;  %4240 = vmatprep.subr.mxu1 %v4383_v2 }
 0x191   : > { %4208 = vmatpush3.msra.mxu0 %v2958_v34  ;;  %4241 = vmatpush3.msra.mxu1 %v2975_v39 }
 0x192   : > { %4209 = vmatprep.subr.mxu0 %v4383_v2  ;;  %4242 = vmatprep.subr.mxu1 %v4383_v2 }
 0x193   : > { %4210 = vmatpush3.msra.mxu0 %v2957_v41  ;;  %4243 = vmatpush3.msra.mxu1 %v2974_v42 }
 0x194   : > { %4211 = vmatprep.subr.mxu0 %v4383_v2  ;;  %4244 = vmatprep.subr.mxu1 %v4383_v2 }
 0x195   : > { %4212 = vmatpush3.msra.mxu0 %v2956_v43  ;;  %4245 = vmatpush3.msra.mxu1 %v2973_v44 }
 0x196   : > { %4213 = vmatprep.subr.mxu0 %v4383_v2  ;;  %4246 = vmatprep.subr.mxu1 %v4383_v2 }
 0x197   : > { %4214 = vmatpush3.msra.mxu0 %v2955_v45  ;;  %4247 = vmatpush3.msra.mxu1 %v2972_v46 }
 0x198   : > { %4215 = vmatprep.subr.mxu0 %v4383_v2  ;;  %4248 = vmatprep.subr.mxu1 %v4383_v2  ;;  %v1186_v50 = vpop.f32.mrf.mxu0 }
 0x199   : > { %4216 = vmatpush3.msra.mxu0 %v2954_v40  ;;  %4249 = vmatpush3.msra.mxu1 %v2971_v47  ;;  %v1190_v32 = vadd.f32 %v1186_v50, %v5932_v18  ;;  %v2984_v18 = vld [vmem:[%s6198_s1 + $0xc18] sm:$0xff] }
 0x19a   : > { %4217 = vmatprep.subr.mxu0 %v4383_v2  ;;  %4250 = vmatprep.subr.mxu1 %v4383_v2  ;;  %v3809_v53 = vpop.f32.mrf.mxu0 }
 0x19b   : > { %4218 = vmatpush3.msra.mxu0 %v2953_v48  ;;  %4251 = vmatpush3.msra.mxu1 %v2970_v49  ;;  %v1278_v54 = vpop.f32.mrf.mxu1 }
 0x19c   : > { %4219 = vmatprep.subr.mxu0 %v4383_v2  ;;  %4252 = vmatprep.subr.mxu1 %v4383_v2  ;;  %v6075_v57 = vadd.f32 %v1278_v54, %v1190_v32 }
 0x19d   : > { %4220 = vmatpush3.msra.mxu0 %v2952_v51  ;;  %4253 = vmatpush3.msra.mxu1 %v2969_v52  ;;  %v3844_v58 = vpop.f32.mrf.mxu1 }
 0x19e   : > { %4221 = vmatprep.subr.mxu0 %v4383_v2  ;;  %4254 = vmatprep.subr.mxu1 %v4383_v2 }
 0x19f   : > { %4222 = vmatpush3.msra.mxu0 %v2951_v55  ;;  %4255 = vmatpush3.msra.mxu1 %v2968_v56  ;;  %v2997_v56 = vld [vmem:[%s6199_s2] ss:$0 sm:$0xff] }
 0x1a0   : > { %4223 = vmatprep.subr.mxu0 %v4383_v2  ;;  %4256 = vmatprep.subr.mxu1 %v4383_v2 }
 0x1a1   : > { %4224 = vmatpush3.msra.mxu0 %v2950_v59  ;;  %4257 = vmatpush3.msra.mxu1 %v2967_v60 }
 0x1a2   : > { %4225 = vmatprep.subr.mxu0 %v4383_v2  ;;  %4258 = vmatprep.subr.mxu1 %v4383_v2 }
 0x1a3   : > { %4226 = vmatpush3.msra.mxu0 %v2949_v62  ;;  %4227 = vmatprep.mubr.msk.f32.mxu0 %vm4384_vm0, %v4383_v2 }
 0x1a4   : > { %4259 = vmatpush3.msra.mxu1 %v2966_v63  ;;  %4228 = vmatmul.mubr.f32.vlgmr.msra.gmra.mxu0 %v2213_v61 }
 0x1a5   : > { %4260 = vmatprep.subr.mxu1 %v4383_v2  ;;  %4265 = vmatprep.subr.mxu0 %v4383_v2 }
 0x1a6   : > { %4261 = vmatpush3.msra.mxu1 %v2965_v1  ;;  %4262 = vmatprep.mubr.msk.f32.mxu1 %vm4384_vm0, %v4383_v2 }
 0x1a7   : > { %4266 = vmatpush3.msra.mxu0 %v2996_v3  ;;  %4263 = vmatmul.mubr.f32.vlgmr.msra.gmra.mxu1 %v2304_v0 }
 0x1a8   : > { %4267 = vmatprep.subr.mxu0 %v4383_v2  ;;  %4297 = vmatprep.mubr.msk.f32.mxu0 %vm4384_vm0, %v4383_v2 }
 0x1a9   : > { %4268 = vmatpush3.msra.mxu0 %v2995_v4 }
 0x1aa   : > { %4269 = vmatprep.subr.mxu0 %v4383_v2 }
 0x1ab   : > { %4270 = vmatpush3.msra.mxu0 %v2994_v5 }
 0x1ac   : > { %4271 = vmatprep.subr.mxu0 %v4383_v2 }
 0x1ad   : > { %4272 = vmatpush3.msra.mxu0 %v2993_v6 }
 0x1ae   : > { %4273 = vmatprep.subr.mxu0 %v4383_v2 }
 0x1af   : > { %4274 = vmatpush3.msra.mxu0 %v2992_v7 }
 0x1b0   : > { %4275 = vmatprep.subr.mxu0 %v4383_v2 }
 0x1b1   : > { %4276 = vmatpush3.msra.mxu0 %v2991_v8 }
 0x1b2   : > { %4277 = vmatprep.subr.mxu0 %v4383_v2 }
 0x1b3   : > { %4278 = vmatpush3.msra.mxu0 %v2990_v9 }
 0x1b4   : > { %4279 = vmatprep.subr.mxu0 %v4383_v2 }
 0x1b5   : > { %4280 = vmatpush3.msra.mxu0 %v2989_v10 }
 0x1b6   : > { %4281 = vmatprep.subr.mxu0 %v4383_v2 }
 0x1b7   : > { %4282 = vmatpush3.msra.mxu0 %v2988_v11 }
 0x1b8   : > { %4283 = vmatprep.subr.mxu0 %v4383_v2 }
 0x1b9   : > { %4284 = vmatpush3.msra.mxu0 %v2987_v12 }
 0x1ba   : > { %4285 = vmatprep.subr.mxu0 %v4383_v2  ;;  %v1369_v16 = vpop.f32.mrf.mxu0 }
 0x1bb   : > { %4286 = vmatpush3.msra.mxu0 %v2986_v14  ;;  %v1373_v17 = vadd.f32 %v1369_v16, %v6075_v57 }
 0x1bc   : > { %4287 = vmatprep.subr.mxu0 %v4383_v2  ;;  %v3879_v19 = vpop.f32.mrf.mxu0 }
 0x1bd   : > { %4288 = vmatpush3.msra.mxu0 %v2985_v15  ;;  %v1460_v20 = vpop.f32.mrf.mxu1 }
 0x1be   : > { %4289 = vmatprep.subr.mxu0 %v4383_v2  ;;  %v1464_v22 = vadd.f32 %v1460_v20, %v1373_v17 }
 0x1bf   : > { %4290 = vmatpush3.msra.mxu0 %v2984_v18  ;;  %v3914_v23 = vpop.f32.mrf.mxu1 }
 0x1c0   : > { %4291 = vmatprep.subr.mxu0 %v4383_v2 }
 0x1c1   : > { %4292 = vmatpush3.msra.mxu0 %v2983_v21 }
 0x1c2   : > { %4293 = vmatprep.subr.mxu0 %v4383_v2 }
 0x1c3   : > { %4294 = vmatpush3.msra.mxu0 %v2982_v25 }
 0x1c4   : > { %4295 = vmatprep.subr.mxu0 %v4383_v2 }
 0x1c5   : > { %4296 = vmatpush3.msra.mxu0 %v2981_v27 }
 0x1c6   : > { %4298 = vmatmul.mubr.f32.vlgmr.msra.gmra.mxu0 %v2394_v26 }
 0x1dc   : > { %v1550_v28 = vpop.f32.mrf.mxu0 }
 0x1dd   : > { %v1554_v29 = vadd.f32 %v1550_v28, %v1464_v22 }
 0x1de   : > { %v3949_v30 = vpop.f32.mrf.mxu0 }
 0x1df   : > { %v1642_v13 = vpop.f32.mrf.mxu1 }
 0x1e0   : > { %v1646_v31 = vadd.f32 %v1642_v13, %v1554_v29 }
 0x1e1   : > { %v3984_v33 = vpop.f32.mrf.mxu1 }
 0x1fe   : > { %v1734_v35 = vpop.f32.mrf.mxu0 }
 0x1ff   : > { %v1738_v36 = vadd.f32 %v1734_v35, %v1646_v31 }
 0x200   : > { %v4019_v24 = vpop.f32.mrf.mxu0 }
 0x201   : > { %v1825_v37 = vpop.f32.mrf.mxu1 }
 0x202   : > { %v1829_v38 = vadd.f32 %v1825_v37, %v1738_v36 }
 0x203   : > { %v4054_v34 = vpop.f32.mrf.mxu1 }
 0x220   : > { %v1916_v39 = vpop.f32.mrf.mxu0 }
 0x221   : > { %v1920_v41 = vadd.f32 %v1916_v39, %v1829_v38 }
 0x222   : > { %v4089_v42 = vpop.f32.mrf.mxu0 }
 0x223   : > { %v2006_v2 = vpop.f32.mrf.mxu1 }
 0x224   : > { %v2010_v43 = vadd.f32 %v2006_v2, %v1920_v41 }
 0x225   : > { %v4124_v44 = vpop.f32.mrf.mxu1 }
 0x242   : > { %v2098_v45 = vpop.f32.mrf.mxu0 }
 0x243   : > { %v2102_v51 = vadd.f32 %v2098_v45, %v2010_v43 }
 0x244   : > { %v4159_v46 = vpop.f32.mrf.mxu0 }
 0x245   : > { %v2190_v40 = vpop.f32.mrf.mxu1 }
 0x246   : > { %v2194_v52 = vadd.f32 %v2190_v40, %v2102_v51 }
 0x247   : > { %v4194_v47 = vpop.f32.mrf.mxu1 }
 0x264   : > { %v2281_v48 = vpop.f32.mrf.mxu0 }
 0x265   : > { %v2285_v53 = vadd.f32 %v2281_v48, %v2194_v52 }
 0x266   : > { %v4229_v49 = vpop.f32.mrf.mxu0 }
 0x267   : > { %v2372_v50 = vpop.f32.mrf.mxu1 }
 0x268   : > { %v2376_v54 = vadd.f32 %v2372_v50, %v2285_v53 }
 0x269   : > { %v4264_v32 = vpop.f32.mrf.mxu1 }
 0x286   : > { %v2462_v55 = vpop.f32.mrf.mxu0 }
 0x287   : > { %v2466_v57 = vadd.f32 %v2462_v55, %v2376_v54 }
 0x288   : > { %v4299_v58 = vpop.f32.mrf.mxu0 }
 0x289   : > { %v2474_v59 = vadd.f32 %v2997_v56, %v2466_v57 }
 0x28b   : > { %v2475_v60 = vmax.f32 %v2474_v59, 0.0 }
 0x28d   : > { %2476 = vst [vmem:[%s190_s26] sm:$0xf] %v2475_v60 }
 0x28e PF: > { %s13_s16 = sadd.s32 1, %s4381_s16   ;;  %s6201_s12 = smov %s4373_s14 }
 0x28f   : > { %p10_p7 = scmp.ge.s32.totalorder %s13_s16, 10   ;;  %s6202_s13 = smov %s4377_s15 }
 0x290   : > { %s6203_s14 = smov %s6206_s17  ;;  %s6204_s15 = smov %s6210_s18 }
 0x291   :  { %12 = sbr.rel (!%p10_p7) target bundleno = 3 (0x3), region = 96 }

// kernel: forward.7
= control target key start
LH: loop header
LB: loop body
LE: loop exit
PB: predicated region body
PF: predicated region fallthrough
CT: control target
= control target key end

     0   :  { %s4406_s12 = smov 0   ;;  %s4408_s13 = smov 0   ;;  %s6198_s0 = inlined_call_operand.vmem [shape: f32[2,16,4,128], index: 0, kind: input, shape index: {}]   ;;  %s6199_s1 = inlined_call_operand.vmem [shape: f32[25,128,128], index: 1, kind: input, shape index: {}]   ;;  %s6200_s2 = inlined_call_operand.vmem [shape: f32[1,128], index: 2, kind: input, shape index: {}]   ;;  %s6201_s3 = inlined_call_operand.vmem [shape: f32[2,2,2,128], index: 3, kind: output, shape index: {}]  }
   0x1   :  { %s4410_s14 = smov 0   ;;  %s4412_s15 = smov 0  }
   0x2   :  { %s4414_s16 = smov 0  }
   0x3 LB: > { %s22_s17 = sadd.s32 1, %s4374_s14  ;;  %s25_s18 = sadd.s32 1, %s4378_s15  ;;  %s4382_s16 = sphi %s4414_s16, %s13_s16   ;;  %s4378_s15 = sphi %s4412_s15, %s6205_s15   ;;  %s4374_s14 = sphi %s4410_s14, %s6204_s14   ;;  %s4370_s13 = sphi %s4408_s13, %s6203_s13   ;;  %s4366_s12 = sphi %s4406_s12, %s6202_s12  }
   0x4   : > { %p23_p0 = scmp.ge.s32.totalorder %s22_s17, 2  ;;  %p2590_p1 = scmp.ge.s32.totalorder %s4382_s16, 1 }
   0x5   : > { %p151_p2 = scmp.lt.s32.totalorder %s4382_s16, 5 }
   0x6   : > { %s6207_s17 = smov (%p23_p0, %s22_s17), 0  ;;  %s6209_s18 = smov (!%p23_p0, %s25_s18), %s4378_s15 }
   0x7   : > { %p152_p3 = pnand %p2590_p1, %p151_p2  ;;  %p27_p4 = scmp.ge.s32.totalorder %s6209_s18, 2 }
   0x8   : > { %p178_p5 = scmp.lt.s32.totalorder (!%p152_p3), %s4370_s13, 1  ;;  %s2595_s8 = sshll.u32 (!%p152_p3), %s4366_s12, 2 }
   0x9   : > { %s6211_s18 = smov (%p27_p4, %s6209_s18), 0  ;;  %155 = sbr.rel (%p152_p3) target bundleno = 654 (0x28e), region = 32 }
   0xa   : > { %p185_p6 = scmp.lt.s32.totalorder (!%p152_p3), %s4366_s12, 1 }
   0xe   : > { %v2613_v0 = vld [vmem:[%s6199_s1 + $0xf8] sm:$0xff]  ;;  %v4384_v2 = vmov 0.0   ;;  %v2612_v3 = vld [vmem:[%s6199_s1 + $0xf0] sm:$0xff]  ;;  %v2611_v5 = vld [vmem:[%s6199_s1 + $0xe8] sm:$0xff]  ;;  %s6213_s13 = smov (!%p178_p5, %s4370_s13), 1  ;;  %vm4385_vm0 = vmmov 0  }
   0xf   : > { %v209_v1 = vld [vmem:[%s6199_s1 + $0x78] sm:$0xff]  ;;  %3427 = vmatprep.subr.mxu0 %v4384_v2  ;;  %3462 = vmatprep.subr.mxu1 %v4384_v2  ;;  %v208_v4 = vld [vmem:[%s6199_s1 + $0x70] sm:$0xff]  ;;  %v207_v6 = vld [vmem:[%s6199_s1 + $0x68] sm:$0xff]  ;;  %s3001_s27 = sshll.u32 %s6213_s13, 6  ;;  %s6215_s12 = smov (!%p185_p6, %s4366_s12), 1 }
  0x10   : > { %3428 = vmatpush3.msra.mxu0 %v2613_v0  ;;  %3463 = vmatpush3.msra.mxu1 %v209_v1  ;;  %v2610_v7 = vld [vmem:[%s6199_s1 + $0xe0] sm:$0xff]  ;;  %v2609_v9 = vld [vmem:[%s6199_s1 + $0xd8] sm:$0xff]  ;;  %v2608_v11 = vld [vmem:[%s6199_s1 + $0xd0] sm:$0xff]  ;;  %s182_s7 = scalar_lea.vmem %s6198_s0, %s3001_s27  ;;  %s2593_s11 = sshll.u32 %s6213_s13, 1 }
  0x11   : > { %3429 = vmatprep.subr.mxu0 %v4384_v2  ;;  %3464 = vmatprep.subr.mxu1 %v4384_v2  ;;  %v206_v8 = vld [vmem:[%s6199_s1 + $0x60] sm:$0xff]  ;;  %v205_v10 = vld [vmem:[%s6199_s1 + $0x58] sm:$0xff]  ;;  %v204_v12 = vld [vmem:[%s6199_s1 + $0x50] sm:$0xff]  ;;  %s4567_s24 = scalar_lea.vmem %s182_s7, %s2595_s8  ;;  %s188_s19 = sadd.s32 %s2593_s11, %s6215_s12 }
  0x12   : > { %3430 = vmatpush3.msra.mxu0 %v2612_v3  ;;  %3465 = vmatpush3.msra.mxu1 %v208_v4  ;;  %v2607_v13 = vld [vmem:[%s6199_s1 + $0xc8] sm:$0xff]  ;;  %v2606_v15 = vld [vmem:[%s6199_s1 + $0xc0] sm:$0xff]  ;;  %v2605_v17 = vld [vmem:[%s6199_s1 + $0xb8] sm:$0xff]  ;;  %s2594_s22 = sshll.u32 %s188_s19, 1 }
  0x13   : > { %3431 = vmatprep.subr.mxu0 %v4384_v2  ;;  %3466 = vmatprep.subr.mxu1 %v4384_v2  ;;  %v203_v14 = vld [vmem:[%s6199_s1 + $0x48] sm:$0xff]  ;;  %v202_v16 = vld [vmem:[%s6199_s1 + $0x40] sm:$0xff]  ;;  %v201_v18 = vld [vmem:[%s6199_s1 + $0x38] sm:$0xff]  ;;  %s190_s26 = scalar_lea.vmem %s6201_s3, %s2594_s22 }
  0x14   : > { %3432 = vmatpush3.msra.mxu0 %v2611_v5  ;;  %3467 = vmatpush3.msra.mxu1 %v207_v6  ;;  %v2604_v19 = vld [vmem:[%s6199_s1 + $0xb0] sm:$0xff]  ;;  %v2603_v21 = vld [vmem:[%s6199_s1 + $0xa8] sm:$0xff]  ;;  %v2602_v23 = vld [vmem:[%s6199_s1 + $0xa0] sm:$0xff] }
  0x15   : > { %3433 = vmatprep.subr.mxu0 %v4384_v2  ;;  %3468 = vmatprep.subr.mxu1 %v4384_v2  ;;  %v200_v20 = vld [vmem:[%s6199_s1 + $0x30] sm:$0xff]  ;;  %v199_v22 = vld [vmem:[%s6199_s1 + $0x28] sm:$0xff]  ;;  %v198_v24 = vld [vmem:[%s6199_s1 + $0x20] sm:$0xff] }
  0x16   : > { %3434 = vmatpush3.msra.mxu0 %v2610_v7  ;;  %3469 = vmatpush3.msra.mxu1 %v206_v8  ;;  %v2601_v25 = vld [vmem:[%s6199_s1 + $0x98] sm:$0xff]  ;;  %v2600_v27 = vld [vmem:[%s6199_s1 + $0x90] sm:$0xff]  ;;  %v2599_v29 = vld [vmem:[%s6199_s1 + $0x88] sm:$0xff] }
  0x17   : > { %3435 = vmatprep.subr.mxu0 %v4384_v2  ;;  %3470 = vmatprep.subr.mxu1 %v4384_v2  ;;  %v197_v26 = vld [vmem:[%s6199_s1 + $0x18] sm:$0xff]  ;;  %v196_v28 = vld [vmem:[%s6199_s1 + $0x10] sm:$0xff]  ;;  %v195_v30 = vld [vmem:[%s6199_s1 + $0x8] sm:$0xff] }
  0x18   : > { %3436 = vmatpush3.msra.mxu0 %v2609_v9  ;;  %3471 = vmatpush3.msra.mxu1 %v205_v10  ;;  %v2598_v31 = vld [vmem:[%s6199_s1 + $0x80] sm:$0xff]  ;;  %v4575_v32 = vld [vmem:[%s4567_s24 + $0x10] sm:$0xf]  ;;  %v2629_v35 = vld [vmem:[%s6199_s1 + $0x178] sm:$0xff] }
  0x19   : > { %3437 = vmatprep.subr.mxu0 %v4384_v2  ;;  %3472 = vmatprep.subr.mxu1 %v4384_v2  ;;  %v194_v33 = vld [vmem:[%s6199_s1] sm:$0xff]  ;;  %v2628_v36 = vld [vmem:[%s6199_s1 + $0x170] sm:$0xff]  ;;  %v2645_v37 = vld [vmem:[%s6199_s1 + $0x1f8] sm:$0xff]  ;;  %v480_v4 = vrot.slane %v4575_v32, 1 }
  0x1a   : > { %3438 = vmatpush3.msra.mxu0 %v2608_v11  ;;  %3473 = vmatpush3.msra.mxu1 %v204_v12  ;;  %v4585_v34 = vld [vmem:[%s4567_s24] sm:$0xf]  ;;  %v2627_v38 = vld [vmem:[%s6199_s1 + $0x168] sm:$0xff]  ;;  %v2644_v39 = vld [vmem:[%s6199_s1 + $0x1f0] sm:$0xff] }
  0x1b   : > { %3439 = vmatprep.subr.mxu0 %v4384_v2  ;;  %3474 = vmatprep.subr.mxu1 %v4384_v2  ;;  %v2626_v40 = vld [vmem:[%s6199_s1 + $0x160] sm:$0xff]  ;;  %v2643_v41 = vld [vmem:[%s6199_s1 + $0x1e8] sm:$0xff]  ;;  %v2625_v42 = vld [vmem:[%s6199_s1 + $0x158] sm:$0xff]  ;;  %v389_v0 = vrot.slane %v4585_v34, 1 }
  0x1c   : > { %3440 = vmatpush3.msra.mxu0 %v2607_v13  ;;  %3475 = vmatpush3.msra.mxu1 %v203_v14  ;;  %v2642_v43 = vld [vmem:[%s6199_s1 + $0x1e0] sm:$0xff]  ;;  %v2624_v44 = vld [vmem:[%s6199_s1 + $0x150] sm:$0xff]  ;;  %v2641_v45 = vld [vmem:[%s6199_s1 + $0x1d8] sm:$0xff] }
  0x1d   : > { %3441 = vmatprep.subr.mxu0 %v4384_v2  ;;  %3476 = vmatprep.subr.mxu1 %v4384_v2  ;;  %v2623_v46 = vld [vmem:[%s6199_s1 + $0x148] sm:$0xff]  ;;  %v2640_v47 = vld [vmem:[%s6199_s1 + $0x1d0] sm:$0xff]  ;;  %v2622_v48 = vld [vmem:[%s6199_s1 + $0x140] sm:$0xff] }
  0x1e   : > { %3442 = vmatpush3.msra.mxu0 %v2606_v15  ;;  %3477 = vmatpush3.msra.mxu1 %v202_v16  ;;  %v2639_v49 = vld [vmem:[%s6199_s1 + $0x1c8] sm:$0xff]  ;;  %v2621_v50 = vld [vmem:[%s6199_s1 + $0x138] sm:$0xff]  ;;  %v2638_v51 = vld [vmem:[%s6199_s1 + $0x1c0] sm:$0xff] }
  0x1f   : > { %3443 = vmatprep.subr.mxu0 %v4384_v2  ;;  %3478 = vmatprep.subr.mxu1 %v4384_v2  ;;  %v2620_v52 = vld [vmem:[%s6199_s1 + $0x130] sm:$0xff]  ;;  %v2637_v53 = vld [vmem:[%s6199_s1 + $0x1b8] sm:$0xff]  ;;  %v2619_v54 = vld [vmem:[%s6199_s1 + $0x128] sm:$0xff] }
  0x20   : > { %3444 = vmatpush3.msra.mxu0 %v2605_v17  ;;  %3479 = vmatpush3.msra.mxu1 %v201_v18  ;;  %v2636_v55 = vld [vmem:[%s6199_s1 + $0x1b0] sm:$0xff]  ;;  %v2618_v56 = vld [vmem:[%s6199_s1 + $0x120] sm:$0xff]  ;;  %v2635_v57 = vld [vmem:[%s6199_s1 + $0x1a8] sm:$0xff] }
  0x21   : > { %3445 = vmatprep.subr.mxu0 %v4384_v2  ;;  %3480 = vmatprep.subr.mxu1 %v4384_v2  ;;  %v2617_v58 = vld [vmem:[%s6199_s1 + $0x118] sm:$0xff]  ;;  %v2634_v59 = vld [vmem:[%s6199_s1 + $0x1a0] sm:$0xff]  ;;  %v2616_v60 = vld [vmem:[%s6199_s1 + $0x110] sm:$0xff] }
  0x22   : > { %3446 = vmatpush3.msra.mxu0 %v2604_v19  ;;  %3481 = vmatpush3.msra.mxu1 %v200_v20  ;;  %v2633_v61 = vld [vmem:[%s6199_s1 + $0x198] sm:$0xff]  ;;  %v2615_v62 = vld [vmem:[%s6199_s1 + $0x108] sm:$0xff]  ;;  %v2632_v63 = vld [vmem:[%s6199_s1 + $0x190] sm:$0xff] }
  0x23   : > { %3447 = vmatprep.subr.mxu0 %v4384_v2  ;;  %3482 = vmatprep.subr.mxu1 %v4384_v2  ;;  %v2614_v1 = vld [vmem:[%s6199_s1 + $0x100] sm:$0xff]  ;;  %v2631_v3 = vld [vmem:[%s6199_s1 + $0x188] sm:$0xff]  ;;  %v2661_v6 = vld [vmem:[%s6199_s1 + $0x278] sm:$0xff] }
  0x24   : > { %3448 = vmatpush3.msra.mxu0 %v2603_v21  ;;  %3483 = vmatpush3.msra.mxu1 %v199_v22  ;;  %v2630_v5 = vld [vmem:[%s6199_s1 + $0x180] sm:$0xff]  ;;  %v2660_v7 = vld [vmem:[%s6199_s1 + $0x270] sm:$0xff]  ;;  %v2679_v8 = vld [vmem:[%s6199_s1 + $0x2f8] sm:$0xff] }
  0x25   : > { %3449 = vmatprep.subr.mxu0 %v4384_v2  ;;  %3484 = vmatprep.subr.mxu1 %v4384_v2  ;;  %v2659_v9 = vld [vmem:[%s6199_s1 + $0x268] sm:$0xff]  ;;  %v2678_v10 = vld [vmem:[%s6199_s1 + $0x2f0] sm:$0xff]  ;;  %v2658_v11 = vld [vmem:[%s6199_s1 + $0x260] sm:$0xff] }
  0x26   : > { %3450 = vmatpush3.msra.mxu0 %v2602_v23  ;;  %3485 = vmatpush3.msra.mxu1 %v198_v24  ;;  %v2677_v12 = vld [vmem:[%s6199_s1 + $0x2e8] sm:$0xff]  ;;  %v2657_v13 = vld [vmem:[%s6199_s1 + $0x258] sm:$0xff]  ;;  %v2676_v14 = vld [vmem:[%s6199_s1 + $0x2e0] sm:$0xff] }
  0x27   : > { %3451 = vmatprep.subr.mxu0 %v4384_v2  ;;  %3486 = vmatprep.subr.mxu1 %v4384_v2  ;;  %v2656_v15 = vld [vmem:[%s6199_s1 + $0x250] sm:$0xff]  ;;  %v2675_v16 = vld [vmem:[%s6199_s1 + $0x2d8] sm:$0xff]  ;;  %v2655_v17 = vld [vmem:[%s6199_s1 + $0x248] sm:$0xff] }
  0x28   : > { %3452 = vmatpush3.msra.mxu0 %v2601_v25  ;;  %3487 = vmatpush3.msra.mxu1 %v197_v26  ;;  %v2674_v18 = vld [vmem:[%s6199_s1 + $0x2d0] sm:$0xff]  ;;  %v2654_v19 = vld [vmem:[%s6199_s1 + $0x240] sm:$0xff]  ;;  %v2673_v20 = vld [vmem:[%s6199_s1 + $0x2c8] sm:$0xff] }
  0x29   : > { %3453 = vmatprep.subr.mxu0 %v4384_v2  ;;  %3488 = vmatprep.subr.mxu1 %v4384_v2  ;;  %v2653_v21 = vld [vmem:[%s6199_s1 + $0x238] sm:$0xff]  ;;  %v2672_v22 = vld [vmem:[%s6199_s1 + $0x2c0] sm:$0xff]  ;;  %v2652_v23 = vld [vmem:[%s6199_s1 + $0x230] sm:$0xff] }
  0x2a   : > { %3454 = vmatpush3.msra.mxu0 %v2600_v27  ;;  %3489 = vmatpush3.msra.mxu1 %v196_v28  ;;  %v2671_v24 = vld [vmem:[%s6199_s1 + $0x2b8] sm:$0xff]  ;;  %v2651_v25 = vld [vmem:[%s6199_s1 + $0x228] sm:$0xff]  ;;  %v2670_v26 = vld [vmem:[%s6199_s1 + $0x2b0] sm:$0xff] }
  0x2b   : > { %3455 = vmatprep.subr.mxu0 %v4384_v2  ;;  %3490 = vmatprep.subr.mxu1 %v4384_v2  ;;  %v2650_v27 = vld [vmem:[%s6199_s1 + $0x220] sm:$0xff]  ;;  %v2669_v28 = vld [vmem:[%s6199_s1 + $0x2a8] sm:$0xff] }
  0x2c   : > { %3456 = vmatpush3.msra.mxu0 %v2599_v29  ;;  %3491 = vmatpush3.msra.mxu1 %v195_v30  ;;  %v2649_v29 = vld [vmem:[%s6199_s1 + $0x218] sm:$0xff]  ;;  %v2668_v30 = vld [vmem:[%s6199_s1 + $0x2a0] sm:$0xff] }
  0x2d   : > { %3457 = vmatprep.subr.mxu0 %v4384_v2  ;;  %3459 = vmatprep.mubr.msk.f32.mxu0 %vm4385_vm0, %v4384_v2 }
  0x2e   : > { %3458 = vmatpush3.msra.mxu0 %v2598_v31  ;;  %3492 = vmatprep.subr.mxu1 %v4384_v2  ;;  %v2648_v31 = vld [vmem:[%s6199_s1 + $0x210] sm:$0xff] }
  0x2f   : > { %3460 = vmatmul.mubr.f32.vlgmr.msra.gmra.mxu0 %v4575_v32  ;;  %3493 = vmatpush3.msra.mxu1 %v194_v33  ;;  %v2667_v32 = vld [vmem:[%s6199_s1 + $0x298] sm:$0xff]  ;;  %v2647_v33 = vld [vmem:[%s6199_s1 + $0x208] sm:$0xff] }
  0x30   : > { %3494 = vmatprep.mubr.msk.f32.mxu1 %vm4385_vm0, %v4384_v2  ;;  %3497 = vmatprep.subr.mxu0 %v4384_v2 }
  0x31   : > { %3495 = vmatmul.mubr.f32.vlgmr.msra.gmra.mxu1 %v4585_v34  ;;  %3498 = vmatpush3.msra.mxu0 %v2629_v35  ;;  %v2666_v35 = vld [vmem:[%s6199_s1 + $0x290] sm:$0xff] }
  0x32   : > { %3499 = vmatprep.subr.mxu0 %v4384_v2  ;;  %3532 = vmatprep.subr.mxu1 %v4384_v2 }
  0x33   : > { %3500 = vmatpush3.msra.mxu0 %v2628_v36  ;;  %3533 = vmatpush3.msra.mxu1 %v2645_v37  ;;  %v570_v36 = vrot.slane %v4585_v34, 2  ;;  %v2646_v37 = vld [vmem:[%s6199_s1 + $0x200] sm:$0xff] }
  0x34   : > { %3501 = vmatprep.subr.mxu0 %v4384_v2  ;;  %3534 = vmatprep.subr.mxu1 %v4384_v2  ;;  %v2664_v34 = vld [vmem:[%s6199_s1 + $0x280] sm:$0xff] }
  0x35   : > { %3502 = vmatpush3.msra.mxu0 %v2627_v38  ;;  %3535 = vmatpush3.msra.mxu1 %v2644_v39  ;;  %v2665_v38 = vld [vmem:[%s6199_s1 + $0x288] sm:$0xff]  ;;  %v2697_v39 = vld [vmem:[%s6199_s1 + $0x378] sm:$0xff] }
  0x36   : > { %3503 = vmatprep.subr.mxu0 %v4384_v2  ;;  %3536 = vmatprep.subr.mxu1 %v4384_v2 }
  0x37   : > { %3504 = vmatpush3.msra.mxu0 %v2626_v40  ;;  %3537 = vmatpush3.msra.mxu1 %v2643_v41  ;;  %v4859_v40 = vld [vmem:[%s4567_s24 + $0x20] sm:$0xf]  ;;  %v2696_v41 = vld [vmem:[%s6199_s1 + $0x370] sm:$0xff] }
  0x38   : > { %3505 = vmatprep.subr.mxu0 %v4384_v2  ;;  %3538 = vmatprep.subr.mxu1 %v4384_v2 }
  0x39   : > { %3506 = vmatpush3.msra.mxu0 %v2625_v42  ;;  %3539 = vmatpush3.msra.mxu1 %v2642_v43  ;;  %v2713_v42 = vld [vmem:[%s6199_s1 + $0x3f8] sm:$0xff]  ;;  %v2695_v43 = vld [vmem:[%s6199_s1 + $0x368] sm:$0xff] }
  0x3a   : > { %3507 = vmatprep.subr.mxu0 %v4384_v2  ;;  %3540 = vmatprep.subr.mxu1 %v4384_v2 }
  0x3b   : > { %3508 = vmatpush3.msra.mxu0 %v2624_v44  ;;  %3541 = vmatpush3.msra.mxu1 %v2641_v45  ;;  %v2712_v44 = vld [vmem:[%s6199_s1 + $0x3f0] sm:$0xff]  ;;  %v2694_v45 = vld [vmem:[%s6199_s1 + $0x360] sm:$0xff] }
  0x3c   : > { %3509 = vmatprep.subr.mxu0 %v4384_v2  ;;  %3542 = vmatprep.subr.mxu1 %v4384_v2 }
  0x3d   : > { %3510 = vmatpush3.msra.mxu0 %v2623_v46  ;;  %3543 = vmatpush3.msra.mxu1 %v2640_v47  ;;  %v2711_v46 = vld [vmem:[%s6199_s1 + $0x3e8] sm:$0xff]  ;;  %v2693_v47 = vld [vmem:[%s6199_s1 + $0x358] sm:$0xff] }
  0x3e   : > { %3511 = vmatprep.subr.mxu0 %v4384_v2  ;;  %3544 = vmatprep.subr.mxu1 %v4384_v2 }
  0x3f   : > { %3512 = vmatpush3.msra.mxu0 %v2622_v48  ;;  %3545 = vmatpush3.msra.mxu1 %v2639_v49  ;;  %v2710_v48 = vld [vmem:[%s6199_s1 + $0x3e0] sm:$0xff]  ;;  %v2692_v49 = vld [vmem:[%s6199_s1 + $0x350] sm:$0xff] }
  0x40   : > { %3513 = vmatprep.subr.mxu0 %v4384_v2  ;;  %3546 = vmatprep.subr.mxu1 %v4384_v2 }
  0x41   : > { %3514 = vmatpush3.msra.mxu0 %v2621_v50  ;;  %3547 = vmatpush3.msra.mxu1 %v2638_v51  ;;  %v2709_v50 = vld [vmem:[%s6199_s1 + $0x3d8] sm:$0xff]  ;;  %v2691_v51 = vld [vmem:[%s6199_s1 + $0x348] sm:$0xff] }
  0x42   : > { %3515 = vmatprep.subr.mxu0 %v4384_v2  ;;  %3548 = vmatprep.subr.mxu1 %v4384_v2 }
  0x43   : > { %3516 = vmatpush3.msra.mxu0 %v2620_v52  ;;  %3549 = vmatpush3.msra.mxu1 %v2637_v53  ;;  %v2708_v52 = vld [vmem:[%s6199_s1 + $0x3d0] sm:$0xff]  ;;  %v2690_v53 = vld [vmem:[%s6199_s1 + $0x340] sm:$0xff] }
  0x44   : > { %3517 = vmatprep.subr.mxu0 %v4384_v2  ;;  %3550 = vmatprep.subr.mxu1 %v4384_v2 }
  0x45   : > { %3518 = vmatpush3.msra.mxu0 %v2619_v54  ;;  %3551 = vmatpush3.msra.mxu1 %v2636_v55  ;;  %v2707_v54 = vld [vmem:[%s6199_s1 + $0x3c8] sm:$0xff]  ;;  %v2689_v55 = vld [vmem:[%s6199_s1 + $0x338] sm:$0xff] }
  0x46   : > { %3519 = vmatprep.subr.mxu0 %v4384_v2  ;;  %3552 = vmatprep.subr.mxu1 %v4384_v2 }
  0x47   : > { %3520 = vmatpush3.msra.mxu0 %v2618_v56  ;;  %3553 = vmatpush3.msra.mxu1 %v2635_v57  ;;  %v2706_v56 = vld [vmem:[%s6199_s1 + $0x3c0] sm:$0xff]  ;;  %v2688_v57 = vld [vmem:[%s6199_s1 + $0x330] sm:$0xff] }
  0x48   : > { %3521 = vmatprep.subr.mxu0 %v4384_v2  ;;  %3554 = vmatprep.subr.mxu1 %v4384_v2 }
  0x49   : > { %3522 = vmatpush3.msra.mxu0 %v2617_v58  ;;  %3555 = vmatpush3.msra.mxu1 %v2634_v59  ;;  %v2705_v58 = vld [vmem:[%s6199_s1 + $0x3b8] sm:$0xff]  ;;  %v2687_v59 = vld [vmem:[%s6199_s1 + $0x328] sm:$0xff] }
  0x4a   : > { %3523 = vmatprep.subr.mxu0 %v4384_v2  ;;  %3556 = vmatprep.subr.mxu1 %v4384_v2 }
  0x4b   : > { %3524 = vmatpush3.msra.mxu0 %v2616_v60  ;;  %3557 = vmatpush3.msra.mxu1 %v2633_v61  ;;  %v2704_v60 = vld [vmem:[%s6199_s1 + $0x3b0] sm:$0xff]  ;;  %v2686_v61 = vld [vmem:[%s6199_s1 + $0x320] sm:$0xff] }
  0x4c   : > { %3525 = vmatprep.subr.mxu0 %v4384_v2  ;;  %3558 = vmatprep.subr.mxu1 %v4384_v2 }
  0x4d   : > { %3526 = vmatpush3.msra.mxu0 %v2615_v62  ;;  %3559 = vmatpush3.msra.mxu1 %v2632_v63  ;;  %v2703_v62 = vld [vmem:[%s6199_s1 + $0x3a8] sm:$0xff]  ;;  %v2685_v63 = vld [vmem:[%s6199_s1 + $0x318] sm:$0xff] }
  0x4e   : > { %3527 = vmatprep.subr.mxu0 %v4384_v2  ;;  %3560 = vmatprep.subr.mxu1 %v4384_v2 }
  0x4f   : > { %3528 = vmatpush3.msra.mxu0 %v2614_v1  ;;  %3529 = vmatprep.mubr.msk.f32.mxu0 %vm4385_vm0, %v4384_v2  ;;  %v2684_v1 = vld [vmem:[%s6199_s1 + $0x310] sm:$0xff] }
  0x50   : > { %3561 = vmatpush3.msra.mxu1 %v2631_v3  ;;  %3530 = vmatmul.mubr.f32.vlgmr.msra.gmra.mxu0 %v389_v0  ;;  %v2702_v0 = vld [vmem:[%s6199_s1 + $0x3a0] sm:$0xff]  ;;  %v2701_v3 = vld [vmem:[%s6199_s1 + $0x398] sm:$0xff] }
  0x51   : > { %3562 = vmatprep.subr.mxu1 %v4384_v2  ;;  %3567 = vmatprep.subr.mxu0 %v4384_v2 }
  0x52   : > { %3563 = vmatpush3.msra.mxu1 %v2630_v5  ;;  %3564 = vmatprep.mubr.msk.f32.mxu1 %vm4385_vm0, %v4384_v2  ;;  %v2700_v5 = vld [vmem:[%s6199_s1 + $0x390] sm:$0xff] }
  0x53   : > { %3568 = vmatpush3.msra.mxu0 %v2661_v6  ;;  %3565 = vmatmul.mubr.f32.vlgmr.msra.gmra.mxu1 %v480_v4  ;;  %v2683_v4 = vld [vmem:[%s6199_s1 + $0x308] sm:$0xff]  ;;  %v2682_v6 = vld [vmem:[%s6199_s1 + $0x300] sm:$0xff] }
  0x54   : > { %3569 = vmatprep.subr.mxu0 %v4384_v2  ;;  %3602 = vmatprep.subr.mxu1 %v4384_v2 }
  0x55   : > { %3570 = vmatpush3.msra.mxu0 %v2660_v7  ;;  %3603 = vmatpush3.msra.mxu1 %v2679_v8  ;;  %v2699_v7 = vld [vmem:[%s6199_s1 + $0x388] sm:$0xff]  ;;  %v4985_v8 = vld [vmem:[%s4567_s24 + $0x30] sm:$0xf] }
  0x56   : > { %3571 = vmatprep.subr.mxu0 %v4384_v2  ;;  %3604 = vmatprep.subr.mxu1 %v4384_v2 }
  0x57   : > { %3572 = vmatpush3.msra.mxu0 %v2659_v9  ;;  %3605 = vmatpush3.msra.mxu1 %v2678_v10  ;;  %v845_v9 = vrot.slane %v4859_v40, 1  ;;  %v2698_v10 = vld [vmem:[%s6199_s1 + $0x380] sm:$0xff] }
  0x58   : > { %3573 = vmatprep.subr.mxu0 %v4384_v2  ;;  %3606 = vmatprep.subr.mxu1 %v4384_v2 }
  0x59   : > { %3574 = vmatpush3.msra.mxu0 %v2658_v11  ;;  %3607 = vmatpush3.msra.mxu1 %v2677_v12  ;;  %v2729_v11 = vld [vmem:[%s6199_s1 + $0x478] sm:$0xff]  ;;  %v2728_v12 = vld [vmem:[%s6199_s1 + $0x470] sm:$0xff] }
  0x5a   : > { %3575 = vmatprep.subr.mxu0 %v4384_v2  ;;  %3608 = vmatprep.subr.mxu1 %v4384_v2 }
  0x5b   : > { %3576 = vmatpush3.msra.mxu0 %v2657_v13  ;;  %3609 = vmatpush3.msra.mxu1 %v2676_v14  ;;  %v2745_v13 = vld [vmem:[%s6199_s1 + $0x4f8] sm:$0xff]  ;;  %v2727_v14 = vld [vmem:[%s6199_s1 + $0x468] sm:$0xff] }
  0x5c   : > { %3577 = vmatprep.subr.mxu0 %v4384_v2  ;;  %3610 = vmatprep.subr.mxu1 %v4384_v2 }
  0x5d   : > { %3578 = vmatpush3.msra.mxu0 %v2656_v15  ;;  %3611 = vmatpush3.msra.mxu1 %v2675_v16  ;;  %v2744_v15 = vld [vmem:[%s6199_s1 + $0x4f0] sm:$0xff]  ;;  %v2726_v16 = vld [vmem:[%s6199_s1 + $0x460] sm:$0xff] }
  0x5e   : > { %3579 = vmatprep.subr.mxu0 %v4384_v2  ;;  %3612 = vmatprep.subr.mxu1 %v4384_v2 }
  0x5f   : > { %3580 = vmatpush3.msra.mxu0 %v2655_v17  ;;  %3613 = vmatpush3.msra.mxu1 %v2674_v18  ;;  %v2743_v17 = vld [vmem:[%s6199_s1 + $0x4e8] sm:$0xff]  ;;  %v2725_v18 = vld [vmem:[%s6199_s1 + $0x458] sm:$0xff] }
  0x60   : > { %3581 = vmatprep.subr.mxu0 %v4384_v2  ;;  %3614 = vmatprep.subr.mxu1 %v4384_v2 }
  0x61   : > { %3582 = vmatpush3.msra.mxu0 %v2654_v19  ;;  %3615 = vmatpush3.msra.mxu1 %v2673_v20  ;;  %v2742_v19 = vld [vmem:[%s6199_s1 + $0x4e0] sm:$0xff]  ;;  %v2724_v20 = vld [vmem:[%s6199_s1 + $0x450] sm:$0xff] }
  0x62   : > { %3583 = vmatprep.subr.mxu0 %v4384_v2  ;;  %3616 = vmatprep.subr.mxu1 %v4384_v2 }
  0x63   : > { %3584 = vmatpush3.msra.mxu0 %v2653_v21  ;;  %3617 = vmatpush3.msra.mxu1 %v2672_v22  ;;  %v2741_v21 = vld [vmem:[%s6199_s1 + $0x4d8] sm:$0xff]  ;;  %v2723_v22 = vld [vmem:[%s6199_s1 + $0x448] sm:$0xff] }
  0x64   : > { %3585 = vmatprep.subr.mxu0 %v4384_v2  ;;  %3618 = vmatprep.subr.mxu1 %v4384_v2 }
  0x65   : > { %3586 = vmatpush3.msra.mxu0 %v2652_v23  ;;  %3619 = vmatpush3.msra.mxu1 %v2671_v24  ;;  %v2740_v23 = vld [vmem:[%s6199_s1 + $0x4d0] sm:$0xff]  ;;  %v2722_v24 = vld [vmem:[%s6199_s1 + $0x440] sm:$0xff] }
  0x66   : > { %3587 = vmatprep.subr.mxu0 %v4384_v2  ;;  %3620 = vmatprep.subr.mxu1 %v4384_v2 }
  0x67   : > { %3588 = vmatpush3.msra.mxu0 %v2651_v25  ;;  %3621 = vmatpush3.msra.mxu1 %v2670_v26  ;;  %v2739_v25 = vld [vmem:[%s6199_s1 + $0x4c8] sm:$0xff]  ;;  %v2721_v26 = vld [vmem:[%s6199_s1 + $0x438] sm:$0xff] }
  0x68   : > { %3589 = vmatprep.subr.mxu0 %v4384_v2  ;;  %3622 = vmatprep.subr.mxu1 %v4384_v2 }
  0x69   : > { %3590 = vmatpush3.msra.mxu0 %v2650_v27  ;;  %3623 = vmatpush3.msra.mxu1 %v2669_v28  ;;  %v2738_v27 = vld [vmem:[%s6199_s1 + $0x4c0] sm:$0xff]  ;;  %v2720_v28 = vld [vmem:[%s6199_s1 + $0x430] sm:$0xff] }
  0x6a   : > { %3591 = vmatprep.subr.mxu0 %v4384_v2  ;;  %3624 = vmatprep.subr.mxu1 %v4384_v2 }
  0x6b   : > { %3592 = vmatpush3.msra.mxu0 %v2649_v29  ;;  %3625 = vmatpush3.msra.mxu1 %v2668_v30  ;;  %v2737_v29 = vld [vmem:[%s6199_s1 + $0x4b8] sm:$0xff]  ;;  %v2719_v30 = vld [vmem:[%s6199_s1 + $0x428] sm:$0xff] }
  0x6c   : > { %3593 = vmatprep.subr.mxu0 %v4384_v2  ;;  %3626 = vmatprep.subr.mxu1 %v4384_v2 }
  0x6d   : > { %3594 = vmatpush3.msra.mxu0 %v2648_v31  ;;  %3627 = vmatpush3.msra.mxu1 %v2667_v32  ;;  %v2736_v31 = vld [vmem:[%s6199_s1 + $0x4b0] sm:$0xff]  ;;  %v2718_v32 = vld [vmem:[%s6199_s1 + $0x420] sm:$0xff] }
  0x6e   : > { %3595 = vmatprep.subr.mxu0 %v4384_v2  ;;  %3628 = vmatprep.subr.mxu1 %v4384_v2 }
  0x6f   : > { %3596 = vmatpush3.msra.mxu0 %v2647_v33  ;;  %3629 = vmatpush3.msra.mxu1 %v2666_v35  ;;  %v2735_v33 = vld [vmem:[%s6199_s1 + $0x4a8] sm:$0xff]  ;;  %v2717_v35 = vld [vmem:[%s6199_s1 + $0x418] sm:$0xff] }
  0x70   : > { %3597 = vmatprep.subr.mxu0 %v4384_v2  ;;  %3630 = vmatprep.subr.mxu1 %v4384_v2 }
  0x71   : > { %3598 = vmatpush3.msra.mxu0 %v2646_v37  ;;  %3599 = vmatprep.mubr.msk.f32.mxu0 %vm4385_vm0, %v4384_v2  ;;  %v2716_v37 = vld [vmem:[%s6199_s1 + $0x410] sm:$0xff] }
  0x72   : > { %3631 = vmatpush3.msra.mxu1 %v2665_v38  ;;  %3600 = vmatmul.mubr.f32.vlgmr.msra.gmra.mxu0 %v570_v36  ;;  %v2734_v36 = vld [vmem:[%s6199_s1 + $0x4a0] sm:$0xff]  ;;  %v2733_v38 = vld [vmem:[%s6199_s1 + $0x498] sm:$0xff] }
  0x73   : > { %3632 = vmatprep.subr.mxu1 %v4384_v2  ;;  %3637 = vmatprep.subr.mxu0 %v4384_v2 }
  0x74   : > { %3633 = vmatpush3.msra.mxu1 %v2664_v34  ;;  %3634 = vmatprep.mubr.msk.f32.mxu1 %vm4385_vm0, %v4384_v2  ;;  %v2715_v34 = vld [vmem:[%s6199_s1 + $0x408] sm:$0xff] }
  0x75   : > { %3638 = vmatpush3.msra.mxu0 %v2697_v39  ;;  %3635 = vmatmul.mubr.f32.vlgmr.msra.gmra.mxu1 %v4859_v40  ;;  %v2732_v39 = vld [vmem:[%s6199_s1 + $0x490] sm:$0xff] }
  0x76   : > { %3639 = vmatprep.subr.mxu0 %v4384_v2  ;;  %3672 = vmatprep.subr.mxu1 %v4384_v2 }
  0x77   : > { %3640 = vmatpush3.msra.mxu0 %v2696_v41  ;;  %3673 = vmatpush3.msra.mxu1 %v2713_v42  ;;  %v936_v41 = vrot.slane %v4985_v8, 1  ;;  %v2714_v42 = vld [vmem:[%s6199_s1 + $0x400] sm:$0xff] }
  0x78   : > { %3641 = vmatprep.subr.mxu0 %v4384_v2  ;;  %3674 = vmatprep.subr.mxu1 %v4384_v2 }
  0x79   : > { %3642 = vmatpush3.msra.mxu0 %v2695_v43  ;;  %3675 = vmatpush3.msra.mxu1 %v2712_v44  ;;  %v2731_v43 = vld [vmem:[%s6199_s1 + $0x488] sm:$0xff]  ;;  %v1026_v44 = vrot.slane %v4859_v40, 2  ;;  %v2762_v40 = vld [vmem:[%s6199_s1 + $0x570] sm:$0xff] }
  0x7a   : > { %3643 = vmatprep.subr.mxu0 %v4384_v2  ;;  %3676 = vmatprep.subr.mxu1 %v4384_v2 }
  0x7b   : > { %3644 = vmatpush3.msra.mxu0 %v2694_v45  ;;  %3677 = vmatpush3.msra.mxu1 %v2711_v46  ;;  %v2730_v45 = vld [vmem:[%s6199_s1 + $0x480] sm:$0xff]  ;;  %v2763_v46 = vld [vmem:[%s6199_s1 + $0x578] sm:$0xff] }
  0x7c   : > { %3645 = vmatprep.subr.mxu0 %v4384_v2  ;;  %3678 = vmatprep.subr.mxu1 %v4384_v2 }
  0x7d   : > { %3646 = vmatpush3.msra.mxu0 %v2693_v47  ;;  %3679 = vmatpush3.msra.mxu1 %v2710_v48  ;;  %v2781_v47 = vld [vmem:[%s6199_s1 + $0x5f8] sm:$0xff]  ;;  %v2761_v48 = vld [vmem:[%s6199_s1 + $0x568] sm:$0xff] }
  0x7e   : > { %3647 = vmatprep.subr.mxu0 %v4384_v2  ;;  %3680 = vmatprep.subr.mxu1 %v4384_v2 }
  0x7f   : > { %3648 = vmatpush3.msra.mxu0 %v2692_v49  ;;  %3681 = vmatpush3.msra.mxu1 %v2709_v50  ;;  %v2780_v49 = vld [vmem:[%s6199_s1 + $0x5f0] sm:$0xff]  ;;  %v2760_v50 = vld [vmem:[%s6199_s1 + $0x560] sm:$0xff] }
  0x80   : > { %3649 = vmatprep.subr.mxu0 %v4384_v2  ;;  %3682 = vmatprep.subr.mxu1 %v4384_v2 }
  0x81   : > { %3650 = vmatpush3.msra.mxu0 %v2691_v51  ;;  %3683 = vmatpush3.msra.mxu1 %v2708_v52  ;;  %v2779_v51 = vld [vmem:[%s6199_s1 + $0x5e8] sm:$0xff]  ;;  %v2759_v52 = vld [vmem:[%s6199_s1 + $0x558] sm:$0xff] }
  0x82   : > { %3651 = vmatprep.subr.mxu0 %v4384_v2  ;;  %3684 = vmatprep.subr.mxu1 %v4384_v2 }
  0x83   : > { %3652 = vmatpush3.msra.mxu0 %v2690_v53  ;;  %3685 = vmatpush3.msra.mxu1 %v2707_v54  ;;  %v2778_v53 = vld [vmem:[%s6199_s1 + $0x5e0] sm:$0xff]  ;;  %v2758_v54 = vld [vmem:[%s6199_s1 + $0x550] sm:$0xff] }
  0x84   : > { %3653 = vmatprep.subr.mxu0 %v4384_v2  ;;  %3686 = vmatprep.subr.mxu1 %v4384_v2 }
  0x85   : > { %3654 = vmatpush3.msra.mxu0 %v2689_v55  ;;  %3687 = vmatpush3.msra.mxu1 %v2706_v56  ;;  %v2777_v55 = vld [vmem:[%s6199_s1 + $0x5d8] sm:$0xff]  ;;  %v2757_v56 = vld [vmem:[%s6199_s1 + $0x548] sm:$0xff] }
  0x86   : > { %3655 = vmatprep.subr.mxu0 %v4384_v2  ;;  %3688 = vmatprep.subr.mxu1 %v4384_v2 }
  0x87   : > { %3656 = vmatpush3.msra.mxu0 %v2688_v57  ;;  %3689 = vmatpush3.msra.mxu1 %v2705_v58  ;;  %v2776_v57 = vld [vmem:[%s6199_s1 + $0x5d0] sm:$0xff]  ;;  %v2756_v58 = vld [vmem:[%s6199_s1 + $0x540] sm:$0xff] }
  0x88   : > { %3657 = vmatprep.subr.mxu0 %v4384_v2  ;;  %3690 = vmatprep.subr.mxu1 %v4384_v2 }
  0x89   : > { %3658 = vmatpush3.msra.mxu0 %v2687_v59  ;;  %3691 = vmatpush3.msra.mxu1 %v2704_v60  ;;  %v2775_v59 = vld [vmem:[%s6199_s1 + $0x5c8] sm:$0xff]  ;;  %v2755_v60 = vld [vmem:[%s6199_s1 + $0x538] sm:$0xff] }
  0x8a   : > { %3659 = vmatprep.subr.mxu0 %v4384_v2  ;;  %3692 = vmatprep.subr.mxu1 %v4384_v2 }
  0x8b   : > { %3660 = vmatpush3.msra.mxu0 %v2686_v61  ;;  %3693 = vmatpush3.msra.mxu1 %v2703_v62  ;;  %v2774_v61 = vld [vmem:[%s6199_s1 + $0x5c0] sm:$0xff]  ;;  %v2754_v62 = vld [vmem:[%s6199_s1 + $0x530] sm:$0xff] }
  0x8c   : > { %3661 = vmatprep.subr.mxu0 %v4384_v2  ;;  %3694 = vmatprep.subr.mxu1 %v4384_v2 }
  0x8d   : > { %3662 = vmatpush3.msra.mxu0 %v2685_v63  ;;  %3695 = vmatpush3.msra.mxu1 %v2702_v0  ;;  %v2773_v63 = vld [vmem:[%s6199_s1 + $0x5b8] sm:$0xff]  ;;  %v2753_v0 = vld [vmem:[%s6199_s1 + $0x528] sm:$0xff] }
  0x8e   : > { %3663 = vmatprep.subr.mxu0 %v4384_v2  ;;  %3696 = vmatprep.subr.mxu1 %v4384_v2 }
  0x8f   : > { %3664 = vmatpush3.msra.mxu0 %v2684_v1  ;;  %3697 = vmatpush3.msra.mxu1 %v2701_v3  ;;  %v2772_v1 = vld [vmem:[%s6199_s1 + $0x5b0] sm:$0xff]  ;;  %v2752_v3 = vld [vmem:[%s6199_s1 + $0x520] sm:$0xff] }
  0x90   : > { %3665 = vmatprep.subr.mxu0 %v4384_v2  ;;  %3698 = vmatprep.subr.mxu1 %v4384_v2 }
  0x91   : > { %3666 = vmatpush3.msra.mxu0 %v2683_v4  ;;  %3699 = vmatpush3.msra.mxu1 %v2700_v5  ;;  %v2771_v4 = vld [vmem:[%s6199_s1 + $0x5a8] sm:$0xff]  ;;  %v2751_v5 = vld [vmem:[%s6199_s1 + $0x518] sm:$0xff] }
  0x92   : > { %3667 = vmatprep.subr.mxu0 %v4384_v2  ;;  %3700 = vmatprep.subr.mxu1 %v4384_v2 }
  0x93   : > { %3668 = vmatpush3.msra.mxu0 %v2682_v6  ;;  %3669 = vmatprep.mubr.msk.f32.mxu0 %vm4385_vm0, %v4384_v2  ;;  %v2770_v6 = vld [vmem:[%s6199_s1 + $0x5a0] sm:$0xff] }
  0x94   : > { %3701 = vmatpush3.msra.mxu1 %v2699_v7  ;;  %3670 = vmatmul.mubr.f32.vlgmr.msra.gmra.mxu0 %v4985_v8  ;;  %v2750_v7 = vld [vmem:[%s6199_s1 + $0x510] sm:$0xff]  ;;  %v2769_v8 = vld [vmem:[%s6199_s1 + $0x598] sm:$0xff] }
  0x95   : > { %3702 = vmatprep.subr.mxu1 %v4384_v2  ;;  %3707 = vmatprep.subr.mxu0 %v4384_v2 }
  0x96   : > { %3703 = vmatpush3.msra.mxu1 %v2698_v10  ;;  %3704 = vmatprep.mubr.msk.f32.mxu1 %vm4385_vm0, %v4384_v2  ;;  %v2768_v10 = vld [vmem:[%s6199_s1 + $0x590] sm:$0xff] }
  0x97   : > { %3708 = vmatpush3.msra.mxu0 %v2729_v11  ;;  %3705 = vmatmul.mubr.f32.vlgmr.msra.gmra.mxu1 %v845_v9  ;;  %v2749_v9 = vld [vmem:[%s6199_s1 + $0x508] sm:$0xff]  ;;  %v2748_v11 = vld [vmem:[%s6199_s1 + $0x500] sm:$0xff] }
  0x98   : > { %3709 = vmatprep.subr.mxu0 %v4384_v2  ;;  %3742 = vmatprep.subr.mxu1 %v4384_v2 }
  0x99   : > { %3710 = vmatpush3.msra.mxu0 %v2728_v12  ;;  %3743 = vmatpush3.msra.mxu1 %v2745_v13  ;;  %v2767_v12 = vld [vmem:[%s6199_s1 + $0x588] sm:$0xff]  ;;  %v5256_v13 = vld [vmem:[%s4567_s24 + $0x4] sm:$0xf] }
  0x9a   : > { %3711 = vmatprep.subr.mxu0 %v4384_v2  ;;  %3744 = vmatprep.subr.mxu1 %v4384_v2 }
  0x9b   : > { %3712 = vmatpush3.msra.mxu0 %v2727_v14  ;;  %3745 = vmatpush3.msra.mxu1 %v2744_v15  ;;  %v2766_v14 = vld [vmem:[%s6199_s1 + $0x580] sm:$0xff]  ;;  %v2797_v15 = vld [vmem:[%s6199_s1 + $0x678] sm:$0xff] }
  0x9c   : > { %3713 = vmatprep.subr.mxu0 %v4384_v2  ;;  %3746 = vmatprep.subr.mxu1 %v4384_v2 }
  0x9d   : > { %3714 = vmatpush3.msra.mxu0 %v2726_v16  ;;  %3747 = vmatpush3.msra.mxu1 %v2743_v17  ;;  %v5270_v16 = vld [vmem:[%s4567_s24 + $0x14] sm:$0xf] }
  0x9e   : > { %3715 = vmatprep.subr.mxu0 %v4384_v2  ;;  %3748 = vmatprep.subr.mxu1 %v4384_v2  ;;  %v2796_v17 = vld [vmem:[%s6199_s1 + $0x670] sm:$0xff] }
  0x9f   : > { %3716 = vmatpush3.msra.mxu0 %v2725_v18  ;;  %3749 = vmatpush3.msra.mxu1 %v2742_v19  ;;  %v2813_v18 = vld [vmem:[%s6199_s1 + $0x6f8] sm:$0xff]  ;;  %v2795_v19 = vld [vmem:[%s6199_s1 + $0x668] sm:$0xff] }
  0xa0   : > { %3717 = vmatprep.subr.mxu0 %v4384_v2  ;;  %3750 = vmatprep.subr.mxu1 %v4384_v2 }
  0xa1   : > { %3718 = vmatpush3.msra.mxu0 %v2724_v20  ;;  %3751 = vmatpush3.msra.mxu1 %v2741_v21  ;;  %v2812_v20 = vld [vmem:[%s6199_s1 + $0x6f0] sm:$0xff]  ;;  %v2794_v21 = vld [vmem:[%s6199_s1 + $0x660] sm:$0xff] }
  0xa2   : > { %3719 = vmatprep.subr.mxu0 %v4384_v2  ;;  %3752 = vmatprep.subr.mxu1 %v4384_v2 }
  0xa3   : > { %3720 = vmatpush3.msra.mxu0 %v2723_v22  ;;  %3753 = vmatpush3.msra.mxu1 %v2740_v23  ;;  %v2811_v22 = vld [vmem:[%s6199_s1 + $0x6e8] sm:$0xff]  ;;  %v2793_v23 = vld [vmem:[%s6199_s1 + $0x658] sm:$0xff] }
  0xa4   : > { %3721 = vmatprep.subr.mxu0 %v4384_v2  ;;  %3754 = vmatprep.subr.mxu1 %v4384_v2 }
  0xa5   : > { %3722 = vmatpush3.msra.mxu0 %v2722_v24  ;;  %3755 = vmatpush3.msra.mxu1 %v2739_v25  ;;  %v2810_v24 = vld [vmem:[%s6199_s1 + $0x6e0] sm:$0xff]  ;;  %v2792_v25 = vld [vmem:[%s6199_s1 + $0x650] sm:$0xff] }
  0xa6   : > { %3723 = vmatprep.subr.mxu0 %v4384_v2  ;;  %3756 = vmatprep.subr.mxu1 %v4384_v2 }
  0xa7   : > { %3724 = vmatpush3.msra.mxu0 %v2721_v26  ;;  %3757 = vmatpush3.msra.mxu1 %v2738_v27  ;;  %v2809_v26 = vld [vmem:[%s6199_s1 + $0x6d8] sm:$0xff]  ;;  %v2791_v27 = vld [vmem:[%s6199_s1 + $0x648] sm:$0xff] }
  0xa8   : > { %3725 = vmatprep.subr.mxu0 %v4384_v2  ;;  %3758 = vmatprep.subr.mxu1 %v4384_v2 }
  0xa9   : > { %3726 = vmatpush3.msra.mxu0 %v2720_v28  ;;  %3759 = vmatpush3.msra.mxu1 %v2737_v29  ;;  %v2808_v28 = vld [vmem:[%s6199_s1 + $0x6d0] sm:$0xff]  ;;  %v2790_v29 = vld [vmem:[%s6199_s1 + $0x640] sm:$0xff] }
  0xaa   : > { %3727 = vmatprep.subr.mxu0 %v4384_v2  ;;  %3760 = vmatprep.subr.mxu1 %v4384_v2 }
  0xab   : > { %3728 = vmatpush3.msra.mxu0 %v2719_v30  ;;  %3761 = vmatpush3.msra.mxu1 %v2736_v31  ;;  %v2807_v30 = vld [vmem:[%s6199_s1 + $0x6c8] sm:$0xff]  ;;  %v2789_v31 = vld [vmem:[%s6199_s1 + $0x638] sm:$0xff] }
  0xac   : > { %3729 = vmatprep.subr.mxu0 %v4384_v2  ;;  %3762 = vmatprep.subr.mxu1 %v4384_v2 }
  0xad   : > { %3730 = vmatpush3.msra.mxu0 %v2718_v32  ;;  %3763 = vmatpush3.msra.mxu1 %v2735_v33  ;;  %v2806_v32 = vld [vmem:[%s6199_s1 + $0x6c0] sm:$0xff]  ;;  %v2788_v33 = vld [vmem:[%s6199_s1 + $0x630] sm:$0xff] }
  0xae   : > { %3731 = vmatprep.subr.mxu0 %v4384_v2  ;;  %3764 = vmatprep.subr.mxu1 %v4384_v2 }
  0xaf   : > { %3732 = vmatpush3.msra.mxu0 %v2717_v35  ;;  %3765 = vmatpush3.msra.mxu1 %v2734_v36  ;;  %v2805_v35 = vld [vmem:[%s6199_s1 + $0x6b8] sm:$0xff]  ;;  %v2787_v36 = vld [vmem:[%s6199_s1 + $0x628] sm:$0xff] }
  0xb0   : > { %3733 = vmatprep.subr.mxu0 %v4384_v2  ;;  %3766 = vmatprep.subr.mxu1 %v4384_v2 }
  0xb1   : > { %3734 = vmatpush3.msra.mxu0 %v2716_v37  ;;  %3767 = vmatpush3.msra.mxu1 %v2733_v38  ;;  %v2804_v37 = vld [vmem:[%s6199_s1 + $0x6b0] sm:$0xff]  ;;  %v2786_v38 = vld [vmem:[%s6199_s1 + $0x620] sm:$0xff] }
  0xb2   : > { %3735 = vmatprep.subr.mxu0 %v4384_v2  ;;  %3768 = vmatprep.subr.mxu1 %v4384_v2 }
  0xb3   : > { %3736 = vmatpush3.msra.mxu0 %v2715_v34  ;;  %3769 = vmatpush3.msra.mxu1 %v2732_v39  ;;  %v2803_v34 = vld [vmem:[%s6199_s1 + $0x6a8] sm:$0xff] }
  0xb4   : > { %3737 = vmatprep.subr.mxu0 %v4384_v2  ;;  %3770 = vmatprep.subr.mxu1 %v4384_v2 }
  0xb5   : > { %3738 = vmatpush3.msra.mxu0 %v2714_v42  ;;  %3739 = vmatprep.mubr.msk.f32.mxu0 %vm4385_vm0, %v4384_v2  ;;  %v2802_v42 = vld [vmem:[%s6199_s1 + $0x6a0] sm:$0xff] }
  0xb6   : > { %3771 = vmatpush3.msra.mxu1 %v2731_v43  ;;  %3740 = vmatmul.mubr.f32.vlgmr.msra.gmra.mxu0 %v936_v41  ;;  %v2785_v41 = vld [vmem:[%s6199_s1 + $0x618] sm:$0xff] }
  0xb7   : > { %3772 = vmatprep.subr.mxu1 %v4384_v2  ;;  %3777 = vmatprep.subr.mxu0 %v4384_v2 }
  0xb8   : > { %3773 = vmatpush3.msra.mxu1 %v2730_v45  ;;  %3774 = vmatprep.mubr.msk.f32.mxu1 %vm4385_vm0, %v4384_v2  ;;  %v2784_v45 = vld [vmem:[%s6199_s1 + $0x610] sm:$0xff] }
  0xb9   : > { %3778 = vmatpush3.msra.mxu0 %v2763_v46  ;;  %3775 = vmatmul.mubr.f32.vlgmr.msra.gmra.mxu1 %v1026_v44  ;;  %v2801_v46 = vld [vmem:[%s6199_s1 + $0x698] sm:$0xff] }
  0xba   : > { %3779 = vmatprep.subr.mxu0 %v4384_v2  ;;  %3812 = vmatprep.subr.mxu1 %v4384_v2 }
  0xbb   : > { %3780 = vmatpush3.msra.mxu0 %v2762_v40  ;;  %3813 = vmatpush3.msra.mxu1 %v2781_v47 }
  0xbc   : > { %3781 = vmatprep.subr.mxu0 %v4384_v2  ;;  %3814 = vmatprep.subr.mxu1 %v4384_v2 }
  0xbd   : > { %3782 = vmatpush3.msra.mxu0 %v2761_v48  ;;  %3815 = vmatpush3.msra.mxu1 %v2780_v49  ;;  %v2783_v48 = vld [vmem:[%s6199_s1 + $0x608] sm:$0xff]  ;;  %v2800_v49 = vld [vmem:[%s6199_s1 + $0x690] sm:$0xff] }
  0xbe   : > { %3783 = vmatprep.subr.mxu0 %v4384_v2  ;;  %3816 = vmatprep.subr.mxu1 %v4384_v2 }
  0xbf   : > { %3784 = vmatpush3.msra.mxu0 %v2760_v50  ;;  %3817 = vmatpush3.msra.mxu1 %v2779_v51  ;;  %v1301_v50 = vrot.slane %v5256_v13, 1  ;;  %v2782_v51 = vld [vmem:[%s6199_s1 + $0x600] sm:$0xff] }
  0xc0   : > { %3785 = vmatprep.subr.mxu0 %v4384_v2  ;;  %3818 = vmatprep.subr.mxu1 %v4384_v2 }
  0xc1   : > { %3786 = vmatpush3.msra.mxu0 %v2759_v52  ;;  %3819 = vmatpush3.msra.mxu1 %v2778_v53  ;;  %v2799_v52 = vld [vmem:[%s6199_s1 + $0x688] sm:$0xff]  ;;  %v1392_v53 = vrot.slane %v5270_v16, 1 }
  0xc2   : > { %3787 = vmatprep.subr.mxu0 %v4384_v2  ;;  %3820 = vmatprep.subr.mxu1 %v4384_v2 }
  0xc3   : > { %3788 = vmatpush3.msra.mxu0 %v2758_v54  ;;  %3821 = vmatpush3.msra.mxu1 %v2777_v55  ;;  %v2798_v54 = vld [vmem:[%s6199_s1 + $0x680] sm:$0xff]  ;;  %v2829_v55 = vld [vmem:[%s6199_s1 + $0x778] sm:$0xff] }
  0xc4   : > { %3789 = vmatprep.subr.mxu0 %v4384_v2  ;;  %3822 = vmatprep.subr.mxu1 %v4384_v2 }
  0xc5   : > { %3790 = vmatpush3.msra.mxu0 %v2757_v56  ;;  %3823 = vmatpush3.msra.mxu1 %v2776_v57  ;;  %v2828_v56 = vld [vmem:[%s6199_s1 + $0x770] sm:$0xff]  ;;  %v2847_v57 = vld [vmem:[%s6199_s1 + $0x7f8] sm:$0xff] }
  0xc6   : > { %3791 = vmatprep.subr.mxu0 %v4384_v2  ;;  %3824 = vmatprep.subr.mxu1 %v4384_v2 }
  0xc7   : > { %3792 = vmatpush3.msra.mxu0 %v2756_v58  ;;  %3825 = vmatpush3.msra.mxu1 %v2775_v59  ;;  %v2827_v58 = vld [vmem:[%s6199_s1 + $0x768] sm:$0xff]  ;;  %v2846_v59 = vld [vmem:[%s6199_s1 + $0x7f0] sm:$0xff] }
  0xc8   : > { %3793 = vmatprep.subr.mxu0 %v4384_v2  ;;  %3826 = vmatprep.subr.mxu1 %v4384_v2 }
  0xc9   : > { %3794 = vmatpush3.msra.mxu0 %v2755_v60  ;;  %3827 = vmatpush3.msra.mxu1 %v2774_v61  ;;  %v2826_v60 = vld [vmem:[%s6199_s1 + $0x760] sm:$0xff]  ;;  %v2845_v61 = vld [vmem:[%s6199_s1 + $0x7e8] sm:$0xff] }
  0xca   : > { %3795 = vmatprep.subr.mxu0 %v4384_v2  ;;  %3828 = vmatprep.subr.mxu1 %v4384_v2 }
  0xcb   : > { %3796 = vmatpush3.msra.mxu0 %v2754_v62  ;;  %3829 = vmatpush3.msra.mxu1 %v2773_v63  ;;  %v2825_v62 = vld [vmem:[%s6199_s1 + $0x758] sm:$0xff]  ;;  %v2844_v63 = vld [vmem:[%s6199_s1 + $0x7e0] sm:$0xff] }
  0xcc   : > { %3797 = vmatprep.subr.mxu0 %v4384_v2  ;;  %3830 = vmatprep.subr.mxu1 %v4384_v2 }
  0xcd   : > { %3798 = vmatpush3.msra.mxu0 %v2753_v0  ;;  %3831 = vmatpush3.msra.mxu1 %v2772_v1  ;;  %v2824_v0 = vld [vmem:[%s6199_s1 + $0x750] sm:$0xff]  ;;  %v2843_v1 = vld [vmem:[%s6199_s1 + $0x7d8] sm:$0xff] }
  0xce   : > { %3799 = vmatprep.subr.mxu0 %v4384_v2  ;;  %3832 = vmatprep.subr.mxu1 %v4384_v2 }
  0xcf   : > { %3800 = vmatpush3.msra.mxu0 %v2752_v3  ;;  %3833 = vmatpush3.msra.mxu1 %v2771_v4  ;;  %v2823_v3 = vld [vmem:[%s6199_s1 + $0x748] sm:$0xff]  ;;  %v2842_v4 = vld [vmem:[%s6199_s1 + $0x7d0] sm:$0xff] }
  0xd0   : > { %3801 = vmatprep.subr.mxu0 %v4384_v2  ;;  %3834 = vmatprep.subr.mxu1 %v4384_v2 }
  0xd1   : > { %3802 = vmatpush3.msra.mxu0 %v2751_v5  ;;  %3835 = vmatpush3.msra.mxu1 %v2770_v6  ;;  %v2822_v5 = vld [vmem:[%s6199_s1 + $0x740] sm:$0xff]  ;;  %v2841_v6 = vld [vmem:[%s6199_s1 + $0x7c8] sm:$0xff] }
  0xd2   : > { %3803 = vmatprep.subr.mxu0 %v4384_v2  ;;  %3836 = vmatprep.subr.mxu1 %v4384_v2 }
  0xd3   : > { %3804 = vmatpush3.msra.mxu0 %v2750_v7  ;;  %3837 = vmatpush3.msra.mxu1 %v2769_v8  ;;  %v2821_v7 = vld [vmem:[%s6199_s1 + $0x738] sm:$0xff]  ;;  %v2840_v8 = vld [vmem:[%s6199_s1 + $0x7c0] sm:$0xff] }
  0xd4   : > { %3805 = vmatprep.subr.mxu0 %v4384_v2  ;;  %3838 = vmatprep.subr.mxu1 %v4384_v2 }
  0xd5   : > { %3806 = vmatpush3.msra.mxu0 %v2749_v9  ;;  %3839 = vmatpush3.msra.mxu1 %v2768_v10  ;;  %v2820_v9 = vld [vmem:[%s6199_s1 + $0x730] sm:$0xff]  ;;  %v2839_v10 = vld [vmem:[%s6199_s1 + $0x7b8] sm:$0xff] }
  0xd6   : > { %3807 = vmatprep.subr.mxu0 %v4384_v2  ;;  %3840 = vmatprep.subr.mxu1 %v4384_v2 }
  0xd7   : > { %3808 = vmatpush3.msra.mxu0 %v2748_v11  ;;  %3809 = vmatprep.mubr.msk.f32.mxu0 %vm4385_vm0, %v4384_v2  ;;  %v2819_v11 = vld [vmem:[%s6199_s1 + $0x728] sm:$0xff] }
  0xd8   : > { %3841 = vmatpush3.msra.mxu1 %v2767_v12  ;;  %3810 = vmatmul.mubr.f32.vlgmr.msra.gmra.mxu0 %v5256_v13  ;;  %v2838_v12 = vld [vmem:[%s6199_s1 + $0x7b0] sm:$0xff] }
  0xd9   : > { %3842 = vmatprep.subr.mxu1 %v4384_v2  ;;  %3847 = vmatprep.subr.mxu0 %v4384_v2 }
  0xda   : > { %3843 = vmatpush3.msra.mxu1 %v2766_v14  ;;  %3844 = vmatprep.mubr.msk.f32.mxu1 %vm4385_vm0, %v4384_v2  ;;  %v2818_v14 = vld [vmem:[%s6199_s1 + $0x720] sm:$0xff] }
  0xdb   : > { %3848 = vmatpush3.msra.mxu0 %v2797_v15  ;;  %3845 = vmatmul.mubr.f32.vlgmr.msra.gmra.mxu1 %v5270_v16  ;;  %v2837_v15 = vld [vmem:[%s6199_s1 + $0x7a8] sm:$0xff] }
  0xdc   : > { %3849 = vmatprep.subr.mxu0 %v4384_v2  ;;  %3882 = vmatprep.subr.mxu1 %v4384_v2 }
  0xdd   : > { %3850 = vmatpush3.msra.mxu0 %v2796_v17  ;;  %3883 = vmatpush3.msra.mxu1 %v2813_v18  ;;  %v2817_v18 = vld [vmem:[%s6199_s1 + $0x718] sm:$0xff] }
  0xde   : > { %3851 = vmatprep.subr.mxu0 %v4384_v2  ;;  %3884 = vmatprep.subr.mxu1 %v4384_v2 }
  0xdf   : > { %3852 = vmatpush3.msra.mxu0 %v2795_v19  ;;  %3885 = vmatpush3.msra.mxu1 %v2812_v20  ;;  %v2836_v19 = vld [vmem:[%s6199_s1 + $0x7a0] sm:$0xff] }
  0xe0   : > { %3853 = vmatprep.subr.mxu0 %v4384_v2  ;;  %3886 = vmatprep.subr.mxu1 %v4384_v2 }
  0xe1   : > { %3854 = vmatpush3.msra.mxu0 %v2794_v21  ;;  %3887 = vmatpush3.msra.mxu1 %v2811_v22  ;;  %v2816_v22 = vld [vmem:[%s6199_s1 + $0x710] sm:$0xff] }
  0xe2   : > { %3855 = vmatprep.subr.mxu0 %v4384_v2  ;;  %3888 = vmatprep.subr.mxu1 %v4384_v2 }
  0xe3   : > { %3856 = vmatpush3.msra.mxu0 %v2793_v23  ;;  %3889 = vmatpush3.msra.mxu1 %v2810_v24  ;;  %v2835_v23 = vld [vmem:[%s6199_s1 + $0x798] sm:$0xff] }
  0xe4   : > { %3857 = vmatprep.subr.mxu0 %v4384_v2  ;;  %3890 = vmatprep.subr.mxu1 %v4384_v2 }
  0xe5   : > { %3858 = vmatpush3.msra.mxu0 %v2792_v25  ;;  %3891 = vmatpush3.msra.mxu1 %v2809_v26  ;;  %v2815_v26 = vld [vmem:[%s6199_s1 + $0x708] sm:$0xff] }
  0xe6   : > { %3859 = vmatprep.subr.mxu0 %v4384_v2  ;;  %3892 = vmatprep.subr.mxu1 %v4384_v2 }
  0xe7   : > { %3860 = vmatpush3.msra.mxu0 %v2791_v27  ;;  %3893 = vmatpush3.msra.mxu1 %v2808_v28  ;;  %v2834_v27 = vld [vmem:[%s6199_s1 + $0x790] sm:$0xff]  ;;  %v1482_v28 = vrot.slane %v5256_v13, 2  ;;  %v2832_v13 = vld [vmem:[%s6199_s1 + $0x780] sm:$0xff] }
  0xe8   : > { %3861 = vmatprep.subr.mxu0 %v4384_v2  ;;  %3894 = vmatprep.subr.mxu1 %v4384_v2 }
  0xe9   : > { %3862 = vmatpush3.msra.mxu0 %v2790_v29  ;;  %3895 = vmatpush3.msra.mxu1 %v2807_v30  ;;  %v2814_v29 = vld [vmem:[%s6199_s1 + $0x700] sm:$0xff]  ;;  %v2833_v30 = vld [vmem:[%s6199_s1 + $0x788] sm:$0xff] }
  0xea   : > { %3863 = vmatprep.subr.mxu0 %v4384_v2  ;;  %3896 = vmatprep.subr.mxu1 %v4384_v2 }
  0xeb   : > { %3864 = vmatpush3.msra.mxu0 %v2789_v31  ;;  %3897 = vmatpush3.msra.mxu1 %v2806_v32  ;;  %v2865_v31 = vld [vmem:[%s6199_s1 + $0x878] sm:$0xff]  ;;  %v5546_v32 = vld [vmem:[%s4567_s24 + $0x24] sm:$0xf] }
  0xec   : > { %3865 = vmatprep.subr.mxu0 %v4384_v2  ;;  %3898 = vmatprep.subr.mxu1 %v4384_v2 }
  0xed   : > { %3866 = vmatpush3.msra.mxu0 %v2788_v33  ;;  %3899 = vmatpush3.msra.mxu1 %v2805_v35  ;;  %v2864_v33 = vld [vmem:[%s6199_s1 + $0x870] sm:$0xff]  ;;  %v2881_v35 = vld [vmem:[%s6199_s1 + $0x8f8] sm:$0xff] }
  0xee   : > { %3867 = vmatprep.subr.mxu0 %v4384_v2  ;;  %3900 = vmatprep.subr.mxu1 %v4384_v2 }
  0xef   : > { %3868 = vmatpush3.msra.mxu0 %v2787_v36  ;;  %3901 = vmatpush3.msra.mxu1 %v2804_v37  ;;  %v297_v39 = vpop.f32.mrf.mxu0  ;;  %v2863_v36 = vld [vmem:[%s6199_s1 + $0x868] sm:$0xff]  ;;  %v2880_v37 = vld [vmem:[%s6199_s1 + $0x8f0] sm:$0xff] }
  0xf0   : > { %3869 = vmatprep.subr.mxu0 %v4384_v2  ;;  %3902 = vmatprep.subr.mxu1 %v4384_v2 }
  0xf1   : > { %3870 = vmatpush3.msra.mxu0 %v2786_v38  ;;  %3903 = vmatpush3.msra.mxu1 %v2803_v34  ;;  %v367_v43 = vpop.f32.mrf.mxu1  ;;  %v3461_v44 = vpop.f32.mrf.mxu0  ;;  %v2862_v38 = vld [vmem:[%s6199_s1 + $0x860] sm:$0xff]  ;;  %v2879_v34 = vld [vmem:[%s6199_s1 + $0x8e8] sm:$0xff] }
  0xf2   : > { %3871 = vmatprep.subr.mxu0 %v4384_v2  ;;  %3904 = vmatprep.subr.mxu1 %v4384_v2  ;;  %v5379_v40 = vadd.f32 %v367_v43, %v297_v39  ;;  %v2861_v39 = vld [vmem:[%s6199_s1 + $0x858] sm:$0xff]  ;;  %v2859_v44 = vld [vmem:[%s6199_s1 + $0x848] sm:$0xff] }
  0xf3   : > { %3872 = vmatpush3.msra.mxu0 %v2785_v41  ;;  %3905 = vmatpush3.msra.mxu1 %v2802_v42  ;;  %v3496_v47 = vpop.f32.mrf.mxu1  ;;  %v2878_v41 = vld [vmem:[%s6199_s1 + $0x8e0] sm:$0xff]  ;;  %v2860_v42 = vld [vmem:[%s6199_s1 + $0x850] sm:$0xff]  ;;  %v2877_v43 = vld [vmem:[%s6199_s1 + $0x8d8] sm:$0xff] }
  0xf4   : > { %3873 = vmatprep.subr.mxu0 %v4384_v2  ;;  %3906 = vmatprep.subr.mxu1 %v4384_v2  ;;  %v2857_v47 = vld [vmem:[%s6199_s1 + $0x838] sm:$0xff] }
  0xf5   : > { %3874 = vmatpush3.msra.mxu0 %v2784_v45  ;;  %3907 = vmatpush3.msra.mxu1 %v2801_v46  ;;  %v2876_v45 = vld [vmem:[%s6199_s1 + $0x8d0] sm:$0xff]  ;;  %v2858_v46 = vld [vmem:[%s6199_s1 + $0x840] sm:$0xff] }
  0xf6   : > { %3875 = vmatprep.subr.mxu0 %v4384_v2  ;;  %3908 = vmatprep.subr.mxu1 %v4384_v2 }
  0xf7   : > { %3876 = vmatpush3.msra.mxu0 %v2783_v48  ;;  %3909 = vmatpush3.msra.mxu1 %v2800_v49  ;;  %v2874_v48 = vld [vmem:[%s6199_s1 + $0x8c0] sm:$0xff]  ;;  %v2856_v49 = vld [vmem:[%s6199_s1 + $0x830] sm:$0xff] }
  0xf8   : > { %3877 = vmatprep.subr.mxu0 %v4384_v2  ;;  %3910 = vmatprep.subr.mxu1 %v4384_v2 }
  0xf9   : > { %3878 = vmatpush3.msra.mxu0 %v2782_v51  ;;  %3879 = vmatprep.mubr.msk.f32.mxu0 %vm4385_vm0, %v4384_v2  ;;  %v2855_v51 = vld [vmem:[%s6199_s1 + $0x828] sm:$0xff] }
  0xfa   : > { %3911 = vmatpush3.msra.mxu1 %v2799_v52  ;;  %3880 = vmatmul.mubr.f32.vlgmr.msra.gmra.mxu0 %v1301_v50  ;;  %v2873_v50 = vld [vmem:[%s6199_s1 + $0x8b8] sm:$0xff]  ;;  %v2872_v52 = vld [vmem:[%s6199_s1 + $0x8b0] sm:$0xff] }
  0xfb   : > { %3912 = vmatprep.subr.mxu1 %v4384_v2  ;;  %3917 = vmatprep.subr.mxu0 %v4384_v2 }
  0xfc   : > { %3913 = vmatpush3.msra.mxu1 %v2798_v54  ;;  %3914 = vmatprep.mubr.msk.f32.mxu1 %vm4385_vm0, %v4384_v2  ;;  %v2871_v54 = vld [vmem:[%s6199_s1 + $0x8a8] sm:$0xff] }
  0xfd   : > { %3918 = vmatpush3.msra.mxu0 %v2829_v55  ;;  %3915 = vmatmul.mubr.f32.vlgmr.msra.gmra.mxu1 %v1392_v53  ;;  %v2854_v53 = vld [vmem:[%s6199_s1 + $0x820] sm:$0xff] }
  0xfe   : > { %3919 = vmatprep.subr.mxu0 %v4384_v2  ;;  %3952 = vmatprep.subr.mxu1 %v4384_v2 }
  0xff   : > { %3920 = vmatpush3.msra.mxu0 %v2828_v56  ;;  %3953 = vmatpush3.msra.mxu1 %v2847_v57  ;;  %v2853_v57 = vld [vmem:[%s6199_s1 + $0x818] sm:$0xff] }
 0x100   : > { %3921 = vmatprep.subr.mxu0 %v4384_v2  ;;  %3954 = vmatprep.subr.mxu1 %v4384_v2 }
 0x101   : > { %3922 = vmatpush3.msra.mxu0 %v2827_v58  ;;  %3955 = vmatpush3.msra.mxu1 %v2846_v59  ;;  %v2870_v58 = vld [vmem:[%s6199_s1 + $0x8a0] sm:$0xff] }
 0x102   : > { %3923 = vmatprep.subr.mxu0 %v4384_v2  ;;  %3956 = vmatprep.subr.mxu1 %v4384_v2 }
 0x103   : > { %3924 = vmatpush3.msra.mxu0 %v2826_v60  ;;  %3957 = vmatpush3.msra.mxu1 %v2845_v61  ;;  %v2852_v61 = vld [vmem:[%s6199_s1 + $0x810] sm:$0xff] }
 0x104   : > { %3925 = vmatprep.subr.mxu0 %v4384_v2  ;;  %3958 = vmatprep.subr.mxu1 %v4384_v2 }
 0x105   : > { %3926 = vmatpush3.msra.mxu0 %v2825_v62  ;;  %3959 = vmatpush3.msra.mxu1 %v2844_v63  ;;  %v2869_v62 = vld [vmem:[%s6199_s1 + $0x898] sm:$0xff] }
 0x106   : > { %3927 = vmatprep.subr.mxu0 %v4384_v2  ;;  %3960 = vmatprep.subr.mxu1 %v4384_v2 }
 0x107   : > { %3928 = vmatpush3.msra.mxu0 %v2824_v0  ;;  %3961 = vmatpush3.msra.mxu1 %v2843_v1  ;;  %v2851_v1 = vld [vmem:[%s6199_s1 + $0x808] sm:$0xff] }
 0x108   : > { %3929 = vmatprep.subr.mxu0 %v4384_v2  ;;  %3962 = vmatprep.subr.mxu1 %v4384_v2 }
 0x109   : > { %3930 = vmatpush3.msra.mxu0 %v2823_v3  ;;  %3963 = vmatpush3.msra.mxu1 %v2842_v4  ;;  %v2868_v3 = vld [vmem:[%s6199_s1 + $0x890] sm:$0xff]  ;;  %v2850_v4 = vld [vmem:[%s6199_s1 + $0x800] sm:$0xff] }
 0x10a   : > { %3931 = vmatprep.subr.mxu0 %v4384_v2  ;;  %3964 = vmatprep.subr.mxu1 %v4384_v2 }
 0x10b   : > { %3932 = vmatpush3.msra.mxu0 %v2822_v5  ;;  %3965 = vmatpush3.msra.mxu1 %v2841_v6  ;;  %v2867_v5 = vld [vmem:[%s6199_s1 + $0x888] sm:$0xff]  ;;  %v5675_v6 = vld [vmem:[%s4567_s24 + $0x34] sm:$0xf] }
 0x10c   : > { %3933 = vmatprep.subr.mxu0 %v4384_v2  ;;  %3966 = vmatprep.subr.mxu1 %v4384_v2 }
 0x10d   : > { %3934 = vmatpush3.msra.mxu0 %v2821_v7  ;;  %3967 = vmatpush3.msra.mxu1 %v2840_v8  ;;  %v1757_v7 = vrot.slane %v5546_v32, 1  ;;  %v2866_v8 = vld [vmem:[%s6199_s1 + $0x880] sm:$0xff] }
 0x10e   : > { %3935 = vmatprep.subr.mxu0 %v4384_v2  ;;  %3968 = vmatprep.subr.mxu1 %v4384_v2 }
 0x10f   : > { %3936 = vmatpush3.msra.mxu0 %v2820_v9  ;;  %3969 = vmatpush3.msra.mxu1 %v2839_v10  ;;  %v2897_v9 = vld [vmem:[%s6199_s1 + $0x978] sm:$0xff]  ;;  %v2896_v10 = vld [vmem:[%s6199_s1 + $0x970] sm:$0xff] }
 0x110   : > { %3937 = vmatprep.subr.mxu0 %v4384_v2  ;;  %3970 = vmatprep.subr.mxu1 %v4384_v2  ;;  %v457_v16 = vpop.f32.mrf.mxu0 }
 0x111   : > { %3938 = vmatpush3.msra.mxu0 %v2819_v11  ;;  %3971 = vmatpush3.msra.mxu1 %v2838_v12  ;;  %v461_v17 = vadd.f32 %v457_v16, %v5379_v40  ;;  %v2875_v40 = vld [vmem:[%s6199_s1 + $0x8c8] sm:$0xff]  ;;  %v2913_v11 = vld [vmem:[%s6199_s1 + $0x9f8] sm:$0xff] }
 0x112   : > { %3939 = vmatprep.subr.mxu0 %v4384_v2  ;;  %3972 = vmatprep.subr.mxu1 %v4384_v2  ;;  %v3531_v20 = vpop.f32.mrf.mxu0  ;;  %v2895_v12 = vld [vmem:[%s6199_s1 + $0x968] sm:$0xff] }
 0x113   : > { %3940 = vmatpush3.msra.mxu0 %v2818_v14  ;;  %3973 = vmatpush3.msra.mxu1 %v2837_v15  ;;  %v548_v21 = vpop.f32.mrf.mxu1  ;;  %v2912_v14 = vld [vmem:[%s6199_s1 + $0x9f0] sm:$0xff]  ;;  %v2894_v15 = vld [vmem:[%s6199_s1 + $0x960] sm:$0xff]  ;;  %v2911_v16 = vld [vmem:[%s6199_s1 + $0x9e8] sm:$0xff] }
 0x114   : > { %3941 = vmatprep.subr.mxu0 %v4384_v2  ;;  %3974 = vmatprep.subr.mxu1 %v4384_v2  ;;  %v5516_v24 = vadd.f32 %v548_v21, %v461_v17  ;;  %v2893_v17 = vld [vmem:[%s6199_s1 + $0x958] sm:$0xff]  ;;  %v2891_v21 = vld [vmem:[%s6199_s1 + $0x948] sm:$0xff] }
 0x115   : > { %3942 = vmatpush3.msra.mxu0 %v2817_v18  ;;  %3975 = vmatpush3.msra.mxu1 %v2836_v19  ;;  %v3566_v25 = vpop.f32.mrf.mxu1  ;;  %v2910_v18 = vld [vmem:[%s6199_s1 + $0x9e0] sm:$0xff]  ;;  %v2892_v19 = vld [vmem:[%s6199_s1 + $0x950] sm:$0xff]  ;;  %v2909_v20 = vld [vmem:[%s6199_s1 + $0x9d8] sm:$0xff] }
 0x116   : > { %3943 = vmatprep.subr.mxu0 %v4384_v2  ;;  %3976 = vmatprep.subr.mxu1 %v4384_v2  ;;  %v2889_v25 = vld [vmem:[%s6199_s1 + $0x938] sm:$0xff] }
 0x117   : > { %3944 = vmatpush3.msra.mxu0 %v2816_v22  ;;  %3977 = vmatpush3.msra.mxu1 %v2835_v23  ;;  %v2908_v22 = vld [vmem:[%s6199_s1 + $0x9d0] sm:$0xff]  ;;  %v2890_v23 = vld [vmem:[%s6199_s1 + $0x940] sm:$0xff] }
 0x118   : > { %3945 = vmatprep.subr.mxu0 %v4384_v2  ;;  %3978 = vmatprep.subr.mxu1 %v4384_v2 }
 0x119   : > { %3946 = vmatpush3.msra.mxu0 %v2815_v26  ;;  %3979 = vmatpush3.msra.mxu1 %v2834_v27  ;;  %v2906_v26 = vld [vmem:[%s6199_s1 + $0x9c0] sm:$0xff]  ;;  %v2888_v27 = vld [vmem:[%s6199_s1 + $0x930] sm:$0xff] }
 0x11a   : > { %3947 = vmatprep.subr.mxu0 %v4384_v2  ;;  %3980 = vmatprep.subr.mxu1 %v4384_v2 }
 0x11b   : > { %3948 = vmatpush3.msra.mxu0 %v2814_v29  ;;  %3949 = vmatprep.mubr.msk.f32.mxu0 %vm4385_vm0, %v4384_v2  ;;  %v2887_v29 = vld [vmem:[%s6199_s1 + $0x928] sm:$0xff] }
 0x11c   : > { %3981 = vmatpush3.msra.mxu1 %v2833_v30  ;;  %3950 = vmatmul.mubr.f32.vlgmr.msra.gmra.mxu0 %v1482_v28  ;;  %v2905_v28 = vld [vmem:[%s6199_s1 + $0x9b8] sm:$0xff]  ;;  %v2904_v30 = vld [vmem:[%s6199_s1 + $0x9b0] sm:$0xff] }
 0x11d   : > { %3982 = vmatprep.subr.mxu1 %v4384_v2  ;;  %3987 = vmatprep.subr.mxu0 %v4384_v2 }
 0x11e   : > { %3983 = vmatpush3.msra.mxu1 %v2832_v13  ;;  %3984 = vmatprep.mubr.msk.f32.mxu1 %vm4385_vm0, %v4384_v2  ;;  %v2886_v13 = vld [vmem:[%s6199_s1 + $0x920] sm:$0xff] }
 0x11f   : > { %3988 = vmatpush3.msra.mxu0 %v2865_v31  ;;  %3985 = vmatmul.mubr.f32.vlgmr.msra.gmra.mxu1 %v5546_v32  ;;  %v2903_v31 = vld [vmem:[%s6199_s1 + $0x9a8] sm:$0xff] }
 0x120   : > { %3989 = vmatprep.subr.mxu0 %v4384_v2  ;;  %4022 = vmatprep.subr.mxu1 %v4384_v2 }
 0x121   : > { %3990 = vmatpush3.msra.mxu0 %v2864_v33  ;;  %4023 = vmatpush3.msra.mxu1 %v2881_v35 }
 0x122   : > { %3991 = vmatprep.subr.mxu0 %v4384_v2  ;;  %4024 = vmatprep.subr.mxu1 %v4384_v2 }
 0x123   : > { %3992 = vmatpush3.msra.mxu0 %v2863_v36  ;;  %4025 = vmatpush3.msra.mxu1 %v2880_v37  ;;  %v2885_v36 = vld [vmem:[%s6199_s1 + $0x918] sm:$0xff]  ;;  %v2902_v37 = vld [vmem:[%s6199_s1 + $0x9a0] sm:$0xff] }
 0x124   : > { %3993 = vmatprep.subr.mxu0 %v4384_v2  ;;  %4026 = vmatprep.subr.mxu1 %v4384_v2 }
 0x125   : > { %3994 = vmatpush3.msra.mxu0 %v2862_v38  ;;  %4027 = vmatpush3.msra.mxu1 %v2879_v34 }
 0x126   : > { %3995 = vmatprep.subr.mxu0 %v4384_v2  ;;  %4028 = vmatprep.subr.mxu1 %v4384_v2 }
 0x127   : > { %3996 = vmatpush3.msra.mxu0 %v2861_v39  ;;  %4029 = vmatpush3.msra.mxu1 %v2878_v41  ;;  %v2884_v39 = vld [vmem:[%s6199_s1 + $0x910] sm:$0xff]  ;;  %v2901_v41 = vld [vmem:[%s6199_s1 + $0x998] sm:$0xff] }
 0x128   : > { %3997 = vmatprep.subr.mxu0 %v4384_v2  ;;  %4030 = vmatprep.subr.mxu1 %v4384_v2 }
 0x129   : > { %3998 = vmatpush3.msra.mxu0 %v2860_v42  ;;  %4031 = vmatpush3.msra.mxu1 %v2877_v43 }
 0x12a   : > { %3999 = vmatprep.subr.mxu0 %v4384_v2  ;;  %4032 = vmatprep.subr.mxu1 %v4384_v2 }
 0x12b   : > { %4000 = vmatpush3.msra.mxu0 %v2859_v44  ;;  %4033 = vmatpush3.msra.mxu1 %v2876_v45  ;;  %v2883_v44 = vld [vmem:[%s6199_s1 + $0x908] sm:$0xff]  ;;  %v2900_v45 = vld [vmem:[%s6199_s1 + $0x990] sm:$0xff] }
 0x12c   : > { %4001 = vmatprep.subr.mxu0 %v4384_v2  ;;  %4034 = vmatprep.subr.mxu1 %v4384_v2 }
 0x12d   : > { %4002 = vmatpush3.msra.mxu0 %v2858_v46  ;;  %4035 = vmatpush3.msra.mxu1 %v2875_v40  ;;  %v1848_v46 = vrot.slane %v5675_v6, 1  ;;  %v2882_v40 = vld [vmem:[%s6199_s1 + $0x900] sm:$0xff] }
 0x12e   : > { %4003 = vmatprep.subr.mxu0 %v4384_v2  ;;  %4036 = vmatprep.subr.mxu1 %v4384_v2 }
 0x12f   : > { %4004 = vmatpush3.msra.mxu0 %v2857_v47  ;;  %4037 = vmatpush3.msra.mxu1 %v2874_v48  ;;  %v2899_v47 = vld [vmem:[%s6199_s1 + $0x988] sm:$0xff]  ;;  %v1938_v48 = vrot.slane %v5546_v32, 2  ;;  %v2930_v32 = vld [vmem:[%s6199_s1 + $0xa70] sm:$0xff] }
 0x130   : > { %4005 = vmatprep.subr.mxu0 %v4384_v2  ;;  %4038 = vmatprep.subr.mxu1 %v4384_v2 }
 0x131   : > { %4006 = vmatpush3.msra.mxu0 %v2856_v49  ;;  %4039 = vmatpush3.msra.mxu1 %v2873_v50  ;;  %v2898_v49 = vld [vmem:[%s6199_s1 + $0x980] sm:$0xff]  ;;  %v2931_v50 = vld [vmem:[%s6199_s1 + $0xa78] sm:$0xff] }
 0x132   : > { %4007 = vmatprep.subr.mxu0 %v4384_v2  ;;  %4040 = vmatprep.subr.mxu1 %v4384_v2  ;;  %v638_v55 = vpop.f32.mrf.mxu0 }
 0x133   : > { %4008 = vmatpush3.msra.mxu0 %v2855_v51  ;;  %4041 = vmatpush3.msra.mxu1 %v2872_v52  ;;  %v642_v56 = vadd.f32 %v638_v55, %v5516_v24  ;;  %v2907_v24 = vld [vmem:[%s6199_s1 + $0x9c8] sm:$0xff]  ;;  %v2949_v51 = vld [vmem:[%s6199_s1 + $0xaf8] sm:$0xff] }
 0x134   : > { %4009 = vmatprep.subr.mxu0 %v4384_v2  ;;  %4042 = vmatprep.subr.mxu1 %v4384_v2  ;;  %v3601_v59 = vpop.f32.mrf.mxu0  ;;  %v2929_v52 = vld [vmem:[%s6199_s1 + $0xa68] sm:$0xff] }
 0x135   : > { %4010 = vmatpush3.msra.mxu0 %v2854_v53  ;;  %4043 = vmatpush3.msra.mxu1 %v2871_v54  ;;  %v730_v60 = vpop.f32.mrf.mxu1  ;;  %v2948_v53 = vld [vmem:[%s6199_s1 + $0xaf0] sm:$0xff]  ;;  %v2928_v54 = vld [vmem:[%s6199_s1 + $0xa60] sm:$0xff]  ;;  %v2947_v55 = vld [vmem:[%s6199_s1 + $0xae8] sm:$0xff] }
 0x136   : > { %4011 = vmatprep.subr.mxu0 %v4384_v2  ;;  %4044 = vmatprep.subr.mxu1 %v4384_v2  ;;  %v5656_v63 = vadd.f32 %v730_v60, %v642_v56  ;;  %v2927_v56 = vld [vmem:[%s6199_s1 + $0xa58] sm:$0xff]  ;;  %v2925_v60 = vld [vmem:[%s6199_s1 + $0xa48] sm:$0xff] }
 0x137   : > { %4012 = vmatpush3.msra.mxu0 %v2853_v57  ;;  %4045 = vmatpush3.msra.mxu1 %v2870_v58  ;;  %v3636_v0 = vpop.f32.mrf.mxu1  ;;  %v2946_v57 = vld [vmem:[%s6199_s1 + $0xae0] sm:$0xff]  ;;  %v2926_v58 = vld [vmem:[%s6199_s1 + $0xa50] sm:$0xff]  ;;  %v2945_v59 = vld [vmem:[%s6199_s1 + $0xad8] sm:$0xff] }
 0x138   : > { %4013 = vmatprep.subr.mxu0 %v4384_v2  ;;  %4046 = vmatprep.subr.mxu1 %v4384_v2  ;;  %v2923_v0 = vld [vmem:[%s6199_s1 + $0xa38] sm:$0xff] }
 0x139   : > { %4014 = vmatpush3.msra.mxu0 %v2852_v61  ;;  %4047 = vmatpush3.msra.mxu1 %v2869_v62  ;;  %v2944_v61 = vld [vmem:[%s6199_s1 + $0xad0] sm:$0xff]  ;;  %v2924_v62 = vld [vmem:[%s6199_s1 + $0xa40] sm:$0xff] }
 0x13a   : > { %4015 = vmatprep.subr.mxu0 %v4384_v2  ;;  %4048 = vmatprep.subr.mxu1 %v4384_v2 }
 0x13b   : > { %4016 = vmatpush3.msra.mxu0 %v2851_v1  ;;  %4049 = vmatpush3.msra.mxu1 %v2868_v3  ;;  %v2942_v1 = vld [vmem:[%s6199_s1 + $0xac0] sm:$0xff]  ;;  %v2922_v3 = vld [vmem:[%s6199_s1 + $0xa30] sm:$0xff] }
 0x13c   : > { %4017 = vmatprep.subr.mxu0 %v4384_v2  ;;  %4050 = vmatprep.subr.mxu1 %v4384_v2 }
 0x13d   : > { %4018 = vmatpush3.msra.mxu0 %v2850_v4  ;;  %4019 = vmatprep.mubr.msk.f32.mxu0 %vm4385_vm0, %v4384_v2  ;;  %v2941_v4 = vld [vmem:[%s6199_s1 + $0xab8] sm:$0xff] }
 0x13e   : > { %4051 = vmatpush3.msra.mxu1 %v2867_v5  ;;  %4020 = vmatmul.mubr.f32.vlgmr.msra.gmra.mxu0 %v5675_v6  ;;  %v2921_v5 = vld [vmem:[%s6199_s1 + $0xa28] sm:$0xff]  ;;  %v2940_v6 = vld [vmem:[%s6199_s1 + $0xab0] sm:$0xff] }
 0x13f   : > { %4052 = vmatprep.subr.mxu1 %v4384_v2  ;;  %4057 = vmatprep.subr.mxu0 %v4384_v2 }
 0x140   : > { %4053 = vmatpush3.msra.mxu1 %v2866_v8  ;;  %4054 = vmatprep.mubr.msk.f32.mxu1 %vm4385_vm0, %v4384_v2  ;;  %v2939_v8 = vld [vmem:[%s6199_s1 + $0xaa8] sm:$0xff] }
 0x141   : > { %4058 = vmatpush3.msra.mxu0 %v2897_v9  ;;  %4055 = vmatmul.mubr.f32.vlgmr.msra.gmra.mxu1 %v1757_v7  ;;  %v2920_v7 = vld [vmem:[%s6199_s1 + $0xa20] sm:$0xff] }
 0x142   : > { %4059 = vmatprep.subr.mxu0 %v4384_v2  ;;  %4092 = vmatprep.subr.mxu1 %v4384_v2 }
 0x143   : > { %4060 = vmatpush3.msra.mxu0 %v2896_v10  ;;  %4093 = vmatpush3.msra.mxu1 %v2913_v11  ;;  %v2919_v11 = vld [vmem:[%s6199_s1 + $0xa18] sm:$0xff] }
 0x144   : > { %4061 = vmatprep.subr.mxu0 %v4384_v2  ;;  %4094 = vmatprep.subr.mxu1 %v4384_v2 }
 0x145   : > { %4062 = vmatpush3.msra.mxu0 %v2895_v12  ;;  %4095 = vmatpush3.msra.mxu1 %v2912_v14  ;;  %v2938_v12 = vld [vmem:[%s6199_s1 + $0xaa0] sm:$0xff] }
 0x146   : > { %4063 = vmatprep.subr.mxu0 %v4384_v2  ;;  %4096 = vmatprep.subr.mxu1 %v4384_v2 }
 0x147   : > { %4064 = vmatpush3.msra.mxu0 %v2894_v15  ;;  %4097 = vmatpush3.msra.mxu1 %v2911_v16  ;;  %v2918_v16 = vld [vmem:[%s6199_s1 + $0xa10] sm:$0xff] }
 0x148   : > { %4065 = vmatprep.subr.mxu0 %v4384_v2  ;;  %4098 = vmatprep.subr.mxu1 %v4384_v2 }
 0x149   : > { %4066 = vmatpush3.msra.mxu0 %v2893_v17  ;;  %4099 = vmatpush3.msra.mxu1 %v2910_v18  ;;  %v2937_v17 = vld [vmem:[%s6199_s1 + $0xa98] sm:$0xff] }
 0x14a   : > { %4067 = vmatprep.subr.mxu0 %v4384_v2  ;;  %4100 = vmatprep.subr.mxu1 %v4384_v2 }
 0x14b   : > { %4068 = vmatpush3.msra.mxu0 %v2892_v19  ;;  %4101 = vmatpush3.msra.mxu1 %v2909_v20  ;;  %v2917_v20 = vld [vmem:[%s6199_s1 + $0xa08] sm:$0xff] }
 0x14c   : > { %4069 = vmatprep.subr.mxu0 %v4384_v2  ;;  %4102 = vmatprep.subr.mxu1 %v4384_v2 }
 0x14d   : > { %4070 = vmatpush3.msra.mxu0 %v2891_v21  ;;  %4103 = vmatpush3.msra.mxu1 %v2908_v22  ;;  %v2936_v21 = vld [vmem:[%s6199_s1 + $0xa90] sm:$0xff]  ;;  %v2916_v22 = vld [vmem:[%s6199_s1 + $0xa00] sm:$0xff] }
 0x14e   : > { %4071 = vmatprep.subr.mxu0 %v4384_v2  ;;  %4104 = vmatprep.subr.mxu1 %v4384_v2 }
 0x14f   : > { %4072 = vmatpush3.msra.mxu0 %v2890_v23  ;;  %4105 = vmatpush3.msra.mxu1 %v2907_v24  ;;  %v2935_v23 = vld [vmem:[%s6199_s1 + $0xa88] sm:$0xff] }
 0x150   : > { %4073 = vmatprep.subr.mxu0 %v4384_v2  ;;  %4106 = vmatprep.subr.mxu1 %v4384_v2  ;;  %v5952_v24 = vld [vmem:[%s4567_s24 + $0x8] sm:$0xf] }
 0x151   : > { %4074 = vmatpush3.msra.mxu0 %v2889_v25  ;;  %4107 = vmatpush3.msra.mxu1 %v2906_v26  ;;  %v2934_v25 = vld [vmem:[%s6199_s1 + $0xa80] sm:$0xff]  ;;  %v2965_v26 = vld [vmem:[%s6199_s1 + $0xb78] sm:$0xff] }
 0x152   : > { %4075 = vmatprep.subr.mxu0 %v4384_v2  ;;  %4108 = vmatprep.subr.mxu1 %v4384_v2 }
 0x153   : > { %4076 = vmatpush3.msra.mxu0 %v2888_v27  ;;  %4109 = vmatpush3.msra.mxu1 %v2905_v28  ;;  %v5966_v27 = vld [vmem:[%s4567_s24 + $0x18] sm:$0xf]  ;;  %v2964_v28 = vld [vmem:[%s6199_s1 + $0xb70] sm:$0xff] }
 0x154   : > { %4077 = vmatprep.subr.mxu0 %v4384_v2  ;;  %4110 = vmatprep.subr.mxu1 %v4384_v2  ;;  %v822_v33 = vpop.f32.mrf.mxu0 }
 0x155   : > { %4078 = vmatpush3.msra.mxu0 %v2887_v29  ;;  %4111 = vmatpush3.msra.mxu1 %v2904_v30  ;;  %v826_v35 = vadd.f32 %v822_v33, %v5656_v63  ;;  %v2943_v63 = vld [vmem:[%s6199_s1 + $0xac8] sm:$0xff]  ;;  %v2981_v29 = vld [vmem:[%s6199_s1 + $0xbf8] sm:$0xff] }
 0x156   : > { %4079 = vmatprep.subr.mxu0 %v4384_v2  ;;  %4112 = vmatprep.subr.mxu1 %v4384_v2  ;;  %v3671_v38 = vpop.f32.mrf.mxu0  ;;  %v2963_v30 = vld [vmem:[%s6199_s1 + $0xb68] sm:$0xff] }
 0x157   : > { %4080 = vmatpush3.msra.mxu0 %v2886_v13  ;;  %4113 = vmatpush3.msra.mxu1 %v2903_v31  ;;  %v913_v34 = vpop.f32.mrf.mxu1  ;;  %v2980_v13 = vld [vmem:[%s6199_s1 + $0xbf0] sm:$0xff]  ;;  %v2962_v31 = vld [vmem:[%s6199_s1 + $0xb60] sm:$0xff]  ;;  %v2979_v33 = vld [vmem:[%s6199_s1 + $0xbe8] sm:$0xff] }
 0x158   : > { %4081 = vmatprep.subr.mxu0 %v4384_v2  ;;  %4114 = vmatprep.subr.mxu1 %v4384_v2  ;;  %v5796_v42 = vadd.f32 %v913_v34, %v826_v35  ;;  %v2961_v35 = vld [vmem:[%s6199_s1 + $0xb58] sm:$0xff]  ;;  %v2959_v34 = vld [vmem:[%s6199_s1 + $0xb48] sm:$0xff] }
 0x159   : > { %4082 = vmatpush3.msra.mxu0 %v2885_v36  ;;  %4115 = vmatpush3.msra.mxu1 %v2902_v37  ;;  %v3706_v43 = vpop.f32.mrf.mxu1  ;;  %v2978_v36 = vld [vmem:[%s6199_s1 + $0xbe0] sm:$0xff]  ;;  %v2960_v37 = vld [vmem:[%s6199_s1 + $0xb50] sm:$0xff]  ;;  %v2977_v38 = vld [vmem:[%s6199_s1 + $0xbd8] sm:$0xff] }
 0x15a   : > { %4083 = vmatprep.subr.mxu0 %v4384_v2  ;;  %4116 = vmatprep.subr.mxu1 %v4384_v2  ;;  %v2957_v43 = vld [vmem:[%s6199_s1 + $0xb38] sm:$0xff] }
 0x15b   : > { %4084 = vmatpush3.msra.mxu0 %v2884_v39  ;;  %4117 = vmatpush3.msra.mxu1 %v2901_v41  ;;  %v2976_v39 = vld [vmem:[%s6199_s1 + $0xbd0] sm:$0xff]  ;;  %v2958_v41 = vld [vmem:[%s6199_s1 + $0xb40] sm:$0xff] }
 0x15c   : > { %4085 = vmatprep.subr.mxu0 %v4384_v2  ;;  %4118 = vmatprep.subr.mxu1 %v4384_v2 }
 0x15d   : > { %4086 = vmatpush3.msra.mxu0 %v2883_v44  ;;  %4119 = vmatpush3.msra.mxu1 %v2900_v45  ;;  %v2974_v44 = vld [vmem:[%s6199_s1 + $0xbc0] sm:$0xff]  ;;  %v2956_v45 = vld [vmem:[%s6199_s1 + $0xb30] sm:$0xff] }
 0x15e   : > { %4087 = vmatprep.subr.mxu0 %v4384_v2  ;;  %4120 = vmatprep.subr.mxu1 %v4384_v2 }
 0x15f   : > { %4088 = vmatpush3.msra.mxu0 %v2882_v40  ;;  %4089 = vmatprep.mubr.msk.f32.mxu0 %vm4385_vm0, %v4384_v2  ;;  %v2955_v40 = vld [vmem:[%s6199_s1 + $0xb28] sm:$0xff] }
 0x160   : > { %4121 = vmatpush3.msra.mxu1 %v2899_v47  ;;  %4090 = vmatmul.mubr.f32.vlgmr.msra.gmra.mxu0 %v1848_v46  ;;  %v2973_v46 = vld [vmem:[%s6199_s1 + $0xbb8] sm:$0xff]  ;;  %v2972_v47 = vld [vmem:[%s6199_s1 + $0xbb0] sm:$0xff] }
 0x161   : > { %4122 = vmatprep.subr.mxu1 %v4384_v2  ;;  %4127 = vmatprep.subr.mxu0 %v4384_v2 }
 0x162   : > { %4123 = vmatpush3.msra.mxu1 %v2898_v49  ;;  %4124 = vmatprep.mubr.msk.f32.mxu1 %vm4385_vm0, %v4384_v2  ;;  %v2971_v49 = vld [vmem:[%s6199_s1 + $0xba8] sm:$0xff] }
 0x163   : > { %4128 = vmatpush3.msra.mxu0 %v2931_v50  ;;  %4125 = vmatmul.mubr.f32.vlgmr.msra.gmra.mxu1 %v1938_v48  ;;  %v2954_v48 = vld [vmem:[%s6199_s1 + $0xb20] sm:$0xff] }
 0x164   : > { %4129 = vmatprep.subr.mxu0 %v4384_v2  ;;  %4162 = vmatprep.subr.mxu1 %v4384_v2 }
 0x165   : > { %4130 = vmatpush3.msra.mxu0 %v2930_v32  ;;  %4163 = vmatpush3.msra.mxu1 %v2949_v51  ;;  %v2953_v51 = vld [vmem:[%s6199_s1 + $0xb18] sm:$0xff] }
 0x166   : > { %4131 = vmatprep.subr.mxu0 %v4384_v2  ;;  %4164 = vmatprep.subr.mxu1 %v4384_v2 }
 0x167   : > { %4132 = vmatpush3.msra.mxu0 %v2929_v52  ;;  %4165 = vmatpush3.msra.mxu1 %v2948_v53  ;;  %v2970_v52 = vld [vmem:[%s6199_s1 + $0xba0] sm:$0xff] }
 0x168   : > { %4133 = vmatprep.subr.mxu0 %v4384_v2  ;;  %4166 = vmatprep.subr.mxu1 %v4384_v2 }
 0x169   : > { %4134 = vmatpush3.msra.mxu0 %v2928_v54  ;;  %4167 = vmatpush3.msra.mxu1 %v2947_v55  ;;  %v2952_v55 = vld [vmem:[%s6199_s1 + $0xb10] sm:$0xff] }
 0x16a   : > { %4135 = vmatprep.subr.mxu0 %v4384_v2  ;;  %4168 = vmatprep.subr.mxu1 %v4384_v2 }
 0x16b   : > { %4136 = vmatpush3.msra.mxu0 %v2927_v56  ;;  %4169 = vmatpush3.msra.mxu1 %v2946_v57  ;;  %v2969_v56 = vld [vmem:[%s6199_s1 + $0xb98] sm:$0xff] }
 0x16c   : > { %4137 = vmatprep.subr.mxu0 %v4384_v2  ;;  %4170 = vmatprep.subr.mxu1 %v4384_v2 }
 0x16d   : > { %4138 = vmatpush3.msra.mxu0 %v2926_v58  ;;  %4171 = vmatpush3.msra.mxu1 %v2945_v59  ;;  %v2951_v59 = vld [vmem:[%s6199_s1 + $0xb08] sm:$0xff] }
 0x16e   : > { %4139 = vmatprep.subr.mxu0 %v4384_v2  ;;  %4172 = vmatprep.subr.mxu1 %v4384_v2 }
 0x16f   : > { %4140 = vmatpush3.msra.mxu0 %v2925_v60  ;;  %4173 = vmatpush3.msra.mxu1 %v2944_v61  ;;  %v2968_v60 = vld [vmem:[%s6199_s1 + $0xb90] sm:$0xff]  ;;  %v2213_v61 = vrot.slane %v5952_v24, 1 }
 0x170   : > { %4141 = vmatprep.subr.mxu0 %v4384_v2  ;;  %4174 = vmatprep.subr.mxu1 %v4384_v2 }
 0x171   : > { %4142 = vmatpush3.msra.mxu0 %v2924_v62  ;;  %4175 = vmatpush3.msra.mxu1 %v2943_v63  ;;  %v2950_v62 = vld [vmem:[%s6199_s1 + $0xb00] sm:$0xff]  ;;  %v2967_v63 = vld [vmem:[%s6199_s1 + $0xb88] sm:$0xff] }
 0x172   : > { %4143 = vmatprep.subr.mxu0 %v4384_v2  ;;  %4176 = vmatprep.subr.mxu1 %v4384_v2 }
 0x173   : > { %4144 = vmatpush3.msra.mxu0 %v2923_v0  ;;  %4177 = vmatpush3.msra.mxu1 %v2942_v1  ;;  %v2304_v0 = vrot.slane %v5966_v27, 1  ;;  %v2966_v1 = vld [vmem:[%s6199_s1 + $0xb80] sm:$0xff] }
 0x174   : > { %4145 = vmatprep.subr.mxu0 %v4384_v2  ;;  %4178 = vmatprep.subr.mxu1 %v4384_v2 }
 0x175   : > { %4146 = vmatpush3.msra.mxu0 %v2922_v3  ;;  %4179 = vmatpush3.msra.mxu1 %v2941_v4  ;;  %v2997_v3 = vld [vmem:[%s6199_s1 + $0xc78] sm:$0xff]  ;;  %v2996_v4 = vld [vmem:[%s6199_s1 + $0xc70] sm:$0xff] }
 0x176   : > { %4147 = vmatprep.subr.mxu0 %v4384_v2  ;;  %4180 = vmatprep.subr.mxu1 %v4384_v2  ;;  %v1004_v9 = vpop.f32.mrf.mxu0 }
 0x177   : > { %4148 = vmatpush3.msra.mxu0 %v2921_v5  ;;  %4181 = vmatpush3.msra.mxu1 %v2940_v6  ;;  %v1008_v10 = vadd.f32 %v1004_v9, %v5796_v42  ;;  %v2975_v42 = vld [vmem:[%s6199_s1 + $0xbc8] sm:$0xff]  ;;  %v2994_v6 = vld [vmem:[%s6199_s1 + $0xc60] sm:$0xff] }
 0x178   : > { %4149 = vmatprep.subr.mxu0 %v4384_v2  ;;  %4182 = vmatprep.subr.mxu1 %v4384_v2  ;;  %v3741_v14 = vpop.f32.mrf.mxu0  ;;  %v2995_v5 = vld [vmem:[%s6199_s1 + $0xc68] sm:$0xff] }
 0x179   : > { %4150 = vmatpush3.msra.mxu0 %v2920_v7  ;;  %4183 = vmatpush3.msra.mxu1 %v2939_v8  ;;  %v1094_v15 = vpop.f32.mrf.mxu1  ;;  %v2993_v7 = vld [vmem:[%s6199_s1 + $0xc58] sm:$0xff]  ;;  %v2992_v8 = vld [vmem:[%s6199_s1 + $0xc50] sm:$0xff]  ;;  %v2991_v9 = vld [vmem:[%s6199_s1 + $0xc48] sm:$0xff] }
 0x17a   : > { %4151 = vmatprep.subr.mxu0 %v4384_v2  ;;  %4184 = vmatprep.subr.mxu1 %v4384_v2  ;;  %v5933_v18 = vadd.f32 %v1094_v15, %v1008_v10  ;;  %v2990_v10 = vld [vmem:[%s6199_s1 + $0xc40] sm:$0xff]  ;;  %v2987_v14 = vld [vmem:[%s6199_s1 + $0xc28] sm:$0xff] }
 0x17b   : > { %4152 = vmatpush3.msra.mxu0 %v2919_v11  ;;  %4185 = vmatpush3.msra.mxu1 %v2938_v12  ;;  %v3776_v19 = vpop.f32.mrf.mxu1  ;;  %v2989_v11 = vld [vmem:[%s6199_s1 + $0xc38] sm:$0xff]  ;;  %v2988_v12 = vld [vmem:[%s6199_s1 + $0xc30] sm:$0xff]  ;;  %v2986_v15 = vld [vmem:[%s6199_s1 + $0xc20] sm:$0xff] }
 0x17c   : > { %4153 = vmatprep.subr.mxu0 %v4384_v2  ;;  %4186 = vmatprep.subr.mxu1 %v4384_v2 }
 0x17d   : > { %4154 = vmatpush3.msra.mxu0 %v2918_v16  ;;  %4187 = vmatpush3.msra.mxu1 %v2937_v17 }
 0x17e   : > { %4155 = vmatprep.subr.mxu0 %v4384_v2  ;;  %4188 = vmatprep.subr.mxu1 %v4384_v2 }
 0x17f   : > { %4156 = vmatpush3.msra.mxu0 %v2917_v20  ;;  %4189 = vmatpush3.msra.mxu1 %v2936_v21  ;;  %v2984_v21 = vld [vmem:[%s6199_s1 + $0xc10] sm:$0xff] }
 0x180   : > { %4157 = vmatprep.subr.mxu0 %v4384_v2  ;;  %4190 = vmatprep.subr.mxu1 %v4384_v2 }
 0x181   : > { %4158 = vmatpush3.msra.mxu0 %v2916_v22  ;;  %4159 = vmatprep.mubr.msk.f32.mxu0 %vm4385_vm0, %v4384_v2 }
 0x182   : > { %4191 = vmatpush3.msra.mxu1 %v2935_v23  ;;  %4160 = vmatmul.mubr.f32.vlgmr.msra.gmra.mxu0 %v5952_v24 }
 0x183   : > { %4192 = vmatprep.subr.mxu1 %v4384_v2  ;;  %4197 = vmatprep.subr.mxu0 %v4384_v2 }
 0x184   : > { %4193 = vmatpush3.msra.mxu1 %v2934_v25  ;;  %4194 = vmatprep.mubr.msk.f32.mxu1 %vm4385_vm0, %v4384_v2  ;;  %v2983_v25 = vld [vmem:[%s6199_s1 + $0xc08] sm:$0xff] }
 0x185   : > { %4198 = vmatpush3.msra.mxu0 %v2965_v26  ;;  %4195 = vmatmul.mubr.f32.vlgmr.msra.gmra.mxu1 %v5966_v27  ;;  %v2394_v26 = vrot.slane %v5952_v24, 2  ;;  %v2982_v27 = vld [vmem:[%s6199_s1 + $0xc00] sm:$0xff] }
 0x186   : > { %4199 = vmatprep.subr.mxu0 %v4384_v2  ;;  %4232 = vmatprep.subr.mxu1 %v4384_v2 }
 0x187   : > { %4200 = vmatpush3.msra.mxu0 %v2964_v28  ;;  %4233 = vmatpush3.msra.mxu1 %v2981_v29 }
 0x188   : > { %4201 = vmatprep.subr.mxu0 %v4384_v2  ;;  %4234 = vmatprep.subr.mxu1 %v4384_v2 }
 0x189   : > { %4202 = vmatpush3.msra.mxu0 %v2963_v30  ;;  %4235 = vmatpush3.msra.mxu1 %v2980_v13 }
 0x18a   : > { %4203 = vmatprep.subr.mxu0 %v4384_v2  ;;  %4236 = vmatprep.subr.mxu1 %v4384_v2 }
 0x18b   : > { %4204 = vmatpush3.msra.mxu0 %v2962_v31  ;;  %4237 = vmatpush3.msra.mxu1 %v2979_v33 }
 0x18c   : > { %4205 = vmatprep.subr.mxu0 %v4384_v2  ;;  %4238 = vmatprep.subr.mxu1 %v4384_v2 }
 0x18d   : > { %4206 = vmatpush3.msra.mxu0 %v2961_v35  ;;  %4239 = vmatpush3.msra.mxu1 %v2978_v36 }
 0x18e   : > { %4207 = vmatprep.subr.mxu0 %v4384_v2  ;;  %4240 = vmatprep.subr.mxu1 %v4384_v2 }
 0x18f   : > { %4208 = vmatpush3.msra.mxu0 %v2960_v37  ;;  %4241 = vmatpush3.msra.mxu1 %v2977_v38 }
 0x190   : > { %4209 = vmatprep.subr.mxu0 %v4384_v2  ;;  %4242 = vmatprep.subr.mxu1 %v4384_v2 }
 0x191   : > { %4210 = vmatpush3.msra.mxu0 %v2959_v34  ;;  %4243 = vmatpush3.msra.mxu1 %v2976_v39 }
 0x192   : > { %4211 = vmatprep.subr.mxu0 %v4384_v2  ;;  %4244 = vmatprep.subr.mxu1 %v4384_v2 }
 0x193   : > { %4212 = vmatpush3.msra.mxu0 %v2958_v41  ;;  %4245 = vmatpush3.msra.mxu1 %v2975_v42 }
 0x194   : > { %4213 = vmatprep.subr.mxu0 %v4384_v2  ;;  %4246 = vmatprep.subr.mxu1 %v4384_v2 }
 0x195   : > { %4214 = vmatpush3.msra.mxu0 %v2957_v43  ;;  %4247 = vmatpush3.msra.mxu1 %v2974_v44 }
 0x196   : > { %4215 = vmatprep.subr.mxu0 %v4384_v2  ;;  %4248 = vmatprep.subr.mxu1 %v4384_v2 }
 0x197   : > { %4216 = vmatpush3.msra.mxu0 %v2956_v45  ;;  %4249 = vmatpush3.msra.mxu1 %v2973_v46 }
 0x198   : > { %4217 = vmatprep.subr.mxu0 %v4384_v2  ;;  %4250 = vmatprep.subr.mxu1 %v4384_v2  ;;  %v1186_v50 = vpop.f32.mrf.mxu0 }
 0x199   : > { %4218 = vmatpush3.msra.mxu0 %v2955_v40  ;;  %4251 = vmatpush3.msra.mxu1 %v2972_v47  ;;  %v1190_v32 = vadd.f32 %v1186_v50, %v5933_v18  ;;  %v2985_v18 = vld [vmem:[%s6199_s1 + $0xc18] sm:$0xff] }
 0x19a   : > { %4219 = vmatprep.subr.mxu0 %v4384_v2  ;;  %4252 = vmatprep.subr.mxu1 %v4384_v2  ;;  %v3811_v53 = vpop.f32.mrf.mxu0 }
 0x19b   : > { %4220 = vmatpush3.msra.mxu0 %v2954_v48  ;;  %4253 = vmatpush3.msra.mxu1 %v2971_v49  ;;  %v1278_v54 = vpop.f32.mrf.mxu1 }
 0x19c   : > { %4221 = vmatprep.subr.mxu0 %v4384_v2  ;;  %4254 = vmatprep.subr.mxu1 %v4384_v2  ;;  %v6076_v57 = vadd.f32 %v1278_v54, %v1190_v32 }
 0x19d   : > { %4222 = vmatpush3.msra.mxu0 %v2953_v51  ;;  %4255 = vmatpush3.msra.mxu1 %v2970_v52  ;;  %v3846_v58 = vpop.f32.mrf.mxu1 }
 0x19e   : > { %4223 = vmatprep.subr.mxu0 %v4384_v2  ;;  %4256 = vmatprep.subr.mxu1 %v4384_v2 }
 0x19f   : > { %4224 = vmatpush3.msra.mxu0 %v2952_v55  ;;  %4257 = vmatpush3.msra.mxu1 %v2969_v56  ;;  %v2998_v56 = vld [vmem:[%s6200_s2] ss:$0 sm:$0xff] }
 0x1a0   : > { %4225 = vmatprep.subr.mxu0 %v4384_v2  ;;  %4258 = vmatprep.subr.mxu1 %v4384_v2 }
 0x1a1   : > { %4226 = vmatpush3.msra.mxu0 %v2951_v59  ;;  %4259 = vmatpush3.msra.mxu1 %v2968_v60 }
 0x1a2   : > { %4227 = vmatprep.subr.mxu0 %v4384_v2  ;;  %4260 = vmatprep.subr.mxu1 %v4384_v2 }
 0x1a3   : > { %4228 = vmatpush3.msra.mxu0 %v2950_v62  ;;  %4229 = vmatprep.mubr.msk.f32.mxu0 %vm4385_vm0, %v4384_v2 }
 0x1a4   : > { %4261 = vmatpush3.msra.mxu1 %v2967_v63  ;;  %4230 = vmatmul.mubr.f32.vlgmr.msra.gmra.mxu0 %v2213_v61 }
 0x1a5   : > { %4262 = vmatprep.subr.mxu1 %v4384_v2  ;;  %4267 = vmatprep.subr.mxu0 %v4384_v2 }
 0x1a6   : > { %4263 = vmatpush3.msra.mxu1 %v2966_v1  ;;  %4264 = vmatprep.mubr.msk.f32.mxu1 %vm4385_vm0, %v4384_v2 }
 0x1a7   : > { %4268 = vmatpush3.msra.mxu0 %v2997_v3  ;;  %4265 = vmatmul.mubr.f32.vlgmr.msra.gmra.mxu1 %v2304_v0 }
 0x1a8   : > { %4269 = vmatprep.subr.mxu0 %v4384_v2  ;;  %4299 = vmatprep.mubr.msk.f32.mxu0 %vm4385_vm0, %v4384_v2 }
 0x1a9   : > { %4270 = vmatpush3.msra.mxu0 %v2996_v4 }
 0x1aa   : > { %4271 = vmatprep.subr.mxu0 %v4384_v2 }
 0x1ab   : > { %4272 = vmatpush3.msra.mxu0 %v2995_v5 }
 0x1ac   : > { %4273 = vmatprep.subr.mxu0 %v4384_v2 }
 0x1ad   : > { %4274 = vmatpush3.msra.mxu0 %v2994_v6 }
 0x1ae   : > { %4275 = vmatprep.subr.mxu0 %v4384_v2 }
 0x1af   : > { %4276 = vmatpush3.msra.mxu0 %v2993_v7 }
 0x1b0   : > { %4277 = vmatprep.subr.mxu0 %v4384_v2 }
 0x1b1   : > { %4278 = vmatpush3.msra.mxu0 %v2992_v8 }
 0x1b2   : > { %4279 = vmatprep.subr.mxu0 %v4384_v2 }
 0x1b3   : > { %4280 = vmatpush3.msra.mxu0 %v2991_v9 }
 0x1b4   : > { %4281 = vmatprep.subr.mxu0 %v4384_v2 }
 0x1b5   : > { %4282 = vmatpush3.msra.mxu0 %v2990_v10 }
 0x1b6   : > { %4283 = vmatprep.subr.mxu0 %v4384_v2 }
 0x1b7   : > { %4284 = vmatpush3.msra.mxu0 %v2989_v11 }
 0x1b8   : > { %4285 = vmatprep.subr.mxu0 %v4384_v2 }
 0x1b9   : > { %4286 = vmatpush3.msra.mxu0 %v2988_v12 }
 0x1ba   : > { %4287 = vmatprep.subr.mxu0 %v4384_v2  ;;  %v1369_v16 = vpop.f32.mrf.mxu0 }
 0x1bb   : > { %4288 = vmatpush3.msra.mxu0 %v2987_v14  ;;  %v1373_v17 = vadd.f32 %v1369_v16, %v6076_v57 }
 0x1bc   : > { %4289 = vmatprep.subr.mxu0 %v4384_v2  ;;  %v3881_v19 = vpop.f32.mrf.mxu0 }
 0x1bd   : > { %4290 = vmatpush3.msra.mxu0 %v2986_v15  ;;  %v1460_v20 = vpop.f32.mrf.mxu1 }
 0x1be   : > { %4291 = vmatprep.subr.mxu0 %v4384_v2  ;;  %v1464_v22 = vadd.f32 %v1460_v20, %v1373_v17 }
 0x1bf   : > { %4292 = vmatpush3.msra.mxu0 %v2985_v18  ;;  %v3916_v23 = vpop.f32.mrf.mxu1 }
 0x1c0   : > { %4293 = vmatprep.subr.mxu0 %v4384_v2 }
 0x1c1   : > { %4294 = vmatpush3.msra.mxu0 %v2984_v21 }
 0x1c2   : > { %4295 = vmatprep.subr.mxu0 %v4384_v2 }
 0x1c3   : > { %4296 = vmatpush3.msra.mxu0 %v2983_v25 }
 0x1c4   : > { %4297 = vmatprep.subr.mxu0 %v4384_v2 }
 0x1c5   : > { %4298 = vmatpush3.msra.mxu0 %v2982_v27 }
 0x1c6   : > { %4300 = vmatmul.mubr.f32.vlgmr.msra.gmra.mxu0 %v2394_v26 }
 0x1dc   : > { %v1550_v28 = vpop.f32.mrf.mxu0 }
 0x1dd   : > { %v1554_v29 = vadd.f32 %v1550_v28, %v1464_v22 }
 0x1de   : > { %v3951_v30 = vpop.f32.mrf.mxu0 }
 0x1df   : > { %v1642_v13 = vpop.f32.mrf.mxu1 }
 0x1e0   : > { %v1646_v31 = vadd.f32 %v1642_v13, %v1554_v29 }
 0x1e1   : > { %v3986_v33 = vpop.f32.mrf.mxu1 }
 0x1fe   : > { %v1734_v35 = vpop.f32.mrf.mxu0 }
 0x1ff   : > { %v1738_v36 = vadd.f32 %v1734_v35, %v1646_v31 }
 0x200   : > { %v4021_v24 = vpop.f32.mrf.mxu0 }
 0x201   : > { %v1825_v37 = vpop.f32.mrf.mxu1 }
 0x202   : > { %v1829_v38 = vadd.f32 %v1825_v37, %v1738_v36 }
 0x203   : > { %v4056_v34 = vpop.f32.mrf.mxu1 }
 0x220   : > { %v1916_v39 = vpop.f32.mrf.mxu0 }
 0x221   : > { %v1920_v41 = vadd.f32 %v1916_v39, %v1829_v38 }
 0x222   : > { %v4091_v42 = vpop.f32.mrf.mxu0 }
 0x223   : > { %v2006_v2 = vpop.f32.mrf.mxu1 }
 0x224   : > { %v2010_v43 = vadd.f32 %v2006_v2, %v1920_v41 }
 0x225   : > { %v4126_v44 = vpop.f32.mrf.mxu1 }
 0x242   : > { %v2098_v45 = vpop.f32.mrf.mxu0 }
 0x243   : > { %v2102_v51 = vadd.f32 %v2098_v45, %v2010_v43 }
 0x244   : > { %v4161_v46 = vpop.f32.mrf.mxu0 }
 0x245   : > { %v2190_v40 = vpop.f32.mrf.mxu1 }
 0x246   : > { %v2194_v52 = vadd.f32 %v2190_v40, %v2102_v51 }
 0x247   : > { %v4196_v47 = vpop.f32.mrf.mxu1 }
 0x264   : > { %v2281_v48 = vpop.f32.mrf.mxu0 }
 0x265   : > { %v2285_v53 = vadd.f32 %v2281_v48, %v2194_v52 }
 0x266   : > { %v4231_v49 = vpop.f32.mrf.mxu0 }
 0x267   : > { %v2372_v50 = vpop.f32.mrf.mxu1 }
 0x268   : > { %v2376_v54 = vadd.f32 %v2372_v50, %v2285_v53 }
 0x269   : > { %v4266_v32 = vpop.f32.mrf.mxu1 }
 0x286   : > { %v2462_v55 = vpop.f32.mrf.mxu0 }
 0x287   : > { %v2466_v57 = vadd.f32 %v2462_v55, %v2376_v54 }
 0x288   : > { %v4301_v58 = vpop.f32.mrf.mxu0 }
 0x289   : > { %v2474_v59 = vadd.f32 %v2998_v56, %v2466_v57 }
 0x28b   : > { %v2475_v60 = vmax.f32 %v2474_v59, 0.0 }
 0x28d   : > { %2476 = vst [vmem:[%s190_s26] sm:$0x3] %v2475_v60 }
 0x28e PF: > { %s13_s16 = sadd.s32 1, %s4382_s16   ;;  %s6202_s12 = smov %s4374_s14 }
 0x28f   : > { %p10_p7 = scmp.ge.s32.totalorder %s13_s16, 6   ;;  %s6203_s13 = smov %s4378_s15 }
 0x290   : > { %s6204_s14 = smov %s6207_s17  ;;  %s6205_s15 = smov %s6211_s18 }
 0x291   :  { %12 = sbr.rel (!%p10_p7) target bundleno = 3 (0x3), region = 96 }

// kernel: forward.9
= control target key start
LH: loop header
LB: loop body
LE: loop exit
PB: predicated region body
PF: predicated region fallthrough
CT: control target
= control target key end

     0   :  { %v181_v0 = vmov 0.0   ;;  %vm182_vm0 = vmmov 0   ;;  %s260_s1 = inlined_call_operand.vmem [shape: f32[128,128], index: 1, kind: input, shape index: {}]   ;;  %s261_s0 = inlined_call_operand.vmem [shape: f32[8,128], index: 0, kind: input, shape index: {}]   ;;  %s262_s2 = inlined_call_operand.vmem [shape: f32[1,128], index: 2, kind: input, shape index: {}]   ;;  %s263_s3 = inlined_call_operand.vmem [shape: f32[8,128], index: 3, kind: output, shape index: {}]  }
   0x1   :  { %144 = vmatprep.subr.mxu0 %v181_v0  ;;  %v36_v1 = vld [vmem:[%s260_s1 + $0x78] sm:$0xff]  ;;  %v35_v2 = vld [vmem:[%s260_s1 + $0x70] sm:$0xff]  ;;  %176 = vmatprep.mubr.msk.f32.mxu0 %vm182_vm0, %v181_v0  ;;  %v34_v3 = vld [vmem:[%s260_s1 + $0x68] sm:$0xff] }
   0x2   :  { %145 = vmatpush3.msra.mxu0 %v36_v1  ;;  %v33_v4 = vld [vmem:[%s260_s1 + $0x60] sm:$0xff]  ;;  %v32_v5 = vld [vmem:[%s260_s1 + $0x58] sm:$0xff]  ;;  %v31_v6 = vld [vmem:[%s260_s1 + $0x50] sm:$0xff] }
   0x3   :  { %146 = vmatprep.subr.mxu0 %v181_v0  ;;  %v30_v7 = vld [vmem:[%s260_s1 + $0x48] sm:$0xff]  ;;  %v29_v8 = vld [vmem:[%s260_s1 + $0x40] sm:$0xff]  ;;  %v28_v9 = vld [vmem:[%s260_s1 + $0x38] sm:$0xff] }
   0x4   :  { %147 = vmatpush3.msra.mxu0 %v35_v2  ;;  %v27_v10 = vld [vmem:[%s260_s1 + $0x30] sm:$0xff]  ;;  %v26_v11 = vld [vmem:[%s260_s1 + $0x28] sm:$0xff]  ;;  %v25_v12 = vld [vmem:[%s260_s1 + $0x20] sm:$0xff] }
   0x5   :  { %148 = vmatprep.subr.mxu0 %v181_v0  ;;  %v24_v13 = vld [vmem:[%s260_s1 + $0x18] sm:$0xff]  ;;  %v23_v14 = vld [vmem:[%s260_s1 + $0x10] sm:$0xff]  ;;  %v22_v15 = vld [vmem:[%s260_s1 + $0x8] sm:$0xff] }
   0x6   :  { %149 = vmatpush3.msra.mxu0 %v34_v3  ;;  %v21_v16 = vld [vmem:[%s260_s1] sm:$0xff] }
   0x7   :  { %150 = vmatprep.subr.mxu0 %v181_v0  ;;  %v19_v17 = vld [vmem:[%s261_s0] sm:$0xff] }
   0x8   :  { %151 = vmatpush3.msra.mxu0 %v33_v4  ;;  %v126_v18 = vld [vmem:[%s262_s2] ss:$0 sm:$0xff] }
   0x9   :  { %152 = vmatprep.subr.mxu0 %v181_v0 }
   0xa   :  { %153 = vmatpush3.msra.mxu0 %v32_v5 }
   0xb   :  { %154 = vmatprep.subr.mxu0 %v181_v0 }
   0xc   :  { %155 = vmatpush3.msra.mxu0 %v31_v6 }
   0xd   :  { %156 = vmatprep.subr.mxu0 %v181_v0 }
   0xe   :  { %157 = vmatpush3.msra.mxu0 %v30_v7 }
   0xf   :  { %158 = vmatprep.subr.mxu0 %v181_v0 }
  0x10   :  { %159 = vmatpush3.msra.mxu0 %v29_v8 }
  0x11   :  { %160 = vmatprep.subr.mxu0 %v181_v0 }
  0x12   :  { %161 = vmatpush3.msra.mxu0 %v28_v9 }
  0x13   :  { %162 = vmatprep.subr.mxu0 %v181_v0 }
  0x14   :  { %163 = vmatpush3.msra.mxu0 %v27_v10 }
  0x15   :  { %164 = vmatprep.subr.mxu0 %v181_v0 }
  0x16   :  { %165 = vmatpush3.msra.mxu0 %v26_v11 }
  0x17   :  { %166 = vmatprep.subr.mxu0 %v181_v0 }
  0x18   :  { %167 = vmatpush3.msra.mxu0 %v25_v12 }
  0x19   :  { %168 = vmatprep.subr.mxu0 %v181_v0 }
  0x1a   :  { %169 = vmatpush3.msra.mxu0 %v24_v13 }
  0x1b   :  { %170 = vmatprep.subr.mxu0 %v181_v0 }
  0x1c   :  { %171 = vmatpush3.msra.mxu0 %v23_v14 }
  0x1d   :  { %172 = vmatprep.subr.mxu0 %v181_v0 }
  0x1e   :  { %173 = vmatpush3.msra.mxu0 %v22_v15 }
  0x1f   :  { %174 = vmatprep.subr.mxu0 %v181_v0 }
  0x20   :  { %175 = vmatpush3.msra.mxu0 %v21_v16 }
  0x21   :  { %177 = vmatmul.mubr.f32.vlgmr.msra.gmra.mxu0 %v19_v17 }
  0xe1   :  { %v103_v19 = vpop.f32.mrf.mxu0 }
  0xe2   :  { %v120_v20 = vadd.f32 %v126_v18, %v103_v19 }
  0xe3   :  { %v178_v21 = vpop.f32.mrf.mxu0 }
  0xe4   :  { %121 = vst [vmem:[%s263_s3] sm:$0xff] %v120_v20 }

// kernel: forward.8
= control target key start
LH: loop header
LB: loop body
LE: loop exit
PB: predicated region body
PF: predicated region fallthrough
CT: control target
= control target key end

     0   :  { %s4335_s12 = smov 0   ;;  %s4337_s13 = smov 0   ;;  %s6104_s0 = inlined_call_operand.vmem [shape: f32[2,12,3,128], index: 0, kind: input, shape index: {}]   ;;  %s6105_s1 = inlined_call_operand.vmem [shape: f32[25,128,128], index: 1, kind: input, shape index: {}]   ;;  %s6106_s2 = inlined_call_operand.vmem [shape: f32[1,128], index: 2, kind: input, shape index: {}]   ;;  %s6107_s3 = inlined_call_operand.vmem [shape: f32[2,1,1,128], index: 3, kind: output, shape index: {}]  }
   0x1   :  { %s4339_s14 = smov 0  }
   0x2 LB: > { %s25_s15 = sadd.s32 1, %s4307_s13  ;;  %p2565_p0 = scmp.ge.s32.totalorder %s4311_s14, 1  ;;  %s4311_s14 = sphi %s4339_s14, %s13_s14   ;;  %s4307_s13 = sphi %s4337_s13, %s6109_s13   ;;  %s4303_s12 = sphi %s4335_s12, %s6108_s12  }
   0x3   : > { %p27_p1 = scmp.ge.s32.totalorder %s25_s15, 2  ;;  %p151_p2 = scmp.lt.s32.totalorder %s4311_s14, 3 }
   0x5   : > { %s6111_s15 = smov (%p27_p1, %s25_s15), 0  ;;  %p152_p3 = pnand %p2565_p0, %p151_p2 }
   0x6   : > { %p176_p4 = scmp.lt.s32.totalorder (!%p152_p3), %s4303_s12, 1 }
   0x7   : > { %155 = sbr.rel (%p152_p3) target bundleno = 652 (0x28c), region = 32 }
   0xc   : > { %v2583_v0 = vld [vmem:[%s6105_s1 + $0xf8] sm:$0xff]  ;;  %v4313_v2 = vmov 0.0   ;;  %v2582_v3 = vld [vmem:[%s6105_s1 + $0xf0] sm:$0xff]  ;;  %v2581_v5 = vld [vmem:[%s6105_s1 + $0xe8] sm:$0xff]  ;;  %s6113_s12 = smov (!%p176_p4, %s4303_s12), 1  ;;  %vm4314_vm0 = vmmov 0  }
   0xd   : > { %v205_v1 = vld [vmem:[%s6105_s1 + $0x78] sm:$0xff]  ;;  %3387 = vmatprep.subr.mxu0 %v4313_v2  ;;  %3422 = vmatprep.subr.mxu1 %v4313_v2  ;;  %v204_v4 = vld [vmem:[%s6105_s1 + $0x70] sm:$0xff]  ;;  %v203_v6 = vld [vmem:[%s6105_s1 + $0x68] sm:$0xff]  ;;  %s4262_s22 = smul.u32 48, %s6113_s12  ;;  %s186_s24 = scalar_lea.vmem %s6107_s3, %s6113_s12 }
   0xe   : > { %3388 = vmatpush3.msra.mxu0 %v2583_v0  ;;  %3423 = vmatpush3.msra.mxu1 %v205_v1  ;;  %v2580_v7 = vld [vmem:[%s6105_s1 + $0xe0] sm:$0xff]  ;;  %v2579_v9 = vld [vmem:[%s6105_s1 + $0xd8] sm:$0xff]  ;;  %v2578_v11 = vld [vmem:[%s6105_s1 + $0xd0] sm:$0xff] }
   0xf   : > { %3389 = vmatprep.subr.mxu0 %v4313_v2  ;;  %3424 = vmatprep.subr.mxu1 %v4313_v2  ;;  %v202_v8 = vld [vmem:[%s6105_s1 + $0x60] sm:$0xff]  ;;  %v201_v10 = vld [vmem:[%s6105_s1 + $0x58] sm:$0xff]  ;;  %v200_v12 = vld [vmem:[%s6105_s1 + $0x50] sm:$0xff]  ;;  %s4481_s6 = scalar_lea.vmem %s6104_s0, %s4262_s22 }
  0x10   : > { %3390 = vmatpush3.msra.mxu0 %v2582_v3  ;;  %3425 = vmatpush3.msra.mxu1 %v204_v4  ;;  %v2577_v13 = vld [vmem:[%s6105_s1 + $0xc8] sm:$0xff]  ;;  %v2576_v15 = vld [vmem:[%s6105_s1 + $0xc0] sm:$0xff]  ;;  %v2575_v17 = vld [vmem:[%s6105_s1 + $0xb8] sm:$0xff] }
  0x11   : > { %3391 = vmatprep.subr.mxu0 %v4313_v2  ;;  %3426 = vmatprep.subr.mxu1 %v4313_v2  ;;  %v199_v14 = vld [vmem:[%s6105_s1 + $0x48] sm:$0xff]  ;;  %v198_v16 = vld [vmem:[%s6105_s1 + $0x40] sm:$0xff]  ;;  %v197_v18 = vld [vmem:[%s6105_s1 + $0x38] sm:$0xff] }
  0x12   : > { %3392 = vmatpush3.msra.mxu0 %v2581_v5  ;;  %3427 = vmatpush3.msra.mxu1 %v203_v6  ;;  %v2574_v19 = vld [vmem:[%s6105_s1 + $0xb0] sm:$0xff]  ;;  %v2573_v21 = vld [vmem:[%s6105_s1 + $0xa8] sm:$0xff]  ;;  %v2572_v23 = vld [vmem:[%s6105_s1 + $0xa0] sm:$0xff] }
  0x13   : > { %3393 = vmatprep.subr.mxu0 %v4313_v2  ;;  %3428 = vmatprep.subr.mxu1 %v4313_v2  ;;  %v196_v20 = vld [vmem:[%s6105_s1 + $0x30] sm:$0xff]  ;;  %v195_v22 = vld [vmem:[%s6105_s1 + $0x28] sm:$0xff]  ;;  %v194_v24 = vld [vmem:[%s6105_s1 + $0x20] sm:$0xff] }
  0x14   : > { %3394 = vmatpush3.msra.mxu0 %v2580_v7  ;;  %3429 = vmatpush3.msra.mxu1 %v202_v8  ;;  %v2571_v25 = vld [vmem:[%s6105_s1 + $0x98] sm:$0xff]  ;;  %v2570_v27 = vld [vmem:[%s6105_s1 + $0x90] sm:$0xff]  ;;  %v2569_v29 = vld [vmem:[%s6105_s1 + $0x88] sm:$0xff] }
  0x15   : > { %3395 = vmatprep.subr.mxu0 %v4313_v2  ;;  %3430 = vmatprep.subr.mxu1 %v4313_v2  ;;  %v193_v26 = vld [vmem:[%s6105_s1 + $0x18] sm:$0xff]  ;;  %v192_v28 = vld [vmem:[%s6105_s1 + $0x10] sm:$0xff]  ;;  %v191_v30 = vld [vmem:[%s6105_s1 + $0x8] sm:$0xff] }
  0x16   : > { %3396 = vmatpush3.msra.mxu0 %v2579_v9  ;;  %3431 = vmatpush3.msra.mxu1 %v201_v10  ;;  %v2568_v31 = vld [vmem:[%s6105_s1 + $0x80] sm:$0xff]  ;;  %v4489_v32 = vld [vmem:[%s4481_s6 + $0xc] sm:$0x7]  ;;  %v2599_v35 = vld [vmem:[%s6105_s1 + $0x178] sm:$0xff] }
  0x17   : > { %3397 = vmatprep.subr.mxu0 %v4313_v2  ;;  %3432 = vmatprep.subr.mxu1 %v4313_v2  ;;  %v190_v33 = vld [vmem:[%s6105_s1] sm:$0xff]  ;;  %v2598_v36 = vld [vmem:[%s6105_s1 + $0x170] sm:$0xff]  ;;  %v2615_v37 = vld [vmem:[%s6105_s1 + $0x1f8] sm:$0xff]  ;;  %v476_v4 = vrot.slane %v4489_v32, 1 }
  0x18   : > { %3398 = vmatpush3.msra.mxu0 %v2578_v11  ;;  %3433 = vmatpush3.msra.mxu1 %v200_v12  ;;  %v4499_v34 = vld [vmem:[%s4481_s6] sm:$0x7]  ;;  %v2597_v38 = vld [vmem:[%s6105_s1 + $0x168] sm:$0xff]  ;;  %v2614_v39 = vld [vmem:[%s6105_s1 + $0x1f0] sm:$0xff] }
  0x19   : > { %3399 = vmatprep.subr.mxu0 %v4313_v2  ;;  %3434 = vmatprep.subr.mxu1 %v4313_v2  ;;  %v2596_v40 = vld [vmem:[%s6105_s1 + $0x160] sm:$0xff]  ;;  %v2613_v41 = vld [vmem:[%s6105_s1 + $0x1e8] sm:$0xff]  ;;  %v2595_v42 = vld [vmem:[%s6105_s1 + $0x158] sm:$0xff]  ;;  %v385_v0 = vrot.slane %v4499_v34, 1 }
  0x1a   : > { %3400 = vmatpush3.msra.mxu0 %v2577_v13  ;;  %3435 = vmatpush3.msra.mxu1 %v199_v14  ;;  %v2612_v43 = vld [vmem:[%s6105_s1 + $0x1e0] sm:$0xff]  ;;  %v2594_v44 = vld [vmem:[%s6105_s1 + $0x150] sm:$0xff]  ;;  %v2611_v45 = vld [vmem:[%s6105_s1 + $0x1d8] sm:$0xff] }
  0x1b   : > { %3401 = vmatprep.subr.mxu0 %v4313_v2  ;;  %3436 = vmatprep.subr.mxu1 %v4313_v2  ;;  %v2593_v46 = vld [vmem:[%s6105_s1 + $0x148] sm:$0xff]  ;;  %v2610_v47 = vld [vmem:[%s6105_s1 + $0x1d0] sm:$0xff]  ;;  %v2592_v48 = vld [vmem:[%s6105_s1 + $0x140] sm:$0xff] }
  0x1c   : > { %3402 = vmatpush3.msra.mxu0 %v2576_v15  ;;  %3437 = vmatpush3.msra.mxu1 %v198_v16  ;;  %v2609_v49 = vld [vmem:[%s6105_s1 + $0x1c8] sm:$0xff]  ;;  %v2591_v50 = vld [vmem:[%s6105_s1 + $0x138] sm:$0xff]  ;;  %v2608_v51 = vld [vmem:[%s6105_s1 + $0x1c0] sm:$0xff] }
  0x1d   : > { %3403 = vmatprep.subr.mxu0 %v4313_v2  ;;  %3438 = vmatprep.subr.mxu1 %v4313_v2  ;;  %v2590_v52 = vld [vmem:[%s6105_s1 + $0x130] sm:$0xff]  ;;  %v2607_v53 = vld [vmem:[%s6105_s1 + $0x1b8] sm:$0xff]  ;;  %v2589_v54 = vld [vmem:[%s6105_s1 + $0x128] sm:$0xff] }
  0x1e   : > { %3404 = vmatpush3.msra.mxu0 %v2575_v17  ;;  %3439 = vmatpush3.msra.mxu1 %v197_v18  ;;  %v2606_v55 = vld [vmem:[%s6105_s1 + $0x1b0] sm:$0xff]  ;;  %v2588_v56 = vld [vmem:[%s6105_s1 + $0x120] sm:$0xff]  ;;  %v2605_v57 = vld [vmem:[%s6105_s1 + $0x1a8] sm:$0xff] }
  0x1f   : > { %3405 = vmatprep.subr.mxu0 %v4313_v2  ;;  %3440 = vmatprep.subr.mxu1 %v4313_v2  ;;  %v2587_v58 = vld [vmem:[%s6105_s1 + $0x118] sm:$0xff]  ;;  %v2604_v59 = vld [vmem:[%s6105_s1 + $0x1a0] sm:$0xff]  ;;  %v2586_v60 = vld [vmem:[%s6105_s1 + $0x110] sm:$0xff] }
  0x20   : > { %3406 = vmatpush3.msra.mxu0 %v2574_v19  ;;  %3441 = vmatpush3.msra.mxu1 %v196_v20  ;;  %v2603_v61 = vld [vmem:[%s6105_s1 + $0x198] sm:$0xff]  ;;  %v2585_v62 = vld [vmem:[%s6105_s1 + $0x108] sm:$0xff]  ;;  %v2602_v63 = vld [vmem:[%s6105_s1 + $0x190] sm:$0xff] }
  0x21   : > { %3407 = vmatprep.subr.mxu0 %v4313_v2  ;;  %3442 = vmatprep.subr.mxu1 %v4313_v2  ;;  %v2584_v1 = vld [vmem:[%s6105_s1 + $0x100] sm:$0xff]  ;;  %v2601_v3 = vld [vmem:[%s6105_s1 + $0x188] sm:$0xff]  ;;  %v2631_v6 = vld [vmem:[%s6105_s1 + $0x278] sm:$0xff] }
  0x22   : > { %3408 = vmatpush3.msra.mxu0 %v2573_v21  ;;  %3443 = vmatpush3.msra.mxu1 %v195_v22  ;;  %v2600_v5 = vld [vmem:[%s6105_s1 + $0x180] sm:$0xff]  ;;  %v2630_v7 = vld [vmem:[%s6105_s1 + $0x270] sm:$0xff]  ;;  %v2648_v8 = vld [vmem:[%s6105_s1 + $0x2f8] sm:$0xff] }
  0x23   : > { %3409 = vmatprep.subr.mxu0 %v4313_v2  ;;  %3444 = vmatprep.subr.mxu1 %v4313_v2  ;;  %v2629_v9 = vld [vmem:[%s6105_s1 + $0x268] sm:$0xff]  ;;  %v2647_v10 = vld [vmem:[%s6105_s1 + $0x2f0] sm:$0xff]  ;;  %v2628_v11 = vld [vmem:[%s6105_s1 + $0x260] sm:$0xff] }
  0x24   : > { %3410 = vmatpush3.msra.mxu0 %v2572_v23  ;;  %3445 = vmatpush3.msra.mxu1 %v194_v24  ;;  %v2646_v12 = vld [vmem:[%s6105_s1 + $0x2e8] sm:$0xff]  ;;  %v2627_v13 = vld [vmem:[%s6105_s1 + $0x258] sm:$0xff]  ;;  %v2645_v14 = vld [vmem:[%s6105_s1 + $0x2e0] sm:$0xff] }
  0x25   : > { %3411 = vmatprep.subr.mxu0 %v4313_v2  ;;  %3446 = vmatprep.subr.mxu1 %v4313_v2  ;;  %v2626_v15 = vld [vmem:[%s6105_s1 + $0x250] sm:$0xff]  ;;  %v2644_v16 = vld [vmem:[%s6105_s1 + $0x2d8] sm:$0xff]  ;;  %v2625_v17 = vld [vmem:[%s6105_s1 + $0x248] sm:$0xff] }
  0x26   : > { %3412 = vmatpush3.msra.mxu0 %v2571_v25  ;;  %3447 = vmatpush3.msra.mxu1 %v193_v26  ;;  %v2643_v18 = vld [vmem:[%s6105_s1 + $0x2d0] sm:$0xff]  ;;  %v2624_v19 = vld [vmem:[%s6105_s1 + $0x240] sm:$0xff]  ;;  %v2642_v20 = vld [vmem:[%s6105_s1 + $0x2c8] sm:$0xff] }
  0x27   : > { %3413 = vmatprep.subr.mxu0 %v4313_v2  ;;  %3448 = vmatprep.subr.mxu1 %v4313_v2  ;;  %v2623_v21 = vld [vmem:[%s6105_s1 + $0x238] sm:$0xff]  ;;  %v2641_v22 = vld [vmem:[%s6105_s1 + $0x2c0] sm:$0xff]  ;;  %v2622_v23 = vld [vmem:[%s6105_s1 + $0x230] sm:$0xff] }
  0x28   : > { %3414 = vmatpush3.msra.mxu0 %v2570_v27  ;;  %3449 = vmatpush3.msra.mxu1 %v192_v28  ;;  %v2640_v24 = vld [vmem:[%s6105_s1 + $0x2b8] sm:$0xff]  ;;  %v2621_v25 = vld [vmem:[%s6105_s1 + $0x228] sm:$0xff]  ;;  %v2639_v26 = vld [vmem:[%s6105_s1 + $0x2b0] sm:$0xff] }
  0x29   : > { %3415 = vmatprep.subr.mxu0 %v4313_v2  ;;  %3450 = vmatprep.subr.mxu1 %v4313_v2  ;;  %v2620_v27 = vld [vmem:[%s6105_s1 + $0x220] sm:$0xff]  ;;  %v2638_v28 = vld [vmem:[%s6105_s1 + $0x2a8] sm:$0xff] }
  0x2a   : > { %3416 = vmatpush3.msra.mxu0 %v2569_v29  ;;  %3451 = vmatpush3.msra.mxu1 %v191_v30  ;;  %v2619_v29 = vld [vmem:[%s6105_s1 + $0x218] sm:$0xff]  ;;  %v2637_v30 = vld [vmem:[%s6105_s1 + $0x2a0] sm:$0xff] }
  0x2b   : > { %3417 = vmatprep.subr.mxu0 %v4313_v2  ;;  %3419 = vmatprep.mubr.msk.f32.mxu0 %vm4314_vm0, %v4313_v2 }
  0x2c   : > { %3418 = vmatpush3.msra.mxu0 %v2568_v31  ;;  %3452 = vmatprep.subr.mxu1 %v4313_v2  ;;  %v2618_v31 = vld [vmem:[%s6105_s1 + $0x210] sm:$0xff] }
  0x2d   : > { %3420 = vmatmul.mubr.f32.vlgmr.msra.gmra.mxu0 %v4489_v32  ;;  %3453 = vmatpush3.msra.mxu1 %v190_v33  ;;  %v2636_v32 = vld [vmem:[%s6105_s1 + $0x298] sm:$0xff]  ;;  %v2617_v33 = vld [vmem:[%s6105_s1 + $0x208] sm:$0xff] }
  0x2e   : > { %3454 = vmatprep.mubr.msk.f32.mxu1 %vm4314_vm0, %v4313_v2  ;;  %3457 = vmatprep.subr.mxu0 %v4313_v2 }
  0x2f   : > { %3455 = vmatmul.mubr.f32.vlgmr.msra.gmra.mxu1 %v4499_v34  ;;  %3458 = vmatpush3.msra.mxu0 %v2599_v35  ;;  %v2635_v35 = vld [vmem:[%s6105_s1 + $0x290] sm:$0xff] }
  0x30   : > { %3459 = vmatprep.subr.mxu0 %v4313_v2  ;;  %3492 = vmatprep.subr.mxu1 %v4313_v2 }
  0x31   : > { %3460 = vmatpush3.msra.mxu0 %v2598_v36  ;;  %3493 = vmatpush3.msra.mxu1 %v2615_v37  ;;  %v566_v36 = vrot.slane %v4499_v34, 2  ;;  %v2616_v37 = vld [vmem:[%s6105_s1 + $0x200] sm:$0xff] }
  0x32   : > { %3461 = vmatprep.subr.mxu0 %v4313_v2  ;;  %3494 = vmatprep.subr.mxu1 %v4313_v2  ;;  %v2633_v34 = vld [vmem:[%s6105_s1 + $0x280] sm:$0xff] }
  0x33   : > { %3462 = vmatpush3.msra.mxu0 %v2597_v38  ;;  %3495 = vmatpush3.msra.mxu1 %v2614_v39  ;;  %v2634_v38 = vld [vmem:[%s6105_s1 + $0x288] sm:$0xff]  ;;  %v2665_v39 = vld [vmem:[%s6105_s1 + $0x378] sm:$0xff] }
  0x34   : > { %3463 = vmatprep.subr.mxu0 %v4313_v2  ;;  %3496 = vmatprep.subr.mxu1 %v4313_v2 }
  0x35   : > { %3464 = vmatpush3.msra.mxu0 %v2596_v40  ;;  %3497 = vmatpush3.msra.mxu1 %v2613_v41  ;;  %v4773_v40 = vld [vmem:[%s4481_s6 + $0x18] sm:$0x7]  ;;  %v2664_v41 = vld [vmem:[%s6105_s1 + $0x370] sm:$0xff] }
  0x36   : > { %3465 = vmatprep.subr.mxu0 %v4313_v2  ;;  %3498 = vmatprep.subr.mxu1 %v4313_v2 }
  0x37   : > { %3466 = vmatpush3.msra.mxu0 %v2595_v42  ;;  %3499 = vmatpush3.msra.mxu1 %v2612_v43  ;;  %v2681_v42 = vld [vmem:[%s6105_s1 + $0x3f8] sm:$0xff]  ;;  %v2663_v43 = vld [vmem:[%s6105_s1 + $0x368] sm:$0xff] }
  0x38   : > { %3467 = vmatprep.subr.mxu0 %v4313_v2  ;;  %3500 = vmatprep.subr.mxu1 %v4313_v2 }
  0x39   : > { %3468 = vmatpush3.msra.mxu0 %v2594_v44  ;;  %3501 = vmatpush3.msra.mxu1 %v2611_v45  ;;  %v2680_v44 = vld [vmem:[%s6105_s1 + $0x3f0] sm:$0xff]  ;;  %v2662_v45 = vld [vmem:[%s6105_s1 + $0x360] sm:$0xff] }
  0x3a   : > { %3469 = vmatprep.subr.mxu0 %v4313_v2  ;;  %3502 = vmatprep.subr.mxu1 %v4313_v2 }
  0x3b   : > { %3470 = vmatpush3.msra.mxu0 %v2593_v46  ;;  %3503 = vmatpush3.msra.mxu1 %v2610_v47  ;;  %v2679_v46 = vld [vmem:[%s6105_s1 + $0x3e8] sm:$0xff]  ;;  %v2661_v47 = vld [vmem:[%s6105_s1 + $0x358] sm:$0xff] }
  0x3c   : > { %3471 = vmatprep.subr.mxu0 %v4313_v2  ;;  %3504 = vmatprep.subr.mxu1 %v4313_v2 }
  0x3d   : > { %3472 = vmatpush3.msra.mxu0 %v2592_v48  ;;  %3505 = vmatpush3.msra.mxu1 %v2609_v49  ;;  %v2678_v48 = vld [vmem:[%s6105_s1 + $0x3e0] sm:$0xff]  ;;  %v2660_v49 = vld [vmem:[%s6105_s1 + $0x350] sm:$0xff] }
  0x3e   : > { %3473 = vmatprep.subr.mxu0 %v4313_v2  ;;  %3506 = vmatprep.subr.mxu1 %v4313_v2 }
  0x3f   : > { %3474 = vmatpush3.msra.mxu0 %v2591_v50  ;;  %3507 = vmatpush3.msra.mxu1 %v2608_v51  ;;  %v2677_v50 = vld [vmem:[%s6105_s1 + $0x3d8] sm:$0xff]  ;;  %v2659_v51 = vld [vmem:[%s6105_s1 + $0x348] sm:$0xff] }
  0x40   : > { %3475 = vmatprep.subr.mxu0 %v4313_v2  ;;  %3508 = vmatprep.subr.mxu1 %v4313_v2 }
  0x41   : > { %3476 = vmatpush3.msra.mxu0 %v2590_v52  ;;  %3509 = vmatpush3.msra.mxu1 %v2607_v53  ;;  %v2676_v52 = vld [vmem:[%s6105_s1 + $0x3d0] sm:$0xff]  ;;  %v2658_v53 = vld [vmem:[%s6105_s1 + $0x340] sm:$0xff] }
  0x42   : > { %3477 = vmatprep.subr.mxu0 %v4313_v2  ;;  %3510 = vmatprep.subr.mxu1 %v4313_v2 }
  0x43   : > { %3478 = vmatpush3.msra.mxu0 %v2589_v54  ;;  %3511 = vmatpush3.msra.mxu1 %v2606_v55  ;;  %v2675_v54 = vld [vmem:[%s6105_s1 + $0x3c8] sm:$0xff]  ;;  %v2657_v55 = vld [vmem:[%s6105_s1 + $0x338] sm:$0xff] }
  0x44   : > { %3479 = vmatprep.subr.mxu0 %v4313_v2  ;;  %3512 = vmatprep.subr.mxu1 %v4313_v2 }
  0x45   : > { %3480 = vmatpush3.msra.mxu0 %v2588_v56  ;;  %3513 = vmatpush3.msra.mxu1 %v2605_v57  ;;  %v2674_v56 = vld [vmem:[%s6105_s1 + $0x3c0] sm:$0xff]  ;;  %v2656_v57 = vld [vmem:[%s6105_s1 + $0x330] sm:$0xff] }
  0x46   : > { %3481 = vmatprep.subr.mxu0 %v4313_v2  ;;  %3514 = vmatprep.subr.mxu1 %v4313_v2 }
  0x47   : > { %3482 = vmatpush3.msra.mxu0 %v2587_v58  ;;  %3515 = vmatpush3.msra.mxu1 %v2604_v59  ;;  %v2673_v58 = vld [vmem:[%s6105_s1 + $0x3b8] sm:$0xff]  ;;  %v2655_v59 = vld [vmem:[%s6105_s1 + $0x328] sm:$0xff] }
  0x48   : > { %3483 = vmatprep.subr.mxu0 %v4313_v2  ;;  %3516 = vmatprep.subr.mxu1 %v4313_v2 }
  0x49   : > { %3484 = vmatpush3.msra.mxu0 %v2586_v60  ;;  %3517 = vmatpush3.msra.mxu1 %v2603_v61  ;;  %v2672_v60 = vld [vmem:[%s6105_s1 + $0x3b0] sm:$0xff]  ;;  %v2654_v61 = vld [vmem:[%s6105_s1 + $0x320] sm:$0xff] }
  0x4a   : > { %3485 = vmatprep.subr.mxu0 %v4313_v2  ;;  %3518 = vmatprep.subr.mxu1 %v4313_v2 }
  0x4b   : > { %3486 = vmatpush3.msra.mxu0 %v2585_v62  ;;  %3519 = vmatpush3.msra.mxu1 %v2602_v63  ;;  %v2671_v62 = vld [vmem:[%s6105_s1 + $0x3a8] sm:$0xff]  ;;  %v2653_v63 = vld [vmem:[%s6105_s1 + $0x318] sm:$0xff] }
  0x4c   : > { %3487 = vmatprep.subr.mxu0 %v4313_v2  ;;  %3520 = vmatprep.subr.mxu1 %v4313_v2 }
  0x4d   : > { %3488 = vmatpush3.msra.mxu0 %v2584_v1  ;;  %3489 = vmatprep.mubr.msk.f32.mxu0 %vm4314_vm0, %v4313_v2  ;;  %v2652_v1 = vld [vmem:[%s6105_s1 + $0x310] sm:$0xff] }
  0x4e   : > { %3521 = vmatpush3.msra.mxu1 %v2601_v3  ;;  %3490 = vmatmul.mubr.f32.vlgmr.msra.gmra.mxu0 %v385_v0  ;;  %v2670_v0 = vld [vmem:[%s6105_s1 + $0x3a0] sm:$0xff]  ;;  %v2669_v3 = vld [vmem:[%s6105_s1 + $0x398] sm:$0xff] }
  0x4f   : > { %3522 = vmatprep.subr.mxu1 %v4313_v2  ;;  %3527 = vmatprep.subr.mxu0 %v4313_v2 }
  0x50   : > { %3523 = vmatpush3.msra.mxu1 %v2600_v5  ;;  %3524 = vmatprep.mubr.msk.f32.mxu1 %vm4314_vm0, %v4313_v2  ;;  %v2668_v5 = vld [vmem:[%s6105_s1 + $0x390] sm:$0xff] }
  0x51   : > { %3528 = vmatpush3.msra.mxu0 %v2631_v6  ;;  %3525 = vmatmul.mubr.f32.vlgmr.msra.gmra.mxu1 %v476_v4  ;;  %v2651_v4 = vld [vmem:[%s6105_s1 + $0x308] sm:$0xff]  ;;  %v2650_v6 = vld [vmem:[%s6105_s1 + $0x300] sm:$0xff] }
  0x52   : > { %3529 = vmatprep.subr.mxu0 %v4313_v2  ;;  %3562 = vmatprep.subr.mxu1 %v4313_v2 }
  0x53   : > { %3530 = vmatpush3.msra.mxu0 %v2630_v7  ;;  %3563 = vmatpush3.msra.mxu1 %v2648_v8  ;;  %v2667_v7 = vld [vmem:[%s6105_s1 + $0x388] sm:$0xff]  ;;  %v4899_v8 = vld [vmem:[%s4481_s6 + $0x24] sm:$0x7] }
  0x54   : > { %3531 = vmatprep.subr.mxu0 %v4313_v2  ;;  %3564 = vmatprep.subr.mxu1 %v4313_v2 }
  0x55   : > { %3532 = vmatpush3.msra.mxu0 %v2629_v9  ;;  %3565 = vmatpush3.msra.mxu1 %v2647_v10  ;;  %v841_v9 = vrot.slane %v4773_v40, 1  ;;  %v2666_v10 = vld [vmem:[%s6105_s1 + $0x380] sm:$0xff] }
  0x56   : > { %3533 = vmatprep.subr.mxu0 %v4313_v2  ;;  %3566 = vmatprep.subr.mxu1 %v4313_v2 }
  0x57   : > { %3534 = vmatpush3.msra.mxu0 %v2628_v11  ;;  %3567 = vmatpush3.msra.mxu1 %v2646_v12  ;;  %v2697_v11 = vld [vmem:[%s6105_s1 + $0x478] sm:$0xff]  ;;  %v2696_v12 = vld [vmem:[%s6105_s1 + $0x470] sm:$0xff] }
  0x58   : > { %3535 = vmatprep.subr.mxu0 %v4313_v2  ;;  %3568 = vmatprep.subr.mxu1 %v4313_v2 }
  0x59   : > { %3536 = vmatpush3.msra.mxu0 %v2627_v13  ;;  %3569 = vmatpush3.msra.mxu1 %v2645_v14  ;;  %v2713_v13 = vld [vmem:[%s6105_s1 + $0x4f8] sm:$0xff]  ;;  %v2695_v14 = vld [vmem:[%s6105_s1 + $0x468] sm:$0xff] }
  0x5a   : > { %3537 = vmatprep.subr.mxu0 %v4313_v2  ;;  %3570 = vmatprep.subr.mxu1 %v4313_v2 }
  0x5b   : > { %3538 = vmatpush3.msra.mxu0 %v2626_v15  ;;  %3571 = vmatpush3.msra.mxu1 %v2644_v16  ;;  %v2712_v15 = vld [vmem:[%s6105_s1 + $0x4f0] sm:$0xff]  ;;  %v2694_v16 = vld [vmem:[%s6105_s1 + $0x460] sm:$0xff] }
  0x5c   : > { %3539 = vmatprep.subr.mxu0 %v4313_v2  ;;  %3572 = vmatprep.subr.mxu1 %v4313_v2 }
  0x5d   : > { %3540 = vmatpush3.msra.mxu0 %v2625_v17  ;;  %3573 = vmatpush3.msra.mxu1 %v2643_v18  ;;  %v2711_v17 = vld [vmem:[%s6105_s1 + $0x4e8] sm:$0xff]  ;;  %v2693_v18 = vld [vmem:[%s6105_s1 + $0x458] sm:$0xff] }
  0x5e   : > { %3541 = vmatprep.subr.mxu0 %v4313_v2  ;;  %3574 = vmatprep.subr.mxu1 %v4313_v2 }
  0x5f   : > { %3542 = vmatpush3.msra.mxu0 %v2624_v19  ;;  %3575 = vmatpush3.msra.mxu1 %v2642_v20  ;;  %v2710_v19 = vld [vmem:[%s6105_s1 + $0x4e0] sm:$0xff]  ;;  %v2692_v20 = vld [vmem:[%s6105_s1 + $0x450] sm:$0xff] }
  0x60   : > { %3543 = vmatprep.subr.mxu0 %v4313_v2  ;;  %3576 = vmatprep.subr.mxu1 %v4313_v2 }
  0x61   : > { %3544 = vmatpush3.msra.mxu0 %v2623_v21  ;;  %3577 = vmatpush3.msra.mxu1 %v2641_v22  ;;  %v2709_v21 = vld [vmem:[%s6105_s1 + $0x4d8] sm:$0xff]  ;;  %v2691_v22 = vld [vmem:[%s6105_s1 + $0x448] sm:$0xff] }
  0x62   : > { %3545 = vmatprep.subr.mxu0 %v4313_v2  ;;  %3578 = vmatprep.subr.mxu1 %v4313_v2 }
  0x63   : > { %3546 = vmatpush3.msra.mxu0 %v2622_v23  ;;  %3579 = vmatpush3.msra.mxu1 %v2640_v24  ;;  %v2708_v23 = vld [vmem:[%s6105_s1 + $0x4d0] sm:$0xff]  ;;  %v2690_v24 = vld [vmem:[%s6105_s1 + $0x440] sm:$0xff] }
  0x64   : > { %3547 = vmatprep.subr.mxu0 %v4313_v2  ;;  %3580 = vmatprep.subr.mxu1 %v4313_v2 }
  0x65   : > { %3548 = vmatpush3.msra.mxu0 %v2621_v25  ;;  %3581 = vmatpush3.msra.mxu1 %v2639_v26  ;;  %v2707_v25 = vld [vmem:[%s6105_s1 + $0x4c8] sm:$0xff]  ;;  %v2689_v26 = vld [vmem:[%s6105_s1 + $0x438] sm:$0xff] }
  0x66   : > { %3549 = vmatprep.subr.mxu0 %v4313_v2  ;;  %3582 = vmatprep.subr.mxu1 %v4313_v2 }
  0x67   : > { %3550 = vmatpush3.msra.mxu0 %v2620_v27  ;;  %3583 = vmatpush3.msra.mxu1 %v2638_v28  ;;  %v2706_v27 = vld [vmem:[%s6105_s1 + $0x4c0] sm:$0xff]  ;;  %v2688_v28 = vld [vmem:[%s6105_s1 + $0x430] sm:$0xff] }
  0x68   : > { %3551 = vmatprep.subr.mxu0 %v4313_v2  ;;  %3584 = vmatprep.subr.mxu1 %v4313_v2 }
  0x69   : > { %3552 = vmatpush3.msra.mxu0 %v2619_v29  ;;  %3585 = vmatpush3.msra.mxu1 %v2637_v30  ;;  %v2705_v29 = vld [vmem:[%s6105_s1 + $0x4b8] sm:$0xff]  ;;  %v2687_v30 = vld [vmem:[%s6105_s1 + $0x428] sm:$0xff] }
  0x6a   : > { %3553 = vmatprep.subr.mxu0 %v4313_v2  ;;  %3586 = vmatprep.subr.mxu1 %v4313_v2 }
  0x6b   : > { %3554 = vmatpush3.msra.mxu0 %v2618_v31  ;;  %3587 = vmatpush3.msra.mxu1 %v2636_v32  ;;  %v2704_v31 = vld [vmem:[%s6105_s1 + $0x4b0] sm:$0xff]  ;;  %v2686_v32 = vld [vmem:[%s6105_s1 + $0x420] sm:$0xff] }
  0x6c   : > { %3555 = vmatprep.subr.mxu0 %v4313_v2  ;;  %3588 = vmatprep.subr.mxu1 %v4313_v2 }
  0x6d   : > { %3556 = vmatpush3.msra.mxu0 %v2617_v33  ;;  %3589 = vmatpush3.msra.mxu1 %v2635_v35  ;;  %v2703_v33 = vld [vmem:[%s6105_s1 + $0x4a8] sm:$0xff]  ;;  %v2685_v35 = vld [vmem:[%s6105_s1 + $0x418] sm:$0xff] }
  0x6e   : > { %3557 = vmatprep.subr.mxu0 %v4313_v2  ;;  %3590 = vmatprep.subr.mxu1 %v4313_v2 }
  0x6f   : > { %3558 = vmatpush3.msra.mxu0 %v2616_v37  ;;  %3559 = vmatprep.mubr.msk.f32.mxu0 %vm4314_vm0, %v4313_v2  ;;  %v2684_v37 = vld [vmem:[%s6105_s1 + $0x410] sm:$0xff] }
  0x70   : > { %3591 = vmatpush3.msra.mxu1 %v2634_v38  ;;  %3560 = vmatmul.mubr.f32.vlgmr.msra.gmra.mxu0 %v566_v36  ;;  %v2702_v36 = vld [vmem:[%s6105_s1 + $0x4a0] sm:$0xff]  ;;  %v2701_v38 = vld [vmem:[%s6105_s1 + $0x498] sm:$0xff] }
  0x71   : > { %3592 = vmatprep.subr.mxu1 %v4313_v2  ;;  %3597 = vmatprep.subr.mxu0 %v4313_v2 }
  0x72   : > { %3593 = vmatpush3.msra.mxu1 %v2633_v34  ;;  %3594 = vmatprep.mubr.msk.f32.mxu1 %vm4314_vm0, %v4313_v2  ;;  %v2683_v34 = vld [vmem:[%s6105_s1 + $0x408] sm:$0xff] }
  0x73   : > { %3598 = vmatpush3.msra.mxu0 %v2665_v39  ;;  %3595 = vmatmul.mubr.f32.vlgmr.msra.gmra.mxu1 %v4773_v40  ;;  %v2700_v39 = vld [vmem:[%s6105_s1 + $0x490] sm:$0xff] }
  0x74   : > { %3599 = vmatprep.subr.mxu0 %v4313_v2  ;;  %3632 = vmatprep.subr.mxu1 %v4313_v2 }
  0x75   : > { %3600 = vmatpush3.msra.mxu0 %v2664_v41  ;;  %3633 = vmatpush3.msra.mxu1 %v2681_v42  ;;  %v932_v41 = vrot.slane %v4899_v8, 1  ;;  %v2682_v42 = vld [vmem:[%s6105_s1 + $0x400] sm:$0xff] }
  0x76   : > { %3601 = vmatprep.subr.mxu0 %v4313_v2  ;;  %3634 = vmatprep.subr.mxu1 %v4313_v2 }
  0x77   : > { %3602 = vmatpush3.msra.mxu0 %v2663_v43  ;;  %3635 = vmatpush3.msra.mxu1 %v2680_v44  ;;  %v2699_v43 = vld [vmem:[%s6105_s1 + $0x488] sm:$0xff]  ;;  %v1022_v44 = vrot.slane %v4773_v40, 2  ;;  %v2729_v40 = vld [vmem:[%s6105_s1 + $0x570] sm:$0xff] }
  0x78   : > { %3603 = vmatprep.subr.mxu0 %v4313_v2  ;;  %3636 = vmatprep.subr.mxu1 %v4313_v2 }
  0x79   : > { %3604 = vmatpush3.msra.mxu0 %v2662_v45  ;;  %3637 = vmatpush3.msra.mxu1 %v2679_v46  ;;  %v2698_v45 = vld [vmem:[%s6105_s1 + $0x480] sm:$0xff]  ;;  %v2730_v46 = vld [vmem:[%s6105_s1 + $0x578] sm:$0xff] }
  0x7a   : > { %3605 = vmatprep.subr.mxu0 %v4313_v2  ;;  %3638 = vmatprep.subr.mxu1 %v4313_v2 }
  0x7b   : > { %3606 = vmatpush3.msra.mxu0 %v2661_v47  ;;  %3639 = vmatpush3.msra.mxu1 %v2678_v48  ;;  %v2747_v47 = vld [vmem:[%s6105_s1 + $0x5f8] sm:$0xff]  ;;  %v2728_v48 = vld [vmem:[%s6105_s1 + $0x568] sm:$0xff] }
  0x7c   : > { %3607 = vmatprep.subr.mxu0 %v4313_v2  ;;  %3640 = vmatprep.subr.mxu1 %v4313_v2 }
  0x7d   : > { %3608 = vmatpush3.msra.mxu0 %v2660_v49  ;;  %3641 = vmatpush3.msra.mxu1 %v2677_v50  ;;  %v2746_v49 = vld [vmem:[%s6105_s1 + $0x5f0] sm:$0xff]  ;;  %v2727_v50 = vld [vmem:[%s6105_s1 + $0x560] sm:$0xff] }
  0x7e   : > { %3609 = vmatprep.subr.mxu0 %v4313_v2  ;;  %3642 = vmatprep.subr.mxu1 %v4313_v2 }
  0x7f   : > { %3610 = vmatpush3.msra.mxu0 %v2659_v51  ;;  %3643 = vmatpush3.msra.mxu1 %v2676_v52  ;;  %v2745_v51 = vld [vmem:[%s6105_s1 + $0x5e8] sm:$0xff]  ;;  %v2726_v52 = vld [vmem:[%s6105_s1 + $0x558] sm:$0xff] }
  0x80   : > { %3611 = vmatprep.subr.mxu0 %v4313_v2  ;;  %3644 = vmatprep.subr.mxu1 %v4313_v2 }
  0x81   : > { %3612 = vmatpush3.msra.mxu0 %v2658_v53  ;;  %3645 = vmatpush3.msra.mxu1 %v2675_v54  ;;  %v2744_v53 = vld [vmem:[%s6105_s1 + $0x5e0] sm:$0xff]  ;;  %v2725_v54 = vld [vmem:[%s6105_s1 + $0x550] sm:$0xff] }
  0x82   : > { %3613 = vmatprep.subr.mxu0 %v4313_v2  ;;  %3646 = vmatprep.subr.mxu1 %v4313_v2 }
  0x83   : > { %3614 = vmatpush3.msra.mxu0 %v2657_v55  ;;  %3647 = vmatpush3.msra.mxu1 %v2674_v56  ;;  %v2743_v55 = vld [vmem:[%s6105_s1 + $0x5d8] sm:$0xff]  ;;  %v2724_v56 = vld [vmem:[%s6105_s1 + $0x548] sm:$0xff] }
  0x84   : > { %3615 = vmatprep.subr.mxu0 %v4313_v2  ;;  %3648 = vmatprep.subr.mxu1 %v4313_v2 }
  0x85   : > { %3616 = vmatpush3.msra.mxu0 %v2656_v57  ;;  %3649 = vmatpush3.msra.mxu1 %v2673_v58  ;;  %v2742_v57 = vld [vmem:[%s6105_s1 + $0x5d0] sm:$0xff]  ;;  %v2723_v58 = vld [vmem:[%s6105_s1 + $0x540] sm:$0xff] }
  0x86   : > { %3617 = vmatprep.subr.mxu0 %v4313_v2  ;;  %3650 = vmatprep.subr.mxu1 %v4313_v2 }
  0x87   : > { %3618 = vmatpush3.msra.mxu0 %v2655_v59  ;;  %3651 = vmatpush3.msra.mxu1 %v2672_v60  ;;  %v2741_v59 = vld [vmem:[%s6105_s1 + $0x5c8] sm:$0xff]  ;;  %v2722_v60 = vld [vmem:[%s6105_s1 + $0x538] sm:$0xff] }
  0x88   : > { %3619 = vmatprep.subr.mxu0 %v4313_v2  ;;  %3652 = vmatprep.subr.mxu1 %v4313_v2 }
  0x89   : > { %3620 = vmatpush3.msra.mxu0 %v2654_v61  ;;  %3653 = vmatpush3.msra.mxu1 %v2671_v62  ;;  %v2740_v61 = vld [vmem:[%s6105_s1 + $0x5c0] sm:$0xff]  ;;  %v2721_v62 = vld [vmem:[%s6105_s1 + $0x530] sm:$0xff] }
  0x8a   : > { %3621 = vmatprep.subr.mxu0 %v4313_v2  ;;  %3654 = vmatprep.subr.mxu1 %v4313_v2 }
  0x8b   : > { %3622 = vmatpush3.msra.mxu0 %v2653_v63  ;;  %3655 = vmatpush3.msra.mxu1 %v2670_v0  ;;  %v2739_v63 = vld [vmem:[%s6105_s1 + $0x5b8] sm:$0xff]  ;;  %v2720_v0 = vld [vmem:[%s6105_s1 + $0x528] sm:$0xff] }
  0x8c   : > { %3623 = vmatprep.subr.mxu0 %v4313_v2  ;;  %3656 = vmatprep.subr.mxu1 %v4313_v2 }
  0x8d   : > { %3624 = vmatpush3.msra.mxu0 %v2652_v1  ;;  %3657 = vmatpush3.msra.mxu1 %v2669_v3  ;;  %v2738_v1 = vld [vmem:[%s6105_s1 + $0x5b0] sm:$0xff]  ;;  %v2719_v3 = vld [vmem:[%s6105_s1 + $0x520] sm:$0xff] }
  0x8e   : > { %3625 = vmatprep.subr.mxu0 %v4313_v2  ;;  %3658 = vmatprep.subr.mxu1 %v4313_v2 }
  0x8f   : > { %3626 = vmatpush3.msra.mxu0 %v2651_v4  ;;  %3659 = vmatpush3.msra.mxu1 %v2668_v5  ;;  %v2737_v4 = vld [vmem:[%s6105_s1 + $0x5a8] sm:$0xff]  ;;  %v2718_v5 = vld [vmem:[%s6105_s1 + $0x518] sm:$0xff] }
  0x90   : > { %3627 = vmatprep.subr.mxu0 %v4313_v2  ;;  %3660 = vmatprep.subr.mxu1 %v4313_v2 }
  0x91   : > { %3628 = vmatpush3.msra.mxu0 %v2650_v6  ;;  %3629 = vmatprep.mubr.msk.f32.mxu0 %vm4314_vm0, %v4313_v2  ;;  %v2736_v6 = vld [vmem:[%s6105_s1 + $0x5a0] sm:$0xff] }
  0x92   : > { %3661 = vmatpush3.msra.mxu1 %v2667_v7  ;;  %3630 = vmatmul.mubr.f32.vlgmr.msra.gmra.mxu0 %v4899_v8  ;;  %v2717_v7 = vld [vmem:[%s6105_s1 + $0x510] sm:$0xff]  ;;  %v2735_v8 = vld [vmem:[%s6105_s1 + $0x598] sm:$0xff] }
  0x93   : > { %3662 = vmatprep.subr.mxu1 %v4313_v2  ;;  %3667 = vmatprep.subr.mxu0 %v4313_v2 }
  0x94   : > { %3663 = vmatpush3.msra.mxu1 %v2666_v10  ;;  %3664 = vmatprep.mubr.msk.f32.mxu1 %vm4314_vm0, %v4313_v2  ;;  %v2734_v10 = vld [vmem:[%s6105_s1 + $0x590] sm:$0xff] }
  0x95   : > { %3668 = vmatpush3.msra.mxu0 %v2697_v11  ;;  %3665 = vmatmul.mubr.f32.vlgmr.msra.gmra.mxu1 %v841_v9  ;;  %v2716_v9 = vld [vmem:[%s6105_s1 + $0x508] sm:$0xff]  ;;  %v2715_v11 = vld [vmem:[%s6105_s1 + $0x500] sm:$0xff] }
  0x96   : > { %3669 = vmatprep.subr.mxu0 %v4313_v2  ;;  %3702 = vmatprep.subr.mxu1 %v4313_v2 }
  0x97   : > { %3670 = vmatpush3.msra.mxu0 %v2696_v12  ;;  %3703 = vmatpush3.msra.mxu1 %v2713_v13  ;;  %v2733_v12 = vld [vmem:[%s6105_s1 + $0x588] sm:$0xff]  ;;  %v5170_v13 = vld [vmem:[%s4481_s6 + $0x4] sm:$0x7] }
  0x98   : > { %3671 = vmatprep.subr.mxu0 %v4313_v2  ;;  %3704 = vmatprep.subr.mxu1 %v4313_v2 }
  0x99   : > { %3672 = vmatpush3.msra.mxu0 %v2695_v14  ;;  %3705 = vmatpush3.msra.mxu1 %v2712_v15  ;;  %v2732_v14 = vld [vmem:[%s6105_s1 + $0x580] sm:$0xff]  ;;  %v2763_v15 = vld [vmem:[%s6105_s1 + $0x678] sm:$0xff] }
  0x9a   : > { %3673 = vmatprep.subr.mxu0 %v4313_v2  ;;  %3706 = vmatprep.subr.mxu1 %v4313_v2 }
  0x9b   : > { %3674 = vmatpush3.msra.mxu0 %v2694_v16  ;;  %3707 = vmatpush3.msra.mxu1 %v2711_v17  ;;  %v5184_v16 = vld [vmem:[%s4481_s6 + $0x10] sm:$0x7] }
  0x9c   : > { %3675 = vmatprep.subr.mxu0 %v4313_v2  ;;  %3708 = vmatprep.subr.mxu1 %v4313_v2  ;;  %v2762_v17 = vld [vmem:[%s6105_s1 + $0x670] sm:$0xff] }
  0x9d   : > { %3676 = vmatpush3.msra.mxu0 %v2693_v18  ;;  %3709 = vmatpush3.msra.mxu1 %v2710_v19  ;;  %v2779_v18 = vld [vmem:[%s6105_s1 + $0x6f8] sm:$0xff]  ;;  %v2761_v19 = vld [vmem:[%s6105_s1 + $0x668] sm:$0xff] }
  0x9e   : > { %3677 = vmatprep.subr.mxu0 %v4313_v2  ;;  %3710 = vmatprep.subr.mxu1 %v4313_v2 }
  0x9f   : > { %3678 = vmatpush3.msra.mxu0 %v2692_v20  ;;  %3711 = vmatpush3.msra.mxu1 %v2709_v21  ;;  %v2778_v20 = vld [vmem:[%s6105_s1 + $0x6f0] sm:$0xff]  ;;  %v2760_v21 = vld [vmem:[%s6105_s1 + $0x660] sm:$0xff] }
  0xa0   : > { %3679 = vmatprep.subr.mxu0 %v4313_v2  ;;  %3712 = vmatprep.subr.mxu1 %v4313_v2 }
  0xa1   : > { %3680 = vmatpush3.msra.mxu0 %v2691_v22  ;;  %3713 = vmatpush3.msra.mxu1 %v2708_v23  ;;  %v2777_v22 = vld [vmem:[%s6105_s1 + $0x6e8] sm:$0xff]  ;;  %v2759_v23 = vld [vmem:[%s6105_s1 + $0x658] sm:$0xff] }
  0xa2   : > { %3681 = vmatprep.subr.mxu0 %v4313_v2  ;;  %3714 = vmatprep.subr.mxu1 %v4313_v2 }
  0xa3   : > { %3682 = vmatpush3.msra.mxu0 %v2690_v24  ;;  %3715 = vmatpush3.msra.mxu1 %v2707_v25  ;;  %v2776_v24 = vld [vmem:[%s6105_s1 + $0x6e0] sm:$0xff]  ;;  %v2758_v25 = vld [vmem:[%s6105_s1 + $0x650] sm:$0xff] }
  0xa4   : > { %3683 = vmatprep.subr.mxu0 %v4313_v2  ;;  %3716 = vmatprep.subr.mxu1 %v4313_v2 }
  0xa5   : > { %3684 = vmatpush3.msra.mxu0 %v2689_v26  ;;  %3717 = vmatpush3.msra.mxu1 %v2706_v27  ;;  %v2775_v26 = vld [vmem:[%s6105_s1 + $0x6d8] sm:$0xff]  ;;  %v2757_v27 = vld [vmem:[%s6105_s1 + $0x648] sm:$0xff] }
  0xa6   : > { %3685 = vmatprep.subr.mxu0 %v4313_v2  ;;  %3718 = vmatprep.subr.mxu1 %v4313_v2 }
  0xa7   : > { %3686 = vmatpush3.msra.mxu0 %v2688_v28  ;;  %3719 = vmatpush3.msra.mxu1 %v2705_v29  ;;  %v2774_v28 = vld [vmem:[%s6105_s1 + $0x6d0] sm:$0xff]  ;;  %v2756_v29 = vld [vmem:[%s6105_s1 + $0x640] sm:$0xff] }
  0xa8   : > { %3687 = vmatprep.subr.mxu0 %v4313_v2  ;;  %3720 = vmatprep.subr.mxu1 %v4313_v2 }
  0xa9   : > { %3688 = vmatpush3.msra.mxu0 %v2687_v30  ;;  %3721 = vmatpush3.msra.mxu1 %v2704_v31  ;;  %v2773_v30 = vld [vmem:[%s6105_s1 + $0x6c8] sm:$0xff]  ;;  %v2755_v31 = vld [vmem:[%s6105_s1 + $0x638] sm:$0xff] }
  0xaa   : > { %3689 = vmatprep.subr.mxu0 %v4313_v2  ;;  %3722 = vmatprep.subr.mxu1 %v4313_v2 }
  0xab   : > { %3690 = vmatpush3.msra.mxu0 %v2686_v32  ;;  %3723 = vmatpush3.msra.mxu1 %v2703_v33  ;;  %v2772_v32 = vld [vmem:[%s6105_s1 + $0x6c0] sm:$0xff]  ;;  %v2754_v33 = vld [vmem:[%s6105_s1 + $0x630] sm:$0xff] }
  0xac   : > { %3691 = vmatprep.subr.mxu0 %v4313_v2  ;;  %3724 = vmatprep.subr.mxu1 %v4313_v2 }
  0xad   : > { %3692 = vmatpush3.msra.mxu0 %v2685_v35  ;;  %3725 = vmatpush3.msra.mxu1 %v2702_v36  ;;  %v2771_v35 = vld [vmem:[%s6105_s1 + $0x6b8] sm:$0xff]  ;;  %v2753_v36 = vld [vmem:[%s6105_s1 + $0x628] sm:$0xff] }
  0xae   : > { %3693 = vmatprep.subr.mxu0 %v4313_v2  ;;  %3726 = vmatprep.subr.mxu1 %v4313_v2 }
  0xaf   : > { %3694 = vmatpush3.msra.mxu0 %v2684_v37  ;;  %3727 = vmatpush3.msra.mxu1 %v2701_v38  ;;  %v2770_v37 = vld [vmem:[%s6105_s1 + $0x6b0] sm:$0xff]  ;;  %v2752_v38 = vld [vmem:[%s6105_s1 + $0x620] sm:$0xff] }
  0xb0   : > { %3695 = vmatprep.subr.mxu0 %v4313_v2  ;;  %3728 = vmatprep.subr.mxu1 %v4313_v2 }
  0xb1   : > { %3696 = vmatpush3.msra.mxu0 %v2683_v34  ;;  %3729 = vmatpush3.msra.mxu1 %v2700_v39  ;;  %v2769_v34 = vld [vmem:[%s6105_s1 + $0x6a8] sm:$0xff] }
  0xb2   : > { %3697 = vmatprep.subr.mxu0 %v4313_v2  ;;  %3730 = vmatprep.subr.mxu1 %v4313_v2 }
  0xb3   : > { %3698 = vmatpush3.msra.mxu0 %v2682_v42  ;;  %3699 = vmatprep.mubr.msk.f32.mxu0 %vm4314_vm0, %v4313_v2  ;;  %v2768_v42 = vld [vmem:[%s6105_s1 + $0x6a0] sm:$0xff] }
  0xb4   : > { %3731 = vmatpush3.msra.mxu1 %v2699_v43  ;;  %3700 = vmatmul.mubr.f32.vlgmr.msra.gmra.mxu0 %v932_v41  ;;  %v2751_v41 = vld [vmem:[%s6105_s1 + $0x618] sm:$0xff] }
  0xb5   : > { %3732 = vmatprep.subr.mxu1 %v4313_v2  ;;  %3737 = vmatprep.subr.mxu0 %v4313_v2 }
  0xb6   : > { %3733 = vmatpush3.msra.mxu1 %v2698_v45  ;;  %3734 = vmatprep.mubr.msk.f32.mxu1 %vm4314_vm0, %v4313_v2  ;;  %v2750_v45 = vld [vmem:[%s6105_s1 + $0x610] sm:$0xff] }
  0xb7   : > { %3738 = vmatpush3.msra.mxu0 %v2730_v46  ;;  %3735 = vmatmul.mubr.f32.vlgmr.msra.gmra.mxu1 %v1022_v44  ;;  %v2767_v46 = vld [vmem:[%s6105_s1 + $0x698] sm:$0xff] }
  0xb8   : > { %3739 = vmatprep.subr.mxu0 %v4313_v2  ;;  %3772 = vmatprep.subr.mxu1 %v4313_v2 }
  0xb9   : > { %3740 = vmatpush3.msra.mxu0 %v2729_v40  ;;  %3773 = vmatpush3.msra.mxu1 %v2747_v47 }
  0xba   : > { %3741 = vmatprep.subr.mxu0 %v4313_v2  ;;  %3774 = vmatprep.subr.mxu1 %v4313_v2 }
  0xbb   : > { %3742 = vmatpush3.msra.mxu0 %v2728_v48  ;;  %3775 = vmatpush3.msra.mxu1 %v2746_v49  ;;  %v2749_v48 = vld [vmem:[%s6105_s1 + $0x608] sm:$0xff]  ;;  %v2766_v49 = vld [vmem:[%s6105_s1 + $0x690] sm:$0xff] }
  0xbc   : > { %3743 = vmatprep.subr.mxu0 %v4313_v2  ;;  %3776 = vmatprep.subr.mxu1 %v4313_v2 }
  0xbd   : > { %3744 = vmatpush3.msra.mxu0 %v2727_v50  ;;  %3777 = vmatpush3.msra.mxu1 %v2745_v51  ;;  %v1297_v50 = vrot.slane %v5170_v13, 1  ;;  %v2748_v51 = vld [vmem:[%s6105_s1 + $0x600] sm:$0xff] }
  0xbe   : > { %3745 = vmatprep.subr.mxu0 %v4313_v2  ;;  %3778 = vmatprep.subr.mxu1 %v4313_v2 }
  0xbf   : > { %3746 = vmatpush3.msra.mxu0 %v2726_v52  ;;  %3779 = vmatpush3.msra.mxu1 %v2744_v53  ;;  %v2765_v52 = vld [vmem:[%s6105_s1 + $0x688] sm:$0xff]  ;;  %v1388_v53 = vrot.slane %v5184_v16, 1 }
  0xc0   : > { %3747 = vmatprep.subr.mxu0 %v4313_v2  ;;  %3780 = vmatprep.subr.mxu1 %v4313_v2 }
  0xc1   : > { %3748 = vmatpush3.msra.mxu0 %v2725_v54  ;;  %3781 = vmatpush3.msra.mxu1 %v2743_v55  ;;  %v2764_v54 = vld [vmem:[%s6105_s1 + $0x680] sm:$0xff]  ;;  %v2795_v55 = vld [vmem:[%s6105_s1 + $0x778] sm:$0xff] }
  0xc2   : > { %3749 = vmatprep.subr.mxu0 %v4313_v2  ;;  %3782 = vmatprep.subr.mxu1 %v4313_v2 }
  0xc3   : > { %3750 = vmatpush3.msra.mxu0 %v2724_v56  ;;  %3783 = vmatpush3.msra.mxu1 %v2742_v57  ;;  %v2794_v56 = vld [vmem:[%s6105_s1 + $0x770] sm:$0xff]  ;;  %v2812_v57 = vld [vmem:[%s6105_s1 + $0x7f8] sm:$0xff] }
  0xc4   : > { %3751 = vmatprep.subr.mxu0 %v4313_v2  ;;  %3784 = vmatprep.subr.mxu1 %v4313_v2 }
  0xc5   : > { %3752 = vmatpush3.msra.mxu0 %v2723_v58  ;;  %3785 = vmatpush3.msra.mxu1 %v2741_v59  ;;  %v2793_v58 = vld [vmem:[%s6105_s1 + $0x768] sm:$0xff]  ;;  %v2811_v59 = vld [vmem:[%s6105_s1 + $0x7f0] sm:$0xff] }
  0xc6   : > { %3753 = vmatprep.subr.mxu0 %v4313_v2  ;;  %3786 = vmatprep.subr.mxu1 %v4313_v2 }
  0xc7   : > { %3754 = vmatpush3.msra.mxu0 %v2722_v60  ;;  %3787 = vmatpush3.msra.mxu1 %v2740_v61  ;;  %v2792_v60 = vld [vmem:[%s6105_s1 + $0x760] sm:$0xff]  ;;  %v2810_v61 = vld [vmem:[%s6105_s1 + $0x7e8] sm:$0xff] }
  0xc8   : > { %3755 = vmatprep.subr.mxu0 %v4313_v2  ;;  %3788 = vmatprep.subr.mxu1 %v4313_v2 }
  0xc9   : > { %3756 = vmatpush3.msra.mxu0 %v2721_v62  ;;  %3789 = vmatpush3.msra.mxu1 %v2739_v63  ;;  %v2791_v62 = vld [vmem:[%s6105_s1 + $0x758] sm:$0xff]  ;;  %v2809_v63 = vld [vmem:[%s6105_s1 + $0x7e0] sm:$0xff] }
  0xca   : > { %3757 = vmatprep.subr.mxu0 %v4313_v2  ;;  %3790 = vmatprep.subr.mxu1 %v4313_v2 }
  0xcb   : > { %3758 = vmatpush3.msra.mxu0 %v2720_v0  ;;  %3791 = vmatpush3.msra.mxu1 %v2738_v1  ;;  %v2790_v0 = vld [vmem:[%s6105_s1 + $0x750] sm:$0xff]  ;;  %v2808_v1 = vld [vmem:[%s6105_s1 + $0x7d8] sm:$0xff] }
  0xcc   : > { %3759 = vmatprep.subr.mxu0 %v4313_v2  ;;  %3792 = vmatprep.subr.mxu1 %v4313_v2 }
  0xcd   : > { %3760 = vmatpush3.msra.mxu0 %v2719_v3  ;;  %3793 = vmatpush3.msra.mxu1 %v2737_v4  ;;  %v2789_v3 = vld [vmem:[%s6105_s1 + $0x748] sm:$0xff]  ;;  %v2807_v4 = vld [vmem:[%s6105_s1 + $0x7d0] sm:$0xff] }
  0xce   : > { %3761 = vmatprep.subr.mxu0 %v4313_v2  ;;  %3794 = vmatprep.subr.mxu1 %v4313_v2 }
  0xcf   : > { %3762 = vmatpush3.msra.mxu0 %v2718_v5  ;;  %3795 = vmatpush3.msra.mxu1 %v2736_v6  ;;  %v2788_v5 = vld [vmem:[%s6105_s1 + $0x740] sm:$0xff]  ;;  %v2806_v6 = vld [vmem:[%s6105_s1 + $0x7c8] sm:$0xff] }
  0xd0   : > { %3763 = vmatprep.subr.mxu0 %v4313_v2  ;;  %3796 = vmatprep.subr.mxu1 %v4313_v2 }
  0xd1   : > { %3764 = vmatpush3.msra.mxu0 %v2717_v7  ;;  %3797 = vmatpush3.msra.mxu1 %v2735_v8  ;;  %v2787_v7 = vld [vmem:[%s6105_s1 + $0x738] sm:$0xff]  ;;  %v2805_v8 = vld [vmem:[%s6105_s1 + $0x7c0] sm:$0xff] }
  0xd2   : > { %3765 = vmatprep.subr.mxu0 %v4313_v2  ;;  %3798 = vmatprep.subr.mxu1 %v4313_v2 }
  0xd3   : > { %3766 = vmatpush3.msra.mxu0 %v2716_v9  ;;  %3799 = vmatpush3.msra.mxu1 %v2734_v10  ;;  %v2786_v9 = vld [vmem:[%s6105_s1 + $0x730] sm:$0xff]  ;;  %v2804_v10 = vld [vmem:[%s6105_s1 + $0x7b8] sm:$0xff] }
  0xd4   : > { %3767 = vmatprep.subr.mxu0 %v4313_v2  ;;  %3800 = vmatprep.subr.mxu1 %v4313_v2 }
  0xd5   : > { %3768 = vmatpush3.msra.mxu0 %v2715_v11  ;;  %3769 = vmatprep.mubr.msk.f32.mxu0 %vm4314_vm0, %v4313_v2  ;;  %v2785_v11 = vld [vmem:[%s6105_s1 + $0x728] sm:$0xff] }
  0xd6   : > { %3801 = vmatpush3.msra.mxu1 %v2733_v12  ;;  %3770 = vmatmul.mubr.f32.vlgmr.msra.gmra.mxu0 %v5170_v13  ;;  %v2803_v12 = vld [vmem:[%s6105_s1 + $0x7b0] sm:$0xff] }
  0xd7   : > { %3802 = vmatprep.subr.mxu1 %v4313_v2  ;;  %3807 = vmatprep.subr.mxu0 %v4313_v2 }
  0xd8   : > { %3803 = vmatpush3.msra.mxu1 %v2732_v14  ;;  %3804 = vmatprep.mubr.msk.f32.mxu1 %vm4314_vm0, %v4313_v2  ;;  %v2784_v14 = vld [vmem:[%s6105_s1 + $0x720] sm:$0xff] }
  0xd9   : > { %3808 = vmatpush3.msra.mxu0 %v2763_v15  ;;  %3805 = vmatmul.mubr.f32.vlgmr.msra.gmra.mxu1 %v5184_v16  ;;  %v2802_v15 = vld [vmem:[%s6105_s1 + $0x7a8] sm:$0xff] }
  0xda   : > { %3809 = vmatprep.subr.mxu0 %v4313_v2  ;;  %3842 = vmatprep.subr.mxu1 %v4313_v2 }
  0xdb   : > { %3810 = vmatpush3.msra.mxu0 %v2762_v17  ;;  %3843 = vmatpush3.msra.mxu1 %v2779_v18  ;;  %v2783_v18 = vld [vmem:[%s6105_s1 + $0x718] sm:$0xff] }
  0xdc   : > { %3811 = vmatprep.subr.mxu0 %v4313_v2  ;;  %3844 = vmatprep.subr.mxu1 %v4313_v2 }
  0xdd   : > { %3812 = vmatpush3.msra.mxu0 %v2761_v19  ;;  %3845 = vmatpush3.msra.mxu1 %v2778_v20  ;;  %v2801_v19 = vld [vmem:[%s6105_s1 + $0x7a0] sm:$0xff] }
  0xde   : > { %3813 = vmatprep.subr.mxu0 %v4313_v2  ;;  %3846 = vmatprep.subr.mxu1 %v4313_v2 }
  0xdf   : > { %3814 = vmatpush3.msra.mxu0 %v2760_v21  ;;  %3847 = vmatpush3.msra.mxu1 %v2777_v22  ;;  %v2782_v22 = vld [vmem:[%s6105_s1 + $0x710] sm:$0xff] }
  0xe0   : > { %3815 = vmatprep.subr.mxu0 %v4313_v2  ;;  %3848 = vmatprep.subr.mxu1 %v4313_v2 }
  0xe1   : > { %3816 = vmatpush3.msra.mxu0 %v2759_v23  ;;  %3849 = vmatpush3.msra.mxu1 %v2776_v24  ;;  %v2800_v23 = vld [vmem:[%s6105_s1 + $0x798] sm:$0xff] }
  0xe2   : > { %3817 = vmatprep.subr.mxu0 %v4313_v2  ;;  %3850 = vmatprep.subr.mxu1 %v4313_v2 }
  0xe3   : > { %3818 = vmatpush3.msra.mxu0 %v2758_v25  ;;  %3851 = vmatpush3.msra.mxu1 %v2775_v26  ;;  %v2781_v26 = vld [vmem:[%s6105_s1 + $0x708] sm:$0xff] }
  0xe4   : > { %3819 = vmatprep.subr.mxu0 %v4313_v2  ;;  %3852 = vmatprep.subr.mxu1 %v4313_v2 }
  0xe5   : > { %3820 = vmatpush3.msra.mxu0 %v2757_v27  ;;  %3853 = vmatpush3.msra.mxu1 %v2774_v28  ;;  %v2799_v27 = vld [vmem:[%s6105_s1 + $0x790] sm:$0xff]  ;;  %v1478_v28 = vrot.slane %v5170_v13, 2  ;;  %v2797_v13 = vld [vmem:[%s6105_s1 + $0x780] sm:$0xff] }
  0xe6   : > { %3821 = vmatprep.subr.mxu0 %v4313_v2  ;;  %3854 = vmatprep.subr.mxu1 %v4313_v2 }
  0xe7   : > { %3822 = vmatpush3.msra.mxu0 %v2756_v29  ;;  %3855 = vmatpush3.msra.mxu1 %v2773_v30  ;;  %v2780_v29 = vld [vmem:[%s6105_s1 + $0x700] sm:$0xff]  ;;  %v2798_v30 = vld [vmem:[%s6105_s1 + $0x788] sm:$0xff] }
  0xe8   : > { %3823 = vmatprep.subr.mxu0 %v4313_v2  ;;  %3856 = vmatprep.subr.mxu1 %v4313_v2 }
  0xe9   : > { %3824 = vmatpush3.msra.mxu0 %v2755_v31  ;;  %3857 = vmatpush3.msra.mxu1 %v2772_v32  ;;  %v2829_v31 = vld [vmem:[%s6105_s1 + $0x878] sm:$0xff] }
  0xea   : > { %3825 = vmatprep.subr.mxu0 %v4313_v2  ;;  %3858 = vmatprep.subr.mxu1 %v4313_v2  ;;  %v5460_v32 = vld [vmem:[%s4481_s6 + $0x1c] sm:$0x7] }
  0xeb   : > { %3826 = vmatpush3.msra.mxu0 %v2754_v33  ;;  %3859 = vmatpush3.msra.mxu1 %v2771_v35  ;;  %v2828_v33 = vld [vmem:[%s6105_s1 + $0x870] sm:$0xff]  ;;  %v2845_v35 = vld [vmem:[%s6105_s1 + $0x8f8] sm:$0xff] }
  0xec   : > { %3827 = vmatprep.subr.mxu0 %v4313_v2  ;;  %3860 = vmatprep.subr.mxu1 %v4313_v2 }
  0xed   : > { %3828 = vmatpush3.msra.mxu0 %v2753_v36  ;;  %3861 = vmatpush3.msra.mxu1 %v2770_v37  ;;  %v293_v39 = vpop.f32.mrf.mxu0  ;;  %v2827_v36 = vld [vmem:[%s6105_s1 + $0x868] sm:$0xff]  ;;  %v2844_v37 = vld [vmem:[%s6105_s1 + $0x8f0] sm:$0xff] }
  0xee   : > { %3829 = vmatprep.subr.mxu0 %v4313_v2  ;;  %3862 = vmatprep.subr.mxu1 %v4313_v2 }
  0xef   : > { %3830 = vmatpush3.msra.mxu0 %v2752_v38  ;;  %3863 = vmatpush3.msra.mxu1 %v2769_v34  ;;  %v363_v43 = vpop.f32.mrf.mxu1  ;;  %v3421_v44 = vpop.f32.mrf.mxu0  ;;  %v2826_v38 = vld [vmem:[%s6105_s1 + $0x860] sm:$0xff]  ;;  %v2843_v34 = vld [vmem:[%s6105_s1 + $0x8e8] sm:$0xff] }
  0xf0   : > { %3831 = vmatprep.subr.mxu0 %v4313_v2  ;;  %3864 = vmatprep.subr.mxu1 %v4313_v2  ;;  %v5293_v40 = vadd.f32 %v363_v43, %v293_v39  ;;  %v2825_v39 = vld [vmem:[%s6105_s1 + $0x858] sm:$0xff]  ;;  %v2823_v44 = vld [vmem:[%s6105_s1 + $0x848] sm:$0xff] }
  0xf1   : > { %3832 = vmatpush3.msra.mxu0 %v2751_v41  ;;  %3865 = vmatpush3.msra.mxu1 %v2768_v42  ;;  %v3456_v47 = vpop.f32.mrf.mxu1  ;;  %v2842_v41 = vld [vmem:[%s6105_s1 + $0x8e0] sm:$0xff]  ;;  %v2824_v42 = vld [vmem:[%s6105_s1 + $0x850] sm:$0xff]  ;;  %v2841_v43 = vld [vmem:[%s6105_s1 + $0x8d8] sm:$0xff] }
  0xf2   : > { %3833 = vmatprep.subr.mxu0 %v4313_v2  ;;  %3866 = vmatprep.subr.mxu1 %v4313_v2  ;;  %v2821_v47 = vld [vmem:[%s6105_s1 + $0x838] sm:$0xff] }
  0xf3   : > { %3834 = vmatpush3.msra.mxu0 %v2750_v45  ;;  %3867 = vmatpush3.msra.mxu1 %v2767_v46  ;;  %v2840_v45 = vld [vmem:[%s6105_s1 + $0x8d0] sm:$0xff]  ;;  %v2822_v46 = vld [vmem:[%s6105_s1 + $0x840] sm:$0xff] }
  0xf4   : > { %3835 = vmatprep.subr.mxu0 %v4313_v2  ;;  %3868 = vmatprep.subr.mxu1 %v4313_v2 }
  0xf5   : > { %3836 = vmatpush3.msra.mxu0 %v2749_v48  ;;  %3869 = vmatpush3.msra.mxu1 %v2766_v49  ;;  %v2838_v48 = vld [vmem:[%s6105_s1 + $0x8c0] sm:$0xff]  ;;  %v2820_v49 = vld [vmem:[%s6105_s1 + $0x830] sm:$0xff] }
  0xf6   : > { %3837 = vmatprep.subr.mxu0 %v4313_v2  ;;  %3870 = vmatprep.subr.mxu1 %v4313_v2 }
  0xf7   : > { %3838 = vmatpush3.msra.mxu0 %v2748_v51  ;;  %3839 = vmatprep.mubr.msk.f32.mxu0 %vm4314_vm0, %v4313_v2  ;;  %v2819_v51 = vld [vmem:[%s6105_s1 + $0x828] sm:$0xff] }
  0xf8   : > { %3871 = vmatpush3.msra.mxu1 %v2765_v52  ;;  %3840 = vmatmul.mubr.f32.vlgmr.msra.gmra.mxu0 %v1297_v50  ;;  %v2837_v50 = vld [vmem:[%s6105_s1 + $0x8b8] sm:$0xff]  ;;  %v2836_v52 = vld [vmem:[%s6105_s1 + $0x8b0] sm:$0xff] }
  0xf9   : > { %3872 = vmatprep.subr.mxu1 %v4313_v2  ;;  %3877 = vmatprep.subr.mxu0 %v4313_v2 }
  0xfa   : > { %3873 = vmatpush3.msra.mxu1 %v2764_v54  ;;  %3874 = vmatprep.mubr.msk.f32.mxu1 %vm4314_vm0, %v4313_v2  ;;  %v2835_v54 = vld [vmem:[%s6105_s1 + $0x8a8] sm:$0xff] }
  0xfb   : > { %3878 = vmatpush3.msra.mxu0 %v2795_v55  ;;  %3875 = vmatmul.mubr.f32.vlgmr.msra.gmra.mxu1 %v1388_v53  ;;  %v2818_v53 = vld [vmem:[%s6105_s1 + $0x820] sm:$0xff] }
  0xfc   : > { %3879 = vmatprep.subr.mxu0 %v4313_v2  ;;  %3912 = vmatprep.subr.mxu1 %v4313_v2 }
  0xfd   : > { %3880 = vmatpush3.msra.mxu0 %v2794_v56  ;;  %3913 = vmatpush3.msra.mxu1 %v2812_v57  ;;  %v2817_v57 = vld [vmem:[%s6105_s1 + $0x818] sm:$0xff] }
  0xfe   : > { %3881 = vmatprep.subr.mxu0 %v4313_v2  ;;  %3914 = vmatprep.subr.mxu1 %v4313_v2 }
  0xff   : > { %3882 = vmatpush3.msra.mxu0 %v2793_v58  ;;  %3915 = vmatpush3.msra.mxu1 %v2811_v59  ;;  %v2834_v58 = vld [vmem:[%s6105_s1 + $0x8a0] sm:$0xff] }
 0x100   : > { %3883 = vmatprep.subr.mxu0 %v4313_v2  ;;  %3916 = vmatprep.subr.mxu1 %v4313_v2 }
 0x101   : > { %3884 = vmatpush3.msra.mxu0 %v2792_v60  ;;  %3917 = vmatpush3.msra.mxu1 %v2810_v61  ;;  %v2816_v61 = vld [vmem:[%s6105_s1 + $0x810] sm:$0xff] }
 0x102   : > { %3885 = vmatprep.subr.mxu0 %v4313_v2  ;;  %3918 = vmatprep.subr.mxu1 %v4313_v2 }
 0x103   : > { %3886 = vmatpush3.msra.mxu0 %v2791_v62  ;;  %3919 = vmatpush3.msra.mxu1 %v2809_v63  ;;  %v2833_v62 = vld [vmem:[%s6105_s1 + $0x898] sm:$0xff] }
 0x104   : > { %3887 = vmatprep.subr.mxu0 %v4313_v2  ;;  %3920 = vmatprep.subr.mxu1 %v4313_v2 }
 0x105   : > { %3888 = vmatpush3.msra.mxu0 %v2790_v0  ;;  %3921 = vmatpush3.msra.mxu1 %v2808_v1  ;;  %v2815_v1 = vld [vmem:[%s6105_s1 + $0x808] sm:$0xff] }
 0x106   : > { %3889 = vmatprep.subr.mxu0 %v4313_v2  ;;  %3922 = vmatprep.subr.mxu1 %v4313_v2 }
 0x107   : > { %3890 = vmatpush3.msra.mxu0 %v2789_v3  ;;  %3923 = vmatpush3.msra.mxu1 %v2807_v4  ;;  %v2832_v3 = vld [vmem:[%s6105_s1 + $0x890] sm:$0xff]  ;;  %v2814_v4 = vld [vmem:[%s6105_s1 + $0x800] sm:$0xff] }
 0x108   : > { %3891 = vmatprep.subr.mxu0 %v4313_v2  ;;  %3924 = vmatprep.subr.mxu1 %v4313_v2 }
 0x109   : > { %3892 = vmatpush3.msra.mxu0 %v2788_v5  ;;  %3925 = vmatpush3.msra.mxu1 %v2806_v6  ;;  %v2831_v5 = vld [vmem:[%s6105_s1 + $0x888] sm:$0xff] }
 0x10a   : > { %3893 = vmatprep.subr.mxu0 %v4313_v2  ;;  %3926 = vmatprep.subr.mxu1 %v4313_v2  ;;  %v5589_v6 = vld [vmem:[%s4481_s6 + $0x28] sm:$0x7] }
 0x10b   : > { %3894 = vmatpush3.msra.mxu0 %v2787_v7  ;;  %3927 = vmatpush3.msra.mxu1 %v2805_v8  ;;  %v1753_v7 = vrot.slane %v5460_v32, 1  ;;  %v2830_v8 = vld [vmem:[%s6105_s1 + $0x880] sm:$0xff] }
 0x10c   : > { %3895 = vmatprep.subr.mxu0 %v4313_v2  ;;  %3928 = vmatprep.subr.mxu1 %v4313_v2 }
 0x10d   : > { %3896 = vmatpush3.msra.mxu0 %v2786_v9  ;;  %3929 = vmatpush3.msra.mxu1 %v2804_v10  ;;  %v2861_v9 = vld [vmem:[%s6105_s1 + $0x978] sm:$0xff]  ;;  %v2860_v10 = vld [vmem:[%s6105_s1 + $0x970] sm:$0xff] }
 0x10e   : > { %3897 = vmatprep.subr.mxu0 %v4313_v2  ;;  %3930 = vmatprep.subr.mxu1 %v4313_v2  ;;  %v453_v16 = vpop.f32.mrf.mxu0 }
 0x10f   : > { %3898 = vmatpush3.msra.mxu0 %v2785_v11  ;;  %3931 = vmatpush3.msra.mxu1 %v2803_v12  ;;  %v457_v17 = vadd.f32 %v453_v16, %v5293_v40  ;;  %v2839_v40 = vld [vmem:[%s6105_s1 + $0x8c8] sm:$0xff]  ;;  %v2877_v11 = vld [vmem:[%s6105_s1 + $0x9f8] sm:$0xff] }
 0x110   : > { %3899 = vmatprep.subr.mxu0 %v4313_v2  ;;  %3932 = vmatprep.subr.mxu1 %v4313_v2  ;;  %v3491_v20 = vpop.f32.mrf.mxu0  ;;  %v2859_v12 = vld [vmem:[%s6105_s1 + $0x968] sm:$0xff] }
 0x111   : > { %3900 = vmatpush3.msra.mxu0 %v2784_v14  ;;  %3933 = vmatpush3.msra.mxu1 %v2802_v15  ;;  %v544_v21 = vpop.f32.mrf.mxu1  ;;  %v2876_v14 = vld [vmem:[%s6105_s1 + $0x9f0] sm:$0xff]  ;;  %v2858_v15 = vld [vmem:[%s6105_s1 + $0x960] sm:$0xff]  ;;  %v2875_v16 = vld [vmem:[%s6105_s1 + $0x9e8] sm:$0xff] }
 0x112   : > { %3901 = vmatprep.subr.mxu0 %v4313_v2  ;;  %3934 = vmatprep.subr.mxu1 %v4313_v2  ;;  %v5430_v24 = vadd.f32 %v544_v21, %v457_v17  ;;  %v2857_v17 = vld [vmem:[%s6105_s1 + $0x958] sm:$0xff]  ;;  %v2855_v21 = vld [vmem:[%s6105_s1 + $0x948] sm:$0xff] }
 0x113   : > { %3902 = vmatpush3.msra.mxu0 %v2783_v18  ;;  %3935 = vmatpush3.msra.mxu1 %v2801_v19  ;;  %v3526_v25 = vpop.f32.mrf.mxu1  ;;  %v2874_v18 = vld [vmem:[%s6105_s1 + $0x9e0] sm:$0xff]  ;;  %v2856_v19 = vld [vmem:[%s6105_s1 + $0x950] sm:$0xff]  ;;  %v2873_v20 = vld [vmem:[%s6105_s1 + $0x9d8] sm:$0xff] }
 0x114   : > { %3903 = vmatprep.subr.mxu0 %v4313_v2  ;;  %3936 = vmatprep.subr.mxu1 %v4313_v2  ;;  %v2853_v25 = vld [vmem:[%s6105_s1 + $0x938] sm:$0xff] }
 0x115   : > { %3904 = vmatpush3.msra.mxu0 %v2782_v22  ;;  %3937 = vmatpush3.msra.mxu1 %v2800_v23  ;;  %v2872_v22 = vld [vmem:[%s6105_s1 + $0x9d0] sm:$0xff]  ;;  %v2854_v23 = vld [vmem:[%s6105_s1 + $0x940] sm:$0xff] }
 0x116   : > { %3905 = vmatprep.subr.mxu0 %v4313_v2  ;;  %3938 = vmatprep.subr.mxu1 %v4313_v2 }
 0x117   : > { %3906 = vmatpush3.msra.mxu0 %v2781_v26  ;;  %3939 = vmatpush3.msra.mxu1 %v2799_v27  ;;  %v2870_v26 = vld [vmem:[%s6105_s1 + $0x9c0] sm:$0xff]  ;;  %v2852_v27 = vld [vmem:[%s6105_s1 + $0x930] sm:$0xff] }
 0x118   : > { %3907 = vmatprep.subr.mxu0 %v4313_v2  ;;  %3940 = vmatprep.subr.mxu1 %v4313_v2 }
 0x119   : > { %3908 = vmatpush3.msra.mxu0 %v2780_v29  ;;  %3909 = vmatprep.mubr.msk.f32.mxu0 %vm4314_vm0, %v4313_v2  ;;  %v2851_v29 = vld [vmem:[%s6105_s1 + $0x928] sm:$0xff] }
 0x11a   : > { %3941 = vmatpush3.msra.mxu1 %v2798_v30  ;;  %3910 = vmatmul.mubr.f32.vlgmr.msra.gmra.mxu0 %v1478_v28  ;;  %v2869_v28 = vld [vmem:[%s6105_s1 + $0x9b8] sm:$0xff]  ;;  %v2868_v30 = vld [vmem:[%s6105_s1 + $0x9b0] sm:$0xff] }
 0x11b   : > { %3942 = vmatprep.subr.mxu1 %v4313_v2  ;;  %3947 = vmatprep.subr.mxu0 %v4313_v2 }
 0x11c   : > { %3943 = vmatpush3.msra.mxu1 %v2797_v13  ;;  %3944 = vmatprep.mubr.msk.f32.mxu1 %vm4314_vm0, %v4313_v2  ;;  %v2850_v13 = vld [vmem:[%s6105_s1 + $0x920] sm:$0xff] }
 0x11d   : > { %3948 = vmatpush3.msra.mxu0 %v2829_v31  ;;  %3945 = vmatmul.mubr.f32.vlgmr.msra.gmra.mxu1 %v5460_v32  ;;  %v2867_v31 = vld [vmem:[%s6105_s1 + $0x9a8] sm:$0xff] }
 0x11e   : > { %3949 = vmatprep.subr.mxu0 %v4313_v2  ;;  %3982 = vmatprep.subr.mxu1 %v4313_v2 }
 0x11f   : > { %3950 = vmatpush3.msra.mxu0 %v2828_v33  ;;  %3983 = vmatpush3.msra.mxu1 %v2845_v35 }
 0x120   : > { %3951 = vmatprep.subr.mxu0 %v4313_v2  ;;  %3984 = vmatprep.subr.mxu1 %v4313_v2 }
 0x121   : > { %3952 = vmatpush3.msra.mxu0 %v2827_v36  ;;  %3985 = vmatpush3.msra.mxu1 %v2844_v37  ;;  %v2849_v36 = vld [vmem:[%s6105_s1 + $0x918] sm:$0xff]  ;;  %v2866_v37 = vld [vmem:[%s6105_s1 + $0x9a0] sm:$0xff] }
 0x122   : > { %3953 = vmatprep.subr.mxu0 %v4313_v2  ;;  %3986 = vmatprep.subr.mxu1 %v4313_v2 }
 0x123   : > { %3954 = vmatpush3.msra.mxu0 %v2826_v38  ;;  %3987 = vmatpush3.msra.mxu1 %v2843_v34 }
 0x124   : > { %3955 = vmatprep.subr.mxu0 %v4313_v2  ;;  %3988 = vmatprep.subr.mxu1 %v4313_v2 }
 0x125   : > { %3956 = vmatpush3.msra.mxu0 %v2825_v39  ;;  %3989 = vmatpush3.msra.mxu1 %v2842_v41  ;;  %v2848_v39 = vld [vmem:[%s6105_s1 + $0x910] sm:$0xff]  ;;  %v2865_v41 = vld [vmem:[%s6105_s1 + $0x998] sm:$0xff] }
 0x126   : > { %3957 = vmatprep.subr.mxu0 %v4313_v2  ;;  %3990 = vmatprep.subr.mxu1 %v4313_v2 }
 0x127   : > { %3958 = vmatpush3.msra.mxu0 %v2824_v42  ;;  %3991 = vmatpush3.msra.mxu1 %v2841_v43 }
 0x128   : > { %3959 = vmatprep.subr.mxu0 %v4313_v2  ;;  %3992 = vmatprep.subr.mxu1 %v4313_v2 }
 0x129   : > { %3960 = vmatpush3.msra.mxu0 %v2823_v44  ;;  %3993 = vmatpush3.msra.mxu1 %v2840_v45  ;;  %v2847_v44 = vld [vmem:[%s6105_s1 + $0x908] sm:$0xff]  ;;  %v2864_v45 = vld [vmem:[%s6105_s1 + $0x990] sm:$0xff] }
 0x12a   : > { %3961 = vmatprep.subr.mxu0 %v4313_v2  ;;  %3994 = vmatprep.subr.mxu1 %v4313_v2 }
 0x12b   : > { %3962 = vmatpush3.msra.mxu0 %v2822_v46  ;;  %3995 = vmatpush3.msra.mxu1 %v2839_v40  ;;  %v1844_v46 = vrot.slane %v5589_v6, 1  ;;  %v2846_v40 = vld [vmem:[%s6105_s1 + $0x900] sm:$0xff] }
 0x12c   : > { %3963 = vmatprep.subr.mxu0 %v4313_v2  ;;  %3996 = vmatprep.subr.mxu1 %v4313_v2 }
 0x12d   : > { %3964 = vmatpush3.msra.mxu0 %v2821_v47  ;;  %3997 = vmatpush3.msra.mxu1 %v2838_v48  ;;  %v2863_v47 = vld [vmem:[%s6105_s1 + $0x988] sm:$0xff]  ;;  %v1934_v48 = vrot.slane %v5460_v32, 2  ;;  %v2893_v32 = vld [vmem:[%s6105_s1 + $0xa70] sm:$0xff] }
 0x12e   : > { %3965 = vmatprep.subr.mxu0 %v4313_v2  ;;  %3998 = vmatprep.subr.mxu1 %v4313_v2 }
 0x12f   : > { %3966 = vmatpush3.msra.mxu0 %v2820_v49  ;;  %3999 = vmatpush3.msra.mxu1 %v2837_v50  ;;  %v2862_v49 = vld [vmem:[%s6105_s1 + $0x980] sm:$0xff]  ;;  %v2894_v50 = vld [vmem:[%s6105_s1 + $0xa78] sm:$0xff] }
 0x130   : > { %3967 = vmatprep.subr.mxu0 %v4313_v2  ;;  %4000 = vmatprep.subr.mxu1 %v4313_v2  ;;  %v634_v55 = vpop.f32.mrf.mxu0 }
 0x131   : > { %3968 = vmatpush3.msra.mxu0 %v2819_v51  ;;  %4001 = vmatpush3.msra.mxu1 %v2836_v52  ;;  %v638_v56 = vadd.f32 %v634_v55, %v5430_v24  ;;  %v2871_v24 = vld [vmem:[%s6105_s1 + $0x9c8] sm:$0xff]  ;;  %v2911_v51 = vld [vmem:[%s6105_s1 + $0xaf8] sm:$0xff] }
 0x132   : > { %3969 = vmatprep.subr.mxu0 %v4313_v2  ;;  %4002 = vmatprep.subr.mxu1 %v4313_v2  ;;  %v3561_v59 = vpop.f32.mrf.mxu0  ;;  %v2892_v52 = vld [vmem:[%s6105_s1 + $0xa68] sm:$0xff] }
 0x133   : > { %3970 = vmatpush3.msra.mxu0 %v2818_v53  ;;  %4003 = vmatpush3.msra.mxu1 %v2835_v54  ;;  %v726_v60 = vpop.f32.mrf.mxu1  ;;  %v2910_v53 = vld [vmem:[%s6105_s1 + $0xaf0] sm:$0xff]  ;;  %v2891_v54 = vld [vmem:[%s6105_s1 + $0xa60] sm:$0xff]  ;;  %v2909_v55 = vld [vmem:[%s6105_s1 + $0xae8] sm:$0xff] }
 0x134   : > { %3971 = vmatprep.subr.mxu0 %v4313_v2  ;;  %4004 = vmatprep.subr.mxu1 %v4313_v2  ;;  %v5570_v63 = vadd.f32 %v726_v60, %v638_v56  ;;  %v2890_v56 = vld [vmem:[%s6105_s1 + $0xa58] sm:$0xff]  ;;  %v2888_v60 = vld [vmem:[%s6105_s1 + $0xa48] sm:$0xff] }
 0x135   : > { %3972 = vmatpush3.msra.mxu0 %v2817_v57  ;;  %4005 = vmatpush3.msra.mxu1 %v2834_v58  ;;  %v3596_v0 = vpop.f32.mrf.mxu1  ;;  %v2908_v57 = vld [vmem:[%s6105_s1 + $0xae0] sm:$0xff]  ;;  %v2889_v58 = vld [vmem:[%s6105_s1 + $0xa50] sm:$0xff]  ;;  %v2907_v59 = vld [vmem:[%s6105_s1 + $0xad8] sm:$0xff] }
 0x136   : > { %3973 = vmatprep.subr.mxu0 %v4313_v2  ;;  %4006 = vmatprep.subr.mxu1 %v4313_v2  ;;  %v2886_v0 = vld [vmem:[%s6105_s1 + $0xa38] sm:$0xff] }
 0x137   : > { %3974 = vmatpush3.msra.mxu0 %v2816_v61  ;;  %4007 = vmatpush3.msra.mxu1 %v2833_v62  ;;  %v2906_v61 = vld [vmem:[%s6105_s1 + $0xad0] sm:$0xff]  ;;  %v2887_v62 = vld [vmem:[%s6105_s1 + $0xa40] sm:$0xff] }
 0x138   : > { %3975 = vmatprep.subr.mxu0 %v4313_v2  ;;  %4008 = vmatprep.subr.mxu1 %v4313_v2 }
 0x139   : > { %3976 = vmatpush3.msra.mxu0 %v2815_v1  ;;  %4009 = vmatpush3.msra.mxu1 %v2832_v3  ;;  %v2904_v1 = vld [vmem:[%s6105_s1 + $0xac0] sm:$0xff]  ;;  %v2885_v3 = vld [vmem:[%s6105_s1 + $0xa30] sm:$0xff] }
 0x13a   : > { %3977 = vmatprep.subr.mxu0 %v4313_v2  ;;  %4010 = vmatprep.subr.mxu1 %v4313_v2 }
 0x13b   : > { %3978 = vmatpush3.msra.mxu0 %v2814_v4  ;;  %3979 = vmatprep.mubr.msk.f32.mxu0 %vm4314_vm0, %v4313_v2  ;;  %v2903_v4 = vld [vmem:[%s6105_s1 + $0xab8] sm:$0xff] }
 0x13c   : > { %4011 = vmatpush3.msra.mxu1 %v2831_v5  ;;  %3980 = vmatmul.mubr.f32.vlgmr.msra.gmra.mxu0 %v5589_v6  ;;  %v2884_v5 = vld [vmem:[%s6105_s1 + $0xa28] sm:$0xff]  ;;  %v2902_v6 = vld [vmem:[%s6105_s1 + $0xab0] sm:$0xff] }
 0x13d   : > { %4012 = vmatprep.subr.mxu1 %v4313_v2  ;;  %4017 = vmatprep.subr.mxu0 %v4313_v2 }
 0x13e   : > { %4013 = vmatpush3.msra.mxu1 %v2830_v8  ;;  %4014 = vmatprep.mubr.msk.f32.mxu1 %vm4314_vm0, %v4313_v2  ;;  %v2901_v8 = vld [vmem:[%s6105_s1 + $0xaa8] sm:$0xff] }
 0x13f   : > { %4018 = vmatpush3.msra.mxu0 %v2861_v9  ;;  %4015 = vmatmul.mubr.f32.vlgmr.msra.gmra.mxu1 %v1753_v7  ;;  %v2883_v7 = vld [vmem:[%s6105_s1 + $0xa20] sm:$0xff] }
 0x140   : > { %4019 = vmatprep.subr.mxu0 %v4313_v2  ;;  %4052 = vmatprep.subr.mxu1 %v4313_v2 }
 0x141   : > { %4020 = vmatpush3.msra.mxu0 %v2860_v10  ;;  %4053 = vmatpush3.msra.mxu1 %v2877_v11  ;;  %v2882_v11 = vld [vmem:[%s6105_s1 + $0xa18] sm:$0xff] }
 0x142   : > { %4021 = vmatprep.subr.mxu0 %v4313_v2  ;;  %4054 = vmatprep.subr.mxu1 %v4313_v2 }
 0x143   : > { %4022 = vmatpush3.msra.mxu0 %v2859_v12  ;;  %4055 = vmatpush3.msra.mxu1 %v2876_v14  ;;  %v2900_v12 = vld [vmem:[%s6105_s1 + $0xaa0] sm:$0xff] }
 0x144   : > { %4023 = vmatprep.subr.mxu0 %v4313_v2  ;;  %4056 = vmatprep.subr.mxu1 %v4313_v2 }
 0x145   : > { %4024 = vmatpush3.msra.mxu0 %v2858_v15  ;;  %4057 = vmatpush3.msra.mxu1 %v2875_v16  ;;  %v2881_v16 = vld [vmem:[%s6105_s1 + $0xa10] sm:$0xff] }
 0x146   : > { %4025 = vmatprep.subr.mxu0 %v4313_v2  ;;  %4058 = vmatprep.subr.mxu1 %v4313_v2 }
 0x147   : > { %4026 = vmatpush3.msra.mxu0 %v2857_v17  ;;  %4059 = vmatpush3.msra.mxu1 %v2874_v18  ;;  %v2899_v17 = vld [vmem:[%s6105_s1 + $0xa98] sm:$0xff] }
 0x148   : > { %4027 = vmatprep.subr.mxu0 %v4313_v2  ;;  %4060 = vmatprep.subr.mxu1 %v4313_v2 }
 0x149   : > { %4028 = vmatpush3.msra.mxu0 %v2856_v19  ;;  %4061 = vmatpush3.msra.mxu1 %v2873_v20  ;;  %v2880_v20 = vld [vmem:[%s6105_s1 + $0xa08] sm:$0xff] }
 0x14a   : > { %4029 = vmatprep.subr.mxu0 %v4313_v2  ;;  %4062 = vmatprep.subr.mxu1 %v4313_v2 }
 0x14b   : > { %4030 = vmatpush3.msra.mxu0 %v2855_v21  ;;  %4063 = vmatpush3.msra.mxu1 %v2872_v22  ;;  %v2898_v21 = vld [vmem:[%s6105_s1 + $0xa90] sm:$0xff]  ;;  %v2879_v22 = vld [vmem:[%s6105_s1 + $0xa00] sm:$0xff] }
 0x14c   : > { %4031 = vmatprep.subr.mxu0 %v4313_v2  ;;  %4064 = vmatprep.subr.mxu1 %v4313_v2 }
 0x14d   : > { %4032 = vmatpush3.msra.mxu0 %v2854_v23  ;;  %4065 = vmatpush3.msra.mxu1 %v2871_v24  ;;  %v2897_v23 = vld [vmem:[%s6105_s1 + $0xa88] sm:$0xff] }
 0x14e   : > { %4033 = vmatprep.subr.mxu0 %v4313_v2  ;;  %4066 = vmatprep.subr.mxu1 %v4313_v2  ;;  %v5866_v24 = vld [vmem:[%s4481_s6 + $0x8] sm:$0x7] }
 0x14f   : > { %4034 = vmatpush3.msra.mxu0 %v2853_v25  ;;  %4067 = vmatpush3.msra.mxu1 %v2870_v26  ;;  %v2896_v25 = vld [vmem:[%s6105_s1 + $0xa80] sm:$0xff]  ;;  %v2927_v26 = vld [vmem:[%s6105_s1 + $0xb78] sm:$0xff] }
 0x150   : > { %4035 = vmatprep.subr.mxu0 %v4313_v2  ;;  %4068 = vmatprep.subr.mxu1 %v4313_v2 }
 0x151   : > { %4036 = vmatpush3.msra.mxu0 %v2852_v27  ;;  %4069 = vmatpush3.msra.mxu1 %v2869_v28  ;;  %v5880_v27 = vld [vmem:[%s4481_s6 + $0x14] sm:$0x7] }
 0x152   : > { %4037 = vmatprep.subr.mxu0 %v4313_v2  ;;  %4070 = vmatprep.subr.mxu1 %v4313_v2  ;;  %v818_v33 = vpop.f32.mrf.mxu0  ;;  %v2926_v28 = vld [vmem:[%s6105_s1 + $0xb70] sm:$0xff] }
 0x153   : > { %4038 = vmatpush3.msra.mxu0 %v2851_v29  ;;  %4071 = vmatpush3.msra.mxu1 %v2868_v30  ;;  %v822_v35 = vadd.f32 %v818_v33, %v5570_v63  ;;  %v2905_v63 = vld [vmem:[%s6105_s1 + $0xac8] sm:$0xff]  ;;  %v2943_v29 = vld [vmem:[%s6105_s1 + $0xbf8] sm:$0xff] }
 0x154   : > { %4039 = vmatprep.subr.mxu0 %v4313_v2  ;;  %4072 = vmatprep.subr.mxu1 %v4313_v2  ;;  %v3631_v38 = vpop.f32.mrf.mxu0  ;;  %v2925_v30 = vld [vmem:[%s6105_s1 + $0xb68] sm:$0xff] }
 0x155   : > { %4040 = vmatpush3.msra.mxu0 %v2850_v13  ;;  %4073 = vmatpush3.msra.mxu1 %v2867_v31  ;;  %v909_v34 = vpop.f32.mrf.mxu1  ;;  %v2942_v13 = vld [vmem:[%s6105_s1 + $0xbf0] sm:$0xff]  ;;  %v2924_v31 = vld [vmem:[%s6105_s1 + $0xb60] sm:$0xff]  ;;  %v2941_v33 = vld [vmem:[%s6105_s1 + $0xbe8] sm:$0xff] }
 0x156   : > { %4041 = vmatprep.subr.mxu0 %v4313_v2  ;;  %4074 = vmatprep.subr.mxu1 %v4313_v2  ;;  %v5710_v42 = vadd.f32 %v909_v34, %v822_v35  ;;  %v2923_v35 = vld [vmem:[%s6105_s1 + $0xb58] sm:$0xff]  ;;  %v2921_v34 = vld [vmem:[%s6105_s1 + $0xb48] sm:$0xff] }
 0x157   : > { %4042 = vmatpush3.msra.mxu0 %v2849_v36  ;;  %4075 = vmatpush3.msra.mxu1 %v2866_v37  ;;  %v3666_v43 = vpop.f32.mrf.mxu1  ;;  %v2940_v36 = vld [vmem:[%s6105_s1 + $0xbe0] sm:$0xff]  ;;  %v2922_v37 = vld [vmem:[%s6105_s1 + $0xb50] sm:$0xff]  ;;  %v2939_v38 = vld [vmem:[%s6105_s1 + $0xbd8] sm:$0xff] }
 0x158   : > { %4043 = vmatprep.subr.mxu0 %v4313_v2  ;;  %4076 = vmatprep.subr.mxu1 %v4313_v2  ;;  %v2919_v43 = vld [vmem:[%s6105_s1 + $0xb38] sm:$0xff] }
 0x159   : > { %4044 = vmatpush3.msra.mxu0 %v2848_v39  ;;  %4077 = vmatpush3.msra.mxu1 %v2865_v41  ;;  %v2938_v39 = vld [vmem:[%s6105_s1 + $0xbd0] sm:$0xff]  ;;  %v2920_v41 = vld [vmem:[%s6105_s1 + $0xb40] sm:$0xff] }
 0x15a   : > { %4045 = vmatprep.subr.mxu0 %v4313_v2  ;;  %4078 = vmatprep.subr.mxu1 %v4313_v2 }
 0x15b   : > { %4046 = vmatpush3.msra.mxu0 %v2847_v44  ;;  %4079 = vmatpush3.msra.mxu1 %v2864_v45  ;;  %v2936_v44 = vld [vmem:[%s6105_s1 + $0xbc0] sm:$0xff]  ;;  %v2918_v45 = vld [vmem:[%s6105_s1 + $0xb30] sm:$0xff] }
 0x15c   : > { %4047 = vmatprep.subr.mxu0 %v4313_v2  ;;  %4080 = vmatprep.subr.mxu1 %v4313_v2 }
 0x15d   : > { %4048 = vmatpush3.msra.mxu0 %v2846_v40  ;;  %4049 = vmatprep.mubr.msk.f32.mxu0 %vm4314_vm0, %v4313_v2  ;;  %v2917_v40 = vld [vmem:[%s6105_s1 + $0xb28] sm:$0xff] }
 0x15e   : > { %4081 = vmatpush3.msra.mxu1 %v2863_v47  ;;  %4050 = vmatmul.mubr.f32.vlgmr.msra.gmra.mxu0 %v1844_v46  ;;  %v2935_v46 = vld [vmem:[%s6105_s1 + $0xbb8] sm:$0xff]  ;;  %v2934_v47 = vld [vmem:[%s6105_s1 + $0xbb0] sm:$0xff] }
 0x15f   : > { %4082 = vmatprep.subr.mxu1 %v4313_v2  ;;  %4087 = vmatprep.subr.mxu0 %v4313_v2 }
 0x160   : > { %4083 = vmatpush3.msra.mxu1 %v2862_v49  ;;  %4084 = vmatprep.mubr.msk.f32.mxu1 %vm4314_vm0, %v4313_v2  ;;  %v2933_v49 = vld [vmem:[%s6105_s1 + $0xba8] sm:$0xff] }
 0x161   : > { %4088 = vmatpush3.msra.mxu0 %v2894_v50  ;;  %4085 = vmatmul.mubr.f32.vlgmr.msra.gmra.mxu1 %v1934_v48  ;;  %v2916_v48 = vld [vmem:[%s6105_s1 + $0xb20] sm:$0xff] }
 0x162   : > { %4089 = vmatprep.subr.mxu0 %v4313_v2  ;;  %4122 = vmatprep.subr.mxu1 %v4313_v2 }
 0x163   : > { %4090 = vmatpush3.msra.mxu0 %v2893_v32  ;;  %4123 = vmatpush3.msra.mxu1 %v2911_v51  ;;  %v2915_v51 = vld [vmem:[%s6105_s1 + $0xb18] sm:$0xff] }
 0x164   : > { %4091 = vmatprep.subr.mxu0 %v4313_v2  ;;  %4124 = vmatprep.subr.mxu1 %v4313_v2 }
 0x165   : > { %4092 = vmatpush3.msra.mxu0 %v2892_v52  ;;  %4125 = vmatpush3.msra.mxu1 %v2910_v53  ;;  %v2932_v52 = vld [vmem:[%s6105_s1 + $0xba0] sm:$0xff] }
 0x166   : > { %4093 = vmatprep.subr.mxu0 %v4313_v2  ;;  %4126 = vmatprep.subr.mxu1 %v4313_v2 }
 0x167   : > { %4094 = vmatpush3.msra.mxu0 %v2891_v54  ;;  %4127 = vmatpush3.msra.mxu1 %v2909_v55  ;;  %v2914_v55 = vld [vmem:[%s6105_s1 + $0xb10] sm:$0xff] }
 0x168   : > { %4095 = vmatprep.subr.mxu0 %v4313_v2  ;;  %4128 = vmatprep.subr.mxu1 %v4313_v2 }
 0x169   : > { %4096 = vmatpush3.msra.mxu0 %v2890_v56  ;;  %4129 = vmatpush3.msra.mxu1 %v2908_v57  ;;  %v2931_v56 = vld [vmem:[%s6105_s1 + $0xb98] sm:$0xff] }
 0x16a   : > { %4097 = vmatprep.subr.mxu0 %v4313_v2  ;;  %4130 = vmatprep.subr.mxu1 %v4313_v2 }
 0x16b   : > { %4098 = vmatpush3.msra.mxu0 %v2889_v58  ;;  %4131 = vmatpush3.msra.mxu1 %v2907_v59  ;;  %v2913_v59 = vld [vmem:[%s6105_s1 + $0xb08] sm:$0xff] }
 0x16c   : > { %4099 = vmatprep.subr.mxu0 %v4313_v2  ;;  %4132 = vmatprep.subr.mxu1 %v4313_v2 }
 0x16d   : > { %4100 = vmatpush3.msra.mxu0 %v2888_v60  ;;  %4133 = vmatpush3.msra.mxu1 %v2906_v61  ;;  %v2930_v60 = vld [vmem:[%s6105_s1 + $0xb90] sm:$0xff]  ;;  %v2209_v61 = vrot.slane %v5866_v24, 1 }
 0x16e   : > { %4101 = vmatprep.subr.mxu0 %v4313_v2  ;;  %4134 = vmatprep.subr.mxu1 %v4313_v2 }
 0x16f   : > { %4102 = vmatpush3.msra.mxu0 %v2887_v62  ;;  %4135 = vmatpush3.msra.mxu1 %v2905_v63  ;;  %v2912_v62 = vld [vmem:[%s6105_s1 + $0xb00] sm:$0xff]  ;;  %v2929_v63 = vld [vmem:[%s6105_s1 + $0xb88] sm:$0xff] }
 0x170   : > { %4103 = vmatprep.subr.mxu0 %v4313_v2  ;;  %4136 = vmatprep.subr.mxu1 %v4313_v2 }
 0x171   : > { %4104 = vmatpush3.msra.mxu0 %v2886_v0  ;;  %4137 = vmatpush3.msra.mxu1 %v2904_v1  ;;  %v2300_v0 = vrot.slane %v5880_v27, 1  ;;  %v2928_v1 = vld [vmem:[%s6105_s1 + $0xb80] sm:$0xff] }
 0x172   : > { %4105 = vmatprep.subr.mxu0 %v4313_v2  ;;  %4138 = vmatprep.subr.mxu1 %v4313_v2 }
 0x173   : > { %4106 = vmatpush3.msra.mxu0 %v2885_v3  ;;  %4139 = vmatpush3.msra.mxu1 %v2903_v4  ;;  %v2959_v3 = vld [vmem:[%s6105_s1 + $0xc78] sm:$0xff]  ;;  %v2958_v4 = vld [vmem:[%s6105_s1 + $0xc70] sm:$0xff] }
 0x174   : > { %4107 = vmatprep.subr.mxu0 %v4313_v2  ;;  %4140 = vmatprep.subr.mxu1 %v4313_v2  ;;  %v1000_v9 = vpop.f32.mrf.mxu0 }
 0x175   : > { %4108 = vmatpush3.msra.mxu0 %v2884_v5  ;;  %4141 = vmatpush3.msra.mxu1 %v2902_v6  ;;  %v1004_v10 = vadd.f32 %v1000_v9, %v5710_v42  ;;  %v2937_v42 = vld [vmem:[%s6105_s1 + $0xbc8] sm:$0xff]  ;;  %v2956_v6 = vld [vmem:[%s6105_s1 + $0xc60] sm:$0xff] }
 0x176   : > { %4109 = vmatprep.subr.mxu0 %v4313_v2  ;;  %4142 = vmatprep.subr.mxu1 %v4313_v2  ;;  %v3701_v14 = vpop.f32.mrf.mxu0  ;;  %v2957_v5 = vld [vmem:[%s6105_s1 + $0xc68] sm:$0xff] }
 0x177   : > { %4110 = vmatpush3.msra.mxu0 %v2883_v7  ;;  %4143 = vmatpush3.msra.mxu1 %v2901_v8  ;;  %v1090_v15 = vpop.f32.mrf.mxu1  ;;  %v2955_v7 = vld [vmem:[%s6105_s1 + $0xc58] sm:$0xff]  ;;  %v2954_v8 = vld [vmem:[%s6105_s1 + $0xc50] sm:$0xff]  ;;  %v2953_v9 = vld [vmem:[%s6105_s1 + $0xc48] sm:$0xff] }
 0x178   : > { %4111 = vmatprep.subr.mxu0 %v4313_v2  ;;  %4144 = vmatprep.subr.mxu1 %v4313_v2  ;;  %v5847_v18 = vadd.f32 %v1090_v15, %v1004_v10  ;;  %v2952_v10 = vld [vmem:[%s6105_s1 + $0xc40] sm:$0xff]  ;;  %v2949_v14 = vld [vmem:[%s6105_s1 + $0xc28] sm:$0xff] }
 0x179   : > { %4112 = vmatpush3.msra.mxu0 %v2882_v11  ;;  %4145 = vmatpush3.msra.mxu1 %v2900_v12  ;;  %v3736_v19 = vpop.f32.mrf.mxu1  ;;  %v2951_v11 = vld [vmem:[%s6105_s1 + $0xc38] sm:$0xff]  ;;  %v2950_v12 = vld [vmem:[%s6105_s1 + $0xc30] sm:$0xff]  ;;  %v2948_v15 = vld [vmem:[%s6105_s1 + $0xc20] sm:$0xff] }
 0x17a   : > { %4113 = vmatprep.subr.mxu0 %v4313_v2  ;;  %4146 = vmatprep.subr.mxu1 %v4313_v2 }
 0x17b   : > { %4114 = vmatpush3.msra.mxu0 %v2881_v16  ;;  %4147 = vmatpush3.msra.mxu1 %v2899_v17 }
 0x17c   : > { %4115 = vmatprep.subr.mxu0 %v4313_v2  ;;  %4148 = vmatprep.subr.mxu1 %v4313_v2 }
 0x17d   : > { %4116 = vmatpush3.msra.mxu0 %v2880_v20  ;;  %4149 = vmatpush3.msra.mxu1 %v2898_v21  ;;  %v2946_v21 = vld [vmem:[%s6105_s1 + $0xc10] sm:$0xff] }
 0x17e   : > { %4117 = vmatprep.subr.mxu0 %v4313_v2  ;;  %4150 = vmatprep.subr.mxu1 %v4313_v2 }
 0x17f   : > { %4118 = vmatpush3.msra.mxu0 %v2879_v22  ;;  %4119 = vmatprep.mubr.msk.f32.mxu0 %vm4314_vm0, %v4313_v2 }
 0x180   : > { %4151 = vmatpush3.msra.mxu1 %v2897_v23  ;;  %4120 = vmatmul.mubr.f32.vlgmr.msra.gmra.mxu0 %v5866_v24 }
 0x181   : > { %4152 = vmatprep.subr.mxu1 %v4313_v2  ;;  %4157 = vmatprep.subr.mxu0 %v4313_v2 }
 0x182   : > { %4153 = vmatpush3.msra.mxu1 %v2896_v25  ;;  %4154 = vmatprep.mubr.msk.f32.mxu1 %vm4314_vm0, %v4313_v2  ;;  %v2945_v25 = vld [vmem:[%s6105_s1 + $0xc08] sm:$0xff] }
 0x183   : > { %4158 = vmatpush3.msra.mxu0 %v2927_v26  ;;  %4155 = vmatmul.mubr.f32.vlgmr.msra.gmra.mxu1 %v5880_v27  ;;  %v2390_v26 = vrot.slane %v5866_v24, 2  ;;  %v2944_v27 = vld [vmem:[%s6105_s1 + $0xc00] sm:$0xff] }
 0x184   : > { %4159 = vmatprep.subr.mxu0 %v4313_v2  ;;  %4192 = vmatprep.subr.mxu1 %v4313_v2 }
 0x185   : > { %4160 = vmatpush3.msra.mxu0 %v2926_v28  ;;  %4193 = vmatpush3.msra.mxu1 %v2943_v29 }
 0x186   : > { %4161 = vmatprep.subr.mxu0 %v4313_v2  ;;  %4194 = vmatprep.subr.mxu1 %v4313_v2 }
 0x187   : > { %4162 = vmatpush3.msra.mxu0 %v2925_v30  ;;  %4195 = vmatpush3.msra.mxu1 %v2942_v13 }
 0x188   : > { %4163 = vmatprep.subr.mxu0 %v4313_v2  ;;  %4196 = vmatprep.subr.mxu1 %v4313_v2 }
 0x189   : > { %4164 = vmatpush3.msra.mxu0 %v2924_v31  ;;  %4197 = vmatpush3.msra.mxu1 %v2941_v33 }
 0x18a   : > { %4165 = vmatprep.subr.mxu0 %v4313_v2  ;;  %4198 = vmatprep.subr.mxu1 %v4313_v2 }
 0x18b   : > { %4166 = vmatpush3.msra.mxu0 %v2923_v35  ;;  %4199 = vmatpush3.msra.mxu1 %v2940_v36 }
 0x18c   : > { %4167 = vmatprep.subr.mxu0 %v4313_v2  ;;  %4200 = vmatprep.subr.mxu1 %v4313_v2 }
 0x18d   : > { %4168 = vmatpush3.msra.mxu0 %v2922_v37  ;;  %4201 = vmatpush3.msra.mxu1 %v2939_v38 }
 0x18e   : > { %4169 = vmatprep.subr.mxu0 %v4313_v2  ;;  %4202 = vmatprep.subr.mxu1 %v4313_v2 }
 0x18f   : > { %4170 = vmatpush3.msra.mxu0 %v2921_v34  ;;  %4203 = vmatpush3.msra.mxu1 %v2938_v39 }
 0x190   : > { %4171 = vmatprep.subr.mxu0 %v4313_v2  ;;  %4204 = vmatprep.subr.mxu1 %v4313_v2 }
 0x191   : > { %4172 = vmatpush3.msra.mxu0 %v2920_v41  ;;  %4205 = vmatpush3.msra.mxu1 %v2937_v42 }
 0x192   : > { %4173 = vmatprep.subr.mxu0 %v4313_v2  ;;  %4206 = vmatprep.subr.mxu1 %v4313_v2 }
 0x193   : > { %4174 = vmatpush3.msra.mxu0 %v2919_v43  ;;  %4207 = vmatpush3.msra.mxu1 %v2936_v44 }
 0x194   : > { %4175 = vmatprep.subr.mxu0 %v4313_v2  ;;  %4208 = vmatprep.subr.mxu1 %v4313_v2 }
 0x195   : > { %4176 = vmatpush3.msra.mxu0 %v2918_v45  ;;  %4209 = vmatpush3.msra.mxu1 %v2935_v46 }
 0x196   : > { %4177 = vmatprep.subr.mxu0 %v4313_v2  ;;  %4210 = vmatprep.subr.mxu1 %v4313_v2  ;;  %v1182_v50 = vpop.f32.mrf.mxu0 }
 0x197   : > { %4178 = vmatpush3.msra.mxu0 %v2917_v40  ;;  %4211 = vmatpush3.msra.mxu1 %v2934_v47  ;;  %v1186_v32 = vadd.f32 %v1182_v50, %v5847_v18  ;;  %v2947_v18 = vld [vmem:[%s6105_s1 + $0xc18] sm:$0xff] }
 0x198   : > { %4179 = vmatprep.subr.mxu0 %v4313_v2  ;;  %4212 = vmatprep.subr.mxu1 %v4313_v2  ;;  %v3771_v53 = vpop.f32.mrf.mxu0 }
 0x199   : > { %4180 = vmatpush3.msra.mxu0 %v2916_v48  ;;  %4213 = vmatpush3.msra.mxu1 %v2933_v49  ;;  %v1274_v54 = vpop.f32.mrf.mxu1 }
 0x19a   : > { %4181 = vmatprep.subr.mxu0 %v4313_v2  ;;  %4214 = vmatprep.subr.mxu1 %v4313_v2  ;;  %v5990_v57 = vadd.f32 %v1274_v54, %v1186_v32 }
 0x19b   : > { %4182 = vmatpush3.msra.mxu0 %v2915_v51  ;;  %4215 = vmatpush3.msra.mxu1 %v2932_v52  ;;  %v3806_v58 = vpop.f32.mrf.mxu1 }
 0x19c   : > { %4183 = vmatprep.subr.mxu0 %v4313_v2  ;;  %4216 = vmatprep.subr.mxu1 %v4313_v2 }
 0x19d   : > { %4184 = vmatpush3.msra.mxu0 %v2914_v55  ;;  %4217 = vmatpush3.msra.mxu1 %v2931_v56  ;;  %v2463_v56 = vld [vmem:[%s6106_s2] sm:$0x1] }
 0x19e   : > { %4185 = vmatprep.subr.mxu0 %v4313_v2  ;;  %4218 = vmatprep.subr.mxu1 %v4313_v2 }
 0x19f   : > { %4186 = vmatpush3.msra.mxu0 %v2913_v59  ;;  %4219 = vmatpush3.msra.mxu1 %v2930_v60 }
 0x1a0   : > { %4187 = vmatprep.subr.mxu0 %v4313_v2  ;;  %4220 = vmatprep.subr.mxu1 %v4313_v2 }
 0x1a1   : > { %4188 = vmatpush3.msra.mxu0 %v2912_v62  ;;  %4189 = vmatprep.mubr.msk.f32.mxu0 %vm4314_vm0, %v4313_v2 }
 0x1a2   : > { %4221 = vmatpush3.msra.mxu1 %v2929_v63  ;;  %4190 = vmatmul.mubr.f32.vlgmr.msra.gmra.mxu0 %v2209_v61 }
 0x1a3   : > { %4222 = vmatprep.subr.mxu1 %v4313_v2  ;;  %4227 = vmatprep.subr.mxu0 %v4313_v2 }
 0x1a4   : > { %4223 = vmatpush3.msra.mxu1 %v2928_v1  ;;  %4224 = vmatprep.mubr.msk.f32.mxu1 %vm4314_vm0, %v4313_v2 }
 0x1a5   : > { %4228 = vmatpush3.msra.mxu0 %v2959_v3  ;;  %4225 = vmatmul.mubr.f32.vlgmr.msra.gmra.mxu1 %v2300_v0 }
 0x1a6   : > { %4229 = vmatprep.subr.mxu0 %v4313_v2  ;;  %4259 = vmatprep.mubr.msk.f32.mxu0 %vm4314_vm0, %v4313_v2 }
 0x1a7   : > { %4230 = vmatpush3.msra.mxu0 %v2958_v4 }
 0x1a8   : > { %4231 = vmatprep.subr.mxu0 %v4313_v2 }
 0x1a9   : > { %4232 = vmatpush3.msra.mxu0 %v2957_v5 }
 0x1aa   : > { %4233 = vmatprep.subr.mxu0 %v4313_v2 }
 0x1ab   : > { %4234 = vmatpush3.msra.mxu0 %v2956_v6 }
 0x1ac   : > { %4235 = vmatprep.subr.mxu0 %v4313_v2 }
 0x1ad   : > { %4236 = vmatpush3.msra.mxu0 %v2955_v7 }
 0x1ae   : > { %4237 = vmatprep.subr.mxu0 %v4313_v2 }
 0x1af   : > { %4238 = vmatpush3.msra.mxu0 %v2954_v8 }
 0x1b0   : > { %4239 = vmatprep.subr.mxu0 %v4313_v2 }
 0x1b1   : > { %4240 = vmatpush3.msra.mxu0 %v2953_v9 }
 0x1b2   : > { %4241 = vmatprep.subr.mxu0 %v4313_v2 }
 0x1b3   : > { %4242 = vmatpush3.msra.mxu0 %v2952_v10 }
 0x1b4   : > { %4243 = vmatprep.subr.mxu0 %v4313_v2 }
 0x1b5   : > { %4244 = vmatpush3.msra.mxu0 %v2951_v11 }
 0x1b6   : > { %4245 = vmatprep.subr.mxu0 %v4313_v2 }
 0x1b7   : > { %4246 = vmatpush3.msra.mxu0 %v2950_v12 }
 0x1b8   : > { %4247 = vmatprep.subr.mxu0 %v4313_v2  ;;  %v1365_v16 = vpop.f32.mrf.mxu0 }
 0x1b9   : > { %4248 = vmatpush3.msra.mxu0 %v2949_v14  ;;  %v1369_v17 = vadd.f32 %v1365_v16, %v5990_v57 }
 0x1ba   : > { %4249 = vmatprep.subr.mxu0 %v4313_v2  ;;  %v3841_v19 = vpop.f32.mrf.mxu0 }
 0x1bb   : > { %4250 = vmatpush3.msra.mxu0 %v2948_v15  ;;  %v1456_v20 = vpop.f32.mrf.mxu1 }
 0x1bc   : > { %4251 = vmatprep.subr.mxu0 %v4313_v2  ;;  %v1460_v22 = vadd.f32 %v1456_v20, %v1369_v17 }
 0x1bd   : > { %4252 = vmatpush3.msra.mxu0 %v2947_v18  ;;  %v3876_v23 = vpop.f32.mrf.mxu1 }
 0x1be   : > { %4253 = vmatprep.subr.mxu0 %v4313_v2 }
 0x1bf   : > { %4254 = vmatpush3.msra.mxu0 %v2946_v21 }
 0x1c0   : > { %4255 = vmatprep.subr.mxu0 %v4313_v2 }
 0x1c1   : > { %4256 = vmatpush3.msra.mxu0 %v2945_v25 }
 0x1c2   : > { %4257 = vmatprep.subr.mxu0 %v4313_v2 }
 0x1c3   : > { %4258 = vmatpush3.msra.mxu0 %v2944_v27 }
 0x1c4   : > { %4260 = vmatmul.mubr.f32.vlgmr.msra.gmra.mxu0 %v2390_v26 }
 0x1da   : > { %v1546_v28 = vpop.f32.mrf.mxu0 }
 0x1db   : > { %v1550_v29 = vadd.f32 %v1546_v28, %v1460_v22 }
 0x1dc   : > { %v3911_v30 = vpop.f32.mrf.mxu0 }
 0x1dd   : > { %v1638_v13 = vpop.f32.mrf.mxu1 }
 0x1de   : > { %v1642_v31 = vadd.f32 %v1638_v13, %v1550_v29 }
 0x1df   : > { %v3946_v33 = vpop.f32.mrf.mxu1 }
 0x1fc   : > { %v1730_v35 = vpop.f32.mrf.mxu0 }
 0x1fd   : > { %v1734_v36 = vadd.f32 %v1730_v35, %v1642_v31 }
 0x1fe   : > { %v3981_v24 = vpop.f32.mrf.mxu0 }
 0x1ff   : > { %v1821_v37 = vpop.f32.mrf.mxu1 }
 0x200   : > { %v1825_v38 = vadd.f32 %v1821_v37, %v1734_v36 }
 0x201   : > { %v4016_v34 = vpop.f32.mrf.mxu1 }
 0x21e   : > { %v1912_v39 = vpop.f32.mrf.mxu0 }
 0x21f   : > { %v1916_v41 = vadd.f32 %v1912_v39, %v1825_v38 }
 0x220   : > { %v4051_v42 = vpop.f32.mrf.mxu0 }
 0x221   : > { %v2002_v43 = vpop.f32.mrf.mxu1 }
 0x222   : > { %v2006_v44 = vadd.f32 %v2002_v43, %v1916_v41 }
 0x223   : > { %v4086_v2 = vpop.f32.mrf.mxu1 }
 0x240   : > { %v2094_v45 = vpop.f32.mrf.mxu0 }
 0x241   : > { %v2098_v51 = vadd.f32 %v2094_v45, %v2006_v44 }
 0x242   : > { %v4121_v46 = vpop.f32.mrf.mxu0 }
 0x243   : > { %v2186_v40 = vpop.f32.mrf.mxu1 }
 0x244   : > { %v2190_v52 = vadd.f32 %v2186_v40, %v2098_v51 }
 0x245   : > { %v4156_v47 = vpop.f32.mrf.mxu1 }
 0x262   : > { %v2277_v48 = vpop.f32.mrf.mxu0 }
 0x263   : > { %v2281_v53 = vadd.f32 %v2277_v48, %v2190_v52 }
 0x264   : > { %v4191_v49 = vpop.f32.mrf.mxu0 }
 0x265   : > { %v2368_v50 = vpop.f32.mrf.mxu1 }
 0x266   : > { %v2372_v54 = vadd.f32 %v2368_v50, %v2281_v53 }
 0x267   : > { %v4226_v32 = vpop.f32.mrf.mxu1 }
 0x284   : > { %v2458_v55 = vpop.f32.mrf.mxu0 }
 0x285   : > { %v2462_v57 = vadd.f32 %v2458_v55, %v2372_v54 }
 0x286   : > { %v4261_v58 = vpop.f32.mrf.mxu0 }
 0x287   : > { %v2464_v59 = vadd.f32 %v2463_v56, %v2462_v57 }
 0x289   : > { %v2465_v60 = vmax.f32 %v2464_v59, 0.0 }
 0x28b   : > { %2466 = vst [vmem:[%s186_s24] sm:$0x1] %v2465_v60 }
 0x28c PF: > { %s13_s14 = sadd.s32 1, %s4311_s14   ;;  %s6108_s12 = smov %s4307_s13 }
 0x28d   : > { %p10_p5 = scmp.ge.s32.totalorder %s13_s14, 4   ;;  %s6109_s13 = smov %s6111_s15 }
 0x28f   :  { %12 = sbr.rel (!%p10_p5) target bundleno = 2 (0x2), region = 96 }

</bundles_post_ra>
